<compile_context>
chip_gen: v6e
topology: v6e:2x2x1
jax: 0.10.0
libtpu: 0.0.40
codegen_flags: <defaults>
</compile_context>

<pallas_src>
import math
import functools

import jax
import jax.numpy as jnp
from jax.experimental import pallas as pl
from jax.experimental.pallas import tpu as pltpu

PAD_IDX = 0
EOS_IDX = 1


# --------------------------------------------------------------------------- #
# Pallas kernel: transformer encoder stack + masked sum + relu + e_proj       #
# (operates on a block of TB batch elements per grid step)                    #
# --------------------------------------------------------------------------- #
def _revdict_kernel(n_layers, n_head,
                    x_ref, pad_ref, sum_ref,
                    in_w_ref, in_b_ref, out_w_ref, out_b_ref,
                    ln1_w_ref, ln1_b_ref,
                    lin1_w_ref, lin1_b_ref, lin2_w_ref, lin2_b_ref,
                    ln2_w_ref, ln2_b_ref,
                    eproj_w_ref, eproj_b_ref,
                    o_ref):
    TB, S, D = x_ref.shape
    N = TB * S
    H = n_head
    HD = D // H
    scale = 1.0 / math.sqrt(HD)

    # Flattened (TB*S, D) activation slab: all projection / FFN matmuls are fused
    # across the whole batch block (rows are independent for those ops).
    x2 = x_ref[...].reshape(N, D)
    attn_bias = pad_ref[...] * (-1e9)                    # (TB, 1, S) additive key mask

    def layer_norm(v, w, b):
        mu = jnp.mean(v, axis=-1, keepdims=True)
        var = jnp.mean((v - mu) ** 2, axis=-1, keepdims=True)
        return (v - mu) * jax.lax.rsqrt(var + 1e-5) * w + b

    # Static unroll over layers (L is small here). For large L, switch to a layer
    # grid axis / emit_pipeline with streamed weights.
    for l in range(n_layers):
        # ---- fused QKV projection over the whole batch block ----
        qkv = jnp.dot(x2, in_w_ref[l],
                      preferred_element_type=jnp.float32) + in_b_ref[l]   # (N, 3D)
        q = qkv[:, 0:D].reshape(TB, S, D)
        k = qkv[:, D:2 * D].reshape(TB, S, D)
        v = qkv[:, 2 * D:3 * D].reshape(TB, S, D)

        ow = out_w_ref[l]                                 # (D, D)
        attn = None
        for h in range(H):                                # static unroll over heads
            sl = slice(h * HD, (h + 1) * HD)
            # batched over TB in one dot_general (single batch dim, flash-style)
            sc = jnp.einsum('bqd,bkd->bqk', q[:, :, sl], k[:, :, sl],
                            preferred_element_type=jnp.float32) * scale   # (TB,S,S)
            sc = sc + attn_bias
            sc = sc - jnp.max(sc, axis=-1, keepdims=True)
            p = jnp.exp(sc)
            p = p * pl.reciprocal(jnp.sum(p, axis=-1, keepdims=True), approx=True)
            ctx = jnp.einsum('bqk,bkd->bqd', p, v[:, :, sl],
                             preferred_element_type=jnp.float32)          # (TB,S,HD)
            # Fold the out-projection into per-head accumulation instead of
            # concatenating heads (removes the concat relayout entirely).
            part = jnp.dot(ctx.reshape(N, HD), ow[sl, :],
                           preferred_element_type=jnp.float32)            # (N, D)
            attn = part if attn is None else attn + part
        attn = attn + out_b_ref[l]

        x2 = layer_norm(x2 + attn, ln1_w_ref[l], ln1_b_ref[l])

        # ---- feed-forward: relu(x W1 + b1) W2 + b2, fused over (N, D) ----
        ff = jnp.dot(x2, lin1_w_ref[l],
                     preferred_element_type=jnp.float32) + lin1_b_ref[l]
        ff = jnp.maximum(ff, 0.0)
        ff = jnp.dot(ff, lin2_w_ref[l],
                     preferred_element_type=jnp.float32) + lin2_b_ref[l]

        x2 = layer_norm(x2 + ff, ln2_w_ref[l], ln2_b_ref[l])

    # ---- masked_fill(pad, 0).sum(dim=0) via one block-diagonal matmul ----
    g = sum_ref[0]                                        # (TB, TB*S) keep matrix
    summed = jnp.dot(g, x2, preferred_element_type=jnp.float32)   # (TB, D)
    summed = jnp.maximum(summed, 0.0)
    out = jnp.dot(summed, eproj_w_ref[...],
                  preferred_element_type=jnp.float32) + eproj_b_ref[...]  # (TB, Dpad)
    o_ref[...] = out                                      # lane-dense (TB, Dpad) store


# --------------------------------------------------------------------------- #
# Wrapper / glue                                                              #
# --------------------------------------------------------------------------- #
def make_positional_encoding(max_len, d_model):
    position = jnp.arange(max_len, dtype=jnp.float32)[:, None]
    div_term = jnp.exp(jnp.arange(0, d_model, 2, dtype=jnp.float32)
                       * (-math.log(10000.0) / d_model))
    pe = jnp.zeros((max_len, d_model), jnp.float32)
    pe = pe.at[:, 0::2].set(jnp.sin(position * div_term))
    pe = pe.at[:, 1::2].set(jnp.cos(position * div_term))
    return pe


def init_params(seed, vocab_size, d_model, n_layers, maxlen):
    D = d_model
    dff = 2 * D
    keys = iter(jax.random.split(jax.random.PRNGKey(seed), 2 + 4 * n_layers))

    def xavier_t(k, out_dim, in_dim):
        # torch xavier_uniform_ on a (out, in) weight; stored transposed (in, out)
        bound = math.sqrt(6.0 / (in_dim + out_dim))
        w = jax.random.uniform(k, (out_dim, in_dim), jnp.float32, -bound, bound)
        return w.T

    params = {}
    emb_bound = math.sqrt(6.0 / (vocab_size + D))
    params["embedding"] = jax.random.uniform(next(keys), (vocab_size, D),
                                             jnp.float32, -emb_bound, emb_bound)
    params["pe"] = make_positional_encoding(maxlen, D)

    in_w, out_w, lin1_w, lin2_w = [], [], [], []
    for _ in range(n_layers):
        in_w.append(xavier_t(next(keys), 3 * D, D))
        out_w.append(xavier_t(next(keys), D, D))
        lin1_w.append(xavier_t(next(keys), dff, D))
        lin2_w.append(xavier_t(next(keys), D, dff))
    params["in_w"] = jnp.stack(in_w)                              # (L, D, 3D)
    params["in_b"] = jnp.zeros((n_layers, 1, 3 * D), jnp.float32)
    params["out_w"] = jnp.stack(out_w)                            # (L, D, D)
    params["out_b"] = jnp.zeros((n_layers, 1, D), jnp.float32)
    params["lin1_w"] = jnp.stack(lin1_w)                          # (L, D, 2D)
    params["lin1_b"] = jnp.zeros((n_layers, 1, dff), jnp.float32)
    params["lin2_w"] = jnp.stack(lin2_w)                          # (L, 2D, D)
    params["lin2_b"] = jnp.zeros((n_layers, 1, D), jnp.float32)
    params["ln1_w"] = jnp.ones((n_layers, 1, D), jnp.float32)
    params["ln1_b"] = jnp.zeros((n_layers, 1, D), jnp.float32)
    params["ln2_w"] = jnp.ones((n_layers, 1, D), jnp.float32)
    params["ln2_b"] = jnp.zeros((n_layers, 1, D), jnp.float32)
    params["eproj_w"] = xavier_t(next(keys), D, D)                # (D, D)
    params["eproj_b"] = jnp.zeros((1, D), jnp.float32)
    return params


def revdict_forward(gloss_tensor, params, n_layers, n_head, block_b=8):
    # gloss_tensor: (S, B) int32, seq-first, same convention as the PyTorch model.
    S, B = gloss_tensor.shape
    D = params["embedding"].shape[1]
    L = n_layers
    TB = block_b
    assert TB % 8 == 0, "block_b must be a multiple of 8 (sublane tiling of output)"
    B_pad = ((B + TB - 1) // TB) * TB
    NB = B_pad // TB
    N = TB * S

    # Only the tiny (S,B) id tensor is transposed -- no (B,S,D) HBM transpose.
    ids = gloss_tensor.T                                          # (B, S)
    if B_pad != B:
        ids = jnp.pad(ids, ((0, B_pad - B), (0, 0)), constant_values=PAD_IDX)

    embs = jnp.take(params["embedding"], ids, axis=0)             # (B_pad, S, D)
    x = (embs + params["pe"][:S][None, :, :]).astype(jnp.float32)
    # dropout layers are identity in eval mode

    padf = (ids == PAD_IDX).astype(jnp.float32)                   # (B_pad, S)
    pad_bias_in = padf[:, None, :]                                # (B_pad, 1, S)

    # Block-diagonal keep matrix: summed[b] = sum_s keep[b,s] * x[b,s] becomes
    # one (TB, TB*S) @ (TB*S, D) matmul inside the kernel.
    keep = (1.0 - padf).reshape(NB, TB, S)
    eye = jnp.eye(TB, dtype=jnp.float32)
    sum_mat = (keep[:, :, None, :] * eye[None, :, :, None]).reshape(NB, TB, N)

    # Lane-dense output: pad e_proj output features to a multiple of 128.
    D_out = ((D + 127) // 128) * 128
    eproj_w = jnp.pad(params["eproj_w"], ((0, 0), (0, D_out - D)))
    eproj_b = jnp.pad(params["eproj_b"], ((0, 0), (0, D_out - D)))

    kernel = functools.partial(_revdict_kernel, n_layers, n_head)

    def full(shape):
        nd = len(shape)
        return pl.BlockSpec(shape, lambda i, _n=nd: (0,) * _n)

    in_specs = [
        pl.BlockSpec((TB, S, D), lambda i: (i, 0, 0)),            # x (batch block)
        pl.BlockSpec((TB, 1, S), lambda i: (i, 0, 0)),            # pad mask
        pl.BlockSpec((1, TB, N), lambda i: (i, 0, 0)),            # keep sum matrix
        full((L, D, 3 * D)), full((L, 1, 3 * D)),                 # in_proj
        full((L, D, D)), full((L, 1, D)),                         # out_proj
        full((L, 1, D)), full((L, 1, D)),                         # norm1
        full((L, D, 2 * D)), full((L, 1, 2 * D)),                 # linear1
        full((L, 2 * D, D)), full((L, 1, D)),                     # linear2
        full((L, 1, D)), full((L, 1, D)),                         # norm2
        full((D, D_out)), full((1, D_out)),                       # e_proj (lane-padded)
    ]

    out = pl.pallas_call(
        kernel,
        out_shape=jax.ShapeDtypeStruct((B_pad, D_out), jnp.float32),
        grid=(NB,),
        in_specs=in_specs,
        out_specs=pl.BlockSpec((TB, D_out), lambda i: (i, 0)),
        compiler_params=pltpu.CompilerParams(
            dimension_semantics=("parallel",),          # batch blocks independent
            vmem_limit_bytes=64 * 1024 * 1024),
    )(x, pad_bias_in, sum_mat,
      params["in_w"], params["in_b"], params["out_w"], params["out_b"],
      params["ln1_w"], params["ln1_b"],
      params["lin1_w"], params["lin1_b"], params["lin2_w"], params["lin2_b"],
      params["ln2_w"], params["ln2_b"],
      eproj_w, eproj_b)
    return out[:B, :D]


if __name__ == "__main__":
    vocab_size = 50
    d_model = 32
    n_head = 4
    n_layers = 2
    maxlen = 64
    S, B = 8, 16

    params = init_params(0, vocab_size, d_model, n_layers, maxlen)

    key = jax.random.PRNGKey(0)
    gloss = jax.random.randint(key, (S, B), 2, vocab_size, dtype=jnp.int32)
    # put PAD tokens at the tail of some sequences (seq-first layout)
    gloss = gloss.at[6:, 0].set(PAD_IDX)
    gloss = gloss.at[7:, 1].set(PAD_IDX)
    gloss = gloss.at[5:, 5].set(PAD_IDX)

    out = revdict_forward(gloss, params, n_layers, n_head, block_b=8)
    out = jax.block_until_ready(out)

    assert out.shape == (B, d_model)
    assert bool(jnp.all(jnp.isfinite(out)))
    print("KERNEL_OK")
</pallas_src>

<mosaic_0001>
module attributes {stable_mosaic.version = 11 : i64} {
  func.func @_revdict_kernel(%arg0: i32, %arg1: memref<8x8x32xf32, #tpu.memory_space<vmem>>, %arg2: memref<8x1x8xf32, #tpu.memory_space<vmem>>, %arg3: memref<1x8x64xf32, #tpu.memory_space<vmem>>, %arg4: memref<2x32x96xf32, #tpu.memory_space<vmem>>, %arg5: memref<2x1x96xf32, #tpu.memory_space<vmem>>, %arg6: memref<2x32x32xf32, #tpu.memory_space<vmem>>, %arg7: memref<2x1x32xf32, #tpu.memory_space<vmem>>, %arg8: memref<2x1x32xf32, #tpu.memory_space<vmem>>, %arg9: memref<2x1x32xf32, #tpu.memory_space<vmem>>, %arg10: memref<2x32x64xf32, #tpu.memory_space<vmem>>, %arg11: memref<2x1x64xf32, #tpu.memory_space<vmem>>, %arg12: memref<2x64x32xf32, #tpu.memory_space<vmem>>, %arg13: memref<2x1x32xf32, #tpu.memory_space<vmem>>, %arg14: memref<2x1x32xf32, #tpu.memory_space<vmem>>, %arg15: memref<2x1x32xf32, #tpu.memory_space<vmem>>, %arg16: memref<32x128xf32, #tpu.memory_space<vmem>>, %arg17: memref<1x128xf32, #tpu.memory_space<vmem>>, %arg18: memref<8x128xf32, #tpu.memory_space<vmem>>) attributes {dimension_semantics = [#tpu.dimension_semantics<parallel>], iteration_bounds = array<i64: 2>, scalar_prefetch = 0 : i64, scratch_operands = 0 : i64, tpu.core_type = #tpu.core_type<tc>, window_params = [{transform_indices = @transform_0, window_bounds = array<i64: 8, 8, 32>}, {transform_indices = @transform_1, window_bounds = array<i64: 8, 1, 8>}, {transform_indices = @transform_2, window_bounds = array<i64: 1, 8, 64>}, {pipeline_mode = #tpu.pipeline_mode<synchronous>, transform_indices = @transform_3, window_bounds = array<i64: 2, 32, 96>}, {pipeline_mode = #tpu.pipeline_mode<synchronous>, transform_indices = @transform_4, window_bounds = array<i64: 2, 1, 96>}, {pipeline_mode = #tpu.pipeline_mode<synchronous>, transform_indices = @transform_5, window_bounds = array<i64: 2, 32, 32>}, {pipeline_mode = #tpu.pipeline_mode<synchronous>, transform_indices = @transform_6, window_bounds = array<i64: 2, 1, 32>}, {pipeline_mode = #tpu.pipeline_mode<synchronous>, transform_indices = @transform_7, window_bounds = array<i64: 2, 1, 32>}, {pipeline_mode = #tpu.pipeline_mode<synchronous>, transform_indices = @transform_8, window_bounds = array<i64: 2, 1, 32>}, {pipeline_mode = #tpu.pipeline_mode<synchronous>, transform_indices = @transform_9, window_bounds = array<i64: 2, 32, 64>}, {pipeline_mode = #tpu.pipeline_mode<synchronous>, transform_indices = @transform_10, window_bounds = array<i64: 2, 1, 64>}, {pipeline_mode = #tpu.pipeline_mode<synchronous>, transform_indices = @transform_11, window_bounds = array<i64: 2, 64, 32>}, {pipeline_mode = #tpu.pipeline_mode<synchronous>, transform_indices = @transform_12, window_bounds = array<i64: 2, 1, 32>}, {pipeline_mode = #tpu.pipeline_mode<synchronous>, transform_indices = @transform_13, window_bounds = array<i64: 2, 1, 32>}, {pipeline_mode = #tpu.pipeline_mode<synchronous>, transform_indices = @transform_14, window_bounds = array<i64: 2, 1, 32>}, {pipeline_mode = #tpu.pipeline_mode<synchronous>, transform_indices = @transform_15, window_bounds = array<i64: 32, 128>}, {pipeline_mode = #tpu.pipeline_mode<synchronous>, transform_indices = @transform_16, window_bounds = array<i64: 1, 128>}, {transform_indices = @transform_17, window_bounds = array<i64: 8, 128>}]} {
    %c0 = arith.constant 0 : index
    %c0_0 = arith.constant 0 : index
    %c0_1 = arith.constant 0 : index
    %0 = vector.load %arg1[%c0, %c0_0, %c0_1] : memref<8x8x32xf32, #tpu.memory_space<vmem>>, vector<8x8x32xf32>
    %1 = vector.shape_cast %0 : vector<8x8x32xf32> to vector<64x32xf32>
    %c0_2 = arith.constant 0 : index
    %c0_3 = arith.constant 0 : index
    %c0_4 = arith.constant 0 : index
    %2 = vector.load %arg2[%c0_2, %c0_3, %c0_4] : memref<8x1x8xf32, #tpu.memory_space<vmem>>, vector<8x1x8xf32>
    %cst = arith.constant -1.000000e+09 : f32
    %3 = vector.broadcast %cst : f32 to vector<8x1x8xf32>
    %4 = arith.mulf %2, %3 : vector<8x1x8xf32>
    %c0_5 = arith.constant 0 : index
    %c0_6 = arith.constant 0 : index
    %c0_7 = arith.constant 0 : index
    %5 = vector.load %arg4[%c0_5, %c0_6, %c0_7] : memref<2x32x96xf32, #tpu.memory_space<vmem>>, vector<1x32x96xf32>
    %6 = vector.shape_cast %5 : vector<1x32x96xf32> to vector<32x96xf32>
    %cst_8 = arith.constant dense<0.000000e+00> : vector<64x96xf32>
    %7 = tpu.matmul %1, %6, %cst_8 {dimension_numbers = #tpu.dot_dimension_numbers<[1], [0], [0], [1], [0, 0, 1, 1], [], []>} : vector<64x32xf32>, vector<32x96xf32>, vector<64x96xf32> -> vector<64x96xf32>
    %c0_9 = arith.constant 0 : index
    %c0_10 = arith.constant 0 : index
    %c0_11 = arith.constant 0 : index
    %8 = vector.load %arg5[%c0_9, %c0_10, %c0_11] : memref<2x1x96xf32, #tpu.memory_space<vmem>>, vector<1x1x96xf32>
    %9 = vector.shape_cast %8 : vector<1x1x96xf32> to vector<1x96xf32>
    %10 = vector.broadcast %9 : vector<1x96xf32> to vector<64x96xf32>
    %11 = arith.addf %7, %10 : vector<64x96xf32>
    %12 = vector.extract_strided_slice %11 {offsets = [0, 0], sizes = [64, 32], strides = [1, 1]} : vector<64x96xf32> to vector<64x32xf32>
    %13 = vector.shape_cast %12 : vector<64x32xf32> to vector<8x8x32xf32>
    %14 = vector.extract_strided_slice %11 {offsets = [0, 32], sizes = [64, 32], strides = [1, 1]} : vector<64x96xf32> to vector<64x32xf32>
    %15 = vector.shape_cast %14 : vector<64x32xf32> to vector<8x8x32xf32>
    %16 = vector.extract_strided_slice %11 {offsets = [0, 64], sizes = [64, 32], strides = [1, 1]} : vector<64x96xf32> to vector<64x32xf32>
    %17 = vector.shape_cast %16 : vector<64x32xf32> to vector<8x8x32xf32>
    %c0_12 = arith.constant 0 : index
    %c0_13 = arith.constant 0 : index
    %c0_14 = arith.constant 0 : index
    %18 = vector.load %arg6[%c0_12, %c0_13, %c0_14] : memref<2x32x32xf32, #tpu.memory_space<vmem>>, vector<1x32x32xf32>
    %19 = vector.shape_cast %18 : vector<1x32x32xf32> to vector<32x32xf32>
    %20 = vector.extract_strided_slice %13 {offsets = [0, 0, 0], sizes = [8, 8, 8], strides = [1, 1, 1]} : vector<8x8x32xf32> to vector<8x8x8xf32>
    %21 = vector.extract_strided_slice %15 {offsets = [0, 0, 0], sizes = [8, 8, 8], strides = [1, 1, 1]} : vector<8x8x32xf32> to vector<8x8x8xf32>
    "tpu.trace_start"() <{level = 10 : i32, message = "bqd,bkd->bqk"}> : () -> ()
    %cst_15 = arith.constant dense<0.000000e+00> : vector<8x8x8xf32>
    %22 = tpu.matmul %20, %21, %cst_15 {dimension_numbers = #tpu.dot_dimension_numbers<[2], [2], [1], [1], [0, 0, 0, 1, 1, 1], [0], [0]>} : vector<8x8x8xf32>, vector<8x8x8xf32>, vector<8x8x8xf32> -> vector<8x8x8xf32>
    "tpu.trace_stop"() : () -> ()
    %cst_16 = arith.constant 0.353553385 : f32
    %23 = vector.broadcast %cst_16 : f32 to vector<8x8x8xf32>
    %24 = arith.mulf %22, %23 : vector<8x8x8xf32>
    %25 = vector.broadcast %4 : vector<8x1x8xf32> to vector<8x8x8xf32>
    %26 = arith.addf %24, %25 : vector<8x8x8xf32>
    %cst_17 = arith.constant dense<0xFF800000> : vector<8x8xf32>
    %27 = vector.multi_reduction <maximumf>, %26, %cst_17 [2] : vector<8x8x8xf32> to vector<8x8xf32>
    %28 = vector.shape_cast %27 : vector<8x8xf32> to vector<8x8x1xf32>
    %29 = vector.broadcast %28 : vector<8x8x1xf32> to vector<8x8x8xf32>
    %30 = arith.subf %26, %29 : vector<8x8x8xf32>
    %31 = math.exp %30 : vector<8x8x8xf32>
    %cst_18 = arith.constant dense<0.000000e+00> : vector<8x8xf32>
    %32 = vector.multi_reduction <add>, %31, %cst_18 [2] : vector<8x8x8xf32> to vector<8x8xf32>
    %33 = vector.shape_cast %32 : vector<8x8xf32> to vector<8x8x1xf32>
    %34 = tpu.reciprocal %33 {approx = true} : vector<8x8x1xf32> -> vector<8x8x1xf32>
    %35 = vector.broadcast %34 : vector<8x8x1xf32> to vector<8x8x8xf32>
    %36 = arith.mulf %31, %35 : vector<8x8x8xf32>
    %37 = vector.extract_strided_slice %17 {offsets = [0, 0, 0], sizes = [8, 8, 8], strides = [1, 1, 1]} : vector<8x8x32xf32> to vector<8x8x8xf32>
    "tpu.trace_start"() <{level = 10 : i32, message = "bqk,bkd->bqd"}> : () -> ()
    %cst_19 = arith.constant dense<0.000000e+00> : vector<8x8x8xf32>
    %38 = tpu.matmul %36, %37, %cst_19 {dimension_numbers = #tpu.dot_dimension_numbers<[2], [1], [1], [2], [0, 0, 0, 1, 1, 2], [0], [0]>} : vector<8x8x8xf32>, vector<8x8x8xf32>, vector<8x8x8xf32> -> vector<8x8x8xf32>
    "tpu.trace_stop"() : () -> ()
    %39 = vector.shape_cast %38 : vector<8x8x8xf32> to vector<64x8xf32>
    %40 = vector.extract_strided_slice %19 {offsets = [0, 0], sizes = [8, 32], strides = [1, 1]} : vector<32x32xf32> to vector<8x32xf32>
    %cst_20 = arith.constant dense<0.000000e+00> : vector<64x32xf32>
    %41 = tpu.matmul %39, %40, %cst_20 {dimension_numbers = #tpu.dot_dimension_numbers<[1], [0], [0], [1], [0, 0, 1, 1], [], []>} : vector<64x8xf32>, vector<8x32xf32>, vector<64x32xf32> -> vector<64x32xf32>
    %42 = vector.extract_strided_slice %13 {offsets = [0, 0, 8], sizes = [8, 8, 8], strides = [1, 1, 1]} : vector<8x8x32xf32> to vector<8x8x8xf32>
    %43 = vector.extract_strided_slice %15 {offsets = [0, 0, 8], sizes = [8, 8, 8], strides = [1, 1, 1]} : vector<8x8x32xf32> to vector<8x8x8xf32>
    "tpu.trace_start"() <{level = 10 : i32, message = "bqd,bkd->bqk"}> : () -> ()
    %cst_21 = arith.constant dense<0.000000e+00> : vector<8x8x8xf32>
    %44 = tpu.matmul %42, %43, %cst_21 {dimension_numbers = #tpu.dot_dimension_numbers<[2], [2], [1], [1], [0, 0, 0, 1, 1, 1], [0], [0]>} : vector<8x8x8xf32>, vector<8x8x8xf32>, vector<8x8x8xf32> -> vector<8x8x8xf32>
    "tpu.trace_stop"() : () -> ()
    %cst_22 = arith.constant 0.353553385 : f32
    %45 = vector.broadcast %cst_22 : f32 to vector<8x8x8xf32>
    %46 = arith.mulf %44, %45 : vector<8x8x8xf32>
    %47 = vector.broadcast %4 : vector<8x1x8xf32> to vector<8x8x8xf32>
    %48 = arith.addf %46, %47 : vector<8x8x8xf32>
    %cst_23 = arith.constant dense<0xFF800000> : vector<8x8xf32>
    %49 = vector.multi_reduction <maximumf>, %48, %cst_23 [2] : vector<8x8x8xf32> to vector<8x8xf32>
    %50 = vector.shape_cast %49 : vector<8x8xf32> to vector<8x8x1xf32>
    %51 = vector.broadcast %50 : vector<8x8x1xf32> to vector<8x8x8xf32>
    %52 = arith.subf %48, %51 : vector<8x8x8xf32>
    %53 = math.exp %52 : vector<8x8x8xf32>
    %cst_24 = arith.constant dense<0.000000e+00> : vector<8x8xf32>
    %54 = vector.multi_reduction <add>, %53, %cst_24 [2] : vector<8x8x8xf32> to vector<8x8xf32>
    %55 = vector.shape_cast %54 : vector<8x8xf32> to vector<8x8x1xf32>
    %56 = tpu.reciprocal %55 {approx = true} : vector<8x8x1xf32> -> vector<8x8x1xf32>
    %57 = vector.broadcast %56 : vector<8x8x1xf32> to vector<8x8x8xf32>
    %58 = arith.mulf %53, %57 : vector<8x8x8xf32>
    %59 = vector.extract_strided_slice %17 {offsets = [0, 0, 8], sizes = [8, 8, 8], strides = [1, 1, 1]} : vector<8x8x32xf32> to vector<8x8x8xf32>
    "tpu.trace_start"() <{level = 10 : i32, message = "bqk,bkd->bqd"}> : () -> ()
    %cst_25 = arith.constant dense<0.000000e+00> : vector<8x8x8xf32>
    %60 = tpu.matmul %58, %59, %cst_25 {dimension_numbers = #tpu.dot_dimension_numbers<[2], [1], [1], [2], [0, 0, 0, 1, 1, 2], [0], [0]>} : vector<8x8x8xf32>, vector<8x8x8xf32>, vector<8x8x8xf32> -> vector<8x8x8xf32>
    "tpu.trace_stop"() : () -> ()
    %61 = vector.shape_cast %60 : vector<8x8x8xf32> to vector<64x8xf32>
    %62 = vector.extract_strided_slice %19 {offsets = [8, 0], sizes = [8, 32], strides = [1, 1]} : vector<32x32xf32> to vector<8x32xf32>
    %cst_26 = arith.constant dense<0.000000e+00> : vector<64x32xf32>
    %63 = tpu.matmul %61, %62, %cst_26 {dimension_numbers = #tpu.dot_dimension_numbers<[1], [0], [0], [1], [0, 0, 1, 1], [], []>} : vector<64x8xf32>, vector<8x32xf32>, vector<64x32xf32> -> vector<64x32xf32>
    %64 = arith.addf %41, %63 : vector<64x32xf32>
    %65 = vector.extract_strided_slice %13 {offsets = [0, 0, 16], sizes = [8, 8, 8], strides = [1, 1, 1]} : vector<8x8x32xf32> to vector<8x8x8xf32>
    %66 = vector.extract_strided_slice %15 {offsets = [0, 0, 16], sizes = [8, 8, 8], strides = [1, 1, 1]} : vector<8x8x32xf32> to vector<8x8x8xf32>
    "tpu.trace_start"() <{level = 10 : i32, message = "bqd,bkd->bqk"}> : () -> ()
    %cst_27 = arith.constant dense<0.000000e+00> : vector<8x8x8xf32>
    %67 = tpu.matmul %65, %66, %cst_27 {dimension_numbers = #tpu.dot_dimension_numbers<[2], [2], [1], [1], [0, 0, 0, 1, 1, 1], [0], [0]>} : vector<8x8x8xf32>, vector<8x8x8xf32>, vector<8x8x8xf32> -> vector<8x8x8xf32>
    "tpu.trace_stop"() : () -> ()
    %cst_28 = arith.constant 0.353553385 : f32
    %68 = vector.broadcast %cst_28 : f32 to vector<8x8x8xf32>
    %69 = arith.mulf %67, %68 : vector<8x8x8xf32>
    %70 = vector.broadcast %4 : vector<8x1x8xf32> to vector<8x8x8xf32>
    %71 = arith.addf %69, %70 : vector<8x8x8xf32>
    %cst_29 = arith.constant dense<0xFF800000> : vector<8x8xf32>
    %72 = vector.multi_reduction <maximumf>, %71, %cst_29 [2] : vector<8x8x8xf32> to vector<8x8xf32>
    %73 = vector.shape_cast %72 : vector<8x8xf32> to vector<8x8x1xf32>
    %74 = vector.broadcast %73 : vector<8x8x1xf32> to vector<8x8x8xf32>
    %75 = arith.subf %71, %74 : vector<8x8x8xf32>
    %76 = math.exp %75 : vector<8x8x8xf32>
    %cst_30 = arith.constant dense<0.000000e+00> : vector<8x8xf32>
    %77 = vector.multi_reduction <add>, %76, %cst_30 [2] : vector<8x8x8xf32> to vector<8x8xf32>
    %78 = vector.shape_cast %77 : vector<8x8xf32> to vector<8x8x1xf32>
    %79 = tpu.reciprocal %78 {approx = true} : vector<8x8x1xf32> -> vector<8x8x1xf32>
    %80 = vector.broadcast %79 : vector<8x8x1xf32> to vector<8x8x8xf32>
    %81 = arith.mulf %76, %80 : vector<8x8x8xf32>
    %82 = vector.extract_strided_slice %17 {offsets = [0, 0, 16], sizes = [8, 8, 8], strides = [1, 1, 1]} : vector<8x8x32xf32> to vector<8x8x8xf32>
    "tpu.trace_start"() <{level = 10 : i32, message = "bqk,bkd->bqd"}> : () -> ()
    %cst_31 = arith.constant dense<0.000000e+00> : vector<8x8x8xf32>
    %83 = tpu.matmul %81, %82, %cst_31 {dimension_numbers = #tpu.dot_dimension_numbers<[2], [1], [1], [2], [0, 0, 0, 1, 1, 2], [0], [0]>} : vector<8x8x8xf32>, vector<8x8x8xf32>, vector<8x8x8xf32> -> vector<8x8x8xf32>
    "tpu.trace_stop"() : () -> ()
    %84 = vector.shape_cast %83 : vector<8x8x8xf32> to vector<64x8xf32>
    %85 = vector.extract_strided_slice %19 {offsets = [16, 0], sizes = [8, 32], strides = [1, 1]} : vector<32x32xf32> to vector<8x32xf32>
    %cst_32 = arith.constant dense<0.000000e+00> : vector<64x32xf32>
    %86 = tpu.matmul %84, %85, %cst_32 {dimension_numbers = #tpu.dot_dimension_numbers<[1], [0], [0], [1], [0, 0, 1, 1], [], []>} : vector<64x8xf32>, vector<8x32xf32>, vector<64x32xf32> -> vector<64x32xf32>
    %87 = arith.addf %64, %86 : vector<64x32xf32>
    %88 = vector.extract_strided_slice %13 {offsets = [0, 0, 24], sizes = [8, 8, 8], strides = [1, 1, 1]} : vector<8x8x32xf32> to vector<8x8x8xf32>
    %89 = vector.extract_strided_slice %15 {offsets = [0, 0, 24], sizes = [8, 8, 8], strides = [1, 1, 1]} : vector<8x8x32xf32> to vector<8x8x8xf32>
    "tpu.trace_start"() <{level = 10 : i32, message = "bqd,bkd->bqk"}> : () -> ()
    %cst_33 = arith.constant dense<0.000000e+00> : vector<8x8x8xf32>
    %90 = tpu.matmul %88, %89, %cst_33 {dimension_numbers = #tpu.dot_dimension_numbers<[2], [2], [1], [1], [0, 0, 0, 1, 1, 1], [0], [0]>} : vector<8x8x8xf32>, vector<8x8x8xf32>, vector<8x8x8xf32> -> vector<8x8x8xf32>
    "tpu.trace_stop"() : () -> ()
    %cst_34 = arith.constant 0.353553385 : f32
    %91 = vector.broadcast %cst_34 : f32 to vector<8x8x8xf32>
    %92 = arith.mulf %90, %91 : vector<8x8x8xf32>
    %93 = vector.broadcast %4 : vector<8x1x8xf32> to vector<8x8x8xf32>
    %94 = arith.addf %92, %93 : vector<8x8x8xf32>
    %cst_35 = arith.constant dense<0xFF800000> : vector<8x8xf32>
    %95 = vector.multi_reduction <maximumf>, %94, %cst_35 [2] : vector<8x8x8xf32> to vector<8x8xf32>
    %96 = vector.shape_cast %95 : vector<8x8xf32> to vector<8x8x1xf32>
    %97 = vector.broadcast %96 : vector<8x8x1xf32> to vector<8x8x8xf32>
    %98 = arith.subf %94, %97 : vector<8x8x8xf32>
    %99 = math.exp %98 : vector<8x8x8xf32>
    %cst_36 = arith.constant dense<0.000000e+00> : vector<8x8xf32>
    %100 = vector.multi_reduction <add>, %99, %cst_36 [2] : vector<8x8x8xf32> to vector<8x8xf32>
    %101 = vector.shape_cast %100 : vector<8x8xf32> to vector<8x8x1xf32>
    %102 = tpu.reciprocal %101 {approx = true} : vector<8x8x1xf32> -> vector<8x8x1xf32>
    %103 = vector.broadcast %102 : vector<8x8x1xf32> to vector<8x8x8xf32>
    %104 = arith.mulf %99, %103 : vector<8x8x8xf32>
    %105 = vector.extract_strided_slice %17 {offsets = [0, 0, 24], sizes = [8, 8, 8], strides = [1, 1, 1]} : vector<8x8x32xf32> to vector<8x8x8xf32>
    "tpu.trace_start"() <{level = 10 : i32, message = "bqk,bkd->bqd"}> : () -> ()
    %cst_37 = arith.constant dense<0.000000e+00> : vector<8x8x8xf32>
    %106 = tpu.matmul %104, %105, %cst_37 {dimension_numbers = #tpu.dot_dimension_numbers<[2], [1], [1], [2], [0, 0, 0, 1, 1, 2], [0], [0]>} : vector<8x8x8xf32>, vector<8x8x8xf32>, vector<8x8x8xf32> -> vector<8x8x8xf32>
    "tpu.trace_stop"() : () -> ()
    %107 = vector.shape_cast %106 : vector<8x8x8xf32> to vector<64x8xf32>
    %108 = vector.extract_strided_slice %19 {offsets = [24, 0], sizes = [8, 32], strides = [1, 1]} : vector<32x32xf32> to vector<8x32xf32>
    %cst_38 = arith.constant dense<0.000000e+00> : vector<64x32xf32>
    %109 = tpu.matmul %107, %108, %cst_38 {dimension_numbers = #tpu.dot_dimension_numbers<[1], [0], [0], [1], [0, 0, 1, 1], [], []>} : vector<64x8xf32>, vector<8x32xf32>, vector<64x32xf32> -> vector<64x32xf32>
    %110 = arith.addf %87, %109 : vector<64x32xf32>
    %c0_39 = arith.constant 0 : index
    %c0_40 = arith.constant 0 : index
    %c0_41 = arith.constant 0 : index
    %111 = vector.load %arg7[%c0_39, %c0_40, %c0_41] : memref<2x1x32xf32, #tpu.memory_space<vmem>>, vector<1x1x32xf32>
    %112 = vector.shape_cast %111 : vector<1x1x32xf32> to vector<1x32xf32>
    %113 = vector.broadcast %112 : vector<1x32xf32> to vector<64x32xf32>
    %114 = arith.addf %110, %113 : vector<64x32xf32>
    %115 = arith.addf %1, %114 : vector<64x32xf32>
    %c0_42 = arith.constant 0 : index
    %c0_43 = arith.constant 0 : index
    %c0_44 = arith.constant 0 : index
    %116 = vector.load %arg8[%c0_42, %c0_43, %c0_44] : memref<2x1x32xf32, #tpu.memory_space<vmem>>, vector<1x1x32xf32>
    %117 = vector.shape_cast %116 : vector<1x1x32xf32> to vector<1x32xf32>
    %c0_45 = arith.constant 0 : index
    %c0_46 = arith.constant 0 : index
    %c0_47 = arith.constant 0 : index
    %118 = vector.load %arg9[%c0_45, %c0_46, %c0_47] : memref<2x1x32xf32, #tpu.memory_space<vmem>>, vector<1x1x32xf32>
    %119 = vector.shape_cast %118 : vector<1x1x32xf32> to vector<1x32xf32>
    %cst_48 = arith.constant dense<0.000000e+00> : vector<64xf32>
    %120 = vector.multi_reduction <add>, %115, %cst_48 [1] : vector<64x32xf32> to vector<64xf32>
    %121 = vector.shape_cast %120 : vector<64xf32> to vector<64x1xf32>
    %cst_49 = arith.constant 3.200000e+01 : f32
    %122 = vector.broadcast %cst_49 : f32 to vector<64x1xf32>
    %123 = arith.divf %121, %122 : vector<64x1xf32>
    %124 = vector.broadcast %123 : vector<64x1xf32> to vector<64x32xf32>
    %125 = arith.subf %115, %124 : vector<64x32xf32>
    %126 = arith.mulf %125, %125 : vector<64x32xf32>
    %cst_50 = arith.constant dense<0.000000e+00> : vector<64xf32>
    %127 = vector.multi_reduction <add>, %126, %cst_50 [1] : vector<64x32xf32> to vector<64xf32>
    %128 = vector.shape_cast %127 : vector<64xf32> to vector<64x1xf32>
    %cst_51 = arith.constant 3.200000e+01 : f32
    %129 = vector.broadcast %cst_51 : f32 to vector<64x1xf32>
    %130 = arith.divf %128, %129 : vector<64x1xf32>
    %131 = vector.broadcast %123 : vector<64x1xf32> to vector<64x32xf32>
    %132 = arith.subf %115, %131 : vector<64x32xf32>
    %cst_52 = arith.constant 9.99999974E-6 : f32
    %133 = vector.broadcast %cst_52 : f32 to vector<64x1xf32>
    %134 = arith.addf %130, %133 : vector<64x1xf32>
    %135 = math.rsqrt %134 : vector<64x1xf32>
    %136 = vector.broadcast %135 : vector<64x1xf32> to vector<64x32xf32>
    %137 = arith.mulf %132, %136 : vector<64x32xf32>
    %138 = vector.broadcast %117 : vector<1x32xf32> to vector<64x32xf32>
    %139 = arith.mulf %137, %138 : vector<64x32xf32>
    %140 = vector.broadcast %119 : vector<1x32xf32> to vector<64x32xf32>
    %141 = arith.addf %139, %140 : vector<64x32xf32>
    %c0_53 = arith.constant 0 : index
    %c0_54 = arith.constant 0 : index
    %c0_55 = arith.constant 0 : index
    %142 = vector.load %arg10[%c0_53, %c0_54, %c0_55] : memref<2x32x64xf32, #tpu.memory_space<vmem>>, vector<1x32x64xf32>
    %143 = vector.shape_cast %142 : vector<1x32x64xf32> to vector<32x64xf32>
    %cst_56 = arith.constant dense<0.000000e+00> : vector<64x64xf32>
    %144 = tpu.matmul %141, %143, %cst_56 {dimension_numbers = #tpu.dot_dimension_numbers<[1], [0], [0], [1], [0, 0, 1, 1], [], []>} : vector<64x32xf32>, vector<32x64xf32>, vector<64x64xf32> -> vector<64x64xf32>
    %c0_57 = arith.constant 0 : index
    %c0_58 = arith.constant 0 : index
    %c0_59 = arith.constant 0 : index
    %145 = vector.load %arg11[%c0_57, %c0_58, %c0_59] : memref<2x1x64xf32, #tpu.memory_space<vmem>>, vector<1x1x64xf32>
    %146 = vector.shape_cast %145 : vector<1x1x64xf32> to vector<1x64xf32>
    %147 = vector.broadcast %146 : vector<1x64xf32> to vector<64x64xf32>
    %148 = arith.addf %144, %147 : vector<64x64xf32>
    %cst_60 = arith.constant 0.000000e+00 : f32
    %149 = vector.broadcast %cst_60 : f32 to vector<64x64xf32>
    %150 = arith.maximumf %148, %149 : vector<64x64xf32>
    %c0_61 = arith.constant 0 : index
    %c0_62 = arith.constant 0 : index
    %c0_63 = arith.constant 0 : index
    %151 = vector.load %arg12[%c0_61, %c0_62, %c0_63] : memref<2x64x32xf32, #tpu.memory_space<vmem>>, vector<1x64x32xf32>
    %152 = vector.shape_cast %151 : vector<1x64x32xf32> to vector<64x32xf32>
    %cst_64 = arith.constant dense<0.000000e+00> : vector<64x32xf32>
    %153 = tpu.matmul %150, %152, %cst_64 {dimension_numbers = #tpu.dot_dimension_numbers<[1], [0], [0], [1], [0, 0, 1, 1], [], []>} : vector<64x64xf32>, vector<64x32xf32>, vector<64x32xf32> -> vector<64x32xf32>
    %c0_65 = arith.constant 0 : index
    %c0_66 = arith.constant 0 : index
    %c0_67 = arith.constant 0 : index
    %154 = vector.load %arg13[%c0_65, %c0_66, %c0_67] : memref<2x1x32xf32, #tpu.memory_space<vmem>>, vector<1x1x32xf32>
    %155 = vector.shape_cast %154 : vector<1x1x32xf32> to vector<1x32xf32>
    %156 = vector.broadcast %155 : vector<1x32xf32> to vector<64x32xf32>
    %157 = arith.addf %153, %156 : vector<64x32xf32>
    %158 = arith.addf %141, %157 : vector<64x32xf32>
    %c0_68 = arith.constant 0 : index
    %c0_69 = arith.constant 0 : index
    %c0_70 = arith.constant 0 : index
    %159 = vector.load %arg14[%c0_68, %c0_69, %c0_70] : memref<2x1x32xf32, #tpu.memory_space<vmem>>, vector<1x1x32xf32>
    %160 = vector.shape_cast %159 : vector<1x1x32xf32> to vector<1x32xf32>
    %c0_71 = arith.constant 0 : index
    %c0_72 = arith.constant 0 : index
    %c0_73 = arith.constant 0 : index
    %161 = vector.load %arg15[%c0_71, %c0_72, %c0_73] : memref<2x1x32xf32, #tpu.memory_space<vmem>>, vector<1x1x32xf32>
    %162 = vector.shape_cast %161 : vector<1x1x32xf32> to vector<1x32xf32>
    %cst_74 = arith.constant dense<0.000000e+00> : vector<64xf32>
    %163 = vector.multi_reduction <add>, %158, %cst_74 [1] : vector<64x32xf32> to vector<64xf32>
    %164 = vector.shape_cast %163 : vector<64xf32> to vector<64x1xf32>
    %cst_75 = arith.constant 3.200000e+01 : f32
    %165 = vector.broadcast %cst_75 : f32 to vector<64x1xf32>
    %166 = arith.divf %164, %165 : vector<64x1xf32>
    %167 = vector.broadcast %166 : vector<64x1xf32> to vector<64x32xf32>
    %168 = arith.subf %158, %167 : vector<64x32xf32>
    %169 = arith.mulf %168, %168 : vector<64x32xf32>
    %cst_76 = arith.constant dense<0.000000e+00> : vector<64xf32>
    %170 = vector.multi_reduction <add>, %169, %cst_76 [1] : vector<64x32xf32> to vector<64xf32>
    %171 = vector.shape_cast %170 : vector<64xf32> to vector<64x1xf32>
    %cst_77 = arith.constant 3.200000e+01 : f32
    %172 = vector.broadcast %cst_77 : f32 to vector<64x1xf32>
    %173 = arith.divf %171, %172 : vector<64x1xf32>
    %174 = vector.broadcast %166 : vector<64x1xf32> to vector<64x32xf32>
    %175 = arith.subf %158, %174 : vector<64x32xf32>
    %cst_78 = arith.constant 9.99999974E-6 : f32
    %176 = vector.broadcast %cst_78 : f32 to vector<64x1xf32>
    %177 = arith.addf %173, %176 : vector<64x1xf32>
    %178 = math.rsqrt %177 : vector<64x1xf32>
    %179 = vector.broadcast %178 : vector<64x1xf32> to vector<64x32xf32>
    %180 = arith.mulf %175, %179 : vector<64x32xf32>
    %181 = vector.broadcast %160 : vector<1x32xf32> to vector<64x32xf32>
    %182 = arith.mulf %180, %181 : vector<64x32xf32>
    %183 = vector.broadcast %162 : vector<1x32xf32> to vector<64x32xf32>
    %184 = arith.addf %182, %183 : vector<64x32xf32>
    %c1 = arith.constant 1 : index
    %c0_79 = arith.constant 0 : index
    %c0_80 = arith.constant 0 : index
    %185 = vector.load %arg4[%c1, %c0_79, %c0_80] : memref<2x32x96xf32, #tpu.memory_space<vmem>>, vector<1x32x96xf32>
    %186 = vector.shape_cast %185 : vector<1x32x96xf32> to vector<32x96xf32>
    %cst_81 = arith.constant dense<0.000000e+00> : vector<64x96xf32>
    %187 = tpu.matmul %184, %186, %cst_81 {dimension_numbers = #tpu.dot_dimension_numbers<[1], [0], [0], [1], [0, 0, 1, 1], [], []>} : vector<64x32xf32>, vector<32x96xf32>, vector<64x96xf32> -> vector<64x96xf32>
    %c1_82 = arith.constant 1 : index
    %c0_83 = arith.constant 0 : index
    %c0_84 = arith.constant 0 : index
    %188 = vector.load %arg5[%c1_82, %c0_83, %c0_84] : memref<2x1x96xf32, #tpu.memory_space<vmem>>, vector<1x1x96xf32>
    %189 = vector.shape_cast %188 : vector<1x1x96xf32> to vector<1x96xf32>
    %190 = vector.broadcast %189 : vector<1x96xf32> to vector<64x96xf32>
    %191 = arith.addf %187, %190 : vector<64x96xf32>
    %192 = vector.extract_strided_slice %191 {offsets = [0, 0], sizes = [64, 32], strides = [1, 1]} : vector<64x96xf32> to vector<64x32xf32>
    %193 = vector.shape_cast %192 : vector<64x32xf32> to vector<8x8x32xf32>
    %194 = vector.extract_strided_slice %191 {offsets = [0, 32], sizes = [64, 32], strides = [1, 1]} : vector<64x96xf32> to vector<64x32xf32>
    %195 = vector.shape_cast %194 : vector<64x32xf32> to vector<8x8x32xf32>
    %196 = vector.extract_strided_slice %191 {offsets = [0, 64], sizes = [64, 32], strides = [1, 1]} : vector<64x96xf32> to vector<64x32xf32>
    %197 = vector.shape_cast %196 : vector<64x32xf32> to vector<8x8x32xf32>
    %c1_85 = arith.constant 1 : index
    %c0_86 = arith.constant 0 : index
    %c0_87 = arith.constant 0 : index
    %198 = vector.load %arg6[%c1_85, %c0_86, %c0_87] : memref<2x32x32xf32, #tpu.memory_space<vmem>>, vector<1x32x32xf32>
    %199 = vector.shape_cast %198 : vector<1x32x32xf32> to vector<32x32xf32>
    %200 = vector.extract_strided_slice %193 {offsets = [0, 0, 0], sizes = [8, 8, 8], strides = [1, 1, 1]} : vector<8x8x32xf32> to vector<8x8x8xf32>
    %201 = vector.extract_strided_slice %195 {offsets = [0, 0, 0], sizes = [8, 8, 8], strides = [1, 1, 1]} : vector<8x8x32xf32> to vector<8x8x8xf32>
    "tpu.trace_start"() <{level = 10 : i32, message = "bqd,bkd->bqk"}> : () -> ()
    %cst_88 = arith.constant dense<0.000000e+00> : vector<8x8x8xf32>
    %202 = tpu.matmul %200, %201, %cst_88 {dimension_numbers = #tpu.dot_dimension_numbers<[2], [2], [1], [1], [0, 0, 0, 1, 1, 1], [0], [0]>} : vector<8x8x8xf32>, vector<8x8x8xf32>, vector<8x8x8xf32> -> vector<8x8x8xf32>
    "tpu.trace_stop"() : () -> ()
    %cst_89 = arith.constant 0.353553385 : f32
    %203 = vector.broadcast %cst_89 : f32 to vector<8x8x8xf32>
    %204 = arith.mulf %202, %203 : vector<8x8x8xf32>
    %205 = vector.broadcast %4 : vector<8x1x8xf32> to vector<8x8x8xf32>
    %206 = arith.addf %204, %205 : vector<8x8x8xf32>
    %cst_90 = arith.constant dense<0xFF800000> : vector<8x8xf32>
    %207 = vector.multi_reduction <maximumf>, %206, %cst_90 [2] : vector<8x8x8xf32> to vector<8x8xf32>
    %208 = vector.shape_cast %207 : vector<8x8xf32> to vector<8x8x1xf32>
    %209 = vector.broadcast %208 : vector<8x8x1xf32> to vector<8x8x8xf32>
    %210 = arith.subf %206, %209 : vector<8x8x8xf32>
    %211 = math.exp %210 : vector<8x8x8xf32>
    %cst_91 = arith.constant dense<0.000000e+00> : vector<8x8xf32>
    %212 = vector.multi_reduction <add>, %211, %cst_91 [2] : vector<8x8x8xf32> to vector<8x8xf32>
    %213 = vector.shape_cast %212 : vector<8x8xf32> to vector<8x8x1xf32>
    %214 = tpu.reciprocal %213 {approx = true} : vector<8x8x1xf32> -> vector<8x8x1xf32>
    %215 = vector.broadcast %214 : vector<8x8x1xf32> to vector<8x8x8xf32>
    %216 = arith.mulf %211, %215 : vector<8x8x8xf32>
    %217 = vector.extract_strided_slice %197 {offsets = [0, 0, 0], sizes = [8, 8, 8], strides = [1, 1, 1]} : vector<8x8x32xf32> to vector<8x8x8xf32>
    "tpu.trace_start"() <{level = 10 : i32, message = "bqk,bkd->bqd"}> : () -> ()
    %cst_92 = arith.constant dense<0.000000e+00> : vector<8x8x8xf32>
    %218 = tpu.matmul %216, %217, %cst_92 {dimension_numbers = #tpu.dot_dimension_numbers<[2], [1], [1], [2], [0, 0, 0, 1, 1, 2], [0], [0]>} : vector<8x8x8xf32>, vector<8x8x8xf32>, vector<8x8x8xf32> -> vector<8x8x8xf32>
    "tpu.trace_stop"() : () -> ()
    %219 = vector.shape_cast %218 : vector<8x8x8xf32> to vector<64x8xf32>
    %220 = vector.extract_strided_slice %199 {offsets = [0, 0], sizes = [8, 32], strides = [1, 1]} : vector<32x32xf32> to vector<8x32xf32>
    %cst_93 = arith.constant dense<0.000000e+00> : vector<64x32xf32>
    %221 = tpu.matmul %219, %220, %cst_93 {dimension_numbers = #tpu.dot_dimension_numbers<[1], [0], [0], [1], [0, 0, 1, 1], [], []>} : vector<64x8xf32>, vector<8x32xf32>, vector<64x32xf32> -> vector<64x32xf32>
    %222 = vector.extract_strided_slice %193 {offsets = [0, 0, 8], sizes = [8, 8, 8], strides = [1, 1, 1]} : vector<8x8x32xf32> to vector<8x8x8xf32>
    %223 = vector.extract_strided_slice %195 {offsets = [0, 0, 8], sizes = [8, 8, 8], strides = [1, 1, 1]} : vector<8x8x32xf32> to vector<8x8x8xf32>
    "tpu.trace_start"() <{level = 10 : i32, message = "bqd,bkd->bqk"}> : () -> ()
    %cst_94 = arith.constant dense<0.000000e+00> : vector<8x8x8xf32>
    %224 = tpu.matmul %222, %223, %cst_94 {dimension_numbers = #tpu.dot_dimension_numbers<[2], [2], [1], [1], [0, 0, 0, 1, 1, 1], [0], [0]>} : vector<8x8x8xf32>, vector<8x8x8xf32>, vector<8x8x8xf32> -> vector<8x8x8xf32>
    "tpu.trace_stop"() : () -> ()
    %cst_95 = arith.constant 0.353553385 : f32
    %225 = vector.broadcast %cst_95 : f32 to vector<8x8x8xf32>
    %226 = arith.mulf %224, %225 : vector<8x8x8xf32>
    %227 = vector.broadcast %4 : vector<8x1x8xf32> to vector<8x8x8xf32>
    %228 = arith.addf %226, %227 : vector<8x8x8xf32>
    %cst_96 = arith.constant dense<0xFF800000> : vector<8x8xf32>
    %229 = vector.multi_reduction <maximumf>, %228, %cst_96 [2] : vector<8x8x8xf32> to vector<8x8xf32>
    %230 = vector.shape_cast %229 : vector<8x8xf32> to vector<8x8x1xf32>
    %231 = vector.broadcast %230 : vector<8x8x1xf32> to vector<8x8x8xf32>
    %232 = arith.subf %228, %231 : vector<8x8x8xf32>
    %233 = math.exp %232 : vector<8x8x8xf32>
    %cst_97 = arith.constant dense<0.000000e+00> : vector<8x8xf32>
    %234 = vector.multi_reduction <add>, %233, %cst_97 [2] : vector<8x8x8xf32> to vector<8x8xf32>
    %235 = vector.shape_cast %234 : vector<8x8xf32> to vector<8x8x1xf32>
    %236 = tpu.reciprocal %235 {approx = true} : vector<8x8x1xf32> -> vector<8x8x1xf32>
    %237 = vector.broadcast %236 : vector<8x8x1xf32> to vector<8x8x8xf32>
    %238 = arith.mulf %233, %237 : vector<8x8x8xf32>
    %239 = vector.extract_strided_slice %197 {offsets = [0, 0, 8], sizes = [8, 8, 8], strides = [1, 1, 1]} : vector<8x8x32xf32> to vector<8x8x8xf32>
    "tpu.trace_start"() <{level = 10 : i32, message = "bqk,bkd->bqd"}> : () -> ()
    %cst_98 = arith.constant dense<0.000000e+00> : vector<8x8x8xf32>
    %240 = tpu.matmul %238, %239, %cst_98 {dimension_numbers = #tpu.dot_dimension_numbers<[2], [1], [1], [2], [0, 0, 0, 1, 1, 2], [0], [0]>} : vector<8x8x8xf32>, vector<8x8x8xf32>, vector<8x8x8xf32> -> vector<8x8x8xf32>
    "tpu.trace_stop"() : () -> ()
    %241 = vector.shape_cast %240 : vector<8x8x8xf32> to vector<64x8xf32>
    %242 = vector.extract_strided_slice %199 {offsets = [8, 0], sizes = [8, 32], strides = [1, 1]} : vector<32x32xf32> to vector<8x32xf32>
    %cst_99 = arith.constant dense<0.000000e+00> : vector<64x32xf32>
    %243 = tpu.matmul %241, %242, %cst_99 {dimension_numbers = #tpu.dot_dimension_numbers<[1], [0], [0], [1], [0, 0, 1, 1], [], []>} : vector<64x8xf32>, vector<8x32xf32>, vector<64x32xf32> -> vector<64x32xf32>
    %244 = arith.addf %221, %243 : vector<64x32xf32>
    %245 = vector.extract_strided_slice %193 {offsets = [0, 0, 16], sizes = [8, 8, 8], strides = [1, 1, 1]} : vector<8x8x32xf32> to vector<8x8x8xf32>
    %246 = vector.extract_strided_slice %195 {offsets = [0, 0, 16], sizes = [8, 8, 8], strides = [1, 1, 1]} : vector<8x8x32xf32> to vector<8x8x8xf32>
    "tpu.trace_start"() <{level = 10 : i32, message = "bqd,bkd->bqk"}> : () -> ()
    %cst_100 = arith.constant dense<0.000000e+00> : vector<8x8x8xf32>
    %247 = tpu.matmul %245, %246, %cst_100 {dimension_numbers = #tpu.dot_dimension_numbers<[2], [2], [1], [1], [0, 0, 0, 1, 1, 1], [0], [0]>} : vector<8x8x8xf32>, vector<8x8x8xf32>, vector<8x8x8xf32> -> vector<8x8x8xf32>
    "tpu.trace_stop"() : () -> ()
    %cst_101 = arith.constant 0.353553385 : f32
    %248 = vector.broadcast %cst_101 : f32 to vector<8x8x8xf32>
    %249 = arith.mulf %247, %248 : vector<8x8x8xf32>
    %250 = vector.broadcast %4 : vector<8x1x8xf32> to vector<8x8x8xf32>
    %251 = arith.addf %249, %250 : vector<8x8x8xf32>
    %cst_102 = arith.constant dense<0xFF800000> : vector<8x8xf32>
    %252 = vector.multi_reduction <maximumf>, %251, %cst_102 [2] : vector<8x8x8xf32> to vector<8x8xf32>
    %253 = vector.shape_cast %252 : vector<8x8xf32> to vector<8x8x1xf32>
    %254 = vector.broadcast %253 : vector<8x8x1xf32> to vector<8x8x8xf32>
    %255 = arith.subf %251, %254 : vector<8x8x8xf32>
    %256 = math.exp %255 : vector<8x8x8xf32>
    %cst_103 = arith.constant dense<0.000000e+00> : vector<8x8xf32>
    %257 = vector.multi_reduction <add>, %256, %cst_103 [2] : vector<8x8x8xf32> to vector<8x8xf32>
    %258 = vector.shape_cast %257 : vector<8x8xf32> to vector<8x8x1xf32>
    %259 = tpu.reciprocal %258 {approx = true} : vector<8x8x1xf32> -> vector<8x8x1xf32>
    %260 = vector.broadcast %259 : vector<8x8x1xf32> to vector<8x8x8xf32>
    %261 = arith.mulf %256, %260 : vector<8x8x8xf32>
    %262 = vector.extract_strided_slice %197 {offsets = [0, 0, 16], sizes = [8, 8, 8], strides = [1, 1, 1]} : vector<8x8x32xf32> to vector<8x8x8xf32>
    "tpu.trace_start"() <{level = 10 : i32, message = "bqk,bkd->bqd"}> : () -> ()
    %cst_104 = arith.constant dense<0.000000e+00> : vector<8x8x8xf32>
    %263 = tpu.matmul %261, %262, %cst_104 {dimension_numbers = #tpu.dot_dimension_numbers<[2], [1], [1], [2], [0, 0, 0, 1, 1, 2], [0], [0]>} : vector<8x8x8xf32>, vector<8x8x8xf32>, vector<8x8x8xf32> -> vector<8x8x8xf32>
    "tpu.trace_stop"() : () -> ()
    %264 = vector.shape_cast %263 : vector<8x8x8xf32> to vector<64x8xf32>
    %265 = vector.extract_strided_slice %199 {offsets = [16, 0], sizes = [8, 32], strides = [1, 1]} : vector<32x32xf32> to vector<8x32xf32>
    %cst_105 = arith.constant dense<0.000000e+00> : vector<64x32xf32>
    %266 = tpu.matmul %264, %265, %cst_105 {dimension_numbers = #tpu.dot_dimension_numbers<[1], [0], [0], [1], [0, 0, 1, 1], [], []>} : vector<64x8xf32>, vector<8x32xf32>, vector<64x32xf32> -> vector<64x32xf32>
    %267 = arith.addf %244, %266 : vector<64x32xf32>
    %268 = vector.extract_strided_slice %193 {offsets = [0, 0, 24], sizes = [8, 8, 8], strides = [1, 1, 1]} : vector<8x8x32xf32> to vector<8x8x8xf32>
    %269 = vector.extract_strided_slice %195 {offsets = [0, 0, 24], sizes = [8, 8, 8], strides = [1, 1, 1]} : vector<8x8x32xf32> to vector<8x8x8xf32>
    "tpu.trace_start"() <{level = 10 : i32, message = "bqd,bkd->bqk"}> : () -> ()
    %cst_106 = arith.constant dense<0.000000e+00> : vector<8x8x8xf32>
    %270 = tpu.matmul %268, %269, %cst_106 {dimension_numbers = #tpu.dot_dimension_numbers<[2], [2], [1], [1], [0, 0, 0, 1, 1, 1], [0], [0]>} : vector<8x8x8xf32>, vector<8x8x8xf32>, vector<8x8x8xf32> -> vector<8x8x8xf32>
    "tpu.trace_stop"() : () -> ()
    %cst_107 = arith.constant 0.353553385 : f32
    %271 = vector.broadcast %cst_107 : f32 to vector<8x8x8xf32>
    %272 = arith.mulf %270, %271 : vector<8x8x8xf32>
    %273 = vector.broadcast %4 : vector<8x1x8xf32> to vector<8x8x8xf32>
    %274 = arith.addf %272, %273 : vector<8x8x8xf32>
    %cst_108 = arith.constant dense<0xFF800000> : vector<8x8xf32>
    %275 = vector.multi_reduction <maximumf>, %274, %cst_108 [2] : vector<8x8x8xf32> to vector<8x8xf32>
    %276 = vector.shape_cast %275 : vector<8x8xf32> to vector<8x8x1xf32>
    %277 = vector.broadcast %276 : vector<8x8x1xf32> to vector<8x8x8xf32>
    %278 = arith.subf %274, %277 : vector<8x8x8xf32>
    %279 = math.exp %278 : vector<8x8x8xf32>
    %cst_109 = arith.constant dense<0.000000e+00> : vector<8x8xf32>
    %280 = vector.multi_reduction <add>, %279, %cst_109 [2] : vector<8x8x8xf32> to vector<8x8xf32>
    %281 = vector.shape_cast %280 : vector<8x8xf32> to vector<8x8x1xf32>
    %282 = tpu.reciprocal %281 {approx = true} : vector<8x8x1xf32> -> vector<8x8x1xf32>
    %283 = vector.broadcast %282 : vector<8x8x1xf32> to vector<8x8x8xf32>
    %284 = arith.mulf %279, %283 : vector<8x8x8xf32>
    %285 = vector.extract_strided_slice %197 {offsets = [0, 0, 24], sizes = [8, 8, 8], strides = [1, 1, 1]} : vector<8x8x32xf32> to vector<8x8x8xf32>
    "tpu.trace_start"() <{level = 10 : i32, message = "bqk,bkd->bqd"}> : () -> ()
    %cst_110 = arith.constant dense<0.000000e+00> : vector<8x8x8xf32>
    %286 = tpu.matmul %284, %285, %cst_110 {dimension_numbers = #tpu.dot_dimension_numbers<[2], [1], [1], [2], [0, 0, 0, 1, 1, 2], [0], [0]>} : vector<8x8x8xf32>, vector<8x8x8xf32>, vector<8x8x8xf32> -> vector<8x8x8xf32>
    "tpu.trace_stop"() : () -> ()
    %287 = vector.shape_cast %286 : vector<8x8x8xf32> to vector<64x8xf32>
    %288 = vector.extract_strided_slice %199 {offsets = [24, 0], sizes = [8, 32], strides = [1, 1]} : vector<32x32xf32> to vector<8x32xf32>
    %cst_111 = arith.constant dense<0.000000e+00> : vector<64x32xf32>
    %289 = tpu.matmul %287, %288, %cst_111 {dimension_numbers = #tpu.dot_dimension_numbers<[1], [0], [0], [1], [0, 0, 1, 1], [], []>} : vector<64x8xf32>, vector<8x32xf32>, vector<64x32xf32> -> vector<64x32xf32>
    %290 = arith.addf %267, %289 : vector<64x32xf32>
    %c1_112 = arith.constant 1 : index
    %c0_113 = arith.constant 0 : index
    %c0_114 = arith.constant 0 : index
    %291 = vector.load %arg7[%c1_112, %c0_113, %c0_114] : memref<2x1x32xf32, #tpu.memory_space<vmem>>, vector<1x1x32xf32>
    %292 = vector.shape_cast %291 : vector<1x1x32xf32> to vector<1x32xf32>
    %293 = vector.broadcast %292 : vector<1x32xf32> to vector<64x32xf32>
    %294 = arith.addf %290, %293 : vector<64x32xf32>
    %295 = arith.addf %184, %294 : vector<64x32xf32>
    %c1_115 = arith.constant 1 : index
    %c0_116 = arith.constant 0 : index
    %c0_117 = arith.constant 0 : index
    %296 = vector.load %arg8[%c1_115, %c0_116, %c0_117] : memref<2x1x32xf32, #tpu.memory_space<vmem>>, vector<1x1x32xf32>
    %297 = vector.shape_cast %296 : vector<1x1x32xf32> to vector<1x32xf32>
    %c1_118 = arith.constant 1 : index
    %c0_119 = arith.constant 0 : index
    %c0_120 = arith.constant 0 : index
    %298 = vector.load %arg9[%c1_118, %c0_119, %c0_120] : memref<2x1x32xf32, #tpu.memory_space<vmem>>, vector<1x1x32xf32>
    %299 = vector.shape_cast %298 : vector<1x1x32xf32> to vector<1x32xf32>
    %cst_121 = arith.constant dense<0.000000e+00> : vector<64xf32>
    %300 = vector.multi_reduction <add>, %295, %cst_121 [1] : vector<64x32xf32> to vector<64xf32>
    %301 = vector.shape_cast %300 : vector<64xf32> to vector<64x1xf32>
    %cst_122 = arith.constant 3.200000e+01 : f32
    %302 = vector.broadcast %cst_122 : f32 to vector<64x1xf32>
    %303 = arith.divf %301, %302 : vector<64x1xf32>
    %304 = vector.broadcast %303 : vector<64x1xf32> to vector<64x32xf32>
    %305 = arith.subf %295, %304 : vector<64x32xf32>
    %306 = arith.mulf %305, %305 : vector<64x32xf32>
    %cst_123 = arith.constant dense<0.000000e+00> : vector<64xf32>
    %307 = vector.multi_reduction <add>, %306, %cst_123 [1] : vector<64x32xf32> to vector<64xf32>
    %308 = vector.shape_cast %307 : vector<64xf32> to vector<64x1xf32>
    %cst_124 = arith.constant 3.200000e+01 : f32
    %309 = vector.broadcast %cst_124 : f32 to vector<64x1xf32>
    %310 = arith.divf %308, %309 : vector<64x1xf32>
    %311 = vector.broadcast %303 : vector<64x1xf32> to vector<64x32xf32>
    %312 = arith.subf %295, %311 : vector<64x32xf32>
    %cst_125 = arith.constant 9.99999974E-6 : f32
    %313 = vector.broadcast %cst_125 : f32 to vector<64x1xf32>
    %314 = arith.addf %310, %313 : vector<64x1xf32>
    %315 = math.rsqrt %314 : vector<64x1xf32>
    %316 = vector.broadcast %315 : vector<64x1xf32> to vector<64x32xf32>
    %317 = arith.mulf %312, %316 : vector<64x32xf32>
    %318 = vector.broadcast %297 : vector<1x32xf32> to vector<64x32xf32>
    %319 = arith.mulf %317, %318 : vector<64x32xf32>
    %320 = vector.broadcast %299 : vector<1x32xf32> to vector<64x32xf32>
    %321 = arith.addf %319, %320 : vector<64x32xf32>
    %c1_126 = arith.constant 1 : index
    %c0_127 = arith.constant 0 : index
    %c0_128 = arith.constant 0 : index
    %322 = vector.load %arg10[%c1_126, %c0_127, %c0_128] : memref<2x32x64xf32, #tpu.memory_space<vmem>>, vector<1x32x64xf32>
    %323 = vector.shape_cast %322 : vector<1x32x64xf32> to vector<32x64xf32>
    %cst_129 = arith.constant dense<0.000000e+00> : vector<64x64xf32>
    %324 = tpu.matmul %321, %323, %cst_129 {dimension_numbers = #tpu.dot_dimension_numbers<[1], [0], [0], [1], [0, 0, 1, 1], [], []>} : vector<64x32xf32>, vector<32x64xf32>, vector<64x64xf32> -> vector<64x64xf32>
    %c1_130 = arith.constant 1 : index
    %c0_131 = arith.constant 0 : index
    %c0_132 = arith.constant 0 : index
    %325 = vector.load %arg11[%c1_130, %c0_131, %c0_132] : memref<2x1x64xf32, #tpu.memory_space<vmem>>, vector<1x1x64xf32>
    %326 = vector.shape_cast %325 : vector<1x1x64xf32> to vector<1x64xf32>
    %327 = vector.broadcast %326 : vector<1x64xf32> to vector<64x64xf32>
    %328 = arith.addf %324, %327 : vector<64x64xf32>
    %cst_133 = arith.constant 0.000000e+00 : f32
    %329 = vector.broadcast %cst_133 : f32 to vector<64x64xf32>
    %330 = arith.maximumf %328, %329 : vector<64x64xf32>
    %c1_134 = arith.constant 1 : index
    %c0_135 = arith.constant 0 : index
    %c0_136 = arith.constant 0 : index
    %331 = vector.load %arg12[%c1_134, %c0_135, %c0_136] : memref<2x64x32xf32, #tpu.memory_space<vmem>>, vector<1x64x32xf32>
    %332 = vector.shape_cast %331 : vector<1x64x32xf32> to vector<64x32xf32>
    %cst_137 = arith.constant dense<0.000000e+00> : vector<64x32xf32>
    %333 = tpu.matmul %330, %332, %cst_137 {dimension_numbers = #tpu.dot_dimension_numbers<[1], [0], [0], [1], [0, 0, 1, 1], [], []>} : vector<64x64xf32>, vector<64x32xf32>, vector<64x32xf32> -> vector<64x32xf32>
    %c1_138 = arith.constant 1 : index
    %c0_139 = arith.constant 0 : index
    %c0_140 = arith.constant 0 : index
    %334 = vector.load %arg13[%c1_138, %c0_139, %c0_140] : memref<2x1x32xf32, #tpu.memory_space<vmem>>, vector<1x1x32xf32>
    %335 = vector.shape_cast %334 : vector<1x1x32xf32> to vector<1x32xf32>
    %336 = vector.broadcast %335 : vector<1x32xf32> to vector<64x32xf32>
    %337 = arith.addf %333, %336 : vector<64x32xf32>
    %338 = arith.addf %321, %337 : vector<64x32xf32>
    %c1_141 = arith.constant 1 : index
    %c0_142 = arith.constant 0 : index
    %c0_143 = arith.constant 0 : index
    %339 = vector.load %arg14[%c1_141, %c0_142, %c0_143] : memref<2x1x32xf32, #tpu.memory_space<vmem>>, vector<1x1x32xf32>
    %340 = vector.shape_cast %339 : vector<1x1x32xf32> to vector<1x32xf32>
    %c1_144 = arith.constant 1 : index
    %c0_145 = arith.constant 0 : index
    %c0_146 = arith.constant 0 : index
    %341 = vector.load %arg15[%c1_144, %c0_145, %c0_146] : memref<2x1x32xf32, #tpu.memory_space<vmem>>, vector<1x1x32xf32>
    %342 = vector.shape_cast %341 : vector<1x1x32xf32> to vector<1x32xf32>
    %cst_147 = arith.constant dense<0.000000e+00> : vector<64xf32>
    %343 = vector.multi_reduction <add>, %338, %cst_147 [1] : vector<64x32xf32> to vector<64xf32>
    %344 = vector.shape_cast %343 : vector<64xf32> to vector<64x1xf32>
    %cst_148 = arith.constant 3.200000e+01 : f32
    %345 = vector.broadcast %cst_148 : f32 to vector<64x1xf32>
    %346 = arith.divf %344, %345 : vector<64x1xf32>
    %347 = vector.broadcast %346 : vector<64x1xf32> to vector<64x32xf32>
    %348 = arith.subf %338, %347 : vector<64x32xf32>
    %349 = arith.mulf %348, %348 : vector<64x32xf32>
    %cst_149 = arith.constant dense<0.000000e+00> : vector<64xf32>
    %350 = vector.multi_reduction <add>, %349, %cst_149 [1] : vector<64x32xf32> to vector<64xf32>
    %351 = vector.shape_cast %350 : vector<64xf32> to vector<64x1xf32>
    %cst_150 = arith.constant 3.200000e+01 : f32
    %352 = vector.broadcast %cst_150 : f32 to vector<64x1xf32>
    %353 = arith.divf %351, %352 : vector<64x1xf32>
    %354 = vector.broadcast %346 : vector<64x1xf32> to vector<64x32xf32>
    %355 = arith.subf %338, %354 : vector<64x32xf32>
    %cst_151 = arith.constant 9.99999974E-6 : f32
    %356 = vector.broadcast %cst_151 : f32 to vector<64x1xf32>
    %357 = arith.addf %353, %356 : vector<64x1xf32>
    %358 = math.rsqrt %357 : vector<64x1xf32>
    %359 = vector.broadcast %358 : vector<64x1xf32> to vector<64x32xf32>
    %360 = arith.mulf %355, %359 : vector<64x32xf32>
    %361 = vector.broadcast %340 : vector<1x32xf32> to vector<64x32xf32>
    %362 = arith.mulf %360, %361 : vector<64x32xf32>
    %363 = vector.broadcast %342 : vector<1x32xf32> to vector<64x32xf32>
    %364 = arith.addf %362, %363 : vector<64x32xf32>
    %c0_152 = arith.constant 0 : index
    %c0_153 = arith.constant 0 : index
    %c0_154 = arith.constant 0 : index
    %365 = vector.load %arg3[%c0_152, %c0_153, %c0_154] : memref<1x8x64xf32, #tpu.memory_space<vmem>>, vector<1x8x64xf32>
    %366 = vector.shape_cast %365 : vector<1x8x64xf32> to vector<8x64xf32>
    %cst_155 = arith.constant dense<0.000000e+00> : vector<8x32xf32>
    %367 = tpu.matmul %366, %364, %cst_155 {dimension_numbers = #tpu.dot_dimension_numbers<[1], [0], [0], [1], [0, 0, 1, 1], [], []>} : vector<8x64xf32>, vector<64x32xf32>, vector<8x32xf32> -> vector<8x32xf32>
    %cst_156 = arith.constant 0.000000e+00 : f32
    %368 = vector.broadcast %cst_156 : f32 to vector<8x32xf32>
    %369 = arith.maximumf %367, %368 : vector<8x32xf32>
    %c0_157 = arith.constant 0 : index
    %c0_158 = arith.constant 0 : index
    %370 = vector.load %arg16[%c0_157, %c0_158] : memref<32x128xf32, #tpu.memory_space<vmem>>, vector<32x128xf32>
    %cst_159 = arith.constant dense<0.000000e+00> : vector<8x128xf32>
    %371 = tpu.matmul %369, %370, %cst_159 {dimension_numbers = #tpu.dot_dimension_numbers<[1], [0], [0], [1], [0, 0, 1, 1], [], []>} : vector<8x32xf32>, vector<32x128xf32>, vector<8x128xf32> -> vector<8x128xf32>
    %c0_160 = arith.constant 0 : index
    %c0_161 = arith.constant 0 : index
    %372 = vector.load %arg17[%c0_160, %c0_161] : memref<1x128xf32, #tpu.memory_space<vmem>>, vector<1x128xf32>
    %373 = vector.broadcast %372 : vector<1x128xf32> to vector<8x128xf32>
    %374 = arith.addf %371, %373 : vector<8x128xf32>
    %c0_162 = arith.constant 0 : index
    %c0_163 = arith.constant 0 : index
    %375 = vector.load %arg18[%c0_162, %c0_163] : memref<8x128xf32, #tpu.memory_space<vmem>>, vector<8x128xf32>
    tpu.vector_store %arg18[%c0_162, %c0_163], %374 {strides = array<i32>} : memref<8x128xf32, #tpu.memory_space<vmem>>, vector<8x128xf32>,
    return
  }
  func.func @transform_0(%arg0: i32) -> (i32, i32, i32) {
    %c0_i32 = arith.constant 0 : i32
    %c0_i32_0 = arith.constant 0 : i32
    %c0_i32_1 = arith.constant 0 : i32
    return %arg0, %c0_i32, %c0_i32_0 : i32, i32, i32
  }
  func.func @transform_1(%arg0: i32) -> (i32, i32, i32) {
    %c0_i32 = arith.constant 0 : i32
    %c0_i32_0 = arith.constant 0 : i32
    %c0_i32_1 = arith.constant 0 : i32
    return %arg0, %c0_i32, %c0_i32_0 : i32, i32, i32
  }
  func.func @transform_2(%arg0: i32) -> (i32, i32, i32) {
    %c0_i32 = arith.constant 0 : i32
    %c0_i32_0 = arith.constant 0 : i32
    %c0_i32_1 = arith.constant 0 : i32
    return %arg0, %c0_i32, %c0_i32_0 : i32, i32, i32
  }
  func.func @transform_3(%arg0: i32) -> (i32, i32, i32) {
    %c0_i32 = arith.constant 0 : i32
    %c0_i32_0 = arith.constant 0 : i32
    %c0_i32_1 = arith.constant 0 : i32
    %c0_i32_2 = arith.constant 0 : i32
    return %c0_i32, %c0_i32_0, %c0_i32_1 : i32, i32, i32
  }
  func.func @transform_4(%arg0: i32) -> (i32, i32, i32) {
    %c0_i32 = arith.constant 0 : i32
    %c0_i32_0 = arith.constant 0 : i32
    %c0_i32_1 = arith.constant 0 : i32
    %c0_i32_2 = arith.constant 0 : i32
    return %c0_i32, %c0_i32_0, %c0_i32_1 : i32, i32, i32
  }
  func.func @transform_5(%arg0: i32) -> (i32, i32, i32) {
    %c0_i32 = arith.constant 0 : i32
    %c0_i32_0 = arith.constant 0 : i32
    %c0_i32_1 = arith.constant 0 : i32
    %c0_i32_2 = arith.constant 0 : i32
    return %c0_i32, %c0_i32_0, %c0_i32_1 : i32, i32, i32
  }
  func.func @transform_6(%arg0: i32) -> (i32, i32, i32) {
    %c0_i32 = arith.constant 0 : i32
    %c0_i32_0 = arith.constant 0 : i32
    %c0_i32_1 = arith.constant 0 : i32
    %c0_i32_2 = arith.constant 0 : i32
    return %c0_i32, %c0_i32_0, %c0_i32_1 : i32, i32, i32
  }
  func.func @transform_7(%arg0: i32) -> (i32, i32, i32) {
    %c0_i32 = arith.constant 0 : i32
    %c0_i32_0 = arith.constant 0 : i32
    %c0_i32_1 = arith.constant 0 : i32
    %c0_i32_2 = arith.constant 0 : i32
    return %c0_i32, %c0_i32_0, %c0_i32_1 : i32, i32, i32
  }
  func.func @transform_8(%arg0: i32) -> (i32, i32, i32) {
    %c0_i32 = arith.constant 0 : i32
    %c0_i32_0 = arith.constant 0 : i32
    %c0_i32_1 = arith.constant 0 : i32
    %c0_i32_2 = arith.constant 0 : i32
    return %c0_i32, %c0_i32_0, %c0_i32_1 : i32, i32, i32
  }
  func.func @transform_9(%arg0: i32) -> (i32, i32, i32) {
    %c0_i32 = arith.constant 0 : i32
    %c0_i32_0 = arith.constant 0 : i32
    %c0_i32_1 = arith.constant 0 : i32
    %c0_i32_2 = arith.constant 0 : i32
    return %c0_i32, %c0_i32_0, %c0_i32_1 : i32, i32, i32
  }
  func.func @transform_10(%arg0: i32) -> (i32, i32, i32) {
    %c0_i32 = arith.constant 0 : i32
    %c0_i32_0 = arith.constant 0 : i32
    %c0_i32_1 = arith.constant 0 : i32
    %c0_i32_2 = arith.constant 0 : i32
    return %c0_i32, %c0_i32_0, %c0_i32_1 : i32, i32, i32
  }
  func.func @transform_11(%arg0: i32) -> (i32, i32, i32) {
    %c0_i32 = arith.constant 0 : i32
    %c0_i32_0 = arith.constant 0 : i32
    %c0_i32_1 = arith.constant 0 : i32
    %c0_i32_2 = arith.constant 0 : i32
    return %c0_i32, %c0_i32_0, %c0_i32_1 : i32, i32, i32
  }
  func.func @transform_12(%arg0: i32) -> (i32, i32, i32) {
    %c0_i32 = arith.constant 0 : i32
    %c0_i32_0 = arith.constant 0 : i32
    %c0_i32_1 = arith.constant 0 : i32
    %c0_i32_2 = arith.constant 0 : i32
    return %c0_i32, %c0_i32_0, %c0_i32_1 : i32, i32, i32
  }
  func.func @transform_13(%arg0: i32) -> (i32, i32, i32) {
    %c0_i32 = arith.constant 0 : i32
    %c0_i32_0 = arith.constant 0 : i32
    %c0_i32_1 = arith.constant 0 : i32
    %c0_i32_2 = arith.constant 0 : i32
    return %c0_i32, %c0_i32_0, %c0_i32_1 : i32, i32, i32
  }
  func.func @transform_14(%arg0: i32) -> (i32, i32, i32) {
    %c0_i32 = arith.constant 0 : i32
    %c0_i32_0 = arith.constant 0 : i32
    %c0_i32_1 = arith.constant 0 : i32
    %c0_i32_2 = arith.constant 0 : i32
    return %c0_i32, %c0_i32_0, %c0_i32_1 : i32, i32, i32
  }
  func.func @transform_15(%arg0: i32) -> (i32, i32) {
    %c0_i32 = arith.constant 0 : i32
    %c0_i32_0 = arith.constant 0 : i32
    %c0_i32_1 = arith.constant 0 : i32
    return %c0_i32, %c0_i32_0 : i32, i32
  }
  func.func @transform_16(%arg0: i32) -> (i32, i32) {
    %c0_i32 = arith.constant 0 : i32
    %c0_i32_0 = arith.constant 0 : i32
    %c0_i32_1 = arith.constant 0 : i32
    return %c0_i32, %c0_i32_0 : i32, i32
  }
  func.func @transform_17(%arg0: i32) -> (i32, i32) {
    %c0_i32 = arith.constant 0 : i32
    %c0_i32_0 = arith.constant 0 : i32
    return %arg0, %c0_i32 : i32, i32
  }
}

</mosaic_0001>

<bundles_post_ra>
// kernel: tpu_custom_call.1
= control target key start
LH: loop header
LB: loop body
LE: loop exit
PB: predicated region body
PF: predicated region fallthrough
CT: control target
= control target key end

     0   :  { %s19235_s0 = inlined_call_operand.vmem [shape: f32[16,8,32], index: 0, kind: input, shape index: {}]   ;;  %s19236_s1 = inlined_call_operand.vmem [shape: f32[16,1,8], index: 1, kind: input, shape index: {}]   ;;  %s19237_s2 = inlined_call_operand.hbm [shape: f32[2,8,64], index: 2, kind: input, shape index: {}]   ;;  %s19238_s3 = inlined_call_operand.vmem [shape: f32[2,32,96], index: 3, kind: input, shape index: {}]   ;;  %s19239_s4 = inlined_call_operand.vmem [shape: f32[2,1,96], index: 4, kind: input, shape index: {}]   ;;  %s19240_s5 = inlined_call_operand.hbm [shape: f32[2,32,32], index: 5, kind: input, shape index: {}]   ;;  %s19241_s6 = inlined_call_operand.hbm [shape: f32[2,1,32], index: 6, kind: input, shape index: {}]   ;;  %s19242_s7 = inlined_call_operand.hbm [shape: f32[2,1,32], index: 7, kind: input, shape index: {}]   ;;  %s19243_s8 = inlined_call_operand.vmem [shape: f32[2,1,32], index: 8, kind: input, shape index: {}]   ;;  %s19244_s9 = inlined_call_operand.hbm [shape: f32[2,32,64], index: 9, kind: input, shape index: {}]   ;;  %s19245_s10 = inlined_call_operand.vmem [shape: f32[2,1,64], index: 10, kind: input, shape index: {}]   ;;  %s19246_s11 = inlined_call_operand.vmem [shape: f32[2,64,32], index: 11, kind: input, shape index: {}]   ;;  %s19247_s12 = inlined_call_operand.vmem [shape: f32[2,1,32], index: 12, kind: input, shape index: {}]   ;;  %s19248_s13 = inlined_call_operand.vmem [shape: f32[2,1,32], index: 13, kind: input, shape index: {}]   ;;  %s19249_s14 = inlined_call_operand.vmem [shape: f32[2,1,32], index: 14, kind: input, shape index: {}]   ;;  %s19250_s15 = inlined_call_operand.vmem [shape: f32[32,128], index: 15, kind: input, shape index: {}]   ;;  %s19251_s16 = inlined_call_operand.vmem [shape: f32[1,128], index: 16, kind: input, shape index: {}]   ;;  %s19252_s17 = inlined_call_operand.hbm [shape: f32[16,128], index: 17, kind: output, shape index: {}]  }
   0x1   :  { %19277 = sst [smem:[#allocation21_spill]] %s19235_s0 }
   0x2   :  { %19278 = sst [smem:[#allocation22_spill]] %s19236_s1 }
   0x3   :  { %19279 = sst [smem:[#allocation23_spill]] %s19240_s5 }
   0x4   :  { %19280 = sst [smem:[#allocation24_spill]] %s19241_s6 }
   0x5   :  { %19281 = sst [smem:[#allocation25_spill]] %s19242_s7 }
   0x6   :  { %19282 = sst [smem:[#allocation26_spill]] %s19244_s9 }
   0x7   :  { %19283 = sst [smem:[#allocation27_spill]] %s19251_s16 }
   0x8   :  { %19284 = sst [smem:[#allocation28_spill]] %s19252_s17 }
   0x9   :  { %22 = vsyncpa [#allocation3], 0 }
   0xa   :  { %24 = vsyncpa [#allocation3 + $0x1], 0 }
   0xb   :  { %25 = vsyncpa [#allocation6], 0 }
   0xc   :  { %26 = vsyncpa [#allocation9], 0 }
   0xd   :  { %27 = vsyncpa [#allocation4], 0 }
   0xe   :  { %29 = vsyncpa [#allocation4 + $0x1], 0  ;;  %s16715_s24 = smov 0   ;;  %s16717_s25 = smov 0  }
   0xf   :  { %s16719_s26 = smov 0   ;;  %s16721_s27 = smov 0  }
  0x10 LB: > { %19285 = sst [smem:[#allocation16_spill]] %s16596_s26  ;;  %s16602_s28 = smov [#allocation5]   ;;  %s16600_s27 = sphi %s16721_s27, %s19324_s27   ;;  %s16596_s26 = sphi %s16719_s26, %s19326_s26   ;;  %s16592_s25 = sphi %s16717_s25, %s19328_s25   ;;  %s16588_s24 = sphi %s16715_s24, %s19327_s24  }
  0x11   : > { %19286 = sst [smem:[#allocation17_spill]] %s16600_s27  ;;  %s456_s29 = sshll.u32 %s16602_s28, 4  ;;  %s457_s29 = int_to_ptr.vmem [resolvable:$true] %s456_s29 }
  0x12   : > { %s16736_s0 = sadd.s32 4294967295, %s16600_s27   ;;  %p14261_p0 = scmp.ge.s32.totalorder %s16600_s27, 1 }
  0x13   : > { %p19256_p1 = scmp.eq.s32.totalorder %s16736_s0, 0  ;;  %p438_p2 = scmp.lt.s32.totalorder %s16600_s27, 3 }
  0x14   : > { %s16603_s19 = smov [#allocation8]   ;;  %s16604_s20 = smov [#allocation7]  }
  0x15   : > { %p16741_p3 = pnand %p14261_p0, %p438_p2  ;;  %s482_s1 = sshll.u32 %s16603_s19, 4  ;;  %s16754_s1 = int_to_ptr.vmem [resolvable:$true] %s482_s1 }
  0x16   : > { %s16756_s21 = sshll.u32 %s16604_s20, 4  ;;  %s16407_s22 = scalar_lea.vmem %s457_s29, 1024  ;;  %s470_s21 = int_to_ptr.vmem [resolvable:$true] %s16756_s21 }
  0x17   : > { %s19287_s30 = scalar_select %p16741_p3, 1, 0 }
  0x18   : > { %p15984_p5 = pneg %p16741_p3  ;;  %p16408_p8 = scmp.ne.s32.totalorder %s457_s29, %s16407_s22 }
  0x19   : > { %p16415_p11 = scmp.lt.s32.totalorder %s457_s29, %s457_s29  ;;  %p16416_p12 = scmp.lt.s32.totalorder %s16407_s22, %s16407_s22 }
  0x1a   : > { %p16750_p6 = pnand %p15984_p5, %p19256_p1 }
  0x1b   : > { %p16417_p13 = por %p16416_p12, %p16415_p11 }
  0x1c   : > { %p16398_p7 = pneg %p16750_p6 }
  0x1e   : > { %p16410_p9 = pnand %p16408_p8, %p16398_p7 }
  0x20   : > { %p16411_p10 = pneg %p16410_p9 }
  0x22   : > { %p16418_p0 = pnand %p16417_p13, %p16411_p10 }
  0x24   : > { %16421 = shalt.err (!%p16418_p0)
}
  0x25   : > { %s19254_s23 = smov 128   ;;  %s16606_s28 = smov 8  }
  0x26   : > { %s19289_s5 = sld [smem:[#allocation23_spill]]  ;;  %s16433_s17 = scalar_lea.vmem %s16754_s1, 32 }
  0x27   : > { %p16434_p2 = scmp.ne.s32.totalorder %s16754_s1, %s16433_s17  ;;  %p16441_p9 = scmp.lt.s32.totalorder %s16754_s1, %s16754_s1 }
  0x28   : > { %p16442_p10 = scmp.lt.s32.totalorder %s16433_s17, %s16433_s17 }
  0x29   : > { %p16436_p5 = pnand %p16434_p2, %p16398_p7 }
  0x2a   : > { %p16443_p11 = por %p16442_p10, %p16441_p9 }
  0x2b   : > { %p16437_p8 = pneg %p16436_p5 }
  0x2c   : > { %15987 = dma.hbm_to_vmem [thread:$0]  (!%p16750_p6), %s19289_s5, 1024, %s457_s29, [#allocation6], %s19254_s23, %s19254_s23, %s16606_s28  }
  0x2d   : > { %p16444_p12 = pnand %p16443_p11, %p16437_p8 }
  0x2f   : > { %16447 = shalt.err (!%p16444_p12)
}
  0x30   : > { %s16607_s22 = smov 16   ;;  %s16608_s16 = smov 1  }
  0x31   : > { %s19290_s7 = sld [smem:[#allocation25_spill]]  ;;  %s16459_s20 = scalar_lea.vmem %s470_s21, 32 }
  0x32   : > { %p16460_p13 = scmp.ne.s32.totalorder %s470_s21, %s16459_s20  ;;  %p16467_p5 = scmp.lt.s32.totalorder %s470_s21, %s470_s21 }
  0x33   : > { %p16468_p8 = scmp.lt.s32.totalorder %s16459_s20, %s16459_s20 }
  0x34   : > { %p16462_p0 = pnand %p16460_p13, %p16398_p7 }
  0x35   : > { %p16469_p9 = por %p16468_p8, %p16467_p5 }
  0x36   : > { %p16463_p2 = pneg %p16462_p0 }
  0x37   : > { %15993 = dma.hbm_to_vmem [thread:$0]  (!%p16750_p6), %s19290_s7, 32, %s16754_s1, [#allocation9], %s16607_s22, %s16607_s22, %s16608_s16  }
  0x38   : > { %p16470_p10 = pnand %p16469_p9, %p16463_p2 }
  0x3a   : > { %16473 = shalt.err (!%p16470_p10)
}
  0x3b   : > { %s19291_s6 = sld [smem:[#allocation24_spill]]  ;;  %s16609_s1 = smov [#allocation10]  }
  0x3c   : > { %s498_s29 = sshll.u32 %s16609_s1, 4  ;;  %s499_s29 = int_to_ptr.vmem [resolvable:$true] %s498_s29 }
  0x3d   : > { %s16485_s19 = scalar_lea.vmem %s499_s29, 1024  ;;  %p16493_p0 = scmp.lt.s32.totalorder %s499_s29, %s499_s29 }
  0x3e   : > { %p16486_p11 = scmp.ne.s32.totalorder %s499_s29, %s16485_s19  ;;  %p16494_p5 = scmp.lt.s32.totalorder %s16485_s19, %s16485_s19 }
  0x40   : > { %p16488_p12 = pnand %p16486_p11, %p16398_p7  ;;  %p16495_p2 = por %p16494_p5, %p16493_p0 }
  0x41   : > { %15990 = dma.hbm_to_vmem [thread:$0]  (!%p16750_p6), %s19291_s6, 32, %s470_s21, [#allocation6], %s16607_s22, %s16607_s22, %s16608_s16  }
  0x42   : > { %p16489_p13 = pneg %p16488_p12 }
  0x44   : > { %p16496_p8 = pnand %p16495_p2, %p16489_p13 }
  0x46   : > { %16499 = shalt.err (!%p16496_p8)
}
  0x47   : > { %s19292_s23 = smov 128   ;;  %s19293_s9 = sld [smem:[#allocation26_spill]] }
  0x48   : > { %s14260_s18 = sadd.s32 4294967294, %s16600_s27   ;;  %s16806_s22 = sadd.s32 1, %s16600_s27  }
  0x49   : > { %19294 = sst [smem:[#allocation18_spill]] %s16806_s22  ;;  %s91_s20 = ssub.s32 %s16600_s27, %s16806_s22 }
  0x4a   : > { %s94_s17 = sadd.s32 1, %s16596_s26  ;;  %p92_p7 = scmp.eq.s32.totalorder %s91_s20, 0 }
  0x4b   : > { %p101_p9 = scmp.ne.s32.totalorder %s16596_s26, %s16592_s25  ;;  %p102_p10 = scmp.eq.s32.totalorder %s16600_s27, 0 }
  0x4c   : > { %p107_p11 = scmp.ne.s32.totalorder %s16592_s25, %s16588_s24  ;;  %p425_p13 = scmp.eq.s32.totalorder %s16736_s0, 1 }
  0x4d   : > { %15996 = dma.hbm_to_vmem [thread:$0]  (!%p16750_p6), %s19293_s9, 1024, %s499_s29, [#allocation9], %s19292_s23, %s19292_s23, %s16606_s28  }
  0x4e   : > { %s16817_s1 = scalar_select %p92_p7, %s16596_s26, %s94_s17  }
  0x4f   : > { %p16819_p12 = por %p102_p10, %p101_p9  ;;  %p16825_p6 = por %p19256_p1, %p107_p11 }
  0x50   : > { %19295 = sst [smem:[#allocation19_spill]] %s16817_s1  ;;  %p431_p0 = scmp.eq.s32.totalorder %s14260_s18, 1 }
  0x51   : > { %s19297_s28 = scalar_select %p16825_p6, 1, 0 }
  0x52   : > { %p16009_p5 = scmp.lt.s32.totalorder %s16600_s27, 2  ;;  %s550_s29 = sand.u32 1, %s16596_s26  }
  0x53   : > { %p16832_p2 = por %p425_p13, %p101_p9  ;;  %p16836_p8 = por %p431_p0, %p107_p11 }
  0x54   : > { %s14267_s21 = sshll.u32 %s550_s29, 3  ;;  %s14268_s20 = sshll.u32 %s16600_s27, 7 }
  0x55   : > { %s19298_s23 = scalar_select %p16832_p2, 1, 0 }
  0x56   : > { %s19299_s16 = scalar_select %p16836_p8, 1, 0 }
  0x57   : > { %s16844_s6 = scalar_lea.hbm %s19237_s2, %s14268_s20  ;;  %s554_s18 = scalar_lea.vmem [#allocation2], %s14267_s21 }
  0x58   : > { %s561_s7 = sshll.u32 %s554_s18, 4  ;;  %p16848_p7 = pnand %p16009_p5, %p16819_p12  ;;  %s562_s7 = int_to_ptr.vmem [resolvable:$true] %s561_s7 }
  0x59   : > { %s551_s1 = scalar_lea.sflag [#allocation3], %s550_s29  ;;  %s16500_s26 = scalar_lea.hbm %s16844_s6, 128 }
  0x5a   : > { %p16501_p9 = scmp.ne.s32.totalorder %s16844_s6, %s16500_s26  ;;  %p16502_p10 = pneg %p16848_p7 }
  0x5b   : > { %s16505_s17 = scalar_lea.hbm %s19237_s2, 256  ;;  %p16506_p0 = scmp.lt.s32.totalorder %s16844_s6, %s19237_s2 }
  0x5c   : > { %p16503_p11 = pnand %p16502_p10, %p16501_p9  ;;  %p16507_p12 = scmp.lt.s32.totalorder %s16505_s17, %s16500_s26 }
  0x5e   : > { %p16504_p13 = pneg %p16503_p11  ;;  %p16508_p5 = por %p16507_p12, %p16506_p0 }
  0x60   : > { %p16509_p4 = pnand %p16508_p5, %p16504_p13 }
  0x62   : > { %16512 = shalt.err (!%p16509_p4)
}
  0x63   : > { %s16513_s19 = scalar_lea.vmem %s562_s7, 128  ;;  %s16610_s29 = smov [#allocation2]  }
  0x64   : > { %p16514_p1 = scmp.ne.s32.totalorder %s562_s7, %s16513_s19  ;;  %s16518_s22 = sshll.u32 %s16610_s29, 4  ;;  %s16519_s22 = int_to_ptr.vmem [resolvable:$false] %s16518_s22 }
  0x65   : > { %s16520_s27 = scalar_lea.vmem %s16519_s22, 256  ;;  %p16521_p9 = scmp.lt.s32.totalorder %s562_s7, %s16519_s22 }
  0x66   : > { %p16516_p8 = pnand %p16514_p1, %p16502_p10  ;;  %p16522_p11 = scmp.lt.s32.totalorder %s16520_s27, %s16513_s19 }
  0x68   : > { %p16517_p2 = pneg %p16516_p8  ;;  %p16523_p6 = por %p16522_p11, %p16521_p9 }
  0x6a   : > { %p16524_p3 = pnand %p16523_p6, %p16517_p2 }
  0x6c   : > { %16527 = shalt.err (!%p16524_p3)
}
  0x6d   : > { %16000 = dma.hbm_to_vmem [thread:$0]  (!%p16848_p7), %s16844_s6, 128, %s562_s7, %s551_s1  }
  0x6e   : > { %p19301_p13 = scmp.ne.s32.totalorder %s19287_s30, 0 }
  0x70   : > { %570 = sbr.rel (%p19301_p13) target bundleno = 9058 (0x2362), region = 88 }
  0x75   : > { %s16869_s26 = sand.u32 1, %s16592_s25   ;;  %p19302_p1 = scmp.ne.s32.totalorder %s19297_s28, 0 }
  0x76   : > { %s19263_s5 = sshll.u32 %s16869_s26, 3  ;;  %s573_s22 = scalar_lea.sflag [#allocation3], %s16869_s26 }
  0x77   : > { %s16875_s27 = scalar_lea.vmem [#allocation2], %s19263_s5 }
  0x78   : > { %16571 = dma.done.wait (%p19302_p1), %s573_s22, 128  }
  0x79   : > { %16573 = vsyncadd (%p19302_p1), %s573_s22, 4294967168  ;;  %p19303_p3 = scmp.eq.s32.totalorder %s16736_s0, 0 }
  0x7b   : > { %16575 = dma.done.wait (%p19303_p3), [#allocation6], 1056   ;;  %p19304_p4 = pmov %p19303_p3 }
  0x7c   : > { %p19305_p6 = pmov %p19303_p3 }
  0x7d   : > { %16577 = vsyncadd (%p19304_p4), [#allocation6], 4294966240 }
  0x7e   : > { %16579 = dma.done.wait (%p19305_p6), [#allocation9], 1056   ;;  %p19306_p2 = pmov %p19303_p3 }
  0x7f   : > { %s14276_s6 = sshll.u32 %s16736_s0, 3  ;;  %s19307_s1 = sld [smem:[#allocation21_spill]]  ;;  %vm698_vm0 = vcmask 261120   ;;  %v690_v0 = vld [vmem:[%s19238_s3 + $0x18] sm:$0xff]  ;;  %v689_v1 = vld [vmem:[%s19238_s3 + $0x10] sm:$0xff]  ;;  %v688_v3 = vld [vmem:[%s19238_s3 + $0x8] sm:$0xff]  ;;  %v1465_v38 = vlaneseq }
  0x80   : > { %16581 = vsyncadd (%p19306_p2), [#allocation9], 4294966240  ;;  %p653_p8 = scmp.lt.s32.totalorder %s14276_s6, 15  ;;  %15046 = vmatprep.subr.mxu0 %v690_v0  ;;  %v687_v4 = vld [vmem:[%s19238_s3] sm:$0xff]  ;;  %v19274_v12 = vmov 0.0   ;;  %vm16612_vm1 = vmmov 0  }
  0x81   : > { %15047 = vmatpush3.msra.mxu0 %v690_v0  ;;  %15066 = vmatprep.subr.mxu1 %v19274_v12  ;;  %v14279_v14 = vld [vmem:[%s19239_s4] ss:$0 sm:$0xff]  ;;  %vm835_vm2 = vcmask 64512   ;;  %v1466_v39 = vshrl.u32 %v1465_v38, 7  ;;  %s19308_s21 = sld [smem:[#allocation22_spill]]  ;;  %s16615_s19 = smov 88  }
  0x82   : > { %s19330_s6 = smov (!%p653_p8, %s14276_s6), 15  ;;  %15048 = vmatprep.subr.mxu0 %v689_v1  ;;  %15068 = vmatprep.mubr.msk.f32.mxu1 %vm16612_vm1, %v19274_v12  ;;  %s16616_s29 = smov 120   ;;  %vm7070_vm3 = vcmask 523264  }
  0x83   : > { %s14277_s7 = sshll.u32 %s19330_s6, 3  ;;  %15049 = vmatpush3.msra.mxu0 %v689_v1  ;;  %v1467_v41 = vsub.s32 0, %v1466_v39  ;;  %s16617_s22 = smov 56  }
  0x84   : > { %15050 = vmatprep.subr.mxu0 %v688_v3  ;;  %s19272_s9 = smov 112   ;;  %s19270_s30 = smov 48  }
  0x85   : > { %s16896_s28 = scalar_lea.vmem %s19307_s1, %s14277_s7  ;;  %15051 = vmatpush3.msra.mxu0 %v688_v3  ;;  %s16613_s1 = smov 96  }
  0x86   : > { %v663_v2 = vld [vmem:[%s16896_s28] sm:$0xff]  ;;  %v664_v5 = vld [vmem:[%s16896_s28 + $0x8] sm:$0xff]  ;;  %15052 = vmatprep.subr.mxu0 %v687_v4  ;;  %v665_v6 = vld [vmem:[%s16896_s28 + $0x10] sm:$0xff]  ;;  %s16618_s7 = smov 80   ;;  %s19268_s20 = smov 104  }
  0x87   : > { %15054 = vmatprep.mubr.msk.f32.mxu0 %vm698_vm0, %v663_v2  ;;  %15053 = vmatpush3.msra.mxu0 %v687_v4  ;;  %v666_v7 = vld [vmem:[%s16896_s28 + $0x18] sm:$0xff]  ;;  %v667_v8 = vld [vmem:[%s16896_s28 + $0x20] sm:$0xff]  ;;  %v668_v9 = vld [vmem:[%s16896_s28 + $0x28] sm:$0xff]  ;;  %s17019_s18 = scalar_lea.vmem %s19308_s21, %s19330_s6  ;;  %s16614_s6 = smov 64  }
  0x88   : > { %15055 = vmatmul.mubr.msk.f32.vlgmr.msra.gmra.mxu0 %vm698_vm0, %v664_v5  ;;  %v669_v10 = vld [vmem:[%s16896_s28 + $0x30] sm:$0xff]  ;;  %v670_v11 = vld [vmem:[%s16896_s28 + $0x38] sm:$0xff]  ;;  %15091 = vmatprep.subr.mxu0 %v19274_v12  ;;  %v675_v40 = vld [vmem:[%s17019_s18 + $0x4] sm:$0x1]  ;;  %s19266_s17 = smov 72   ;;  %s19264_s21 = smov 40  }
  0x89   : > { %15057 = vmatprep.mubr.msk.f32.mxu0 %vm698_vm0, %v665_v6  ;;  %v683_v42 = vmul.f32 -1e+09, %v675_v40  ;;  %v677_v44 = vld [vmem:[%s17019_s18 + $0x6] sm:$0x1]  ;;  %v671_v47 = vld [vmem:[%s17019_s18] sm:$0x1] }
  0x8a   : > { %v685_v45 = vmul.f32 -1e+09, %v677_v44  ;;  %v679_v48 = vmul.f32 -1e+09, %v671_v47  ;;  %v672_v49 = vld [vmem:[%s17019_s18 + $0x1] sm:$0x1] }
  0x8b   : > { %v17022_v43 = vrot.slane %v683_v42, %v1467_v41  ;;  %v680_v51 = vmul.f32 -1e+09, %v672_v49  ;;  %v673_v53 = vld [vmem:[%s17019_s18 + $0x2] sm:$0x1]  ;;  %v674_v60 = vld [vmem:[%s17019_s18 + $0x3] sm:$0x1] }
  0x8c   : > { %15058 = vmatmul.mubr.msk.f32.gmra.mxu0 %vm698_vm0, %v666_v7  ;;  %v17025_v46 = vrot.slane %v685_v45, %v1467_v41  ;;  %v17029_v50 = vrot.slane %v679_v48, %v1467_v41  ;;  %v681_v58 = vmul.f32 -1e+09, %v673_v53  ;;  %v676_v63 = vld [vmem:[%s17019_s18 + $0x5] sm:$0x1]  ;;  %v682_v3 = vmul.f32 -1e+09, %v674_v60 }
  0x8d   : > { %15060 = vmatprep.mubr.msk.f32.mxu0 %vm698_vm0, %v667_v8  ;;  %v17035_v57 = vrot.slane %v680_v51, %v1467_v41  ;;  %v684_v5 = vmul.f32 -1e+09, %v676_v63  ;;  %v678_v8 = vld [vmem:[%s17019_s18 + $0x7] sm:$0x1]  ;;  %s14621_s18 = sshll.u32 %s16736_s0, 7  ;;  %p19320_p10 = scmp.ne.s32.totalorder %s19298_s23, 0 }
  0x8e   : > { %v17044_v2 = vrot.slane %v681_v58, %v1467_v41  ;;  %s16624_s0 = smov [#allocation11]  }
  0x90   : > { %15061 = vmatmul.mubr.msk.f32.gmra.mxu0 %vm698_vm0, %v668_v9 }
  0x91   : > { %15063 = vmatprep.mubr.msk.f32.mxu0 %vm698_vm0, %v669_v10 }
  0x94   : > { %15064 = vmatmul.mubr.msk.f32.gmra.mxu0 %vm698_vm0, %v670_v11  ;;  %v17052_v11 = vrot.slane %v682_v3, %v1467_v41 }
  0x95   : > { %15093 = vmatprep.mubr.msk.f32.mxu0 %vm16612_vm1, %v19274_v12 }
 0x148   : > { %v15056_v13 = vpop.f32.mrf.mxu0 }
 0x149   : > { %v16939_v19 = vadd.f32 %v15056_v13, %v14279_v14 }
 0x14a   : > { %v789_v15 = vpop.f32.mrf.mxu0 }
 0x14b   : > { %v16935_v16 = vadd.f32 %v14279_v14, %v789_v15  ;;  %v686_v15 = vmul.f32 -1e+09, %v678_v8 }
 0x14c   : > { %v15059_v17 = vpop.f32.mrf.mxu0 }
 0x14d   : > { %833 = vrot.lane.b32.xlu0 %v16935_v16, %s16613_s1  ;;  %v16943_v22 = vadd.f32 %v15059_v17, %v14279_v14 }
 0x14e   : > { %v799_v18 = vpop.f32.mrf.mxu0 }
 0x14f   : > { %v16941_v20 = vadd.f32 %v14279_v14, %v799_v18 }
 0x150   : > { %v15062_v21 = vpop.f32.mrf.mxu0 }
 0x151   : > { %988 = vrot.lane.b32.xlu1 %v16941_v20, %s16613_s1  ;;  %911 = vrot.lane.b32.xlu0 %v16939_v19, %s16613_s1  ;;  %v16953_v26 = vadd.f32 %v15062_v21, %v14279_v14 }
 0x152   : > { %v809_v23 = vpop.f32.mrf.mxu0 }
 0x153   : > { %v16949_v24 = vadd.f32 %v14279_v14, %v809_v23  ;;  %v17056_v23 = vrot.slane %v684_v5, %v1467_v41 }
 0x154   : > { %v15065_v25 = vpop.f32.mrf.mxu0 }
 0x155   : > { %1065 = vrot.lane.b32.xlu1 %v16943_v22, %s16613_s1  ;;  %1142 = vrot.lane.b32.xlu0 %v16949_v24, %s16613_s1  ;;  %v16961_v29 = vadd.f32 %v15065_v25, %v14279_v14 }
 0x156   : > { %v819_v27 = vpop.f32.mrf.mxu0 }
 0x157   : > { %v16957_v28 = vadd.f32 %v14279_v14, %v819_v27 }
 0x159   : > { %1219 = vrot.lane.b32.xlu1 %v16953_v26, %s16613_s1  ;;  %1296 = vrot.lane.b32.xlu0 %v16957_v28, %s16613_s1 }
 0x15d   : > { %1373 = vrot.lane.b32.xlu1 %v16961_v29, %s16613_s1 }
 0x1bf   : > { %v834_v30 = vpop.permute.xlu0 %833 }
 0x1c0   : > { %15067 = vmatpush3.xpose.msk.msra.mxu1 %vm835_vm2, %v834_v30 }
 0x1c1   : > { %15071 = vmatprep.subr.mxu1 %v19274_v12 }
 0x1c3   : > { %v989_v31 = vpop.permute.xlu1 %988  ;;  %15069 = vmatmul.mubr.msk.f32.vlgmr.msra.gmra.mxu1 %vm835_vm2, %v16935_v16  ;;  %v912_v32 = vpop.permute.xlu0 %911 }
 0x1c4   : > { %15072 = vmatpush3.xpose.msk.msra.mxu1 %vm835_vm2, %v912_v32  ;;  %15073 = vmatprep.mubr.msk.f32.mxu1 %vm16612_vm1, %v19274_v12 }
 0x1c5   : > { %15076 = vmatprep.subr.mxu1 %v19274_v12 }
 0x1c7   : > { %v1066_v33 = vpop.permute.xlu1 %1065  ;;  %15074 = vmatmul.mubr.msk.f32.vlgmr.msra.gmra.mxu1 %vm835_vm2, %v16939_v19  ;;  %v1143_v35 = vpop.permute.xlu0 %1142 }
 0x1c8   : > { %15077 = vmatpush3.xpose.msk.msra.mxu1 %vm835_vm2, %v989_v31  ;;  %15078 = vmatprep.mubr.msk.f32.mxu1 %vm16612_vm1, %v19274_v12 }
 0x1c9   : > { %15081 = vmatprep.subr.mxu1 %v19274_v12 }
 0x1cb   : > { %v1220_v34 = vpop.permute.xlu1 %1219  ;;  %15079 = vmatmul.mubr.msk.f32.vlgmr.msra.gmra.mxu1 %vm835_vm2, %v16941_v20  ;;  %v1297_v37 = vpop.permute.xlu0 %1296 }
 0x1cc   : > { %15082 = vmatpush3.xpose.msk.msra.mxu1 %vm835_vm2, %v1066_v33  ;;  %15092 = vmatpush3.xpose.msk.msra.mxu0 %vm835_vm2, %v1220_v34 }
 0x1cd   : > { %15083 = vmatprep.mubr.msk.f32.mxu1 %vm16612_vm1, %v19274_v12  ;;  %15101 = vmatprep.subr.mxu0 %v19274_v12 }
 0x1ce   : > { %15086 = vmatprep.subr.mxu1 %v19274_v12 }
 0x1cf   : > { %15094 = vmatmul.mubr.msk.f32.vlgmr.msra.gmra.mxu0 %vm835_vm2, %v16953_v26  ;;  %v1374_v36 = vpop.permute.xlu1 %1373  ;;  %15084 = vmatmul.mubr.msk.f32.vlgmr.msra.gmra.mxu1 %vm835_vm2, %v16943_v22 }
 0x1d0   : > { %15087 = vmatpush3.xpose.msk.msra.mxu1 %vm835_vm2, %v1143_v35  ;;  %15102 = vmatpush3.xpose.msk.msra.mxu0 %vm835_vm2, %v1374_v36  ;;  %v17064_v36 = vrot.slane %v686_v15, %v1467_v41 }
 0x1d1   : > { %15088 = vmatprep.mubr.msk.f32.mxu1 %vm16612_vm1, %v19274_v12  ;;  %15103 = vmatprep.mubr.msk.f32.mxu0 %vm16612_vm1, %v19274_v12 }
 0x1d2   : > { %15096 = vmatprep.subr.mxu1 %v19274_v12  ;;  %15111 = vmatprep.subr.mxu0 %v19274_v12 }
 0x1d3   : > { %15089 = vmatmul.mubr.msk.f32.vlgmr.msra.gmra.mxu1 %vm835_vm2, %v16949_v24  ;;  %15104 = vmatmul.mubr.msk.f32.vlgmr.msra.gmra.mxu0 %vm835_vm2, %v16961_v29 }
 0x1d4   : > { %15097 = vmatpush3.xpose.msk.msra.mxu1 %vm835_vm2, %v1297_v37  ;;  %15098 = vmatprep.mubr.msk.f32.mxu1 %vm16612_vm1, %v19274_v12 }
 0x1d5   : > { %15106 = vmatprep.subr.mxu1 %v19274_v12  ;;  %15113 = vmatprep.mubr.msk.f32.mxu0 %vm16612_vm1, %v19274_v12 }
 0x1d7   : > { %15099 = vmatmul.mubr.msk.f32.vlgmr.msra.gmra.mxu1 %vm835_vm2, %v16957_v28 }
 0x1d8   : > { %15108 = vmatprep.mubr.msk.f32.mxu1 %vm16612_vm1, %v19274_v12 }
 0x283   : > { %v906_v52 = vpop.f32.mrf.mxu1 }
 0x284   : > { %v1449_v54 = vmul.f32 0.35355338, %v906_v52 }
 0x285   : > { %v15070_v55 = vpop.f32.mrf.mxu1 }
 0x286   : > { %v17033_v56 = vadd.f32 %v17029_v50, %v1449_v54 }
 0x287   : > { %v983_v59 = vpop.f32.mrf.mxu1 }
 0x288   : > { %v1450_v61 = vmul.f32 0.35355338, %v983_v59  ;;  %v1513_v62 = vsel %vm835_vm2, %v17033_v56, -inf }
 0x289   : > { %1514 = vmax.xlane.f32.xlu0 %v1513_v62  ;;  %v15075_v0 = vpop.f32.mrf.mxu1 }
 0x28a   : > { %v17042_v1 = vadd.f32 %v17035_v57, %v1450_v61 }
 0x28b   : > { %v1060_v4 = vpop.f32.mrf.mxu1 }
 0x28c   : > { %v1451_v6 = vmul.f32 0.35355338, %v1060_v4  ;;  %v1516_v7 = vsel %vm835_vm2, %v17042_v1, -inf }
 0x28d   : > { %1517 = vmax.xlane.f32.xlu1 %v1516_v7  ;;  %v15080_v9 = vpop.f32.mrf.mxu1 }
 0x28e   : > { %v17050_v10 = vadd.f32 %v17044_v2, %v1451_v6 }
 0x28f   : > { %v1137_v13 = vpop.f32.mrf.mxu1  ;;  %v1291_v14 = vpop.f32.mrf.mxu0 }
 0x290   : > { %v1452_v17 = vmul.f32 0.35355338, %v1137_v13  ;;  %v1454_v18 = vmul.f32 0.35355338, %v1291_v14  ;;  %v1519_v21 = vsel %vm835_vm2, %v17050_v10, -inf }
 0x291   : > { %v15095_v25 = vpop.f32.mrf.mxu0  ;;  %1520 = vmax.xlane.f32.xlu0 %v1519_v21  ;;  %v15085_v27 = vpop.f32.mrf.mxu1 }
 0x292   : > { %v17059_v30 = vadd.f32 %v17052_v11, %v1452_v17  ;;  %v1510_v35 = vadd.f32 %v17056_v23, %v1454_v18 }
 0x293   : > { %v1214_v31 = vpop.f32.mrf.mxu1  ;;  %v1445_v32 = vpop.f32.mrf.mxu0 }
 0x294   : > { %v1456_v33 = vmul.f32 0.35355338, %v1445_v32  ;;  %v1522_v34 = vsel %vm835_vm2, %v17059_v30, -inf  ;;  %v1528_v40 = vsel %vm835_vm2, %v1510_v35, -inf  ;;  %v1453_v41 = vmul.f32 0.35355338, %v1214_v31 }
 0x295   : > { %v15105_v37 = vpop.f32.mrf.mxu0  ;;  %1523 = vmax.xlane.f32.xlu0 %v1522_v34  ;;  %v15090_v38 = vpop.f32.mrf.mxu1 }
 0x296   : > { %v1512_v42 = vadd.f32 %v17064_v36, %v1456_v33  ;;  %v17092_v48 = vadd.f32 %v17022_v43, %v1453_v41 }
 0x297   : > { %v1368_v39 = vpop.f32.mrf.mxu1 }
 0x298   : > { %v1534_v45 = vsel %vm835_vm2, %v1512_v42, -inf  ;;  %v1455_v47 = vmul.f32 0.35355338, %v1368_v39  ;;  %v1525_v49 = vsel %vm835_vm2, %v17092_v48, -inf }
 0x299   : > { %1529 = vmax.xlane.f32.xlu0 %v1528_v40  ;;  %v15100_v44 = vpop.f32.mrf.mxu1 }
 0x29a   : > { %v17097_v51 = vadd.f32 %v17025_v46, %v1455_v47 }
 0x29c   : > { %v1531_v52 = vsel %vm835_vm2, %v17097_v51, -inf }
 0x29d   : > { %1535 = vmax.xlane.f32.xlu0 %v1534_v45 }
 0x29e   : > { %1601 = vrot.lane.b32.xlu1 %v16935_v16, %s16614_s6 }
 0x2a2   : > { %1753 = vrot.lane.b32.xlu1 %v16941_v20, %s16614_s6 }
 0x2a6   : > { %1829 = vrot.lane.b32.xlu1 %v16943_v22, %s16614_s6 }
 0x2aa   : > { %1981 = vrot.lane.b32.xlu1 %v16953_v26, %s16614_s6 }
 0x2ae   : > { %2133 = vrot.lane.b32.xlu1 %v16961_v29, %s16614_s6 }
 0x2b2   : > { %2289 = vrot.lane.b32.xlu1 %v16939_v19, %s16615_s19 }
 0x2b3   : > { %1677 = vrot.lane.b32.xlu0 %v16939_v19, %s16614_s6 }
 0x2b7   : > { %1905 = vrot.lane.b32.xlu0 %v16949_v24, %s16614_s6 }
 0x2bb   : > { %2057 = vrot.lane.b32.xlu0 %v16957_v28, %s16614_s6 }
 0x2bf   : > { %2211 = vrot.lane.b32.xlu0 %v16935_v16, %s16615_s19 }
 0x2c3   : > { %2209 = vrot.lane.b32.xlu0 %v16935_v16, %s16616_s29 }
 0x2d6   : > { %1526 = vmax.xlane.f32.xlu1 %v1525_v49 }
 0x2da   : > { %1532 = vmax.xlane.f32.xlu1 %v1531_v52 }
 0x2eb   : > { %2287 = vrot.lane.b32.xlu1 %v16939_v19, %s16616_s29 }
 0x312   : > { %v1515_v53 = vpop.xlane.xlu0 %1514 }
 0x313   : > { %v1537_v54 = vsub.f32 %v17033_v56, %v1515_v53 }
 0x315   : > { %v1545_v55 = vmul.f32 1.442695, %v1537_v54 }
 0x316   : > { %v1518_v58 = vpop.xlane.xlu1 %1517 }
 0x317   : > { %16068 = vpow2.f32 %v1545_v55  ;;  %v1538_v59 = vsub.f32 %v17042_v1, %v1518_v58 }
 0x319   : > { %v1547_v60 = vmul.f32 1.442695, %v1538_v59 }
 0x31a   : > { %v1602_v61 = vpop.permute.xlu1 %1601  ;;  %v1521_v62 = vpop.xlane.xlu0 %1520 }
 0x31b   : > { %16070 = vpow2.f32 %v1547_v60  ;;  %v1539_v63 = vsub.f32 %v17050_v10, %v1521_v62  ;;  %15107 = vmatpush3.msra.mxu1 %v1602_v61 }
 0x31c   : > { %15116 = vmatprep.subr.mxu1 %v19274_v12 }
 0x31d   : > { %v1549_v0 = vmul.f32 1.442695, %v1539_v63 }
 0x31e   : > { %v1524_v3 = vpop.xlane.xlu0 %1523  ;;  %v1754_v34 = vpop.permute.xlu1 %1753 }
 0x31f   : > { %16072 = vpow2.f32 %v1549_v0  ;;  %v1540_v6 = vsub.f32 %v17059_v30, %v1524_v3 }
 0x321   : > { %v1551_v13 = vmul.f32 1.442695, %v1540_v6 }
 0x322   : > { %v1530_v4 = vpop.xlane.xlu0 %1529 }
 0x323   : > { %v1542_v5 = vsub.f32 %v1510_v35, %v1530_v4  ;;  %v1830_v35 = vpop.permute.xlu1 %1829 }
 0x324   : > { %v17107_v56 = vpop.eup %16068 }
 0x325   : > { %v1555_v7 = vmul.f32 1.442695, %v1542_v5  ;;  %v1561_v1 = vsel %vm835_vm2, %v17107_v56, 0.0 }
 0x326   : > { %1562 = vadd.xlane.f32.xlu1 %v1561_v1  ;;  %v1536_v8 = vpop.xlane.xlu0 %1535 }
 0x327   : > { %16074 = vpow2.f32 %v1555_v7  ;;  %v1544_v9 = vsub.f32 %v1512_v42, %v1536_v8  ;;  %v17137_v37 = vpop.permute.xlu1 %1981 }
 0x328   : > { %v17112_v10 = vpop.eup %16070 }
 0x329   : > { %v1559_v14 = vmul.f32 1.442695, %v1544_v9  ;;  %v1564_v15 = vsel %vm835_vm2, %v17112_v10, 0.0 }
 0x32a   : > { %1565 = vadd.xlane.f32.xlu0 %v1564_v15  ;;  %v1678_v17 = vpop.permute.xlu0 %1677 }
 0x32b   : > { %16076 = vpow2.f32 %v1559_v14  ;;  %15112 = vmatpush3.msra.mxu0 %v1678_v17  ;;  %v17141_v38 = vpop.permute.xlu1 %2133 }
 0x32c   : > { %v17116_v18 = vpop.eup %16072  ;;  %15121 = vmatprep.subr.mxu0 %v19274_v12  ;;  %16078 = vpow2.f32 %v1551_v13 }
 0x32d   : > { %v1567_v21 = vsel %vm835_vm2, %v17116_v18, 0.0 }
 0x32e   : > { %1568 = vadd.xlane.f32.xlu1 %v1567_v21 }
 0x32f   : > { %v17145_v39 = vpop.permute.xlu1 %2289 }
 0x334   : > { %v17121_v25 = vpop.eup %16074 }
 0x335   : > { %v1576_v27 = vsel %vm835_vm2, %v17121_v25, 0.0 }
 0x336   : > { %1577 = vadd.xlane.f32.xlu0 %v1576_v27 }
 0x338   : > { %v17125_v30 = vpop.eup %16076 }
 0x339   : > { %v1582_v31 = vsel %vm835_vm2, %v17125_v30, 0.0  ;;  %v17129_v32 = vpop.eup %16078 }
 0x33a   : > { %1583 = vadd.xlane.f32.xlu0 %v1582_v31  ;;  %v1570_v33 = vsel %vm835_vm2, %v17129_v32, 0.0 }
 0x33e   : > { %1571 = vadd.xlane.f32.xlu0 %v1570_v33 }
 0x33f   : > { %2445 = vrot.lane.b32.xlu1 %v16943_v22, %s16615_s19 }
 0x343   : > { %2443 = vrot.lane.b32.xlu1 %v16943_v22, %s16616_s29 }
 0x354   : > { %2367 = vrot.lane.b32.xlu0 %v16941_v20, %s16615_s19 }
 0x358   : > { %2365 = vrot.lane.b32.xlu0 %v16941_v20, %s16616_s29 }
 0x35c   : > { %2523 = vrot.lane.b32.xlu0 %v16949_v24, %s16615_s19 }
 0x35f   : > { %v1527_v40 = vpop.xlane.xlu1 %1526 }
 0x360   : > { %v1541_v42 = vsub.f32 %v17092_v48, %v1527_v40  ;;  %2521 = vrot.lane.b32.xlu0 %v16949_v24, %s16616_s29 }
 0x362   : > { %v1553_v44 = vmul.f32 1.442695, %v1541_v42 }
 0x363   : > { %v1533_v45 = vpop.xlane.xlu1 %1532 }
 0x364   : > { %16080 = vpow2.f32 %v1553_v44  ;;  %v1543_v41 = vsub.f32 %v17097_v51, %v1533_v45  ;;  %2679 = vrot.lane.b32.xlu0 %v16957_v28, %s16615_s19  ;;  %v1906_v51 = vpop.permute.xlu0 %1905 }
 0x366   : > { %v1557_v47 = vmul.f32 1.442695, %v1543_v41 }
 0x367   : > { %v2288_v58 = vpop.permute.xlu1 %2287 }
 0x368   : > { %16082 = vpow2.f32 %v1557_v47  ;;  %2677 = vrot.lane.b32.xlu0 %v16957_v28, %s16616_s29  ;;  %v17173_v54 = vpop.permute.xlu0 %2057 }
 0x36c   : > { %v17175_v55 = vpop.permute.xlu0 %2211 }
 0x370   : > { %v17177_v59 = vpop.permute.xlu0 %2209 }
 0x371   : > { %v17157_v49 = vpop.eup %16080 }
 0x372   : > { %v1573_v48 = vsel %vm835_vm2, %v17157_v49, 0.0 }
 0x373   : > { %1574 = vadd.xlane.f32.xlu1 %v1573_v48 }
 0x375   : > { %v17161_v52 = vpop.eup %16082 }
 0x376   : > { %v1579_v53 = vsel %vm835_vm2, %v17161_v52, 0.0 }
 0x377   : > { %1580 = vadd.xlane.f32.xlu1 %v1579_v53 }
 0x388   : > { %2601 = vrot.lane.b32.xlu1 %v16953_v26, %s16615_s19 }
 0x38c   : > { %2599 = vrot.lane.b32.xlu1 %v16953_v26, %s16616_s29 }
 0x390   : > { %2757 = vrot.lane.b32.xlu1 %v16961_v29, %s16615_s19 }
 0x394   : > { %2755 = vrot.lane.b32.xlu1 %v16961_v29, %s16616_s29 }
 0x3af   : > { %v1563_v60 = vpop.xlane.xlu1 %1562 }
 0x3b0   : > { %16084 = vrcp.f32 %v1563_v60 }
 0x3b3   : > { %v1566_v61 = vpop.xlane.xlu0 %1565 }
 0x3b4   : > { %16086 = vrcp.f32 %v1566_v61 }
 0x3b7   : > { %v1569_v62 = vpop.xlane.xlu1 %1568 }
 0x3b8   : > { %16088 = vrcp.f32 %v1569_v62 }
 0x3bb   : > { %v2446_v17 = vpop.permute.xlu1 %2445 }
 0x3bd   : > { %v16085_v63 = vpop.eup %16084 }
 0x3be   : > { %v1593_v0 = vmul.f32 %v16085_v63, %v17107_v56 }
 0x3bf   : > { %v1578_v3 = vpop.xlane.xlu0 %1577 }
 0x3c0   : > { %15109 = vmatmul.mubr.msk.f32.vlgmr.msra.gmra.mxu1 %vm835_vm2, %v1593_v0 }
 0x3c1   : > { %v16087_v4 = vpop.eup %16086  ;;  %15117 = vmatpush3.msra.mxu1 %v1754_v34  ;;  %15118 = vmatprep.mubr.msk.f32.mxu1 %vm16612_vm1, %v19274_v12 }
 0x3c2   : > { %v1594_v5 = vmul.f32 %v16087_v4, %v17112_v10  ;;  %15126 = vmatprep.subr.mxu1 %v19274_v12 }
 0x3c3   : > { %v1584_v6 = vpop.xlane.xlu0 %1583 }
 0x3c4   : > { %15114 = vmatmul.mubr.msk.f32.vlgmr.msra.gmra.mxu0 %vm835_vm2, %v1594_v5 }
 0x3c5   : > { %v16089_v7 = vpop.eup %16088  ;;  %15122 = vmatpush3.msra.mxu0 %v1830_v35  ;;  %15123 = vmatprep.mubr.msk.f32.mxu0 %vm16612_vm1, %v19274_v12 }
 0x3c6   : > { %v1595_v56 = vmul.f32 %v16089_v7, %v17116_v18  ;;  %15131 = vmatprep.subr.mxu0 %v19274_v12  ;;  %v2444_v18 = vpop.permute.xlu1 %2443 }
 0x3c7   : > { %v1572_v1 = vpop.xlane.xlu0 %1571 }
 0x3c8   : > { %16090 = vrcp.f32 %v1572_v1  ;;  %15119 = vmatmul.mubr.msk.f32.vlgmr.msra.gmra.mxu1 %vm835_vm2, %v1595_v56 }
 0x3c9   : > { %15127 = vmatpush3.msra.mxu1 %v1906_v51  ;;  %15128 = vmatprep.mubr.msk.f32.mxu1 %vm16612_vm1, %v19274_v12  ;;  %16092 = vrcp.f32 %v1578_v3 }
 0x3ca   : > { %15136 = vmatprep.subr.mxu1 %v19274_v12  ;;  %16094 = vrcp.f32 %v1584_v6 }
 0x3cb   : > { %v2368_v27 = vpop.permute.xlu0 %2367 }
 0x3cf   : > { %v2366_v31 = vpop.permute.xlu0 %2365 }
 0x3d5   : > { %v16091_v8 = vpop.eup %16090 }
 0x3d6   : > { %v1596_v9 = vmul.f32 %v16091_v8, %v17129_v32  ;;  %v16093_v10 = vpop.eup %16092 }
 0x3d7   : > { %v1598_v13 = vmul.f32 %v16093_v10, %v17121_v25  ;;  %v16095_v14 = vpop.eup %16094 }
 0x3d8   : > { %15124 = vmatmul.mubr.msk.f32.vlgmr.msra.gmra.mxu0 %vm835_vm2, %v1596_v9  ;;  %v1600_v15 = vmul.f32 %v16095_v14, %v17125_v30 }
 0x3d9   : > { %15132 = vmatpush3.msra.mxu0 %v17137_v37  ;;  %15133 = vmatprep.mubr.msk.f32.mxu0 %vm16612_vm1, %v19274_v12 }
 0x3da   : > { %15141 = vmatprep.subr.mxu0 %v19274_v12 }
 0x3dc   : > { %15134 = vmatmul.mubr.msk.f32.vlgmr.msra.gmra.mxu0 %vm835_vm2, %v1598_v13 }
 0x3dd   : > { %15142 = vmatpush3.msra.mxu0 %v17141_v38  ;;  %15143 = vmatprep.mubr.msk.f32.mxu0 %vm16612_vm1, %v19274_v12  ;;  %v2524_v38 = vpop.permute.xlu0 %2523 }
 0x3de   : > { %15151 = vmatprep.subr.mxu0 %v19274_v12 }
 0x3e0   : > { %15144 = vmatmul.mubr.msk.f32.vlgmr.msra.gmra.mxu0 %vm835_vm2, %v1600_v15 }
 0x3e1   : > { %15152 = vmatpush3.xpose.msk.msra.mxu0 %vm835_vm2, %v17145_v39  ;;  %15153 = vmatprep.mubr.msk.f32.mxu0 %vm16612_vm1, %v19274_v12  ;;  %v2522_v42 = vpop.permute.xlu0 %2521 }
 0x3e2   : > { %15161 = vmatprep.subr.mxu0 %v19274_v12 }
 0x3e4   : > { %15154 = vmatmul.mubr.msk.f32.vlgmr.msra.gmra.mxu0 %vm835_vm2, %v2288_v58 }
 0x3e5   : > { %15162 = vmatpush3.xpose.msk.msra.mxu0 %vm835_vm2, %v2446_v17  ;;  %15163 = vmatprep.mubr.msk.f32.mxu0 %vm16612_vm1, %v19274_v12  ;;  %v2680_v44 = vpop.permute.xlu0 %2679 }
 0x3e6   : > { %15171 = vmatprep.subr.mxu0 %v19274_v12 }
 0x3e8   : > { %15164 = vmatmul.mubr.msk.f32.vlgmr.msra.gmra.mxu0 %vm835_vm2, %v2444_v18 }
 0x3e9   : > { %15173 = vmatprep.mubr.msk.f32.mxu0 %vm16612_vm1, %v19274_v12  ;;  %v2678_v45 = vpop.permute.xlu0 %2677 }
 0x3fc   : > { %v1575_v21 = vpop.xlane.xlu1 %1574 }
 0x3fd   : > { %16096 = vrcp.f32 %v1575_v21 }
 0x400   : > { %v1581_v25 = vpop.xlane.xlu1 %1580 }
 0x401   : > { %16098 = vrcp.f32 %v1581_v25 }
 0x404   : > { %v2602_v30 = vpop.permute.xlu1 %2601 }
 0x405   : > { %15172 = vmatpush3.xpose.msk.msra.mxu0 %vm835_vm2, %v2602_v30 }
 0x406   : > { %15181 = vmatprep.subr.mxu0 %v19274_v12 }
 0x408   : > { %v2600_v32 = vpop.permute.xlu1 %2599 }
 0x409   : > { %15174 = vmatmul.mubr.msk.f32.vlgmr.msra.gmra.mxu0 %vm835_vm2, %v2600_v32 }
 0x40a   : > { %v16097_v33 = vpop.eup %16096  ;;  %15183 = vmatprep.mubr.msk.f32.mxu0 %vm16612_vm1, %v19274_v12 }
 0x40b   : > { %v1597_v34 = vmul.f32 %v16097_v33, %v17157_v49 }
 0x40c   : > { %v2758_v35 = vpop.permute.xlu1 %2757 }
 0x40d   : > { %15129 = vmatmul.mubr.msk.f32.vlgmr.msra.gmra.mxu1 %vm835_vm2, %v1597_v34  ;;  %15182 = vmatpush3.xpose.msk.msra.mxu0 %vm835_vm2, %v2758_v35 }
 0x40e   : > { %v16099_v37 = vpop.eup %16098  ;;  %15137 = vmatpush3.msra.mxu1 %v17173_v54  ;;  %15138 = vmatprep.mubr.msk.f32.mxu1 %vm16612_vm1, %v19274_v12 }
 0x40f   : > { %15146 = vmatprep.subr.mxu1 %v19274_v12  ;;  %v1599_v39 = vmul.f32 %v16099_v37, %v17161_v52  ;;  %15191 = vmatprep.subr.mxu0 %v19274_v12 }
 0x410   : > { %v2756_v40 = vpop.permute.xlu1 %2755 }
 0x411   : > { %15139 = vmatmul.mubr.msk.f32.vlgmr.msra.gmra.mxu1 %vm835_vm2, %v1599_v39  ;;  %15184 = vmatmul.mubr.msk.f32.vlgmr.msra.gmra.mxu0 %vm835_vm2, %v2756_v40 }
 0x412   : > { %15147 = vmatpush3.xpose.msk.msra.mxu1 %vm835_vm2, %v17175_v55  ;;  %15148 = vmatprep.mubr.msk.f32.mxu1 %vm16612_vm1, %v19274_v12 }
 0x413   : > { %15156 = vmatprep.subr.mxu1 %v19274_v12  ;;  %15193 = vmatprep.mubr.msk.f32.mxu0 %vm16612_vm1, %v19274_v12 }
 0x415   : > { %15149 = vmatmul.mubr.msk.f32.vlgmr.msra.gmra.mxu1 %vm835_vm2, %v17177_v59 }
 0x416   : > { %15157 = vmatpush3.xpose.msk.msra.mxu1 %vm835_vm2, %v2368_v27  ;;  %15158 = vmatprep.mubr.msk.f32.mxu1 %vm16612_vm1, %v19274_v12 }
 0x417   : > { %15166 = vmatprep.subr.mxu1 %v19274_v12 }
 0x419   : > { %15159 = vmatmul.mubr.msk.f32.vlgmr.msra.gmra.mxu1 %vm835_vm2, %v2366_v31 }
 0x41a   : > { %15167 = vmatpush3.xpose.msk.msra.mxu1 %vm835_vm2, %v2524_v38  ;;  %15168 = vmatprep.mubr.msk.f32.mxu1 %vm16612_vm1, %v19274_v12 }
 0x41b   : > { %15176 = vmatprep.subr.mxu1 %v19274_v12 }
 0x41d   : > { %15169 = vmatmul.mubr.msk.f32.vlgmr.msra.gmra.mxu1 %vm835_vm2, %v2522_v42 }
 0x41e   : > { %15177 = vmatpush3.xpose.msk.msra.mxu1 %vm835_vm2, %v2680_v44  ;;  %15178 = vmatprep.mubr.msk.f32.mxu1 %vm16612_vm1, %v19274_v12 }
 0x41f   : > { %15186 = vmatprep.subr.mxu1 %v19274_v12 }
 0x421   : > { %15179 = vmatmul.mubr.msk.f32.vlgmr.msra.gmra.mxu1 %vm835_vm2, %v2678_v45 }
 0x422   : > { %15188 = vmatprep.mubr.msk.f32.mxu1 %vm16612_vm1, %v19274_v12 }
 0x480   : > { %v17263_v41 = vpop.f32.mrf.mxu1 }
 0x482   : > { %v15110_v47 = vpop.f32.mrf.mxu1 }
 0x484   : > { %v17265_v49 = vpop.f32.mrf.mxu0 }
 0x486   : > { %v15115_v48 = vpop.f32.mrf.mxu0 }
 0x488   : > { %v17267_v52 = vpop.f32.mrf.mxu1 }
 0x48a   : > { %v15120_v53 = vpop.f32.mrf.mxu1 }
 0x498   : > { %v17269_v51 = vpop.f32.mrf.mxu0 }
 0x49a   : > { %v15125_v54 = vpop.f32.mrf.mxu0 }
 0x49c   : > { %v17271_v55 = vpop.f32.mrf.mxu0 }
 0x49e   : > { %v15135_v58 = vpop.f32.mrf.mxu0 }
 0x4a0   : > { %v17273_v59 = vpop.f32.mrf.mxu0 }
 0x4a2   : > { %v15145_v60 = vpop.f32.mrf.mxu0 }
 0x4a4   : > { %v2361_v61 = vpop.f32.mrf.mxu0 }
 0x4a5   : > { %v2834_v62 = vmul.f32 0.35355338, %v2361_v61 }
 0x4a6   : > { %v15155_v63 = vpop.f32.mrf.mxu0 }
 0x4a7   : > { %v2842_v0 = vadd.f32 %v2834_v62, %v17035_v57 }
 0x4a8   : > { %v2517_v3 = vpop.f32.mrf.mxu0 }
 0x4a9   : > { %v2852_v4 = vsel %vm835_vm2, %v2842_v0, -inf  ;;  %v2836_v21 = vmul.f32 0.35355338, %v2517_v3 }
 0x4aa   : > { %2853 = vmax.xlane.f32.xlu1 %v2852_v4  ;;  %v15165_v5 = vpop.f32.mrf.mxu0 }
 0x4ab   : > { %v2844_v34 = vadd.f32 %v2836_v21, %v17052_v11 }
 0x4ad   : > { %v2858_v44 = vsel %vm835_vm2, %v2844_v34, -inf }
 0x4c9   : > { %v2673_v6 = vpop.f32.mrf.mxu0 }
 0x4ca   : > { %v2838_v35 = vmul.f32 0.35355338, %v2673_v6 }
 0x4cb   : > { %v15175_v7 = vpop.f32.mrf.mxu0 }
 0x4cc   : > { %v2846_v53 = vadd.f32 %v2838_v35, %v17056_v23 }
 0x4cd   : > { %v17277_v56 = vpop.f32.mrf.mxu1 }
 0x4ce   : > { %v2864_v60 = vsel %vm835_vm2, %v2846_v53, -inf }
 0x4cf   : > { %v15130_v1 = vpop.f32.mrf.mxu1 }
 0x4d1   : > { %v17279_v8 = vpop.f32.mrf.mxu1  ;;  %v2829_v9 = vpop.f32.mrf.mxu0 }
 0x4d2   : > { %v2840_v45 = vmul.f32 0.35355338, %v2829_v9 }
 0x4d3   : > { %v15140_v10 = vpop.f32.mrf.mxu1  ;;  %v15185_v13 = vpop.f32.mrf.mxu0 }
 0x4d4   : > { %v2848_v62 = vadd.f32 %v2840_v45, %v17064_v36 }
 0x4d5   : > { %v2283_v14 = vpop.f32.mrf.mxu1 }
 0x4d6   : > { %v2833_v15 = vmul.f32 0.35355338, %v2283_v14  ;;  %v2870_v63 = vsel %vm835_vm2, %v2848_v62, -inf }
 0x4d7   : > { %v15150_v17 = vpop.f32.mrf.mxu1 }
 0x4d8   : > { %v2841_v18 = vadd.f32 %v2833_v15, %v17029_v50 }
 0x4d9   : > { %v2439_v25 = vpop.f32.mrf.mxu1 }
 0x4da   : > { %v2835_v27 = vmul.f32 0.35355338, %v2439_v25  ;;  %v2849_v30 = vsel %vm835_vm2, %v2841_v18, -inf }
 0x4db   : > { %2850 = vmax.xlane.f32.xlu0 %v2849_v30  ;;  %v15160_v31 = vpop.f32.mrf.mxu1 }
 0x4dc   : > { %v2843_v32 = vadd.f32 %v2835_v27, %v17044_v2 }
 0x4dd   : > { %v2595_v33 = vpop.f32.mrf.mxu1 }
 0x4de   : > { %v2837_v37 = vmul.f32 0.35355338, %v2595_v33  ;;  %v2855_v38 = vsel %vm835_vm2, %v2843_v32, -inf }
 0x4df   : > { %2856 = vmax.xlane.f32.xlu0 %v2855_v38  ;;  %v15170_v39 = vpop.f32.mrf.mxu1 }
 0x4e0   : > { %v2845_v40 = vadd.f32 %v2837_v37, %v17022_v43 }
 0x4e1   : > { %v2751_v42 = vpop.f32.mrf.mxu1 }
 0x4e2   : > { %v2839_v47 = vmul.f32 0.35355338, %v2751_v42  ;;  %v2861_v48 = vsel %vm835_vm2, %v2845_v40, -inf }
 0x4e3   : > { %2859 = vmax.xlane.f32.xlu0 %v2858_v44  ;;  %2862 = vmax.xlane.f32.xlu1 %v2861_v48  ;;  %v15180_v54 = vpop.f32.mrf.mxu1 }
 0x4e4   : > { %v2847_v58 = vadd.f32 %v2839_v47, %v17025_v46 }
 0x4e6   : > { %v2867_v61 = vsel %vm835_vm2, %v2847_v58, -inf }
 0x4e7   : > { %2865 = vmax.xlane.f32.xlu0 %v2864_v60  ;;  %2868 = vmax.xlane.f32.xlu1 %v2867_v61 }
 0x4eb   : > { %2871 = vmax.xlane.f32.xlu0 %v2870_v63 }
 0x4f8   : > { %2937 = vrot.lane.b32.xlu1 %v16935_v16, %s16617_s22 }
 0x4fc   : > { %3089 = vrot.lane.b32.xlu1 %v16941_v20, %s16617_s22 }
 0x500   : > { %3165 = vrot.lane.b32.xlu1 %v16943_v22, %s16617_s22 }
 0x501   : > { %3013 = vrot.lane.b32.xlu0 %v16939_v19, %s16617_s22 }
 0x504   : > { %3317 = vrot.lane.b32.xlu1 %v16953_v26, %s16617_s22 }
 0x505   : > { %3241 = vrot.lane.b32.xlu0 %v16949_v24, %s16617_s22 }
 0x533   : > { %v2854_v3 = vpop.xlane.xlu1 %2853 }
 0x534   : > { %v2874_v4 = vsub.f32 %v2842_v0, %v2854_v3 }
 0x536   : > { %v2883_v5 = vmul.f32 1.442695, %v2874_v4 }
 0x538   : > { %16100 = vpow2.f32 %v2883_v5 }
 0x545   : > { %v17307_v6 = vpop.eup %16100 }
 0x546   : > { %v2900_v7 = vsel %vm835_vm2, %v17307_v6, 0.0 }
 0x547   : > { %2901 = vadd.xlane.f32.xlu0 %v2900_v7 }
 0x564   : > { %v2851_v1 = vpop.xlane.xlu0 %2850 }
 0x565   : > { %v2873_v9 = vsub.f32 %v2841_v18, %v2851_v1 }
 0x567   : > { %v2881_v10 = vmul.f32 1.442695, %v2873_v9 }
 0x568   : > { %v2857_v13 = vpop.xlane.xlu0 %2856 }
 0x569   : > { %16102 = vpow2.f32 %v2881_v10  ;;  %v2875_v14 = vsub.f32 %v2843_v32, %v2857_v13 }
 0x56b   : > { %v2885_v15 = vmul.f32 1.442695, %v2875_v14 }
 0x56c   : > { %v2863_v17 = vpop.xlane.xlu1 %2862  ;;  %v2860_v21 = vpop.xlane.xlu0 %2859 }
 0x56d   : > { %16104 = vpow2.f32 %v2885_v15  ;;  %v2877_v25 = vsub.f32 %v2845_v40, %v2863_v17  ;;  %v2876_v0 = vsub.f32 %v2844_v34, %v2860_v21 }
 0x56f   : > { %v2889_v27 = vmul.f32 1.442695, %v2877_v25  ;;  %v2887_v30 = vmul.f32 1.442695, %v2876_v0 }
 0x570   : > { %v2869_v31 = vpop.xlane.xlu1 %2868  ;;  %v2866_v33 = vpop.xlane.xlu0 %2865 }
 0x571   : > { %16106 = vpow2.f32 %v2889_v27  ;;  %v2879_v35 = vsub.f32 %v2847_v58, %v2869_v31  ;;  %v2878_v37 = vsub.f32 %v2846_v53, %v2866_v33 }
 0x572   : > { %16108 = vpow2.f32 %v2887_v30 }
 0x573   : > { %v2893_v38 = vmul.f32 1.442695, %v2879_v35  ;;  %v2891_v18 = vmul.f32 1.442695, %v2878_v37 }
 0x574   : > { %v2938_v39 = vpop.permute.xlu1 %2937  ;;  %v2872_v42 = vpop.xlane.xlu0 %2871 }
 0x575   : > { %16110 = vpow2.f32 %v2893_v38  ;;  %v2880_v32 = vsub.f32 %v2848_v62, %v2872_v42  ;;  %15187 = vmatpush3.msra.mxu1 %v2938_v39 }
 0x576   : > { %v17311_v44 = vpop.eup %16102  ;;  %16112 = vpow2.f32 %v2891_v18  ;;  %15196 = vmatprep.subr.mxu1 %v19274_v12 }
 0x577   : > { %v2895_v34 = vmul.f32 1.442695, %v2880_v32  ;;  %v2897_v40 = vsel %vm835_vm2, %v17311_v44, 0.0 }
 0x578   : > { %2898 = vadd.xlane.f32.xlu1 %v2897_v40  ;;  %v3014_v45 = vpop.permute.xlu0 %3013  ;;  %v3090_v9 = vpop.permute.xlu1 %3089 }
 0x579   : > { %16114 = vpow2.f32 %v2895_v34  ;;  %15192 = vmatpush3.msra.mxu0 %v3014_v45 }
 0x57a   : > { %v17316_v47 = vpop.eup %16104  ;;  %15201 = vmatprep.subr.mxu0 %v19274_v12 }
 0x57b   : > { %v2903_v48 = vsel %vm835_vm2, %v17316_v47, 0.0 }
 0x57c   : > { %2904 = vadd.xlane.f32.xlu1 %v2903_v48  ;;  %v3242_v7 = vpop.permute.xlu0 %3241  ;;  %v3166_v14 = vpop.permute.xlu1 %3165 }
 0x57e   : > { %v17321_v53 = vpop.eup %16106 }
 0x57f   : > { %v17323_v54 = vpop.eup %16108  ;;  %v2909_v58 = vsel %vm835_vm2, %v17321_v53, 0.0 }
 0x580   : > { %2910 = vadd.xlane.f32.xlu1 %v2909_v58  ;;  %v2906_v60 = vsel %vm835_vm2, %v17323_v54, 0.0  ;;  %v3318_v15 = vpop.permute.xlu1 %3317 }
 0x581   : > { %2907 = vadd.xlane.f32.xlu0 %v2906_v60 }
 0x582   : > { %v17329_v61 = vpop.eup %16110 }
 0x583   : > { %v17331_v62 = vpop.eup %16112  ;;  %v2915_v63 = vsel %vm835_vm2, %v17329_v61, 0.0 }
 0x584   : > { %2916 = vadd.xlane.f32.xlu1 %v2915_v63  ;;  %v2912_v3 = vsel %vm835_vm2, %v17331_v62, 0.0 }
 0x585   : > { %2913 = vadd.xlane.f32.xlu0 %v2912_v3 }
 0x586   : > { %v17337_v4 = vpop.eup %16114 }
 0x587   : > { %v2918_v5 = vsel %vm835_vm2, %v17337_v4, 0.0 }
 0x589   : > { %2919 = vadd.xlane.f32.xlu0 %v2918_v5 }
 0x595   : > { %3469 = vrot.lane.b32.xlu1 %v16961_v29, %s16617_s22 }
 0x599   : > { %3883 = vrot.lane.b32.xlu1 %v16939_v19, %s16618_s7 }
 0x59d   : > { %3881 = vrot.lane.b32.xlu1 %v16939_v19, %s19272_s9 }
 0x59f   : > { %3393 = vrot.lane.b32.xlu0 %v16957_v28, %s16617_s22 }
 0x5a1   : > { %4039 = vrot.lane.b32.xlu1 %v16943_v22, %s16618_s7 }
 0x5a3   : > { %3805 = vrot.lane.b32.xlu0 %v16935_v16, %s16618_s7 }
 0x5a5   : > { %4037 = vrot.lane.b32.xlu1 %v16943_v22, %s19272_s9 }
 0x5a7   : > { %3803 = vrot.lane.b32.xlu0 %v16935_v16, %s19272_s9 }
 0x5a9   : > { %4195 = vrot.lane.b32.xlu1 %v16953_v26, %s16618_s7 }
 0x5ab   : > { %3961 = vrot.lane.b32.xlu0 %v16941_v20, %s16618_s7 }
 0x5ad   : > { %4193 = vrot.lane.b32.xlu1 %v16953_v26, %s19272_s9 }
 0x5af   : > { %3959 = vrot.lane.b32.xlu0 %v16941_v20, %s19272_s9 }
 0x5b1   : > { %4351 = vrot.lane.b32.xlu1 %v16961_v29, %s16618_s7 }
 0x5b3   : > { %4117 = vrot.lane.b32.xlu0 %v16949_v24, %s16618_s7 }
 0x5b5   : > { %4349 = vrot.lane.b32.xlu1 %v16961_v29, %s19272_s9 }
 0x5b7   : > { %4115 = vrot.lane.b32.xlu0 %v16949_v24, %s19272_s9 }
 0x5bb   : > { %4273 = vrot.lane.b32.xlu0 %v16957_v28, %s16618_s7 }
 0x5bf   : > { %4271 = vrot.lane.b32.xlu0 %v16957_v28, %s19272_s9 }
 0x5d0   : > { %v2902_v1 = vpop.xlane.xlu0 %2901 }
 0x5d1   : > { %16116 = vrcp.f32 %v2902_v1 }
 0x5de   : > { %v16117_v10 = vpop.eup %16116 }
 0x5df   : > { %v2930_v13 = vmul.f32 %v16117_v10, %v17307_v6 }
 0x5e1   : > { %15194 = vmatmul.mubr.msk.f32.vlgmr.msra.gmra.mxu0 %vm835_vm2, %v2930_v13 }
 0x5e2   : > { %15202 = vmatpush3.msra.mxu0 %v3166_v14  ;;  %15203 = vmatprep.mubr.msk.f32.mxu0 %vm16612_vm1, %v19274_v12 }
 0x5e3   : > { %15211 = vmatprep.subr.mxu0 %v19274_v12 }
 0x601   : > { %v2899_v17 = vpop.xlane.xlu1 %2898 }
 0x602   : > { %16118 = vrcp.f32 %v2899_v17 }
 0x605   : > { %v2905_v21 = vpop.xlane.xlu1 %2904 }
 0x606   : > { %16120 = vrcp.f32 %v2905_v21 }
 0x609   : > { %v2911_v25 = vpop.xlane.xlu1 %2910 }
 0x60a   : > { %16122 = vrcp.f32 %v2911_v25  ;;  %v2908_v0 = vpop.xlane.xlu0 %2907 }
 0x60b   : > { %16124 = vrcp.f32 %v2908_v0 }
 0x60d   : > { %v2917_v27 = vpop.xlane.xlu1 %2916 }
 0x60e   : > { %16126 = vrcp.f32 %v2917_v27  ;;  %v2914_v6 = vpop.xlane.xlu0 %2913 }
 0x60f   : > { %v16119_v30 = vpop.eup %16118  ;;  %16128 = vrcp.f32 %v2914_v6 }
 0x610   : > { %v2929_v31 = vmul.f32 %v16119_v30, %v17311_v44 }
 0x611   : > { %v3470_v33 = vpop.permute.xlu1 %3469 }
 0x612   : > { %v2920_v35 = vpop.xlane.xlu0 %2919  ;;  %15189 = vmatmul.mubr.msk.f32.vlgmr.msra.gmra.mxu1 %vm835_vm2, %v2929_v31 }
 0x613   : > { %v16121_v37 = vpop.eup %16120  ;;  %16130 = vrcp.f32 %v2920_v35  ;;  %15197 = vmatpush3.msra.mxu1 %v3090_v9  ;;  %15198 = vmatprep.mubr.msk.f32.mxu1 %vm16612_vm1, %v19274_v12 }
 0x614   : > { %15206 = vmatprep.subr.mxu1 %v19274_v12  ;;  %v2931_v38 = vmul.f32 %v16121_v37, %v17316_v47 }
 0x615   : > { %v3884_v42 = vpop.permute.xlu1 %3883 }
 0x616   : > { %15199 = vmatmul.mubr.msk.f32.vlgmr.msra.gmra.mxu1 %vm835_vm2, %v2931_v38  ;;  %v3394_v34 = vpop.permute.xlu0 %3393 }
 0x617   : > { %v16123_v18 = vpop.eup %16122  ;;  %15207 = vmatpush3.msra.mxu1 %v3242_v7  ;;  %15208 = vmatprep.mubr.msk.f32.mxu1 %vm16612_vm1, %v19274_v12 }
 0x618   : > { %v16125_v39 = vpop.eup %16124  ;;  %15216 = vmatprep.subr.mxu1 %v19274_v12  ;;  %v2933_v32 = vmul.f32 %v16123_v18, %v17321_v53 }
 0x619   : > { %v2932_v44 = vmul.f32 %v16125_v39, %v17323_v54  ;;  %v3882_v53 = vpop.permute.xlu1 %3881  ;;  %v828_v54 = vld [vmem:[#allocation5] sm:$0xff] }
 0x61a   : > { %15209 = vmatmul.mubr.msk.f32.vlgmr.msra.gmra.mxu1 %vm835_vm2, %v2933_v32 }
 0x61b   : > { %v16127_v40 = vpop.eup %16126  ;;  %15204 = vmatmul.mubr.msk.f32.vlgmr.msra.gmra.mxu0 %vm835_vm2, %v2932_v44  ;;  %15217 = vmatpush3.msra.mxu1 %v3394_v34 }
 0x61c   : > { %v16129_v45 = vpop.eup %16128  ;;  %15212 = vmatpush3.msra.mxu0 %v3318_v15  ;;  %15213 = vmatprep.mubr.msk.f32.mxu0 %vm16612_vm1, %v19274_v12  ;;  %v2935_v47 = vmul.f32 %v16127_v40, %v17329_v61  ;;  %v829_v61 = vld [vmem:[#allocation5 + $0x8] sm:$0xff] }
 0x61d   : > { %15218 = vmatprep.mubr.msk.f32.mxu1 %vm16612_vm1, %v19274_v12  ;;  %15221 = vmatprep.subr.mxu0 %v19274_v12  ;;  %v2934_v48 = vmul.f32 %v16129_v45, %v17331_v62  ;;  %v4040_v63 = vpop.permute.xlu1 %4039 }
 0x61e   : > { %15219 = vmatmul.mubr.msk.f32.vlgmr.msra.gmra.mxu1 %vm835_vm2, %v2935_v47  ;;  %15226 = vmatprep.subr.mxu1 %v829_v61 }
 0x61f   : > { %15214 = vmatmul.mubr.msk.f32.vlgmr.msra.gmra.mxu0 %vm835_vm2, %v2934_v48  ;;  %15227 = vmatpush3.msra.mxu1 %v829_v61 }
 0x620   : > { %v16131_v58 = vpop.eup %16130  ;;  %15222 = vmatpush3.msra.mxu0 %v3470_v33  ;;  %15223 = vmatprep.mubr.msk.f32.mxu0 %vm16612_vm1, %v19274_v12 }
 0x621   : > { %v2936_v60 = vmul.f32 %v16131_v58, %v17337_v4  ;;  %15240 = vmatprep.subr.mxu0 %v828_v54  ;;  %15254 = vmatprep.subr.mxu1 %v19274_v12  ;;  %v4038_v62 = vpop.permute.xlu1 %4037 }
 0x623   : > { %15224 = vmatmul.mubr.msk.f32.vlgmr.msra.gmra.mxu0 %vm835_vm2, %v2936_v60 }
 0x624   : > { %15242 = vmatprep.mubr.msk.f32.mxu0 %vm835_vm2, %v17263_v41  ;;  %15241 = vmatpush3.msra.mxu0 %v828_v54 }
 0x625   : > { %15259 = vmatprep.subr.mxu0 %v19274_v12  ;;  %v4196_v41 = vpop.permute.xlu1 %4195 }
 0x627   : > { %15243 = vmatmul.mubr.msk.f32.vlgmr.msra.gmra.mxu0 %vm835_vm2, %v17265_v49 }
 0x628   : > { %15260 = vmatpush3.xpose.msk.msra.mxu0 %vm835_vm2, %v3884_v42  ;;  %15245 = vmatprep.mubr.msk.f32.mxu0 %vm835_vm2, %v17267_v52 }
 0x629   : > { %15269 = vmatprep.subr.mxu0 %v19274_v12  ;;  %v4194_v49 = vpop.permute.xlu1 %4193 }
 0x62b   : > { %15246 = vmatmul.mubr.msk.f32.gmra.mxu0 %vm835_vm2, %v17269_v51 }
 0x62c   : > { %15248 = vmatprep.mubr.msk.f32.mxu0 %vm835_vm2, %v17277_v56  ;;  %v3806_v56 = vpop.permute.xlu0 %3805 }
 0x62d   : > { %v4352_v52 = vpop.permute.xlu1 %4351 }
 0x62f   : > { %15249 = vmatmul.mubr.msk.f32.gmra.mxu0 %vm835_vm2, %v17271_v55 }
 0x630   : > { %15251 = vmatprep.mubr.msk.f32.mxu0 %vm835_vm2, %v17279_v8  ;;  %v3804_v8 = vpop.permute.xlu0 %3803 }
 0x631   : > { %v4350_v51 = vpop.permute.xlu1 %4349 }
 0x633   : > { %15252 = vmatmul.mubr.msk.f32.gmra.mxu0 %vm835_vm2, %v17273_v59 }
 0x634   : > { %15261 = vmatprep.mubr.msk.f32.mxu0 %vm16612_vm1, %v19274_v12  ;;  %v3962_v5 = vpop.permute.xlu0 %3961 }
 0x637   : > { %15262 = vmatmul.mubr.msk.f32.vlgmr.msra.gmra.mxu0 %vm835_vm2, %v3882_v53 }
 0x638   : > { %15270 = vmatpush3.xpose.msk.msra.mxu0 %vm835_vm2, %v4040_v63  ;;  %15271 = vmatprep.mubr.msk.f32.mxu0 %vm16612_vm1, %v19274_v12  ;;  %v3960_v10 = vpop.permute.xlu0 %3959 }
 0x639   : > { %15279 = vmatprep.subr.mxu0 %v19274_v12 }
 0x63b   : > { %15272 = vmatmul.mubr.msk.f32.vlgmr.msra.gmra.mxu0 %vm835_vm2, %v4038_v62 }
 0x63c   : > { %15280 = vmatpush3.xpose.msk.msra.mxu0 %vm835_vm2, %v4196_v41  ;;  %15281 = vmatprep.mubr.msk.f32.mxu0 %vm16612_vm1, %v19274_v12  ;;  %v4118_v0 = vpop.permute.xlu0 %4117 }
 0x63d   : > { %15289 = vmatprep.subr.mxu0 %v19274_v12 }
 0x63f   : > { %15282 = vmatmul.mubr.msk.f32.vlgmr.msra.gmra.mxu0 %vm835_vm2, %v4194_v49 }
 0x640   : > { %15290 = vmatpush3.xpose.msk.msra.mxu0 %vm835_vm2, %v4352_v52  ;;  %15291 = vmatprep.mubr.msk.f32.mxu0 %vm16612_vm1, %v19274_v12  ;;  %v4116_v31 = vpop.permute.xlu0 %4115 }
 0x641   : > { %15299 = vmatprep.subr.mxu0 %v19274_v12 }
 0x643   : > { %15292 = vmatmul.mubr.msk.f32.vlgmr.msra.gmra.mxu0 %vm835_vm2, %v4350_v51 }
 0x644   : > { %15301 = vmatprep.mubr.msk.f32.mxu0 %vm16612_vm1, %v19274_v12  ;;  %v4274_v38 = vpop.permute.xlu0 %4273 }
 0x648   : > { %v4272_v32 = vpop.permute.xlu0 %4271 }
 0x6a1   : > { %v3085_v55 = vpop.f32.mrf.mxu0 }
 0x6a3   : > { %v15195_v59 = vpop.f32.mrf.mxu0 }
 0x6d2   : > { %v3009_v3 = vpop.f32.mrf.mxu1 }
 0x6d3   : > { %15228 = vmatprep.mubr.msk.f32.mxu1 %vm835_vm2, %v3009_v3 }
 0x6d4   : > { %v15190_v4 = vpop.f32.mrf.mxu1  ;;  %15229 = vmatmul.mubr.msk.f32.vlgmr.msra.gmra.mxu1 %vm835_vm2, %v3085_v55 }
 0x6d5   : > { %15255 = vmatpush3.xpose.msk.msra.mxu1 %vm835_vm2, %v3806_v56 }
 0x6d6   : > { %v3161_v7 = vpop.f32.mrf.mxu1  ;;  %15264 = vmatprep.subr.mxu1 %v19274_v12 }
 0x6d7   : > { %15231 = vmatprep.mubr.msk.f32.mxu1 %vm835_vm2, %v3161_v7 }
 0x6d8   : > { %v15200_v1 = vpop.f32.mrf.mxu1 }
 0x6da   : > { %v3313_v9 = vpop.f32.mrf.mxu1 }
 0x6db   : > { %v3237_v13 = vpop.f32.mrf.mxu0 }
 0x6dc   : > { %15232 = vmatmul.mubr.msk.f32.gmra.mxu1 %vm835_vm2, %v3237_v13  ;;  %v15210_v14 = vpop.f32.mrf.mxu1 }
 0x6dd   : > { %v15205_v15 = vpop.f32.mrf.mxu0  ;;  %15234 = vmatprep.mubr.msk.f32.mxu1 %vm835_vm2, %v3313_v9 }
 0x6de   : > { %v3465_v17 = vpop.f32.mrf.mxu1 }
 0x6df   : > { %v3389_v21 = vpop.f32.mrf.mxu0 }
 0x6e0   : > { %15235 = vmatmul.mubr.msk.f32.gmra.mxu1 %vm835_vm2, %v3389_v21  ;;  %v15220_v25 = vpop.f32.mrf.mxu1 }
 0x6e1   : > { %v15215_v27 = vpop.f32.mrf.mxu0  ;;  %15237 = vmatprep.mubr.msk.f32.mxu1 %vm835_vm2, %v3465_v17 }
 0x6e3   : > { %v3541_v6 = vpop.f32.mrf.mxu0 }
 0x6e4   : > { %15238 = vmatmul.mubr.msk.f32.gmra.mxu1 %vm835_vm2, %v3541_v6 }
 0x6e5   : > { %v15225_v30 = vpop.f32.mrf.mxu0  ;;  %15256 = vmatprep.mubr.msk.f32.mxu1 %vm16612_vm1, %v19274_v12 }
 0x6e7   : > { %v17461_v33 = vpop.f32.mrf.mxu0 }
 0x6e8   : > { %15257 = vmatmul.mubr.msk.f32.vlgmr.msra.gmra.mxu1 %vm835_vm2, %v3804_v8 }
 0x6e9   : > { %15265 = vmatpush3.xpose.msk.msra.mxu1 %vm835_vm2, %v3962_v5  ;;  %v17465_v35 = vpop.f32.mrf.mxu0  ;;  %15266 = vmatprep.mubr.msk.f32.mxu1 %vm16612_vm1, %v19274_v12 }
 0x6ea   : > { %15274 = vmatprep.subr.mxu1 %v19274_v12 }
 0x6eb   : > { %v17470_v37 = vpop.f32.mrf.mxu0 }
 0x6ec   : > { %15267 = vmatmul.mubr.msk.f32.vlgmr.msra.gmra.mxu1 %vm835_vm2, %v3960_v10 }
 0x6ed   : > { %15275 = vmatpush3.xpose.msk.msra.mxu1 %vm835_vm2, %v4118_v0  ;;  %v17474_v18 = vpop.f32.mrf.mxu0  ;;  %15276 = vmatprep.mubr.msk.f32.mxu1 %vm16612_vm1, %v19274_v12 }
 0x6ee   : > { %15284 = vmatprep.subr.mxu1 %v19274_v12 }
 0x6ef   : > { %v17479_v39 = vpop.f32.mrf.mxu0 }
 0x6f0   : > { %15277 = vmatmul.mubr.msk.f32.vlgmr.msra.gmra.mxu1 %vm835_vm2, %v4116_v31 }
 0x6f1   : > { %15285 = vmatpush3.xpose.msk.msra.mxu1 %vm835_vm2, %v4274_v38  ;;  %v17483_v42 = vpop.f32.mrf.mxu0  ;;  %15286 = vmatprep.mubr.msk.f32.mxu1 %vm16612_vm1, %v19274_v12 }
 0x6f2   : > { %15294 = vmatprep.subr.mxu1 %v19274_v12 }
 0x6f3   : > { %v17488_v44 = vpop.f32.mrf.mxu0 }
 0x6f4   : > { %15287 = vmatmul.mubr.msk.f32.vlgmr.msra.gmra.mxu1 %vm835_vm2, %v4272_v32 }
 0x6f5   : > { %v17491_v34 = vpop.f32.mrf.mxu0  ;;  %15296 = vmatprep.mubr.msk.f32.mxu1 %vm16612_vm1, %v19274_v12 }
 0x6f7   : > { %v3955_v40 = vpop.f32.mrf.mxu0 }
 0x6f8   : > { %v4428_v45 = vmul.f32 0.35355338, %v3955_v40 }
 0x6f9   : > { %v15263_v47 = vpop.f32.mrf.mxu0 }
 0x6fa   : > { %v4436_v48 = vadd.f32 %v4428_v45, %v17035_v57 }
 0x6fb   : > { %v4111_v53 = vpop.f32.mrf.mxu0 }
 0x6fc   : > { %v4446_v54 = vsel %vm835_vm2, %v4436_v48, -inf  ;;  %v4430_v10 = vmul.f32 0.35355338, %v4111_v53 }
 0x6fd   : > { %4447 = vmax.xlane.f32.xlu1 %v4446_v54  ;;  %v15273_v58 = vpop.f32.mrf.mxu0 }
 0x6fe   : > { %v4438_v27 = vadd.f32 %v4430_v10, %v17052_v11 }
 0x6ff   : > { %v4267_v60 = vpop.f32.mrf.mxu0 }
 0x700   : > { %v4432_v6 = vmul.f32 0.35355338, %v4267_v60  ;;  %v4452_v45 = vsel %vm835_vm2, %v4438_v27, -inf }
 0x701   : > { %v15283_v61 = vpop.f32.mrf.mxu0 }
 0x702   : > { %v4440_v54 = vadd.f32 %v4432_v6, %v17056_v23 }
 0x703   : > { %v4423_v63 = vpop.f32.mrf.mxu0 }
 0x704   : > { %v4434_v47 = vmul.f32 0.35355338, %v4423_v63  ;;  %v4458_v61 = vsel %vm835_vm2, %v4440_v54, -inf }
 0x705   : > { %v15293_v62 = vpop.f32.mrf.mxu0 }
 0x786   : > { %v4448_v8 = vpop.xlane.xlu1 %4447 }
 0x787   : > { %v4468_v5 = vsub.f32 %v4436_v48, %v4448_v8  ;;  %v4442_v8 = vadd.f32 %v4434_v47, %v17064_v36 }
 0x789   : > { %v4477_v14 = vmul.f32 1.442695, %v4468_v5  ;;  %v4464_v63 = vsel %vm835_vm2, %v4442_v8, -inf }
 0x78b   : > { %16132 = vpow2.f32 %v4477_v14 }
 0x794   : > { %v17497_v41 = vpop.f32.mrf.mxu1 }
 0x796   : > { %v17499_v49 = vpop.f32.mrf.mxu1 }
 0x79c   : > { %v17501_v52 = vpop.f32.mrf.mxu1 }
 0x79e   : > { %v17503_v51 = vpop.f32.mrf.mxu1 }
 0x7a0   : > { %v17505_v55 = vpop.f32.mrf.mxu1 }
 0x7a2   : > { %v17507_v59 = vpop.f32.mrf.mxu1 }
 0x7a4   : > { %v17509_v56 = vpop.f32.mrf.mxu1 }
 0x7a6   : > { %v17511_v3 = vpop.f32.mrf.mxu1 }
 0x7a8   : > { %v3877_v4 = vpop.f32.mrf.mxu1 }
 0x7a9   : > { %v4427_v7 = vmul.f32 0.35355338, %v3877_v4  ;;  %v17527_v4 = vpop.eup %16132 }
 0x7aa   : > { %v15258_v1 = vpop.f32.mrf.mxu1  ;;  %v4494_v5 = vsel %vm835_vm2, %v17527_v4, 0.0 }
 0x7ab   : > { %v4435_v9 = vadd.f32 %v4427_v7, %v17029_v50 }
 0x7ac   : > { %v4033_v13 = vpop.f32.mrf.mxu1 }
 0x7ad   : > { %v4429_v15 = vmul.f32 0.35355338, %v4033_v13  ;;  %v4443_v17 = vsel %vm835_vm2, %v4435_v9, -inf }
 0x7ae   : > { %4444 = vmax.xlane.f32.xlu0 %v4443_v17  ;;  %v15268_v21 = vpop.f32.mrf.mxu1 }
 0x7af   : > { %v4437_v25 = vadd.f32 %v4429_v15, %v17044_v2 }
 0x7b0   : > { %v4189_v0 = vpop.f32.mrf.mxu1 }
 0x7b1   : > { %v4431_v30 = vmul.f32 0.35355338, %v4189_v0  ;;  %v4449_v31 = vsel %vm835_vm2, %v4437_v25, -inf }
 0x7b2   : > { %4450 = vmax.xlane.f32.xlu0 %v4449_v31  ;;  %v15278_v38 = vpop.f32.mrf.mxu1 }
 0x7b3   : > { %v4439_v32 = vadd.f32 %v4431_v30, %v17022_v43 }
 0x7b4   : > { %v4345_v40 = vpop.f32.mrf.mxu1 }
 0x7b5   : > { %v4433_v48 = vmul.f32 0.35355338, %v4345_v40  ;;  %v4455_v53 = vsel %vm835_vm2, %v4439_v32, -inf }
 0x7b6   : > { %4453 = vmax.xlane.f32.xlu0 %v4452_v45  ;;  %4456 = vmax.xlane.f32.xlu1 %v4455_v53  ;;  %v15288_v58 = vpop.f32.mrf.mxu1 }
 0x7b7   : > { %v4441_v60 = vadd.f32 %v4433_v48, %v17025_v46 }
 0x7b9   : > { %v4461_v62 = vsel %vm835_vm2, %v4441_v60, -inf }
 0x7ba   : > { %4459 = vmax.xlane.f32.xlu0 %v4458_v61  ;;  %4462 = vmax.xlane.f32.xlu1 %v4461_v62 }
 0x7be   : > { %4465 = vmax.xlane.f32.xlu0 %v4464_v63 }
 0x7c2   : > { %4495 = vadd.xlane.f32.xlu0 %v4494_v5 }
 0x7cb   : > { %4531 = vrot.lane.b32.xlu1 %v16935_v16, %s19270_s30 }
 0x7cf   : > { %4683 = vrot.lane.b32.xlu1 %v16941_v20, %s19270_s30 }
 0x7d3   : > { %4759 = vrot.lane.b32.xlu1 %v16943_v22, %s19270_s30 }
 0x7d7   : > { %4911 = vrot.lane.b32.xlu1 %v16953_v26, %s19270_s30 }
 0x837   : > { %v4445_v7 = vpop.xlane.xlu0 %4444 }
 0x838   : > { %v4467_v1 = vsub.f32 %v4435_v9, %v4445_v7 }
 0x83a   : > { %v4475_v10 = vmul.f32 1.442695, %v4467_v1 }
 0x83b   : > { %v4451_v13 = vpop.xlane.xlu0 %4450 }
 0x83c   : > { %16134 = vpow2.f32 %v4475_v10  ;;  %v4469_v14 = vsub.f32 %v4437_v25, %v4451_v13 }
 0x83e   : > { %v4479_v15 = vmul.f32 1.442695, %v4469_v14 }
 0x83f   : > { %v4457_v17 = vpop.xlane.xlu1 %4456  ;;  %v4454_v21 = vpop.xlane.xlu0 %4453 }
 0x840   : > { %16136 = vpow2.f32 %v4479_v15  ;;  %v4471_v0 = vsub.f32 %v4439_v32, %v4457_v17  ;;  %v4470_v6 = vsub.f32 %v4438_v27, %v4454_v21 }
 0x842   : > { %v4483_v30 = vmul.f32 1.442695, %v4471_v0  ;;  %v4481_v31 = vmul.f32 1.442695, %v4470_v6 }
 0x843   : > { %v4463_v38 = vpop.xlane.xlu1 %4462  ;;  %v4460_v40 = vpop.xlane.xlu0 %4459 }
 0x844   : > { %16138 = vpow2.f32 %v4483_v30  ;;  %v4473_v45 = vsub.f32 %v4441_v60, %v4463_v38  ;;  %v4472_v47 = vsub.f32 %v4440_v54, %v4460_v40 }
 0x845   : > { %16140 = vpow2.f32 %v4481_v31 }
 0x846   : > { %v4487_v48 = vmul.f32 1.442695, %v4473_v45  ;;  %v4485_v9 = vmul.f32 1.442695, %v4472_v47 }
 0x847   : > { %v4532_v53 = vpop.permute.xlu1 %4531  ;;  %v4466_v58 = vpop.xlane.xlu0 %4465 }
 0x848   : > { %16142 = vpow2.f32 %v4487_v48  ;;  %v4474_v25 = vsub.f32 %v4442_v8, %v4466_v58  ;;  %15295 = vmatpush3.msra.mxu1 %v4532_v53 }
 0x849   : > { %v17539_v61 = vpop.eup %16134  ;;  %16144 = vpow2.f32 %v4485_v9  ;;  %15304 = vmatprep.subr.mxu1 %v19274_v12 }
 0x84a   : > { %v4489_v27 = vmul.f32 1.442695, %v4474_v25  ;;  %v4491_v32 = vsel %vm835_vm2, %v17539_v61, 0.0 }
 0x84b   : > { %4492 = vadd.xlane.f32.xlu1 %v4491_v32  ;;  %v4684_v17 = vpop.permute.xlu1 %4683  ;;  %v4496_v30 = vpop.xlane.xlu0 %4495 }
 0x84c   : > { %16146 = vpow2.f32 %v4489_v27 }
 0x84d   : > { %v17544_v54 = vpop.eup %16136 }
 0x84e   : > { %v4497_v60 = vsel %vm835_vm2, %v17544_v54, 0.0 }
 0x84f   : > { %4498 = vadd.xlane.f32.xlu1 %v4497_v60  ;;  %v4760_v21 = vpop.permute.xlu1 %4759 }
 0x851   : > { %v17548_v62 = vpop.eup %16138 }
 0x852   : > { %v17550_v8 = vpop.eup %16140  ;;  %v4503_v63 = vsel %vm835_vm2, %v17548_v62, 0.0 }
 0x853   : > { %4504 = vadd.xlane.f32.xlu1 %v4503_v63  ;;  %v4500_v5 = vsel %vm835_vm2, %v17550_v8, 0.0  ;;  %v4912_v0 = vpop.permute.xlu1 %4911 }
 0x854   : > { %4501 = vadd.xlane.f32.xlu0 %v4500_v5 }
 0x855   : > { %v17556_v7 = vpop.eup %16142 }
 0x856   : > { %v17558_v1 = vpop.eup %16144  ;;  %v4509_v10 = vsel %vm835_vm2, %v17556_v7, 0.0 }
 0x857   : > { %4510 = vadd.xlane.f32.xlu1 %v4509_v10  ;;  %v4506_v13 = vsel %vm835_vm2, %v17558_v1, 0.0 }
 0x858   : > { %4507 = vadd.xlane.f32.xlu0 %v4506_v13 }
 0x859   : > { %v17564_v14 = vpop.eup %16146 }
 0x85a   : > { %v4512_v15 = vsel %vm835_vm2, %v17564_v14, 0.0 }
 0x85c   : > { %4513 = vadd.xlane.f32.xlu0 %v4512_v15 }
 0x868   : > { %5063 = vrot.lane.b32.xlu1 %v16961_v29, %s19270_s30 }
 0x86c   : > { %5276 = vrot.lane.b32.xlu1 %v16935_v16, %s19268_s20 }
 0x870   : > { %5354 = vrot.lane.b32.xlu1 %v16939_v19, %s19268_s20 }
 0x872   : > { %4607 = vrot.lane.b32.xlu0 %v16939_v19, %s19270_s30 }
 0x874   : > { %5432 = vrot.lane.b32.xlu1 %v16941_v20, %s19268_s20 }
 0x876   : > { %4835 = vrot.lane.b32.xlu0 %v16949_v24, %s19270_s30 }
 0x878   : > { %5510 = vrot.lane.b32.xlu1 %v16943_v22, %s19268_s20 }
 0x87a   : > { %4987 = vrot.lane.b32.xlu0 %v16957_v28, %s19270_s30 }
 0x87c   : > { %5668 = vrot.lane.b32.xlu1 %v16953_v26, %s19266_s17 }
 0x87e   : > { %5278 = vrot.lane.b32.xlu0 %v16935_v16, %s19266_s17 }
 0x880   : > { %5666 = vrot.lane.b32.xlu1 %v16953_v26, %s19268_s20 }
 0x882   : > { %5356 = vrot.lane.b32.xlu0 %v16939_v19, %s19266_s17 }
 0x884   : > { %5824 = vrot.lane.b32.xlu1 %v16961_v29, %s19266_s17 }
 0x886   : > { %5434 = vrot.lane.b32.xlu0 %v16941_v20, %s19266_s17 }
 0x888   : > { %5822 = vrot.lane.b32.xlu1 %v16961_v29, %s19268_s20 }
 0x88a   : > { %5512 = vrot.lane.b32.xlu0 %v16943_v22, %s19266_s17 }
 0x88e   : > { %5590 = vrot.lane.b32.xlu0 %v16949_v24, %s19266_s17 }
 0x892   : > { %5588 = vrot.lane.b32.xlu0 %v16949_v24, %s19268_s20 }
 0x896   : > { %5746 = vrot.lane.b32.xlu0 %v16957_v28, %s19266_s17 }
 0x89a   : > { %5744 = vrot.lane.b32.xlu0 %v16957_v28, %s19268_s20  ;;  %s16532_s20 = sshll.u32 %s16624_s0, 4  ;;  %s16533_s20 = int_to_ptr.vmem [resolvable:$false] %s16532_s20 }
 0x89b   : > { %s16534_s17 = scalar_lea.vmem %s16533_s20, 256 }
 0x8d4   : > { %v4493_v6 = vpop.xlane.xlu1 %4492 }
 0x8d5   : > { %16148 = vrcp.f32 %v4493_v6 }
 0x8d6   : > { %16150 = vrcp.f32 %v4496_v30 }
 0x8d8   : > { %v4499_v31 = vpop.xlane.xlu1 %4498 }
 0x8d9   : > { %16152 = vrcp.f32 %v4499_v31 }
 0x8dc   : > { %v4505_v38 = vpop.xlane.xlu1 %4504 }
 0x8dd   : > { %16154 = vrcp.f32 %v4505_v38  ;;  %v4502_v40 = vpop.xlane.xlu0 %4501 }
 0x8de   : > { %16156 = vrcp.f32 %v4502_v40 }
 0x8e0   : > { %v4511_v45 = vpop.xlane.xlu1 %4510 }
 0x8e1   : > { %16158 = vrcp.f32 %v4511_v45  ;;  %v4508_v47 = vpop.xlane.xlu0 %4507 }
 0x8e2   : > { %v16149_v48 = vpop.eup %16148  ;;  %16160 = vrcp.f32 %v4508_v47 }
 0x8e3   : > { %v4523_v9 = vmul.f32 %v16149_v48, %v17539_v61  ;;  %v16151_v58 = vpop.eup %16150 }
 0x8e4   : > { %v5064_v53 = vpop.permute.xlu1 %5063  ;;  %v4524_v61 = vmul.f32 %v16151_v58, %v17527_v4 }
 0x8e5   : > { %v4514_v25 = vpop.xlane.xlu0 %4513  ;;  %15297 = vmatmul.mubr.msk.f32.vlgmr.msra.gmra.mxu1 %vm835_vm2, %v4523_v9 }
 0x8e6   : > { %v16153_v27 = vpop.eup %16152  ;;  %16162 = vrcp.f32 %v4514_v25  ;;  %15305 = vmatpush3.msra.mxu1 %v4684_v17  ;;  %15306 = vmatprep.mubr.msk.f32.mxu1 %vm16612_vm1, %v19274_v12 }
 0x8e7   : > { %v4525_v32 = vmul.f32 %v16153_v27, %v17544_v54  ;;  %15314 = vmatprep.subr.mxu1 %v19274_v12 }
 0x8e8   : > { %v5277_v60 = vpop.permute.xlu1 %5276 }
 0x8e9   : > { %v4608_v63 = vpop.permute.xlu0 %4607  ;;  %15307 = vmatmul.mubr.msk.f32.vlgmr.msra.gmra.mxu1 %vm835_vm2, %v4525_v32 }
 0x8ea   : > { %v16155_v5 = vpop.eup %16154  ;;  %15300 = vmatpush3.msra.mxu0 %v4608_v63  ;;  %15316 = vmatprep.mubr.msk.f32.mxu1 %vm16612_vm1, %v19274_v12 }
 0x8eb   : > { %v16157_v10 = vpop.eup %16156  ;;  %15302 = vmatmul.mubr.msk.f32.vlgmr.msra.gmra.mxu0 %vm835_vm2, %v4524_v61  ;;  %15309 = vmatprep.subr.mxu0 %v19274_v12  ;;  %v4527_v54 = vmul.f32 %v16155_v5, %v17548_v62 }
 0x8ec   : > { %15310 = vmatpush3.msra.mxu0 %v4760_v21  ;;  %v5355_v13 = vpop.permute.xlu1 %5354  ;;  %15311 = vmatprep.mubr.msk.f32.mxu0 %vm16612_vm1, %v19274_v12  ;;  %v4526_v15 = vmul.f32 %v16157_v10, %v17550_v8 }
 0x8ed   : > { %v4836_v4 = vpop.permute.xlu0 %4835  ;;  %15319 = vmatprep.subr.mxu0 %v19274_v12 }
 0x8ee   : > { %v16159_v17 = vpop.eup %16158  ;;  %15315 = vmatpush3.msra.mxu1 %v4836_v4 }
 0x8ef   : > { %v16161_v6 = vpop.eup %16160  ;;  %15312 = vmatmul.mubr.msk.f32.vlgmr.msra.gmra.mxu0 %vm835_vm2, %v4526_v15  ;;  %15317 = vmatmul.mubr.msk.f32.vlgmr.msra.gmra.mxu1 %vm835_vm2, %v4527_v54  ;;  %v4529_v30 = vmul.f32 %v16159_v17, %v17556_v7 }
 0x8f0   : > { %15320 = vmatpush3.msra.mxu0 %v4912_v0  ;;  %v5433_v62 = vpop.permute.xlu1 %5432  ;;  %15324 = vmatprep.subr.mxu1 %v19274_v12  ;;  %v4528_v21 = vmul.f32 %v16161_v6, %v17558_v1 }
 0x8f1   : > { %v4988_v31 = vpop.permute.xlu0 %4987  ;;  %15321 = vmatprep.mubr.msk.f32.mxu0 %vm16612_vm1, %v19274_v12  ;;  %15326 = vmatprep.mubr.msk.f32.mxu1 %vm16612_vm1, %v19274_v12 }
 0x8f2   : > { %15325 = vmatpush3.msra.mxu1 %v4988_v31  ;;  %15329 = vmatprep.subr.mxu0 %v19274_v12 }
 0x8f3   : > { %v16163_v8 = vpop.eup %16162  ;;  %15322 = vmatmul.mubr.msk.f32.vlgmr.msra.gmra.mxu0 %vm835_vm2, %v4528_v21  ;;  %15327 = vmatmul.mubr.msk.f32.vlgmr.msra.gmra.mxu1 %vm835_vm2, %v4529_v30 }
 0x8f4   : > { %15330 = vmatpush3.msra.mxu0 %v5064_v53  ;;  %15331 = vmatprep.mubr.msk.f32.mxu0 %vm16612_vm1, %v19274_v12  ;;  %v4530_v7 = vmul.f32 %v16163_v8, %v17564_v14  ;;  %v5511_v0 = vpop.permute.xlu1 %5510  ;;  %v830_v53 = vld [vmem:[#allocation5 + $0x10] sm:$0xff] }
 0x8f5   : > { %v5279_v1 = vpop.permute.xlu0 %5278  ;;  %15348 = vmatprep.subr.mxu0 %v19274_v12  ;;  %15334 = vmatprep.subr.mxu1 %v830_v53 }
 0x8f6   : > { %15335 = vmatpush3.msra.mxu1 %v830_v53 }
 0x8f7   : > { %15332 = vmatmul.mubr.msk.f32.vlgmr.msra.gmra.mxu0 %vm835_vm2, %v4530_v7  ;;  %15368 = vmatprep.subr.mxu1 %v19274_v12 }
 0x8f8   : > { %15349 = vmatpush3.xpose.msk.msra.mxu0 %vm835_vm2, %v5279_v1  ;;  %15350 = vmatprep.mubr.msk.f32.mxu0 %vm16612_vm1, %v19274_v12  ;;  %v5669_v40 = vpop.permute.xlu1 %5668 }
 0x8f9   : > { %v5357_v38 = vpop.permute.xlu0 %5356  ;;  %15353 = vmatprep.subr.mxu0 %v19274_v12 }
 0x8fb   : > { %15351 = vmatmul.mubr.msk.f32.vlgmr.msra.gmra.mxu0 %vm835_vm2, %v5277_v60 }
 0x8fc   : > { %15354 = vmatpush3.xpose.msk.msra.mxu0 %vm835_vm2, %v5357_v38  ;;  %15355 = vmatprep.mubr.msk.f32.mxu0 %vm16612_vm1, %v19274_v12  ;;  %v5667_v47 = vpop.permute.xlu1 %5666 }
 0x8fd   : > { %v5435_v14 = vpop.permute.xlu0 %5434  ;;  %15358 = vmatprep.subr.mxu0 %v19274_v12 }
 0x8ff   : > { %15356 = vmatmul.mubr.msk.f32.vlgmr.msra.gmra.mxu0 %vm835_vm2, %v5355_v13 }
 0x900   : > { %15359 = vmatpush3.xpose.msk.msra.mxu0 %vm835_vm2, %v5435_v14  ;;  %15360 = vmatprep.mubr.msk.f32.mxu0 %vm16612_vm1, %v19274_v12  ;;  %v5825_v48 = vpop.permute.xlu1 %5824 }
 0x901   : > { %v5513_v45 = vpop.permute.xlu0 %5512  ;;  %15363 = vmatprep.subr.mxu0 %v19274_v12 }
 0x903   : > { %15361 = vmatmul.mubr.msk.f32.vlgmr.msra.gmra.mxu0 %vm835_vm2, %v5433_v62 }
 0x904   : > { %15364 = vmatpush3.xpose.msk.msra.mxu0 %vm835_vm2, %v5513_v45  ;;  %15365 = vmatprep.mubr.msk.f32.mxu0 %vm16612_vm1, %v19274_v12  ;;  %v5823_v9 = vpop.permute.xlu1 %5822 }
 0x905   : > { %15373 = vmatprep.subr.mxu0 %v19274_v12  ;;  %v5591_v63 = vpop.permute.xlu0 %5590 }
 0x907   : > { %15366 = vmatmul.mubr.msk.f32.vlgmr.msra.gmra.mxu0 %vm835_vm2, %v5511_v0 }
 0x908   : > { %15374 = vmatpush3.xpose.msk.msra.mxu0 %vm835_vm2, %v5669_v40  ;;  %15375 = vmatprep.mubr.msk.f32.mxu0 %vm16612_vm1, %v19274_v12 }
 0x909   : > { %15383 = vmatprep.subr.mxu0 %v19274_v12  ;;  %v5589_v15 = vpop.permute.xlu0 %5588 }
 0x90b   : > { %15376 = vmatmul.mubr.msk.f32.vlgmr.msra.gmra.mxu0 %vm835_vm2, %v5667_v47 }
 0x90c   : > { %15384 = vmatpush3.xpose.msk.msra.mxu0 %vm835_vm2, %v5825_v48  ;;  %15385 = vmatprep.mubr.msk.f32.mxu0 %vm16612_vm1, %v19274_v12 }
 0x90d   : > { %15393 = vmatprep.subr.mxu0 %v19274_v12  ;;  %v5747_v21 = vpop.permute.xlu0 %5746 }
 0x90f   : > { %15386 = vmatmul.mubr.msk.f32.vlgmr.msra.gmra.mxu0 %vm835_vm2, %v5823_v9 }
 0x910   : > { %15395 = vmatprep.mubr.msk.f32.mxu0 %vm16612_vm1, %v19274_v12 }
 0x911   : > { %v5745_v38 = vpop.permute.xlu0 %5744 }
 0x9a5   : > { %v4603_v58 = vpop.f32.mrf.mxu1 }
 0x9a6   : > { %15336 = vmatprep.mubr.msk.f32.mxu1 %vm835_vm2, %v4603_v58 }
 0x9a7   : > { %v15298_v25 = vpop.f32.mrf.mxu1 }
 0x9a9   : > { %v4755_v27 = vpop.f32.mrf.mxu1 }
 0x9ab   : > { %v4679_v32 = vpop.f32.mrf.mxu0  ;;  %v15308_v60 = vpop.f32.mrf.mxu1 }
 0x9ac   : > { %15337 = vmatmul.mubr.msk.f32.vlgmr.msra.gmra.mxu1 %vm835_vm2, %v4679_v32 }
 0x9ad   : > { %15369 = vmatpush3.xpose.msk.msra.mxu1 %vm835_vm2, %v5591_v63  ;;  %v15303_v61 = vpop.f32.mrf.mxu0  ;;  %15339 = vmatprep.mubr.msk.f32.mxu1 %vm835_vm2, %v4755_v27 }
 0x9ae   : > { %15378 = vmatprep.subr.mxu1 %v19274_v12 }
 0x9af   : > { %v4831_v5 = vpop.f32.mrf.mxu0  ;;  %v4907_v10 = vpop.f32.mrf.mxu1 }
 0x9b0   : > { %15340 = vmatmul.mubr.msk.f32.gmra.mxu1 %vm835_vm2, %v4831_v5 }
 0x9b1   : > { %v15313_v54 = vpop.f32.mrf.mxu0  ;;  %v15318_v13 = vpop.f32.mrf.mxu1  ;;  %15342 = vmatprep.mubr.msk.f32.mxu1 %vm835_vm2, %v4907_v10 }
 0x9b3   : > { %v4983_v4 = vpop.f32.mrf.mxu0  ;;  %v5059_v17 = vpop.f32.mrf.mxu1 }
 0x9b4   : > { %15343 = vmatmul.mubr.msk.f32.gmra.mxu1 %vm835_vm2, %v4983_v4 }
 0x9b5   : > { %v15323_v6 = vpop.f32.mrf.mxu0  ;;  %v15328_v30 = vpop.f32.mrf.mxu1  ;;  %15345 = vmatprep.mubr.msk.f32.mxu1 %vm835_vm2, %v5059_v17 }
 0x9b7   : > { %v5135_v62 = vpop.f32.mrf.mxu0 }
 0x9b8   : > { %15346 = vmatmul.mubr.msk.f32.gmra.mxu1 %vm835_vm2, %v5135_v62 }
 0x9b9   : > { %v15333_v31 = vpop.f32.mrf.mxu0  ;;  %15370 = vmatprep.mubr.msk.f32.mxu1 %vm16612_vm1, %v19274_v12 }
 0x9bb   : > { %v5350_v8 = vpop.f32.mrf.mxu0 }
 0x9bc   : > { %v5900_v7 = vmul.f32 0.35355338, %v5350_v8  ;;  %15371 = vmatmul.mubr.msk.f32.vlgmr.msra.gmra.mxu1 %vm835_vm2, %v5589_v15 }
 0x9bd   : > { %15379 = vmatpush3.xpose.msk.msra.mxu1 %vm835_vm2, %v5747_v21  ;;  %v15352_v1 = vpop.f32.mrf.mxu0  ;;  %15380 = vmatprep.mubr.msk.f32.mxu1 %vm16612_vm1, %v19274_v12 }
 0x9be   : > { %v17692_v0 = vadd.f32 %v5900_v7, %v17029_v50  ;;  %15388 = vmatprep.subr.mxu1 %v19274_v12 }
 0x9bf   : > { %v5428_v40 = vpop.f32.mrf.mxu0 }
 0x9c0   : > { %v5901_v14 = vmul.f32 0.35355338, %v5428_v40  ;;  %15381 = vmatmul.mubr.msk.f32.vlgmr.msra.gmra.mxu1 %vm835_vm2, %v5745_v38  ;;  %v5916_v45 = vsel %vm835_vm2, %v17692_v0, -inf }
 0x9c1   : > { %5917 = vmax.xlane.f32.xlu0 %v5916_v45  ;;  %v15357_v47 = vpop.f32.mrf.mxu0  ;;  %15390 = vmatprep.mubr.msk.f32.mxu1 %vm16612_vm1, %v19274_v12 }
 0x9c2   : > { %v5909_v48 = vadd.f32 %v5901_v14, %v17035_v57 }
 0x9c3   : > { %v5506_v9 = vpop.f32.mrf.mxu0 }
 0x9c4   : > { %v5902_v53 = vmul.f32 0.35355338, %v5506_v9  ;;  %v5919_v58 = vsel %vm835_vm2, %v5909_v48, -inf }
 0x9c5   : > { %5920 = vmax.xlane.f32.xlu1 %v5919_v58  ;;  %v15362_v25 = vpop.f32.mrf.mxu0 }
 0x9c6   : > { %v17703_v27 = vadd.f32 %v5902_v53, %v17044_v2 }
 0x9c7   : > { %v5584_v32 = vpop.f32.mrf.mxu0 }
 0x9c8   : > { %v5903_v60 = vmul.f32 0.35355338, %v5584_v32  ;;  %v5922_v63 = vsel %vm835_vm2, %v17703_v27, -inf }
 0x9c9   : > { %5923 = vmax.xlane.f32.xlu0 %v5922_v63  ;;  %v15367_v61 = vpop.f32.mrf.mxu0 }
 0x9ca   : > { %v5911_v5 = vadd.f32 %v5903_v60, %v17052_v11 }
 0x9cb   : > { %v5740_v10 = vpop.f32.mrf.mxu0 }
 0x9cc   : > { %v5905_v54 = vmul.f32 0.35355338, %v5740_v10  ;;  %v5925_v13 = vsel %vm835_vm2, %v5911_v5, -inf  ;;  %v3770_v10 = vadd.f32 %v17461_v33, %v17497_v41 }
 0x9cd   : > { %5926 = vmax.xlane.f32.xlu0 %v5925_v13  ;;  %v15377_v15 = vpop.f32.mrf.mxu0 }
 0x9ce   : > { %v5913_v4 = vadd.f32 %v5905_v54, %v17056_v23 }
 0x9cf   : > { %v5896_v17 = vpop.f32.mrf.mxu0 }
 0x9d0   : > { %v5907_v6 = vmul.f32 0.35355338, %v5896_v17  ;;  %v5931_v30 = vsel %vm835_vm2, %v5913_v4, -inf }
 0x9d1   : > { %5932 = vmax.xlane.f32.xlu0 %v5931_v30  ;;  %v15387_v62 = vpop.f32.mrf.mxu0 }
 0x9d2   : > { %v5915_v21 = vadd.f32 %v5907_v6, %v17064_v36  ;;  %v3780_v6 = vadd.f32 %v17470_v37, %v17501_v52 }
 0x9d4   : > { %v5937_v31 = vsel %vm835_vm2, %v5915_v21, -inf }
 0x9d5   : > { %5938 = vmax.xlane.f32.xlu0 %v5937_v31 }
 0xa4a   : > { %v5918_v8 = vpop.xlane.xlu0 %5917 }
 0xa4e   : > { %v5921_v7 = vpop.xlane.xlu1 %5920 }
 0xa4f   : > { %v5941_v1 = vsub.f32 %v5909_v48, %v5921_v7  ;;  %v3790_v7 = vadd.f32 %v17479_v39, %v17505_v55 }
 0xa51   : > { %v5950_v38 = vmul.f32 1.442695, %v5941_v1 }
 0xa52   : > { %v5924_v40 = vpop.xlane.xlu0 %5923 }
 0xa53   : > { %16164 = vpow2.f32 %v5950_v38  ;;  %v5942_v37 = vsub.f32 %v17703_v27, %v5924_v40 }
 0xa56   : > { %v5927_v14 = vpop.xlane.xlu0 %5926 }
 0xa57   : > { %v5943_v45 = vsub.f32 %v5911_v5, %v5927_v14 }
 0xa59   : > { %v5954_v47 = vmul.f32 1.442695, %v5943_v45  ;;  %v5952_v45 = vmul.f32 1.442695, %v5942_v37 }
 0xa5a   : > { %v5933_v9 = vpop.xlane.xlu0 %5932 }
 0xa5b   : > { %16166 = vpow2.f32 %v5954_v47  ;;  %v5945_v53 = vsub.f32 %v5913_v4, %v5933_v9 }
 0xa5d   : > { %v5958_v58 = vmul.f32 1.442695, %v5945_v53 }
 0xa5e   : > { %v5939_v25 = vpop.xlane.xlu0 %5938 }
 0xa5f   : > { %16168 = vpow2.f32 %v5958_v58  ;;  %v5947_v32 = vsub.f32 %v5915_v21, %v5939_v25  ;;  %v5940_v21 = vsub.f32 %v17692_v0, %v5918_v8  ;;  %v3800_v0 = vadd.f32 %v17488_v44, %v17509_v56 }
 0xa60   : > { %v17713_v60 = vpop.eup %16164 }
 0xa61   : > { %v5962_v63 = vmul.f32 1.442695, %v5947_v32  ;;  %v5967_v61 = vsel %vm835_vm2, %v17713_v60, 0.0  ;;  %v5948_v38 = vmul.f32 1.442695, %v5940_v21 }
 0xa62   : > { %5968 = vadd.xlane.f32.xlu0 %v5967_v61 }
 0xa63   : > { %16170 = vpow2.f32 %v5962_v63 }
 0xa64   : > { %16172 = vpow2.f32 %v5948_v38 }
 0xa65   : > { %16174 = vpow2.f32 %v5952_v45 }
 0xa68   : > { %v17717_v48 = vpop.eup %16166 }
 0xa69   : > { %v5973_v5 = vsel %vm835_vm2, %v17717_v48, 0.0 }
 0xa6a   : > { %5974 = vadd.xlane.f32.xlu0 %v5973_v5 }
 0xa6c   : > { %v17723_v54 = vpop.eup %16168  ;;  %v15338_v13 = vpop.f32.mrf.mxu1 }
 0xa6d   : > { %v17725_v15 = vadd.f32 %v15338_v13, %v3770_v10  ;;  %v5979_v4 = vsel %vm835_vm2, %v17723_v54, 0.0 }
 0xa6e   : > { %v17729_v17 = vpop.f32.mrf.mxu1  ;;  %5980 = vadd.xlane.f32.xlu0 %v5979_v4 }
 0xa70   : > { %v17733_v30 = vpop.eup %16170  ;;  %v15341_v62 = vpop.f32.mrf.mxu1 }
 0xa71   : > { %v17736_v33 = vadd.f32 %v15341_v62, %v3780_v6  ;;  %v5985_v41 = vsel %vm835_vm2, %v17733_v30, 0.0  ;;  %v16173_v63 = vpop.eup %16172 }
 0xa72   : > { %v17740_v31 = vpop.f32.mrf.mxu1  ;;  %5986 = vadd.xlane.f32.xlu0 %v5985_v41  ;;  %v5964_v61 = vsel %vm835_vm2, %v16173_v63, 0.0  ;;  %v16175_v5 = vpop.eup %16174 }
 0xa73   : > { %v5970_v10 = vsel %vm835_vm2, %v16175_v5, 0.0 }
 0xa74   : > { %v15344_v1 = vpop.f32.mrf.mxu1 }
 0xa75   : > { %v17745_v52 = vadd.f32 %v15344_v1, %v3790_v7 }
 0xa76   : > { %v17747_v14 = vpop.f32.mrf.mxu1 }
 0xa78   : > { %v15347_v8 = vpop.f32.mrf.mxu1 }
 0xa79   : > { %v17751_v47 = vadd.f32 %v15347_v8, %v3800_v0 }
 0xa7a   : > { %v17753_v9 = vpop.f32.mrf.mxu1 }
 0xa7c   : > { %v5662_v53 = vpop.f32.mrf.mxu1 }
 0xa7d   : > { %v5904_v39 = vmul.f32 0.35355338, %v5662_v53 }
 0xa7e   : > { %v15372_v55 = vpop.f32.mrf.mxu1 }
 0xa7f   : > { %v5912_v27 = vadd.f32 %v5904_v39, %v17022_v43 }
 0xa80   : > { %v5818_v40 = vpop.f32.mrf.mxu1 }
 0xa81   : > { %v5906_v58 = vmul.f32 0.35355338, %v5818_v40  ;;  %v5928_v25 = vsel %vm835_vm2, %v5912_v27, -inf }
 0xa82   : > { %5929 = vmax.xlane.f32.xlu1 %v5928_v25  ;;  %v15382_v32 = vpop.f32.mrf.mxu1 }
 0xa83   : > { %v5914_v44 = vadd.f32 %v5906_v58, %v17025_v46 }
 0xa85   : > { %v5934_v56 = vsel %vm835_vm2, %v5914_v44, -inf }
 0xa86   : > { %5935 = vmax.xlane.f32.xlu1 %v5934_v56 }
 0xa88   : > { %6080 = vrot.lane.b32.xlu0 %v16939_v19, %s19264_s21 }
 0xa8a   : > { %5965 = vadd.xlane.f32.xlu1 %v5964_v61 }
 0xa8c   : > { %6308 = vrot.lane.b32.xlu0 %v16949_v24, %s19264_s21 }
 0xa8e   : > { %5971 = vadd.xlane.f32.xlu1 %v5970_v10 }
 0xa90   : > { %6460 = vrot.lane.b32.xlu0 %v16957_v28, %s19264_s21 }
 0xa9f   : > { %6004 = vrot.lane.b32.xlu1 %v16935_v16, %s19264_s21 }
 0xaa3   : > { %6156 = vrot.lane.b32.xlu1 %v16941_v20, %s19264_s21 }
 0xaa7   : > { %6232 = vrot.lane.b32.xlu1 %v16943_v22, %s19264_s21 }
 0xaab   : > { %6384 = vrot.lane.b32.xlu1 %v16953_v26, %s19264_s21 }
 0xaeb   : > { %v5969_v19 = vpop.xlane.xlu0 %5968 }
 0xaec   : > { %16176 = vrcp.f32 %v5969_v19 }
 0xaf3   : > { %v5975_v24 = vpop.xlane.xlu0 %5974 }
 0xaf7   : > { %v5981_v13 = vpop.xlane.xlu0 %5980 }
 0xaf9   : > { %v16177_v6 = vpop.eup %16176 }
 0xafa   : > { %v5997_v28 = vmul.f32 %v16177_v6, %v17713_v60 }
 0xafb   : > { %v5987_v4 = vpop.xlane.xlu0 %5986 }
 0xaff   : > { %v6081_v62 = vpop.permute.xlu0 %6080 }
 0xb00   : > { %15394 = vmatpush3.msra.mxu0 %v6081_v62 }
 0xb01   : > { %15396 = vmatmul.mubr.msk.f32.vlgmr.msra.gmra.mxu0 %vm835_vm2, %v5997_v28  ;;  %15403 = vmatprep.subr.mxu0 %v19274_v12 }
 0xb02   : > { %15405 = vmatprep.mubr.msk.f32.mxu0 %vm16612_vm1, %v19274_v12 }
 0xb0b   : > { %v5930_v16 = vpop.xlane.xlu1 %5929 }
 0xb0c   : > { %v5944_v20 = vsub.f32 %v5912_v27, %v5930_v16 }
 0xb0e   : > { %v5956_v22 = vmul.f32 1.442695, %v5944_v20 }
 0xb0f   : > { %v5936_v26 = vpop.xlane.xlu1 %5935 }
 0xb10   : > { %16178 = vpow2.f32 %v5956_v22  ;;  %v5946_v21 = vsub.f32 %v5914_v44, %v5936_v26 }
 0xb11   : > { %16180 = vrcp.f32 %v5975_v24 }
 0xb12   : > { %v5960_v41 = vmul.f32 1.442695, %v5946_v21 }
 0xb13   : > { %v5966_v7 = vpop.xlane.xlu1 %5965 }
 0xb14   : > { %16182 = vpow2.f32 %v5960_v41 }
 0xb15   : > { %16184 = vrcp.f32 %v5966_v7 }
 0xb16   : > { %16186 = vrcp.f32 %v5981_v13  ;;  %v831_v13 = vld [vmem:[#allocation5 + $0x18] sm:$0xff] }
 0xb17   : > { %v5972_v60 = vpop.xlane.xlu1 %5971 }
 0xb18   : > { %16188 = vrcp.f32 %v5972_v60 }
 0xb19   : > { %16190 = vrcp.f32 %v5987_v4 }
 0xb1b   : > { %v6005_v1 = vpop.permute.xlu1 %6004 }
 0xb1c   : > { %15389 = vmatpush3.msra.mxu1 %v6005_v1 }
 0xb1d   : > { %v16179_v38 = vpop.eup %16178  ;;  %15398 = vmatprep.subr.mxu1 %v19274_v12 }
 0xb1e   : > { %v5976_v37 = vsel %vm835_vm2, %v16179_v38, 0.0  ;;  %v16181_v8 = vpop.eup %16180 }
 0xb1f   : > { %5977 = vadd.xlane.f32.xlu1 %v5976_v37  ;;  %v6157_v0 = vpop.permute.xlu1 %6156  ;;  %v5999_v40 = vmul.f32 %v16181_v8, %v17717_v48  ;;  %v6309_v48 = vpop.permute.xlu0 %6308 }
 0xb21   : > { %v16183_v45 = vpop.eup %16182 }
 0xb22   : > { %v16185_v53 = vpop.eup %16184  ;;  %v5982_v39 = vsel %vm835_vm2, %v16183_v45, 0.0 }
 0xb23   : > { %5983 = vadd.xlane.f32.xlu1 %v5982_v39  ;;  %v6233_v55 = vpop.permute.xlu1 %6232  ;;  %v5996_v27 = vmul.f32 %v16185_v53, %v16173_v63  ;;  %v16187_v58 = vpop.eup %16186  ;;  %v14416_v39 = vld [vmem:[#allocation7] ss:$0 sm:$0xff] }
 0xb24   : > { %15404 = vmatpush3.msra.mxu0 %v6233_v55  ;;  %v6001_v56 = vmul.f32 %v16187_v58, %v17723_v54  ;;  %v6461_v6 = vpop.permute.xlu0 %6460  ;;  %v3775_v58 = vadd.f32 %v17474_v18, %v17503_v51 }
 0xb25   : > { %v16189_v25 = vpop.eup %16188  ;;  %15391 = vmatmul.mubr.msk.f32.vlgmr.msra.gmra.mxu1 %vm835_vm2, %v5996_v27  ;;  %15406 = vmatmul.mubr.msk.f32.vlgmr.msra.gmra.mxu0 %vm835_vm2, %v5999_v40 }
 0xb26   : > { %15399 = vmatpush3.msra.mxu1 %v6157_v0  ;;  %15400 = vmatprep.mubr.msk.f32.mxu1 %vm16612_vm1, %v19274_v12  ;;  %v5998_v32 = vmul.f32 %v16189_v25, %v16175_v5  ;;  %v16191_v61 = vpop.eup %16190 }
 0xb27   : > { %15408 = vmatprep.subr.mxu1 %v19274_v12  ;;  %v6385_v44 = vpop.permute.xlu1 %6384  ;;  %15413 = vmatprep.subr.mxu0 %v19274_v12  ;;  %v6003_v10 = vmul.f32 %v16191_v61, %v17733_v30  ;;  %v16389_v61 = vld [vmem:[%s16896_s28] sm:$0xff] }
 0xb28   : > { %15414 = vmatpush3.msra.mxu0 %v6385_v44  ;;  %15415 = vmatprep.mubr.msk.f32.mxu0 %vm16612_vm1, %v19274_v12 }
 0xb29   : > { %15401 = vmatmul.mubr.msk.f32.vlgmr.msra.gmra.mxu1 %vm835_vm2, %v5998_v32  ;;  %15416 = vmatmul.mubr.msk.f32.vlgmr.msra.gmra.mxu0 %vm835_vm2, %v6001_v56  ;;  %v5270_v56 = vadd.f32 %v17740_v31, %v3775_v58 }
 0xb2a   : > { %15409 = vmatpush3.msra.mxu1 %v6309_v48  ;;  %15423 = vmatprep.subr.mxu0 %v19274_v12 }
 0xb2b   : > { %15425 = vmatprep.mubr.msk.f32.mxu0 %vm16612_vm1, %v19274_v12  ;;  %15410 = vmatprep.mubr.msk.f32.mxu1 %vm16612_vm1, %v19274_v12 }
 0xb2c   : > { %15418 = vmatprep.subr.mxu1 %v19274_v12 }
 0xb34   : > { %6536 = vrot.lane.b32.xlu1 %v16961_v29, %s19264_s21 }
 0xba8   : > { %v5978_v54 = vpop.xlane.xlu1 %5977 }
 0xba9   : > { %16192 = vrcp.f32 %v5978_v54 }
 0xbac   : > { %v5984_v63 = vpop.xlane.xlu1 %5983 }
 0xbad   : > { %16194 = vrcp.f32 %v5984_v63 }
 0xbb0   : > { %v6537_v5 = vpop.permute.xlu1 %6536 }
 0xbb1   : > { %15424 = vmatpush3.msra.mxu0 %v6537_v5 }
 0xbb2   : > { %15426 = vmatmul.mubr.msk.f32.vlgmr.msra.gmra.mxu0 %vm835_vm2, %v6003_v10 }
 0xbb6   : > { %v16193_v19 = vpop.eup %16192 }
 0xbb7   : > { %v6000_v24 = vmul.f32 %v16193_v19, %v16179_v38  ;;  %v16390_v19 = vld [vmem:[%s16896_s28 + $0x10] sm:$0xff] }
 0xbb9   : > { %15411 = vmatmul.mubr.msk.f32.vlgmr.msra.gmra.mxu1 %vm835_vm2, %v6000_v24 }
 0xbba   : > { %v16195_v62 = vpop.eup %16194  ;;  %15419 = vmatpush3.msra.mxu1 %v6461_v6  ;;  %15420 = vmatprep.mubr.msk.f32.mxu1 %vm16612_vm1, %v19274_v12 }
 0xbbb   : > { %v6002_v29 = vmul.f32 %v16195_v62, %v16183_v45  ;;  %15428 = vmatprep.subr.mxu1 %v831_v13  ;;  %v3765_v45 = vadd.f32 %v17465_v35, %v17499_v49  ;;  %v16388_v49 = vld [vmem:[%s16896_s28 + $0x8] sm:$0xff]  ;;  %v3785_v62 = vadd.f32 %v17483_v42, %v17507_v59 }
 0xbbd   : > { %15421 = vmatmul.mubr.msk.f32.vlgmr.msra.gmra.mxu1 %vm835_vm2, %v6002_v29  ;;  %v5268_v55 = vadd.f32 %v17729_v17, %v3765_v45 }
 0xbbe   : > { %15429 = vmatpush3.msra.mxu1 %v831_v13 }
 0xbc1   : > { %v6152_v30 = vpop.f32.mrf.mxu0 }
 0xbc3   : > { %v15397_v4 = vpop.f32.mrf.mxu0 }
 0xbe5   : > { %v6076_v28 = vpop.f32.mrf.mxu1  ;;  %v6304_v16 = vpop.f32.mrf.mxu0 }
 0xbe6   : > { %15430 = vmatprep.mubr.msk.f32.mxu1 %vm835_vm2, %v6076_v28  ;;  %v5272_v28 = vadd.f32 %v17747_v14, %v3785_v62 }
 0xbe7   : > { %v15392_v20 = vpop.f32.mrf.mxu1  ;;  %15431 = vmatmul.mubr.msk.f32.vlgmr.msra.gmra.mxu1 %vm835_vm2, %v6152_v30  ;;  %v15407_v22 = vpop.f32.mrf.mxu0 }
 0xbe9   : > { %v6228_v26 = vpop.f32.mrf.mxu1  ;;  %v6456_v21 = vpop.f32.mrf.mxu0 }
 0xbea   : > { %15433 = vmatprep.mubr.msk.f32.mxu1 %vm835_vm2, %v6228_v26  ;;  %v3795_v26 = vadd.f32 %v17491_v34, %v17511_v3 }
 0xbeb   : > { %v15402_v41 = vpop.f32.mrf.mxu1  ;;  %15434 = vmatmul.mubr.msk.f32.gmra.mxu1 %vm835_vm2, %v6304_v16  ;;  %v15417_v7 = vpop.f32.mrf.mxu0 }
 0xbec   : > { %v5274_v42 = vadd.f32 %v17753_v9, %v3795_v26 }
 0xc72   : > { %v6608_v60 = vpop.f32.mrf.mxu0 }
 0xc74   : > { %v15427_v1 = vpop.f32.mrf.mxu0 }
 0xc79   : > { %v6380_v38 = vpop.f32.mrf.mxu1 }
 0xc7a   : > { %15436 = vmatprep.mubr.msk.f32.mxu1 %vm835_vm2, %v6380_v38 }
 0xc7b   : > { %v15412_v37 = vpop.f32.mrf.mxu1  ;;  %15437 = vmatmul.mubr.msk.f32.gmra.mxu1 %vm835_vm2, %v6456_v21 }
 0xc7c   : > { %v16392_v37 = vld [vmem:[%s16896_s28 + $0x28] sm:$0xff] }
 0xc7d   : > { %v6532_v0 = vpop.f32.mrf.mxu1 }
 0xc7e   : > { %15439 = vmatprep.mubr.msk.f32.mxu1 %vm835_vm2, %v6532_v0 }
 0xc7f   : > { %v15422_v8 = vpop.f32.mrf.mxu1  ;;  %15440 = vmatmul.mubr.msk.f32.gmra.mxu1 %vm835_vm2, %v6608_v60 }
 0xca7   : > { %v15432_v53 = vpop.f32.mrf.mxu1 }
 0xca8   : > { %v6742_v27 = vadd.f32 %v15432_v53, %v17725_v15  ;;  %v16393_v53 = vld [vmem:[%s16896_s28 + $0x20] sm:$0xff] }
 0xca9   : > { %v6702_v40 = vpop.f32.mrf.mxu1 }
 0xcaa   : > { %v6757_v25 = vadd.f32 %v14416_v39, %v6742_v27  ;;  %v6741_v32 = vadd.f32 %v6702_v40, %v5268_v55 }
 0xcab   : > { %v15435_v44 = vpop.f32.mrf.mxu1 }
 0xcac   : > { %v6756_v48 = vadd.f32 %v14416_v39, %v6741_v32  ;;  %v6744_v35 = vadd.f32 %v15435_v44, %v17736_v33  ;;  %v6765_v54 = vadd.f32 %v16388_v49, %v6757_v25  ;;  %v16391_v33 = vld [vmem:[%s16896_s28 + $0x18] sm:$0xff] }
 0xcad   : > { %v6712_v63 = vpop.f32.mrf.mxu1  ;;  %v16394_v25 = vld [vmem:[%s16896_s28 + $0x38] sm:$0xff] }
 0xcae   : > { %v6743_v17 = vadd.f32 %v6712_v63, %v5270_v56  ;;  %v6777_v15 = vsel %vm698_vm0, %v6765_v54, 0.0  ;;  %v6764_v5 = vadd.f32 %v16389_v61, %v6756_v48  ;;  %v6759_v18 = vadd.f32 %v14416_v39, %v6744_v35  ;;  %v16395_v48 = vld [vmem:[%s16896_s28 + $0x30] sm:$0xff]  ;;  %s19317_s28 = sld [smem:[#allocation27_spill]] }
 0xcaf   : > { %6778 = vadd.xlane.f32.xlu1 %v6777_v15 }
 0xcb0   : > { %v6758_v51 = vadd.f32 %v14416_v39, %v6743_v17  ;;  %v6774_v10 = vsel %vm698_vm0, %v6764_v5, 0.0  ;;  %v6767_v13 = vadd.f32 %v16391_v33, %v6759_v18 }
 0xcb1   : > { %6775 = vadd.xlane.f32.xlu0 %v6774_v10  ;;  %v6910_v10 = vld [vmem:[#allocation10 + $0x18] sm:$0xff] }
 0xcb2   : > { %v6766_v31 = vadd.f32 %v16390_v19, %v6758_v51  ;;  %v6783_v6 = vsel %vm698_vm0, %v6767_v13, 0.0  ;;  %v6909_v19 = vld [vmem:[#allocation10 + $0x10] sm:$0xff]  ;;  %15442 = vmatprep.subr.mxu0 %v6910_v10 }
 0xcb3   : > { %15443 = vmatpush3.msra.mxu0 %v6910_v10  ;;  %v7061_v10 = vld [vmem:[%s19246_s11 + $0x30] sm:$0xff] }
 0xcb4   : > { %v6780_v24 = vsel %vm698_vm0, %v6766_v31, 0.0  ;;  %15444 = vmatprep.subr.mxu0 %v6909_v19 }
 0xcb5   : > { %6781 = vadd.xlane.f32.xlu0 %v6780_v24  ;;  %15445 = vmatpush3.msra.mxu0 %v6909_v19  ;;  %v6907_v24 = vld [vmem:[#allocation10] sm:$0xff]  ;;  %v7060_v19 = vld [vmem:[%s19246_s11 + $0x28] sm:$0xff] }
 0xcb9   : > { %6784 = vadd.xlane.f32.xlu0 %v6783_v6 }
 0xd38   : > { %v6779_v29 = vpop.xlane.xlu1 %6778 }
 0xd39   : > { %v6800_v20 = vmul.f32 0.03125, %v6779_v29 }
 0xd3a   : > { %v6776_v30 = vpop.xlane.xlu0 %6775 }
 0xd3b   : > { %v15438_v4 = vpop.f32.mrf.mxu1  ;;  %v6799_v60 = vmul.f32 0.03125, %v6776_v30 }
 0xd3c   : > { %v6746_v16 = vadd.f32 %v15438_v4, %v17745_v52  ;;  %v17842_v52 = vsub.f32 %v6765_v54, %v6800_v20 }
 0xd3d   : > { %v6722_v22 = vpop.f32.mrf.mxu1  ;;  %v17846_v27 = vsub.f32 %v6764_v5, %v6799_v60 }
 0xd3e   : > { %v6761_v21 = vadd.f32 %v14416_v39, %v6746_v16  ;;  %v6782_v41 = vpop.xlane.xlu0 %6781  ;;  %v6745_v7 = vadd.f32 %v6722_v22, %v5272_v28  ;;  %v6816_v49 = vmul.f32 %v17842_v52, %v17842_v52 }
 0xd3f   : > { %v15441_v1 = vpop.f32.mrf.mxu1  ;;  %v6801_v40 = vmul.f32 0.03125, %v6782_v41 }
 0xd40   : > { %v6760_v59 = vadd.f32 %v14416_v39, %v6745_v7  ;;  %v6748_v38 = vadd.f32 %v15441_v1, %v17751_v47  ;;  %v6769_v14 = vadd.f32 %v16392_v37, %v6761_v21  ;;  %v6826_v17 = vsel %vm698_vm0, %v6816_v49, 0.0 }
 0xd41   : > { %v6732_v0 = vpop.f32.mrf.mxu1  ;;  %v17856_v54 = vsub.f32 %v6766_v31, %v6801_v40  ;;  %v6908_v31 = vld [vmem:[#allocation10 + $0x8] sm:$0xff] }
 0xd42   : > { %v6763_v8 = vadd.f32 %v14416_v39, %v6748_v38  ;;  %v6785_v45 = vpop.xlane.xlu0 %6784  ;;  %v6747_v34 = vadd.f32 %v6732_v0, %v5274_v42  ;;  %v6789_v3 = vsel %vm698_vm0, %v6769_v14, 0.0  ;;  %v6768_v55 = vadd.f32 %v16393_v53, %v6760_v59  ;;  %15446 = vmatprep.subr.mxu0 %v6908_v31 }
 0xd43   : > { %v6802_v9 = vmul.f32 0.03125, %v6785_v45  ;;  %6790 = vadd.xlane.f32.xlu0 %v6789_v3  ;;  %v6817_v5 = vmul.f32 %v17856_v54, %v17856_v54  ;;  %15447 = vmatpush3.msra.mxu0 %v6908_v31  ;;  %v7059_v31 = vld [vmem:[%s19246_s11 + $0x20] sm:$0xff] }
 0xd44   : > { %v6762_v47 = vadd.f32 %v14416_v39, %v6747_v34  ;;  %v6786_v58 = vsel %vm698_vm0, %v6768_v55, 0.0  ;;  %v6771_v32 = vadd.f32 %v16394_v25, %v6763_v8  ;;  %v6815_v39 = vmul.f32 %v17846_v27, %v17846_v27  ;;  %15448 = vmatprep.subr.mxu0 %v6907_v24  ;;  %v17889_v25 = vld [vmem:[#allocation8] ss:$0 sm:$0xff] }
 0xd45   : > { %6787 = vadd.xlane.f32.xlu1 %v6786_v58  ;;  %v17850_v44 = vsub.f32 %v6767_v13, %v6802_v9  ;;  %v6829_v51 = vsel %vm698_vm0, %v6817_v5, 0.0  ;;  %15449 = vmatpush3.msra.mxu0 %v6907_v24  ;;  %v7058_v24 = vld [vmem:[%s19246_s11 + $0x18] sm:$0xff] }
 0xd46   : > { %v6795_v56 = vsel %vm698_vm0, %v6771_v32, 0.0  ;;  %v6770_v35 = vadd.f32 %v16395_v48, %v6762_v47  ;;  %v6823_v61 = vsel %vm698_vm0, %v6815_v39, 0.0 }
 0xd47   : > { %6796 = vadd.xlane.f32.xlu0 %v6795_v56  ;;  %v6818_v15 = vmul.f32 %v17850_v44, %v17850_v44 }
 0xd48   : > { %v6792_v63 = vsel %vm698_vm0, %v6770_v35, 0.0 }
 0xd49   : > { %6793 = vadd.xlane.f32.xlu1 %v6792_v63  ;;  %v6832_v18 = vsel %vm698_vm0, %v6818_v15, 0.0  ;;  %v17897_v63 = vld [vmem:[%s19243_s8] ss:$0 sm:$0xff] }
 0xd4b   : > { %6827 = vadd.xlane.f32.xlu0 %v6826_v17 }
 0xd4d   : > { %6824 = vadd.xlane.f32.xlu1 %v6823_v61 }
 0xd4f   : > { %6833 = vadd.xlane.f32.xlu0 %v6832_v18 }
 0xd51   : > { %6830 = vadd.xlane.f32.xlu1 %v6829_v51 }
 0xdcc   : > { %v6791_v33 = vpop.xlane.xlu0 %6790 }
 0xdcd   : > { %v6804_v13 = vmul.f32 0.03125, %v6791_v33  ;;  %v7057_v33 = vld [vmem:[%s19246_s11 + $0x10] sm:$0xff] }
 0xdce   : > { %v6788_v6 = vpop.xlane.xlu1 %6787 }
 0xdcf   : > { %v17869_v62 = vsub.f32 %v6769_v14, %v6804_v13  ;;  %v6803_v29 = vmul.f32 0.03125, %v6788_v6  ;;  %v7056_v13 = vld [vmem:[%s19246_s11 + $0x8] sm:$0xff]  ;;  %v7055_v6 = vld [vmem:[%s19246_s11] sm:$0xff] }
 0xdd0   : > { %v6797_v30 = vpop.xlane.xlu0 %6796 }
 0xdd1   : > { %v17871_v4 = vsub.f32 %v6768_v55, %v6803_v29  ;;  %v6806_v28 = vmul.f32 0.03125, %v6797_v30  ;;  %v6820_v16 = vmul.f32 %v17869_v62, %v17869_v62 }
 0xdd2   : > { %v6794_v20 = vpop.xlane.xlu1 %6793 }
 0xdd3   : > { %v17875_v22 = vsub.f32 %v6771_v32, %v6806_v28  ;;  %v6805_v26 = vmul.f32 0.03125, %v6794_v20  ;;  %v6838_v21 = vsel %vm698_vm0, %v6820_v16, 0.0  ;;  %v6819_v41 = vmul.f32 %v17871_v4, %v17871_v4 }
 0xdd4   : > { %6839 = vadd.xlane.f32.xlu0 %v6838_v21  ;;  %v6828_v7 = vpop.xlane.xlu0 %6827 }
 0xdd5   : > { %v17880_v60 = vsub.f32 %v6770_v35, %v6805_v26  ;;  %v6848_v1 = vmul.f32 0.03125, %v6828_v7  ;;  %v6835_v42 = vsel %vm698_vm0, %v6819_v41, 0.0  ;;  %v6822_v59 = vmul.f32 %v17875_v22, %v17875_v22 }
 0xdd6   : > { %6836 = vadd.xlane.f32.xlu1 %v6835_v42  ;;  %v6825_v38 = vpop.xlane.xlu1 %6824 }
 0xdd7   : > { %v6856_v37 = vadd.f32 1e-05, %v6848_v1  ;;  %v6847_v14 = vmul.f32 0.03125, %v6825_v38  ;;  %v6844_v0 = vsel %vm698_vm0, %v6822_v59, 0.0  ;;  %v6821_v8 = vmul.f32 %v17880_v60, %v17880_v60 }
 0xdd8   : > { %6845 = vadd.xlane.f32.xlu0 %v6844_v0  ;;  %v6834_v45 = vpop.xlane.xlu0 %6833 }
 0xdd9   : > { %16196 = vrsqrt.f32 %v6856_v37  ;;  %v6855_v34 = vadd.f32 1e-05, %v6847_v14  ;;  %v6850_v3 = vmul.f32 0.03125, %v6834_v45  ;;  %v6841_v53 = vsel %vm698_vm0, %v6821_v8, 0.0 }
 0xdda   : > { %6842 = vadd.xlane.f32.xlu1 %v6841_v53  ;;  %v6831_v55 = vpop.xlane.xlu1 %6830 }
 0xddb   : > { %16198 = vrsqrt.f32 %v6855_v34  ;;  %v6858_v9 = vadd.f32 1e-05, %v6850_v3  ;;  %v6849_v40 = vmul.f32 0.03125, %v6831_v55 }
 0xddd   : > { %16200 = vrsqrt.f32 %v6858_v9  ;;  %v6857_v47 = vadd.f32 1e-05, %v6849_v40 }
 0xddf   : > { %16202 = vrsqrt.f32 %v6857_v47 }
 0xde6   : > { %v16197_v58 = vpop.eup %16196 }
 0xde7   : > { %v6872_v32 = vmul.f32 %v16197_v58, %v17842_v52 }
 0xde8   : > { %v16199_v56 = vpop.eup %16198 }
 0xde9   : > { %v6871_v48 = vmul.f32 %v16199_v56, %v17846_v27  ;;  %v6886_v49 = vmul.f32 %v17889_v25, %v6872_v32 }
 0xdea   : > { %v16201_v35 = vpop.eup %16200 }
 0xdeb   : > { %v6885_v39 = vmul.f32 %v17889_v25, %v6871_v48  ;;  %v6874_v17 = vmul.f32 %v16201_v35, %v17850_v44  ;;  %v17906_v27 = vadd.f32 %v17897_v63, %v6886_v49 }
 0xdec   : > { %v16203_v15 = vpop.eup %16202 }
 0xded   : > { %v17902_v61 = vadd.f32 %v17897_v63, %v6885_v39  ;;  %v6873_v52 = vmul.f32 %v16203_v15, %v17856_v54  ;;  %v6888_v5 = vmul.f32 %v17889_v25, %v6874_v17  ;;  %v7062_v54 = vld [vmem:[%s19246_s11 + $0x38] sm:$0xff] }
 0xdee   : > { %15462 = vmatprep.subr.mxu1 %v7062_v54 }
 0xdef   : > { %15450 = vmatprep.mubr.msk.f32.mxu0 %vm698_vm0, %v17902_v61  ;;  %v6887_v18 = vmul.f32 %v17889_v25, %v6873_v52  ;;  %v17918_v51 = vadd.f32 %v17897_v63, %v6888_v5  ;;  %15463 = vmatpush3.msra.mxu1 %v7062_v54 }
 0xdf0   : > { %15451 = vmatmul.mubr.msk.f32.vlgmr.msra.gmra.mxu0 %vm698_vm0, %v17906_v27  ;;  %15464 = vmatprep.subr.mxu1 %v7061_v10 }
 0xdf1   : > { %v17915_v44 = vadd.f32 %v17897_v63, %v6887_v18  ;;  %15465 = vmatpush3.msra.mxu1 %v7061_v10 }
 0xdf2   : > { %15466 = vmatprep.subr.mxu1 %v7060_v19 }
 0xdf3   : > { %15453 = vmatprep.mubr.msk.f32.mxu0 %vm698_vm0, %v17915_v44  ;;  %15467 = vmatpush3.msra.mxu1 %v7060_v19 }
 0xdf4   : > { %15454 = vmatmul.mubr.msk.f32.gmra.mxu0 %vm698_vm0, %v17918_v51  ;;  %15468 = vmatprep.subr.mxu1 %v7059_v31 }
 0xdf5   : > { %15469 = vmatpush3.msra.mxu1 %v7059_v31 }
 0xdf6   : > { %15470 = vmatprep.subr.mxu1 %v7058_v24 }
 0xdf7   : > { %15471 = vmatpush3.msra.mxu1 %v7058_v24 }
 0xdf8   : > { %15472 = vmatprep.subr.mxu1 %v7057_v33 }
 0xdf9   : > { %15473 = vmatpush3.msra.mxu1 %v7057_v33 }
 0xdfa   : > { %15474 = vmatprep.subr.mxu1 %v7056_v13 }
 0xdfb   : > { %15475 = vmatpush3.msra.mxu1 %v7056_v13 }
 0xdfc   : > { %15476 = vmatprep.subr.mxu1 %v7055_v6 }
 0xdfd   : > { %15477 = vmatpush3.msra.mxu1 %v7055_v6 }
 0xdfe   : > { %15510 = vmatprep.subr.mxu1 %v19274_v12 }
 0xe5d   : > { %v6840_v29 = vpop.xlane.xlu0 %6839 }
 0xe5e   : > { %v6852_v30 = vmul.f32 0.03125, %v6840_v29 }
 0xe5f   : > { %v6837_v28 = vpop.xlane.xlu1 %6836 }
 0xe60   : > { %v6860_v16 = vadd.f32 1e-05, %v6852_v30  ;;  %v6851_v20 = vmul.f32 0.03125, %v6837_v28  ;;  %v14428_v28 = vld [vmem:[%s19247_s12] ss:$0 sm:$0xff] }
 0xe61   : > { %v6846_v26 = vpop.xlane.xlu0 %6845 }
 0xe62   : > { %16204 = vrsqrt.f32 %v6860_v16  ;;  %v6859_v21 = vadd.f32 1e-05, %v6851_v20  ;;  %v6854_v41 = vmul.f32 0.03125, %v6846_v26 }
 0xe63   : > { %v6843_v7 = vpop.xlane.xlu1 %6842 }
 0xe64   : > { %16206 = vrsqrt.f32 %v6859_v21  ;;  %v6862_v1 = vadd.f32 1e-05, %v6854_v41  ;;  %v6853_v42 = vmul.f32 0.03125, %v6843_v7 }
 0xe66   : > { %16208 = vrsqrt.f32 %v6862_v1  ;;  %v6861_v59 = vadd.f32 1e-05, %v6853_v42 }
 0xe68   : > { %16210 = vrsqrt.f32 %v6861_v59 }
 0xe6f   : > { %v16205_v38 = vpop.eup %16204 }
 0xe70   : > { %v6876_v37 = vmul.f32 %v16205_v38, %v17869_v62 }
 0xe71   : > { %v16207_v14 = vpop.eup %16206 }
 0xe72   : > { %v6875_v0 = vmul.f32 %v16207_v14, %v17871_v4  ;;  %v6890_v45 = vmul.f32 %v17889_v25, %v6876_v37 }
 0xe73   : > { %v16209_v8 = vpop.eup %16208 }
 0xe74   : > { %v6889_v34 = vmul.f32 %v17889_v25, %v6875_v0  ;;  %v6878_v3 = vmul.f32 %v16209_v8, %v17875_v22  ;;  %v17959_v40 = vadd.f32 %v17897_v63, %v6890_v45 }
 0xe75   : > { %v16211_v53 = vpop.eup %16210 }
 0xe76   : > { %v17955_v55 = vadd.f32 %v17897_v63, %v6889_v34  ;;  %v6877_v9 = vmul.f32 %v16211_v53, %v17880_v60  ;;  %v6892_v62 = vmul.f32 %v17889_v25, %v6878_v3  ;;  %v14419_v60 = vld [vmem:[%s19245_s10] ss:$0 sm:$0xff] }
 0xe78   : > { %15456 = vmatprep.mubr.msk.f32.mxu0 %vm698_vm0, %v17955_v55  ;;  %v6891_v4 = vmul.f32 %v17889_v25, %v6877_v9  ;;  %v17971_v47 = vadd.f32 %v17897_v63, %v6892_v62 }
 0xe79   : > { %15457 = vmatmul.mubr.msk.f32.gmra.mxu0 %vm698_vm0, %v17959_v40 }
 0xe7a   : > { %v17968_v22 = vadd.f32 %v17897_v63, %v6891_v4 }
 0xe7c   : > { %15459 = vmatprep.mubr.msk.f32.mxu0 %vm698_vm0, %v17968_v22 }
 0xe7d   : > { %15460 = vmatmul.mubr.msk.f32.gmra.mxu0 %vm698_vm0, %v17971_v47 }
 0xeb0   : > { %v15452_v58 = vpop.f32.mrf.mxu0 }
 0xeb1   : > { %v7014_v25 = vadd.f32 %v15452_v58, %v14419_v60 }
 0xeb2   : > { %v7008_v32 = vpop.f32.mrf.mxu0 }
 0xeb3   : > { %v7009_v56 = vadd.f32 %v14419_v60, %v7008_v32  ;;  %v7048_v49 = vmax.f32 %v7014_v25, 0.0 }
 0xeb4   : > { %v15455_v48 = vpop.f32.mrf.mxu0 }
 0xeb5   : > { %v7047_v35 = vmax.f32 %v7009_v56, 0.0  ;;  %v7024_v63 = vadd.f32 %v15455_v48, %v14419_v60 }
 0xeb6   : > { %v7018_v39 = vpop.f32.mrf.mxu0 }
 0xeb7   : > { %v7019_v17 = vadd.f32 %v14419_v60, %v7018_v39  ;;  %15478 = vmatprep.mubr.msk.f32.mxu1 %vm7070_vm3, %v7047_v35  ;;  %v7050_v52 = vmax.f32 %v7024_v63, 0.0 }
 0xeb8   : > { %15479 = vmatmul.mubr.msk.f32.vlgmr.msra.gmra.mxu1 %vm7070_vm3, %v7048_v49 }
 0xeb9   : > { %v7049_v15 = vmax.f32 %v7019_v17, 0.0 }
 0xebb   : > { %15481 = vmatprep.mubr.msk.f32.mxu1 %vm7070_vm3, %v7049_v15 }
 0xebc   : > { %15482 = vmatmul.mubr.msk.f32.gmra.mxu1 %vm7070_vm3, %v7050_v52 }
 0xf39   : > { %v15458_v5 = vpop.f32.mrf.mxu0 }
 0xf3a   : > { %v7034_v18 = vadd.f32 %v15458_v5, %v14419_v60 }
 0xf3b   : > { %v7028_v54 = vpop.f32.mrf.mxu0 }
 0xf3c   : > { %v7029_v10 = vadd.f32 %v14419_v60, %v7028_v54  ;;  %v7052_v24 = vmax.f32 %v7034_v18, 0.0 }
 0xf3d   : > { %v15461_v19 = vpop.f32.mrf.mxu0 }
 0xf3e   : > { %v7051_v31 = vmax.f32 %v7029_v10, 0.0  ;;  %v7044_v33 = vadd.f32 %v15461_v19, %v14419_v60 }
 0xf3f   : > { %v7038_v13 = vpop.f32.mrf.mxu0 }
 0xf40   : > { %v7039_v6 = vadd.f32 %v14419_v60, %v7038_v13  ;;  %15484 = vmatprep.mubr.msk.f32.mxu1 %vm7070_vm3, %v7051_v31  ;;  %v7054_v30 = vmax.f32 %v7044_v33, 0.0 }
 0xf41   : > { %15485 = vmatmul.mubr.msk.f32.gmra.mxu1 %vm7070_vm3, %v7052_v24 }
 0xf42   : > { %v7053_v29 = vmax.f32 %v7039_v6, 0.0 }
 0xf44   : > { %15487 = vmatprep.mubr.msk.f32.mxu1 %vm7070_vm3, %v7053_v29  ;;  %v14442_v29 = vld [vmem:[%s19238_s3 + $0x38] sm:$0xff] }
 0xf45   : > { %15488 = vmatmul.mubr.msk.f32.gmra.mxu1 %vm7070_vm3, %v7054_v30  ;;  %v14441_v30 = vld [vmem:[%s19238_s3 + $0x30] sm:$0xff]  ;;  %15490 = vmatprep.subr.mxu0 %v14442_v29 }
 0xf46   : > { %15512 = vmatprep.mubr.msk.f32.mxu1 %vm16612_vm1, %v19274_v12  ;;  %15491 = vmatpush3.msra.mxu0 %v14442_v29 }
 0xf47   : > { %15492 = vmatprep.subr.mxu0 %v14441_v30 }
 0xf48   : > { %15493 = vmatpush3.msra.mxu0 %v14441_v30 }
 0xf78   : > { %v15480_v16 = vpop.f32.mrf.mxu1 }
 0xf79   : > { %v7167_v20 = vadd.f32 %v15480_v16, %v14428_v28  ;;  %v14439_v16 = vld [vmem:[%s19238_s3 + $0x20] sm:$0xff] }
 0xf7a   : > { %v7161_v26 = vpop.f32.mrf.mxu1 }
 0xf7b   : > { %v7201_v21 = vadd.f32 %v7167_v20, %v17906_v27  ;;  %v7162_v41 = vadd.f32 %v14428_v28, %v7161_v26 }
 0xf7c   : > { %v15483_v7 = vpop.f32.mrf.mxu1 }
 0xf7d   : > { %v7200_v1 = vadd.f32 %v7162_v41, %v17902_v61  ;;  %v7177_v42 = vadd.f32 %v15483_v7, %v14428_v28  ;;  %v7213_v59 = vsel %vm698_vm0, %v7201_v21, 0.0 }
 0xf7e   : > { %7214 = vadd.xlane.f32.xlu0 %v7213_v59  ;;  %v7171_v38 = vpop.f32.mrf.mxu1 }
 0xf7f   : > { %v7203_v37 = vadd.f32 %v7177_v42, %v17918_v51  ;;  %v7172_v14 = vadd.f32 %v14428_v28, %v7171_v38  ;;  %v7210_v0 = vsel %vm698_vm0, %v7200_v1, 0.0 }
 0xf80   : > { %7211 = vadd.xlane.f32.xlu1 %v7210_v0 }
 0xf81   : > { %v7202_v8 = vadd.f32 %v7172_v14, %v17915_v44  ;;  %v7219_v45 = vsel %vm698_vm0, %v7203_v37, 0.0 }
 0xf82   : > { %7220 = vadd.xlane.f32.xlu0 %v7219_v45 }
 0xf83   : > { %v7216_v27 = vsel %vm698_vm0, %v7202_v8, 0.0 }
 0xf84   : > { %7217 = vadd.xlane.f32.xlu1 %v7216_v27 }
0x1001   : > { %v15486_v61 = vpop.f32.mrf.mxu1 }
0x1002   : > { %v7187_v34 = vadd.f32 %v15486_v61, %v14428_v28 }
0x1003   : > { %v7181_v3 = vpop.f32.mrf.mxu1 }
0x1004   : > { %v7205_v53 = vadd.f32 %v7187_v34, %v17959_v40  ;;  %v7182_v9 = vadd.f32 %v14428_v28, %v7181_v3 }
0x1005   : > { %v15489_v62 = vpop.f32.mrf.mxu1 }
0x1006   : > { %v7204_v51 = vadd.f32 %v7182_v9, %v17955_v55  ;;  %v7197_v4 = vadd.f32 %v15489_v62, %v14428_v28  ;;  %v7225_v60 = vsel %vm698_vm0, %v7205_v53, 0.0 }
0x1007   : > { %v7215_v58 = vpop.xlane.xlu0 %7214  ;;  %7226 = vadd.xlane.f32.xlu0 %v7225_v60  ;;  %v7191_v44 = vpop.f32.mrf.mxu1 }
0x1008   : > { %v7207_v25 = vadd.f32 %v7197_v4, %v17971_v47  ;;  %v7235_v32 = vmul.f32 0.03125, %v7215_v58  ;;  %v7192_v56 = vadd.f32 %v14428_v28, %v7191_v44  ;;  %v7222_v48 = vsel %vm698_vm0, %v7204_v51, 0.0  ;;  %v14440_v28 = vld [vmem:[%s19238_s3 + $0x28] sm:$0xff] }
0x1009   : > { %7223 = vadd.xlane.f32.xlu1 %v7222_v48  ;;  %v7212_v35 = vpop.xlane.xlu1 %7211  ;;  %15494 = vmatprep.subr.mxu0 %v14440_v28 }
0x100a   : > { %v18006_v49 = vsub.f32 %v7201_v21, %v7235_v32  ;;  %v7206_v40 = vadd.f32 %v7192_v56, %v17968_v22  ;;  %v7234_v63 = vmul.f32 0.03125, %v7212_v35  ;;  %v7231_v55 = vsel %vm698_vm0, %v7207_v25, 0.0  ;;  %15495 = vmatpush3.msra.mxu0 %v14440_v28 }
0x100b   : > { %v7221_v39 = vpop.xlane.xlu0 %7220  ;;  %7232 = vadd.xlane.f32.xlu0 %v7231_v55  ;;  %15496 = vmatprep.subr.mxu0 %v14439_v16  ;;  %v14437_v55 = vld [vmem:[%s19248_s13] ss:$0 sm:$0xff] }
0x100c   : > { %v18010_v17 = vsub.f32 %v7200_v1, %v7234_v63  ;;  %v7237_v15 = vmul.f32 0.03125, %v7221_v39  ;;  %v7228_v47 = vsel %vm698_vm0, %v7206_v40, 0.0  ;;  %v7251_v52 = vmul.f32 %v18006_v49, %v18006_v49  ;;  %15497 = vmatpush3.msra.mxu0 %v14439_v16 }
0x100d   : > { %7229 = vadd.xlane.f32.xlu1 %v7228_v47  ;;  %v7218_v5 = vpop.xlane.xlu1 %7217  ;;  %15520 = vmatprep.subr.mxu0 %v19274_v12 }
0x100e   : > { %v18015_v18 = vsub.f32 %v7203_v37, %v7237_v15  ;;  %v7236_v54 = vmul.f32 0.03125, %v7218_v5  ;;  %v7261_v22 = vsel %vm698_vm0, %v7251_v52, 0.0  ;;  %v7250_v10 = vmul.f32 %v18010_v17, %v18010_v17 }
0x100f   : > { %7262 = vadd.xlane.f32.xlu0 %v7261_v22 }
0x1010   : > { %v18020_v19 = vsub.f32 %v7202_v8, %v7236_v54  ;;  %v7258_v31 = vsel %vm698_vm0, %v7250_v10, 0.0  ;;  %v7253_v24 = vmul.f32 %v18015_v18, %v18015_v18  ;;  %v14438_v54 = vld [vmem:[%s19249_s14] ss:$0 sm:$0xff] }
0x1011   : > { %7259 = vadd.xlane.f32.xlu1 %v7258_v31 }
0x1012   : > { %v7267_v33 = vsel %vm698_vm0, %v7253_v24, 0.0  ;;  %v7252_v13 = vmul.f32 %v18020_v19, %v18020_v19 }
0x1013   : > { %7268 = vadd.xlane.f32.xlu0 %v7267_v33 }
0x1014   : > { %v7264_v6 = vsel %vm698_vm0, %v7252_v13, 0.0 }
0x1015   : > { %7265 = vadd.xlane.f32.xlu1 %v7264_v6 }
0x1090   : > { %v7227_v20 = vpop.xlane.xlu0 %7226 }
0x1091   : > { %v7239_v26 = vmul.f32 0.03125, %v7227_v20 }
0x1092   : > { %v7224_v21 = vpop.xlane.xlu1 %7223 }
0x1093   : > { %v18042_v41 = vsub.f32 %v7205_v53, %v7239_v26  ;;  %v7238_v7 = vmul.f32 0.03125, %v7224_v21 }
0x1094   : > { %v7233_v1 = vpop.xlane.xlu0 %7232 }
0x1095   : > { %v18044_v42 = vsub.f32 %v7204_v51, %v7238_v7  ;;  %v7241_v59 = vmul.f32 0.03125, %v7233_v1  ;;  %v7255_v38 = vmul.f32 %v18042_v41, %v18042_v41 }
0x1096   : > { %v7230_v37 = vpop.xlane.xlu1 %7229 }
0x1097   : > { %v18048_v14 = vsub.f32 %v7207_v25, %v7241_v59  ;;  %v7240_v0 = vmul.f32 0.03125, %v7230_v37  ;;  %v7273_v8 = vsel %vm698_vm0, %v7255_v38, 0.0  ;;  %v7254_v45 = vmul.f32 %v18044_v42, %v18044_v42 }
0x1098   : > { %7274 = vadd.xlane.f32.xlu0 %v7273_v8  ;;  %v7263_v27 = vpop.xlane.xlu0 %7262 }
0x1099   : > { %v18053_v61 = vsub.f32 %v7206_v40, %v7240_v0  ;;  %v7283_v34 = vmul.f32 0.03125, %v7263_v27  ;;  %v7270_v3 = vsel %vm698_vm0, %v7254_v45, 0.0  ;;  %v7257_v53 = vmul.f32 %v18048_v14, %v18048_v14 }
0x109a   : > { %7271 = vadd.xlane.f32.xlu1 %v7270_v3  ;;  %v7260_v9 = vpop.xlane.xlu1 %7259 }
0x109b   : > { %v7291_v62 = vadd.f32 1e-05, %v7283_v34  ;;  %v7282_v51 = vmul.f32 0.03125, %v7260_v9  ;;  %v7279_v4 = vsel %vm698_vm0, %v7257_v53, 0.0  ;;  %v7256_v60 = vmul.f32 %v18053_v61, %v18053_v61 }
0x109c   : > { %7280 = vadd.xlane.f32.xlu0 %v7279_v4  ;;  %v7269_v58 = vpop.xlane.xlu0 %7268 }
0x109d   : > { %16212 = vrsqrt.f32 %v7291_v62  ;;  %v7290_v44 = vadd.f32 1e-05, %v7282_v51  ;;  %v7285_v25 = vmul.f32 0.03125, %v7269_v58  ;;  %v7276_v32 = vsel %vm698_vm0, %v7256_v60, 0.0 }
0x109e   : > { %7277 = vadd.xlane.f32.xlu1 %v7276_v32  ;;  %v7266_v56 = vpop.xlane.xlu1 %7265 }
0x109f   : > { %16214 = vrsqrt.f32 %v7290_v44  ;;  %v7293_v48 = vadd.f32 1e-05, %v7285_v25  ;;  %v7284_v35 = vmul.f32 0.03125, %v7266_v56 }
0x10a1   : > { %16216 = vrsqrt.f32 %v7293_v48  ;;  %v7292_v40 = vadd.f32 1e-05, %v7284_v35 }
0x10a3   : > { %16218 = vrsqrt.f32 %v7292_v40 }
0x10aa   : > { %v16213_v63 = vpop.eup %16212 }
0x10ab   : > { %v7307_v39 = vmul.f32 %v16213_v63, %v18006_v49 }
0x10ac   : > { %v16215_v15 = vpop.eup %16214 }
0x10ad   : > { %v7306_v47 = vmul.f32 %v16215_v15, %v18010_v17  ;;  %v7321_v5 = vmul.f32 %v14437_v55, %v7307_v39 }
0x10ae   : > { %v16217_v52 = vpop.eup %16216 }
0x10af   : > { %v7320_v22 = vmul.f32 %v14437_v55, %v7306_v47  ;;  %v7309_v10 = vmul.f32 %v16217_v52, %v18015_v18  ;;  %v18074_v13 = vadd.f32 %v14438_v54, %v7321_v5 }
0x10b0   : > { %v16219_v31 = vpop.eup %16218 }
0x10b1   : > { %v18071_v24 = vadd.f32 %v14438_v54, %v7320_v22  ;;  %v7308_v33 = vmul.f32 %v16219_v31, %v18020_v19  ;;  %v7323_v49 = vmul.f32 %v14437_v55, %v7309_v10 }
0x10b3   : > { %15498 = vmatprep.mubr.msk.f32.mxu0 %vm698_vm0, %v18071_v24  ;;  %v7322_v17 = vmul.f32 %v14437_v55, %v7308_v33  ;;  %v18082_v29 = vadd.f32 %v14438_v54, %v7323_v49 }
0x10b4   : > { %15499 = vmatmul.mubr.msk.f32.vlgmr.msra.gmra.mxu0 %vm698_vm0, %v18074_v13 }
0x10b5   : > { %v18080_v6 = vadd.f32 %v14438_v54, %v7322_v17 }
0x10b7   : > { %15501 = vmatprep.mubr.msk.f32.mxu0 %vm698_vm0, %v18080_v6 }
0x10b8   : > { %15502 = vmatmul.mubr.msk.f32.gmra.mxu0 %vm698_vm0, %v18082_v29 }
0x1121   : > { %v7275_v18 = vpop.xlane.xlu0 %7274 }
0x1122   : > { %v7287_v19 = vmul.f32 0.03125, %v7275_v18 }
0x1123   : > { %v7272_v30 = vpop.xlane.xlu1 %7271 }
0x1124   : > { %v7295_v28 = vadd.f32 1e-05, %v7287_v19  ;;  %v7286_v16 = vmul.f32 0.03125, %v7272_v30 }
0x1125   : > { %v7281_v20 = vpop.xlane.xlu0 %7280 }
0x1126   : > { %16220 = vrsqrt.f32 %v7295_v28  ;;  %v7294_v26 = vadd.f32 1e-05, %v7286_v16  ;;  %v7289_v21 = vmul.f32 0.03125, %v7281_v20 }
0x1127   : > { %v7278_v7 = vpop.xlane.xlu1 %7277 }
0x1128   : > { %16222 = vrsqrt.f32 %v7294_v26  ;;  %v7297_v1 = vadd.f32 1e-05, %v7289_v21  ;;  %v7288_v59 = vmul.f32 0.03125, %v7278_v7 }
0x112a   : > { %16224 = vrsqrt.f32 %v7297_v1  ;;  %v7296_v38 = vadd.f32 1e-05, %v7288_v59 }
0x112c   : > { %16226 = vrsqrt.f32 %v7296_v38 }
0x1133   : > { %v16221_v37 = vpop.eup %16220 }
0x1134   : > { %v7311_v0 = vmul.f32 %v16221_v37, %v18042_v41 }
0x1135   : > { %v16223_v8 = vpop.eup %16222 }
0x1136   : > { %v7310_v45 = vmul.f32 %v16223_v8, %v18044_v42  ;;  %v7325_v34 = vmul.f32 %v14437_v55, %v7311_v0 }
0x1137   : > { %v16225_v27 = vpop.eup %16224 }
0x1138   : > { %v7324_v3 = vmul.f32 %v14437_v55, %v7310_v45  ;;  %v7313_v53 = vmul.f32 %v16225_v27, %v18048_v14  ;;  %v18094_v4 = vadd.f32 %v14438_v54, %v7325_v34  ;;  %v14444_v14 = vld [vmem:[%s19239_s4 + $0x1] ss:$0 sm:$0xff] }
0x1139   : > { %v16227_v9 = vpop.eup %16226 }
0x113a   : > { %v18091_v62 = vadd.f32 %v14438_v54, %v7324_v3  ;;  %v7312_v51 = vmul.f32 %v16227_v9, %v18053_v61  ;;  %v7327_v60 = vmul.f32 %v14437_v55, %v7313_v53 }
0x113c   : > { %15504 = vmatprep.mubr.msk.f32.mxu0 %vm698_vm0, %v18091_v62  ;;  %v7326_v41 = vmul.f32 %v14437_v55, %v7312_v51  ;;  %v18102_v58 = vadd.f32 %v14438_v54, %v7327_v60 }
0x113d   : > { %15505 = vmatmul.mubr.msk.f32.gmra.mxu0 %vm698_vm0, %v18094_v4 }
0x113e   : > { %v18100_v42 = vadd.f32 %v14438_v54, %v7326_v41 }
0x1140   : > { %19309 = vst [vmem:[#allocation20_spill] sm:$0xff] %v18100_v42  ;;  %15507 = vmatprep.mubr.msk.f32.mxu0 %vm698_vm0, %v18100_v42 }
0x1141   : > { %15508 = vmatmul.mubr.msk.f32.gmra.mxu0 %vm698_vm0, %v18102_v58 }
0x1142   : > { %15522 = vmatprep.mubr.msk.f32.mxu0 %vm16612_vm1, %v19274_v12 }
0x1174   : > { %v15500_v61 = vpop.f32.mrf.mxu0 }
0x1175   : > { %v18113_v44 = vadd.f32 %v15500_v61, %v14444_v14 }
0x1176   : > { %v7445_v25 = vpop.f32.mrf.mxu0 }
0x1177   : > { %v18115_v32 = vadd.f32 %v14444_v14, %v7445_v25  ;;  %7567 = vrot.lane.b32.xlu0 %v18113_v44, %s16613_s1 }
0x1178   : > { %v15503_v56 = vpop.f32.mrf.mxu0 }
0x1179   : > { %7490 = vrot.lane.b32.xlu1 %v18115_v32, %s16613_s1  ;;  %v18125_v40 = vadd.f32 %v15503_v56, %v14444_v14 }
0x117a   : > { %v7455_v48 = vpop.f32.mrf.mxu0 }
0x117b   : > { %v18121_v35 = vadd.f32 %v14444_v14, %v7455_v48 }
0x117d   : > { %7644 = vrot.lane.b32.xlu1 %v18121_v35, %s16613_s1 }
0x1181   : > { %7721 = vrot.lane.b32.xlu1 %v18125_v40, %s16613_s1 }
0x11e9   : > { %v7568_v55 = vpop.permute.xlu0 %7567 }
0x11eb   : > { %v7491_v63 = vpop.permute.xlu1 %7490 }
0x11ec   : > { %15511 = vmatpush3.xpose.msk.msra.mxu1 %vm835_vm2, %v7491_v63 }
0x11ed   : > { %15515 = vmatprep.subr.mxu1 %v19274_v12 }
0x11ef   : > { %15513 = vmatmul.mubr.msk.f32.vlgmr.msra.gmra.mxu1 %vm835_vm2, %v18115_v32  ;;  %v7645_v39 = vpop.permute.xlu1 %7644 }
0x11f0   : > { %15516 = vmatpush3.xpose.msk.msra.mxu1 %vm835_vm2, %v7568_v55  ;;  %15521 = vmatpush3.xpose.msk.msra.mxu0 %vm835_vm2, %v7645_v39 }
0x11f1   : > { %15517 = vmatprep.mubr.msk.f32.mxu1 %vm16612_vm1, %v19274_v12  ;;  %15525 = vmatprep.subr.mxu1 %v19274_v12 }
0x11f2   : > { %15530 = vmatprep.subr.mxu0 %v19274_v12 }
0x11f3   : > { %15518 = vmatmul.mubr.msk.f32.vlgmr.msra.gmra.mxu1 %vm835_vm2, %v18113_v44  ;;  %15523 = vmatmul.mubr.msk.f32.vlgmr.msra.gmra.mxu0 %vm835_vm2, %v18121_v35  ;;  %v7722_v15 = vpop.permute.xlu1 %7721 }
0x11f4   : > { %15526 = vmatpush3.xpose.msk.msra.mxu1 %vm835_vm2, %v7722_v15  ;;  %15527 = vmatprep.mubr.msk.f32.mxu1 %vm16612_vm1, %v19274_v12 }
0x11f5   : > { %15535 = vmatprep.subr.mxu1 %v19274_v12  ;;  %15532 = vmatprep.mubr.msk.f32.mxu0 %vm16612_vm1, %v19274_v12 }
0x11f7   : > { %15528 = vmatmul.mubr.msk.f32.vlgmr.msra.gmra.mxu1 %vm835_vm2, %v18125_v40 }
0x11f8   : > { %15537 = vmatprep.mubr.msk.f32.mxu1 %vm16612_vm1, %v19274_v12 }
0x11fd   : > { %v15506_v47 = vpop.f32.mrf.mxu0 }
0x11fe   : > { %v18153_v52 = vadd.f32 %v15506_v47, %v14444_v14 }
0x11ff   : > { %v7465_v5 = vpop.f32.mrf.mxu0 }
0x1200   : > { %v18155_v54 = vadd.f32 %v14444_v14, %v7465_v5  ;;  %7875 = vrot.lane.b32.xlu1 %v18153_v52, %s16613_s1 }
0x1201   : > { %v15509_v22 = vpop.f32.mrf.mxu0 }
0x1202   : > { %v18159_v10 = vadd.f32 %v15509_v22, %v14444_v14  ;;  %7798 = vrot.lane.b32.xlu0 %v18155_v54, %s16613_s1 }
0x1203   : > { %v7475_v31 = vpop.f32.mrf.mxu0 }
0x1204   : > { %v18163_v33 = vadd.f32 %v14444_v14, %v7475_v31  ;;  %8029 = vrot.lane.b32.xlu1 %v18159_v10, %s16613_s1 }
0x1206   : > { %7952 = vrot.lane.b32.xlu0 %v18163_v33, %s16613_s1  ;;  %s19310_s1 = smov 112  }
0x1272   : > { %v7876_v49 = vpop.permute.xlu1 %7875 }
0x1273   : > { %15536 = vmatpush3.xpose.msk.msra.mxu1 %vm835_vm2, %v7876_v49 }
0x1274   : > { %v7799_v17 = vpop.permute.xlu0 %7798  ;;  %15545 = vmatprep.subr.mxu1 %v19274_v12 }
0x1275   : > { %15531 = vmatpush3.xpose.msk.msra.mxu0 %vm835_vm2, %v7799_v17 }
0x1276   : > { %15538 = vmatmul.mubr.msk.f32.vlgmr.msra.gmra.mxu1 %vm835_vm2, %v18153_v52  ;;  %v8030_v18 = vpop.permute.xlu1 %8029  ;;  %15540 = vmatprep.subr.mxu0 %v19274_v12 }
0x1277   : > { %15546 = vmatpush3.xpose.msk.msra.mxu1 %vm835_vm2, %v8030_v18  ;;  %15547 = vmatprep.mubr.msk.f32.mxu1 %vm16612_vm1, %v19274_v12 }
0x1278   : > { %v7953_v19 = vpop.permute.xlu0 %7952  ;;  %15533 = vmatmul.mubr.msk.f32.vlgmr.msra.gmra.mxu0 %vm835_vm2, %v18155_v54  ;;  %15555 = vmatprep.subr.mxu1 %v19274_v12 }
0x1279   : > { %15541 = vmatpush3.xpose.msk.msra.mxu0 %vm835_vm2, %v7953_v19  ;;  %15542 = vmatprep.mubr.msk.f32.mxu0 %vm16612_vm1, %v19274_v12 }
0x127a   : > { %15548 = vmatmul.mubr.msk.f32.vlgmr.msra.gmra.mxu1 %vm835_vm2, %v18159_v10  ;;  %15550 = vmatprep.subr.mxu0 %v19274_v12 }
0x127b   : > { %15557 = vmatprep.mubr.msk.f32.mxu1 %vm16612_vm1, %v19274_v12 }
0x127c   : > { %15543 = vmatmul.mubr.msk.f32.vlgmr.msra.gmra.mxu0 %vm835_vm2, %v18163_v33 }
0x127d   : > { %15552 = vmatprep.mubr.msk.f32.mxu0 %vm16612_vm1, %v19274_v12 }
0x12af   : > { %v7562_v30 = vpop.f32.mrf.mxu1 }
0x12b0   : > { %v8105_v28 = vmul.f32 0.35355338, %v7562_v30 }
0x12b1   : > { %v15514_v16 = vpop.f32.mrf.mxu1 }
0x12b2   : > { %v8113_v20 = vadd.f32 %v8105_v28, %v17029_v50 }
0x12b3   : > { %v7639_v26 = vpop.f32.mrf.mxu1  ;;  %v7716_v21 = vpop.f32.mrf.mxu0 }
0x12b4   : > { %v8106_v7 = vmul.f32 0.35355338, %v7639_v26  ;;  %v8107_v1 = vmul.f32 0.35355338, %v7716_v21  ;;  %v8121_v59 = vsel %vm835_vm2, %v8113_v20, -inf }
0x12b5   : > { %8122 = vmax.xlane.f32.xlu0 %v8121_v59  ;;  %v15519_v38 = vpop.f32.mrf.mxu1  ;;  %v15524_v37 = vpop.f32.mrf.mxu0 }
0x12b6   : > { %v8114_v0 = vadd.f32 %v8106_v7, %v17035_v57  ;;  %v8115_v8 = vadd.f32 %v8107_v1, %v17044_v2 }
0x12b7   : > { %v7793_v45 = vpop.f32.mrf.mxu1 }
0x12b8   : > { %v8108_v27 = vmul.f32 0.35355338, %v7793_v45  ;;  %v8124_v34 = vsel %vm835_vm2, %v8114_v0, -inf  ;;  %v8127_v3 = vsel %vm835_vm2, %v8115_v8, -inf }
0x12b9   : > { %8125 = vmax.xlane.f32.xlu1 %v8124_v34  ;;  %8128 = vmax.xlane.f32.xlu0 %v8127_v3  ;;  %v15529_v53 = vpop.f32.mrf.mxu1 }
0x12ba   : > { %v8116_v9 = vadd.f32 %v8108_v27, %v17052_v11 }
0x12bc   : > { %v8130_v51 = vsel %vm835_vm2, %v8116_v9, -inf }
0x12bd   : > { %8131 = vmax.xlane.f32.xlu0 %v8130_v51 }
0x1336   : > { %v7947_v60 = vpop.f32.mrf.mxu1 }
0x1337   : > { %v8110_v41 = vmul.f32 0.35355338, %v7947_v60 }
0x1338   : > { %v7870_v14 = vpop.f32.mrf.mxu0  ;;  %v15539_v61 = vpop.f32.mrf.mxu1 }
0x1339   : > { %v18202_v25 = vadd.f32 %v8110_v41, %v17056_v23  ;;  %v8109_v59 = vmul.f32 0.35355338, %v7870_v14 }
0x133a   : > { %v15534_v56 = vpop.f32.mrf.mxu0  ;;  %v8101_v48 = vpop.f32.mrf.mxu1 }
0x133b   : > { %v8112_v63 = vmul.f32 0.35355338, %v8101_v48  ;;  %v8136_v55 = vsel %vm835_vm2, %v18202_v25, -inf }
0x133c   : > { %v8024_v39 = vpop.f32.mrf.mxu0  ;;  %8137 = vmax.xlane.f32.xlu0 %v8136_v55  ;;  %v15549_v15 = vpop.f32.mrf.mxu1 }
0x133d   : > { %v8120_v47 = vadd.f32 %v8112_v63, %v17064_v36 }
0x133e   : > { %v8123_v5 = vpop.xlane.xlu0 %8122  ;;  %v15544_v22 = vpop.f32.mrf.mxu0 }
0x133f   : > { %v8145_v31 = vsub.f32 %v8113_v20, %v8123_v5  ;;  %v8142_v49 = vsel %vm835_vm2, %v8120_v47, -inf  ;;  %v8117_v20 = vadd.f32 %v8109_v59, %v17022_v43 }
0x1340   : > { %8143 = vmax.xlane.f32.xlu0 %v8142_v49 }
0x1341   : > { %v8153_v17 = vmul.f32 1.442695, %v8145_v31 }
0x1342   : > { %v8129_v18 = vpop.xlane.xlu0 %8128  ;;  %v8126_v19 = vpop.xlane.xlu1 %8125 }
0x1343   : > { %16228 = vpow2.f32 %v8153_v17  ;;  %v8147_v30 = vsub.f32 %v8115_v8, %v8129_v18  ;;  %v8146_v28 = vsub.f32 %v8114_v0, %v8126_v19  ;;  %v8111_v0 = vmul.f32 0.35355338, %v8024_v39 }
0x1344   : > { %v8133_v8 = vsel %vm835_vm2, %v8117_v20, -inf }
0x1345   : > { %v8157_v16 = vmul.f32 1.442695, %v8147_v30  ;;  %v8155_v26 = vmul.f32 1.442695, %v8146_v28  ;;  %v8119_v53 = vadd.f32 %v8111_v0, %v17025_v46 }
0x1346   : > { %v8132_v21 = vpop.xlane.xlu0 %8131 }
0x1347   : > { %v8148_v7 = vsub.f32 %v8116_v9, %v8132_v21  ;;  %16230 = vpow2.f32 %v8155_v26  ;;  %v8139_v60 = vsel %vm835_vm2, %v8119_v53, -inf }
0x1348   : > { %16232 = vpow2.f32 %v8157_v16 }
0x1349   : > { %v8159_v1 = vmul.f32 1.442695, %v8148_v7 }
0x134b   : > { %16234 = vpow2.f32 %v8159_v1 }
0x1350   : > { %v18208_v38 = vpop.eup %16228 }
0x1351   : > { %v8169_v37 = vsel %vm835_vm2, %v18208_v38, 0.0 }
0x1352   : > { %8170 = vadd.xlane.f32.xlu1 %v8169_v37 }
0x1354   : > { %v18213_v45 = vpop.eup %16230 }
0x1355   : > { %v18216_v27 = vpop.eup %16232  ;;  %v8172_v34 = vsel %vm835_vm2, %v18213_v45, 0.0 }
0x1356   : > { %8134 = vmax.xlane.f32.xlu1 %v8133_v8  ;;  %8173 = vadd.xlane.f32.xlu0 %v8172_v34  ;;  %v8175_v9 = vsel %vm835_vm2, %v18216_v27, 0.0 }
0x1358   : > { %v18220_v3 = vpop.eup %16234 }
0x1359   : > { %v8178_v51 = vsel %vm835_vm2, %v18220_v3, 0.0 }
0x135a   : > { %8176 = vadd.xlane.f32.xlu1 %v8175_v9  ;;  %8179 = vadd.xlane.f32.xlu0 %v8178_v51 }
0x135e   : > { %8140 = vmax.xlane.f32.xlu1 %v8139_v60 }
0x136f   : > { %8209 = vrot.lane.b32.xlu1 %v18115_v32, %s16614_s6 }
0x1370   : > { %8285 = vrot.lane.b32.xlu0 %v18113_v44, %s16614_s6 }
0x1373   : > { %8361 = vrot.lane.b32.xlu1 %v18121_v35, %s16614_s6 }
0x1374   : > { %8513 = vrot.lane.b32.xlu0 %v18155_v54, %s16614_s6 }
0x1377   : > { %8437 = vrot.lane.b32.xlu1 %v18125_v40, %s16614_s6 }
0x1378   : > { %8665 = vrot.lane.b32.xlu0 %v18163_v33, %s16614_s6 }
0x137b   : > { %8589 = vrot.lane.b32.xlu1 %v18153_v52, %s16614_s6 }
0x137c   : > { %8819 = vrot.lane.b32.xlu0 %v18115_v32, %s16615_s19 }
0x137f   : > { %8741 = vrot.lane.b32.xlu1 %v18159_v10, %s16614_s6  ;;  %s19311_s6 = smov 48  }
0x1380   : > { %8817 = vrot.lane.b32.xlu0 %v18115_v32, %s16616_s29 }
0x1383   : > { %8897 = vrot.lane.b32.xlu1 %v18113_v44, %s16615_s19 }
0x1384   : > { %8975 = vrot.lane.b32.xlu0 %v18121_v35, %s16615_s19 }
0x1387   : > { %8895 = vrot.lane.b32.xlu1 %v18113_v44, %s16616_s29 }
0x1388   : > { %8973 = vrot.lane.b32.xlu0 %v18121_v35, %s16616_s29 }
0x138b   : > { %9053 = vrot.lane.b32.xlu1 %v18125_v40, %s16615_s19 }
0x138f   : > { %9051 = vrot.lane.b32.xlu1 %v18125_v40, %s16616_s29 }
0x13c5   : > { %v8138_v41 = vpop.xlane.xlu0 %8137 }
0x13c6   : > { %v8150_v14 = vsub.f32 %v18202_v25, %v8138_v41 }
0x13c8   : > { %v8163_v61 = vmul.f32 1.442695, %v8150_v14 }
0x13c9   : > { %v8144_v56 = vpop.xlane.xlu0 %8143 }
0x13ca   : > { %16236 = vpow2.f32 %v8163_v61  ;;  %v8152_v48 = vsub.f32 %v8120_v47, %v8144_v56 }
0x13cc   : > { %v8167_v63 = vmul.f32 1.442695, %v8152_v48 }
0x13ce   : > { %16238 = vpow2.f32 %v8167_v63 }
0x13d7   : > { %v18261_v55 = vpop.eup %16236 }
0x13d8   : > { %v8184_v39 = vsel %vm835_vm2, %v18261_v55, 0.0 }
0x13d9   : > { %8185 = vadd.xlane.f32.xlu0 %v8184_v39 }
0x13db   : > { %v18265_v15 = vpop.eup %16238  ;;  %v8171_v5 = vpop.xlane.xlu1 %8170 }
0x13dc   : > { %16240 = vrcp.f32 %v8171_v5  ;;  %v8190_v22 = vsel %vm835_vm2, %v18265_v15, 0.0 }
0x13dd   : > { %8191 = vadd.xlane.f32.xlu0 %v8190_v22 }
0x13df   : > { %v8135_v25 = vpop.xlane.xlu1 %8134  ;;  %v8174_v31 = vpop.xlane.xlu0 %8173 }
0x13e0   : > { %v8149_v49 = vsub.f32 %v8117_v20, %v8135_v25  ;;  %16242 = vrcp.f32 %v8174_v31 }
0x13e2   : > { %v8161_v47 = vmul.f32 1.442695, %v8149_v49 }
0x13e3   : > { %v8177_v17 = vpop.xlane.xlu1 %8176  ;;  %v8180_v18 = vpop.xlane.xlu0 %8179 }
0x13e4   : > { %16244 = vpow2.f32 %v8161_v47 }
0x13e5   : > { %16246 = vrcp.f32 %v8180_v18 }
0x13e6   : > { %16248 = vrcp.f32 %v8177_v17 }
0x13e7   : > { %v8141_v19 = vpop.xlane.xlu1 %8140  ;;  %v8286_v30 = vpop.permute.xlu0 %8285 }
0x13e8   : > { %v8151_v28 = vsub.f32 %v8119_v53, %v8141_v19  ;;  %15556 = vmatpush3.msra.mxu1 %v8286_v30 }
0x13e9   : > { %v16241_v16 = vpop.eup %16240  ;;  %15565 = vmatprep.subr.mxu1 %v19274_v12 }
0x13ea   : > { %v8165_v26 = vmul.f32 1.442695, %v8151_v28  ;;  %v8201_v21 = vmul.f32 %v16241_v16, %v18208_v38 }
0x13eb   : > { %v8210_v7 = vpop.permute.xlu1 %8209  ;;  %v8514_v9 = vpop.permute.xlu0 %8513 }
0x13ec   : > { %16250 = vpow2.f32 %v8165_v26  ;;  %15551 = vmatpush3.msra.mxu0 %v8210_v7 }
0x13ed   : > { %15553 = vmatmul.mubr.msk.f32.vlgmr.msra.gmra.mxu0 %vm835_vm2, %v8201_v21  ;;  %15560 = vmatprep.subr.mxu0 %v19274_v12  ;;  %v16243_v1 = vpop.eup %16242 }
0x13ee   : > { %15562 = vmatprep.mubr.msk.f32.mxu0 %vm16612_vm1, %v19274_v12  ;;  %v8202_v20 = vmul.f32 %v16243_v1, %v18213_v45 }
0x13ef   : > { %v8362_v59 = vpop.permute.xlu1 %8361  ;;  %v8666_v60 = vpop.permute.xlu0 %8665 }
0x13f0   : > { %15561 = vmatpush3.msra.mxu0 %v8362_v59  ;;  %15558 = vmatmul.mubr.msk.f32.vlgmr.msra.gmra.mxu1 %vm835_vm2, %v8202_v20 }
0x13f1   : > { %v18276_v37 = vpop.eup %16244  ;;  %15570 = vmatprep.subr.mxu0 %v19274_v12  ;;  %15567 = vmatprep.mubr.msk.f32.mxu1 %vm16612_vm1, %v19274_v12 }
0x13f2   : > { %v16247_v38 = vpop.eup %16246  ;;  %v8181_v0 = vsel %vm835_vm2, %v18276_v37, 0.0 }
0x13f3   : > { %v16249_v8 = vpop.eup %16248  ;;  %9131 = vrot.lane.b32.xlu0 %v18155_v54, %s16615_s19  ;;  %8182 = vadd.xlane.f32.xlu1 %v8181_v0  ;;  %v8438_v45 = vpop.permute.xlu1 %8437  ;;  %v8204_v34 = vmul.f32 %v16247_v38, %v18220_v3 }
0x13f4   : > { %v8203_v53 = vmul.f32 %v16249_v8, %v18216_v27  ;;  %15566 = vmatpush3.msra.mxu1 %v8438_v45  ;;  %v8820_v41 = vpop.permute.xlu0 %8819 }
0x13f5   : > { %15568 = vmatmul.mubr.msk.f32.vlgmr.msra.gmra.mxu1 %vm835_vm2, %v8204_v34  ;;  %15575 = vmatprep.subr.mxu1 %v19274_v12 }
0x13f6   : > { %15563 = vmatmul.mubr.msk.f32.vlgmr.msra.gmra.mxu0 %vm835_vm2, %v8203_v53  ;;  %15577 = vmatprep.mubr.msk.f32.mxu1 %vm16612_vm1, %v19274_v12 }
0x13f7   : > { %15571 = vmatpush3.msra.mxu0 %v8514_v9  ;;  %9129 = vrot.lane.b32.xlu0 %v18155_v54, %s16616_s29  ;;  %v8590_v51 = vpop.permute.xlu1 %8589 }
0x13f8   : > { %15576 = vmatpush3.msra.mxu1 %v8590_v51  ;;  %15572 = vmatprep.mubr.msk.f32.mxu0 %vm16612_vm1, %v19274_v12  ;;  %v8818_v14 = vpop.permute.xlu0 %8817 }
0x13f9   : > { %v18297_v27 = vpop.eup %16250  ;;  %15585 = vmatprep.subr.mxu1 %v19274_v12  ;;  %15580 = vmatprep.subr.mxu0 %v19274_v12 }
0x13fa   : > { %v8187_v3 = vsel %vm835_vm2, %v18297_v27, 0.0 }
0x13fb   : > { %9287 = vrot.lane.b32.xlu0 %v18163_v33, %s16615_s19  ;;  %8188 = vadd.xlane.f32.xlu1 %v8187_v3  ;;  %v8742_v48 = vpop.permute.xlu1 %8741 }
0x13fc   : > { %v8976_v61 = vpop.permute.xlu0 %8975 }
0x13ff   : > { %9285 = vrot.lane.b32.xlu0 %v18163_v33, %s16616_s29  ;;  %v8898_v39 = vpop.permute.xlu1 %8897 }
0x1400   : > { %v8974_v56 = vpop.permute.xlu0 %8973 }
0x1403   : > { %v8896_v22 = vpop.permute.xlu1 %8895 }
0x1407   : > { %v9054_v49 = vpop.permute.xlu1 %9053 }
0x140b   : > { %v9052_v18 = vpop.permute.xlu1 %9051 }
0x140c   : > { %9209 = vrot.lane.b32.xlu1 %v18153_v52, %s16615_s19 }
0x1410   : > { %9207 = vrot.lane.b32.xlu1 %v18153_v52, %s16616_s29 }
0x1414   : > { %9365 = vrot.lane.b32.xlu1 %v18159_v10, %s16615_s19  ;;  %s19313_s19 = smov 104  }
0x1418   : > { %9363 = vrot.lane.b32.xlu1 %v18159_v10, %s16616_s29  ;;  %s19314_s29 = smov 72  }
0x1462   : > { %v8186_v63 = vpop.xlane.xlu0 %8185 }
0x1463   : > { %16252 = vrcp.f32 %v8186_v63 }
0x1466   : > { %v8192_v5 = vpop.xlane.xlu0 %8191 }
0x1467   : > { %16254 = vrcp.f32 %v8192_v5 }
0x146a   : > { %v9132_v7 = vpop.permute.xlu0 %9131 }
0x146e   : > { %v9130_v20 = vpop.permute.xlu0 %9129 }
0x1470   : > { %v16253_v25 = vpop.eup %16252 }
0x1471   : > { %v8206_v31 = vmul.f32 %v16253_v25, %v18261_v55 }
0x1473   : > { %15578 = vmatmul.mubr.msk.f32.vlgmr.msra.gmra.mxu1 %vm835_vm2, %v8206_v31 }
0x1474   : > { %v16255_v47 = vpop.eup %16254  ;;  %15586 = vmatpush3.msra.mxu1 %v8742_v48  ;;  %15587 = vmatprep.mubr.msk.f32.mxu1 %vm16612_vm1, %v19274_v12 }
0x1475   : > { %v8208_v17 = vmul.f32 %v16255_v47, %v18265_v15  ;;  %15595 = vmatprep.subr.mxu1 %v19274_v12 }
0x1477   : > { %15588 = vmatmul.mubr.msk.f32.vlgmr.msra.gmra.mxu1 %vm835_vm2, %v8208_v17 }
0x1478   : > { %15596 = vmatpush3.xpose.msk.msra.mxu1 %vm835_vm2, %v8898_v39  ;;  %15597 = vmatprep.mubr.msk.f32.mxu1 %vm16612_vm1, %v19274_v12 }
0x1479   : > { %15605 = vmatprep.subr.mxu1 %v19274_v12 }
0x147b   : > { %15598 = vmatmul.mubr.msk.f32.vlgmr.msra.gmra.mxu1 %vm835_vm2, %v8896_v22 }
0x147c   : > { %15606 = vmatpush3.xpose.msk.msra.mxu1 %vm835_vm2, %v9054_v49  ;;  %v8183_v55 = vpop.xlane.xlu1 %8182  ;;  %15607 = vmatprep.mubr.msk.f32.mxu1 %vm16612_vm1, %v19274_v12 }
0x147d   : > { %16256 = vrcp.f32 %v8183_v55  ;;  %15615 = vmatprep.subr.mxu1 %v19274_v12 }
0x147f   : > { %15608 = vmatmul.mubr.msk.f32.vlgmr.msra.gmra.mxu1 %vm835_vm2, %v9052_v18 }
0x1480   : > { %15617 = vmatprep.mubr.msk.f32.mxu1 %vm16612_vm1, %v19274_v12 }
0x1484   : > { %v8189_v15 = vpop.xlane.xlu1 %8188 }
0x1485   : > { %16258 = vrcp.f32 %v8189_v15 }
0x1488   : > { %v9210_v19 = vpop.permute.xlu1 %9209 }
0x1489   : > { %15616 = vmatpush3.xpose.msk.msra.mxu1 %vm835_vm2, %v9210_v19 }
0x148a   : > { %v16257_v30 = vpop.eup %16256  ;;  %15625 = vmatprep.subr.mxu1 %v19274_v12 }
0x148b   : > { %v8205_v28 = vmul.f32 %v16257_v30, %v18276_v37  ;;  %v9288_v37 = vpop.permute.xlu0 %9287 }
0x148c   : > { %v9208_v16 = vpop.permute.xlu1 %9207 }
0x148d   : > { %15573 = vmatmul.mubr.msk.f32.vlgmr.msra.gmra.mxu0 %vm835_vm2, %v8205_v28  ;;  %15618 = vmatmul.mubr.msk.f32.vlgmr.msra.gmra.mxu1 %vm835_vm2, %v9208_v16 }
0x148e   : > { %15581 = vmatpush3.msra.mxu0 %v8666_v60  ;;  %15582 = vmatprep.mubr.msk.f32.mxu0 %vm16612_vm1, %v19274_v12 }
0x148f   : > { %15590 = vmatprep.subr.mxu0 %v19274_v12  ;;  %15627 = vmatprep.mubr.msk.f32.mxu1 %vm16612_vm1, %v19274_v12  ;;  %v9286_v38 = vpop.permute.xlu0 %9285 }
0x1490   : > { %v9366_v26 = vpop.permute.xlu1 %9365 }
0x1491   : > { %15626 = vmatpush3.xpose.msk.msra.mxu1 %vm835_vm2, %v9366_v26 }
0x1492   : > { %v16259_v21 = vpop.eup %16258  ;;  %15635 = vmatprep.subr.mxu1 %v19274_v12 }
0x1493   : > { %v8207_v1 = vmul.f32 %v16259_v21, %v18297_v27 }
0x1494   : > { %v9364_v59 = vpop.permute.xlu1 %9363 }
0x1495   : > { %15583 = vmatmul.mubr.msk.f32.vlgmr.msra.gmra.mxu0 %vm835_vm2, %v8207_v1  ;;  %15628 = vmatmul.mubr.msk.f32.vlgmr.msra.gmra.mxu1 %vm835_vm2, %v9364_v59 }
0x1496   : > { %15591 = vmatpush3.xpose.msk.msra.mxu0 %vm835_vm2, %v8820_v41  ;;  %15592 = vmatprep.mubr.msk.f32.mxu0 %vm16612_vm1, %v19274_v12 }
0x1497   : > { %15600 = vmatprep.subr.mxu0 %v19274_v12  ;;  %15637 = vmatprep.mubr.msk.f32.mxu1 %vm16612_vm1, %v19274_v12 }
0x1499   : > { %15593 = vmatmul.mubr.msk.f32.vlgmr.msra.gmra.mxu0 %vm835_vm2, %v8818_v14 }
0x149a   : > { %15601 = vmatpush3.xpose.msk.msra.mxu0 %vm835_vm2, %v8976_v61  ;;  %15602 = vmatprep.mubr.msk.f32.mxu0 %vm16612_vm1, %v19274_v12 }
0x149b   : > { %15610 = vmatprep.subr.mxu0 %v19274_v12 }
0x149d   : > { %15603 = vmatmul.mubr.msk.f32.vlgmr.msra.gmra.mxu0 %vm835_vm2, %v8974_v56 }
0x149e   : > { %15611 = vmatpush3.xpose.msk.msra.mxu0 %vm835_vm2, %v9132_v7  ;;  %15612 = vmatprep.mubr.msk.f32.mxu0 %vm16612_vm1, %v19274_v12 }
0x149f   : > { %15620 = vmatprep.subr.mxu0 %v19274_v12 }
0x14a1   : > { %15613 = vmatmul.mubr.msk.f32.vlgmr.msra.gmra.mxu0 %vm835_vm2, %v9130_v20 }
0x14a2   : > { %15621 = vmatpush3.xpose.msk.msra.mxu0 %vm835_vm2, %v9288_v37  ;;  %15622 = vmatprep.mubr.msk.f32.mxu0 %vm16612_vm1, %v19274_v12 }
0x14a3   : > { %15630 = vmatprep.subr.mxu0 %v19274_v12 }
0x14a5   : > { %15623 = vmatmul.mubr.msk.f32.vlgmr.msra.gmra.mxu0 %vm835_vm2, %v9286_v38 }
0x14a6   : > { %15632 = vmatprep.mubr.msk.f32.mxu0 %vm16612_vm1, %v19274_v12 }
0x14ad   : > { %v18373_v0 = vpop.f32.mrf.mxu0 }
0x14af   : > { %v15554_v8 = vpop.f32.mrf.mxu0 }
0x14b0   : > { %v18375_v45 = vpop.f32.mrf.mxu1 }
0x14b2   : > { %v15559_v34 = vpop.f32.mrf.mxu1 }
0x14b5   : > { %v18377_v53 = vpop.f32.mrf.mxu1 }
0x14b6   : > { %v18379_v9 = vpop.f32.mrf.mxu0 }
0x14b7   : > { %v15569_v51 = vpop.f32.mrf.mxu1 }
0x14b8   : > { %v15564_v27 = vpop.f32.mrf.mxu0 }
0x1533   : > { %v18381_v3 = vpop.f32.mrf.mxu1 }
0x1535   : > { %v15579_v60 = vpop.f32.mrf.mxu1 }
0x1537   : > { %v18383_v41 = vpop.f32.mrf.mxu1 }
0x1539   : > { %v15589_v14 = vpop.f32.mrf.mxu1 }
0x153b   : > { %v8969_v61 = vpop.f32.mrf.mxu1 }
0x153c   : > { %v9442_v56 = vmul.f32 0.35355338, %v8969_v61 }
0x153d   : > { %v15599_v48 = vpop.f32.mrf.mxu1 }
0x153e   : > { %v9450_v63 = vadd.f32 %v9442_v56, %v17035_v57 }
0x153f   : > { %v9125_v39 = vpop.f32.mrf.mxu1 }
0x1540   : > { %v9460_v5 = vsel %vm835_vm2, %v9450_v63, -inf  ;;  %v9444_v26 = vmul.f32 0.35355338, %v9125_v39 }
0x1541   : > { %9461 = vmax.xlane.f32.xlu1 %v9460_v5  ;;  %v15609_v22 = vpop.f32.mrf.mxu1 }
0x1542   : > { %v9452_v37 = vadd.f32 %v9444_v26, %v17052_v11 }
0x1544   : > { %v9466_v61 = vsel %vm835_vm2, %v9452_v37, -inf }
0x154d   : > { %v18387_v25 = vpop.f32.mrf.mxu0  ;;  %v9281_v31 = vpop.f32.mrf.mxu1 }
0x154e   : > { %v9446_v8 = vmul.f32 0.35355338, %v9281_v31 }
0x154f   : > { %v15574_v49 = vpop.f32.mrf.mxu0  ;;  %v15619_v47 = vpop.f32.mrf.mxu1 }
0x1550   : > { %v9454_v56 = vadd.f32 %v9446_v8, %v17056_v23 }
0x1555   : > { %v18389_v17 = vpop.f32.mrf.mxu0  ;;  %v9437_v18 = vpop.f32.mrf.mxu1 }
0x1556   : > { %v9448_v48 = vmul.f32 0.35355338, %v9437_v18 }
0x1557   : > { %v15584_v55 = vpop.f32.mrf.mxu0  ;;  %v15629_v15 = vpop.f32.mrf.mxu1 }
0x1558   : > { %v9456_v49 = vadd.f32 %v9448_v48, %v17064_v36  ;;  %v9472_v55 = vsel %vm835_vm2, %v9454_v56, -inf }
0x1559   : > { %v8891_v19 = vpop.f32.mrf.mxu0 }
0x155a   : > { %v9441_v30 = vmul.f32 0.35355338, %v8891_v19  ;;  %v9478_v15 = vsel %vm835_vm2, %v9456_v49, -inf }
0x155b   : > { %v15594_v28 = vpop.f32.mrf.mxu0 }
0x155c   : > { %v9449_v16 = vadd.f32 %v9441_v30, %v17029_v50 }
0x155d   : > { %v9047_v21 = vpop.f32.mrf.mxu0 }
0x155e   : > { %v9443_v7 = vmul.f32 0.35355338, %v9047_v21  ;;  %v9457_v1 = vsel %vm835_vm2, %v9449_v16, -inf }
0x155f   : > { %9458 = vmax.xlane.f32.xlu0 %v9457_v1  ;;  %v15604_v59 = vpop.f32.mrf.mxu0 }
0x1560   : > { %v9451_v20 = vadd.f32 %v9443_v7, %v17044_v2 }
0x1561   : > { %v9203_v38 = vpop.f32.mrf.mxu0 }
0x1562   : > { %v9445_v34 = vmul.f32 0.35355338, %v9203_v38  ;;  %v9463_v51 = vsel %vm835_vm2, %v9451_v20, -inf }
0x1563   : > { %9464 = vmax.xlane.f32.xlu0 %v9463_v51  ;;  %v15614_v27 = vpop.f32.mrf.mxu0 }
0x1564   : > { %v9453_v60 = vadd.f32 %v9445_v34, %v17022_v43 }
0x1565   : > { %v9359_v14 = vpop.f32.mrf.mxu0 }
0x1566   : > { %v9447_v39 = vmul.f32 0.35355338, %v9359_v14  ;;  %v9469_v5 = vsel %vm835_vm2, %v9453_v60, -inf }
0x1567   : > { %9467 = vmax.xlane.f32.xlu0 %v9466_v61  ;;  %9470 = vmax.xlane.f32.xlu1 %v9469_v5  ;;  %v15624_v22 = vpop.f32.mrf.mxu0 }
0x1568   : > { %v9455_v31 = vadd.f32 %v9447_v39, %v17025_v46 }
0x156a   : > { %v9475_v47 = vsel %vm835_vm2, %v9455_v31, -inf }
0x156b   : > { %9476 = vmax.xlane.f32.xlu1 %v9475_v47  ;;  %9473 = vmax.xlane.f32.xlu0 %v9472_v55 }
0x156f   : > { %9479 = vmax.xlane.f32.xlu0 %v9478_v15 }
0x157c   : > { %9545 = vrot.lane.b32.xlu1 %v18115_v32, %s16617_s22 }
0x1580   : > { %9697 = vrot.lane.b32.xlu1 %v18121_v35, %s16617_s22 }
0x1584   : > { %9773 = vrot.lane.b32.xlu1 %v18125_v40, %s16617_s22 }
0x1585   : > { %9621 = vrot.lane.b32.xlu0 %v18113_v44, %s16617_s22 }
0x1588   : > { %9925 = vrot.lane.b32.xlu1 %v18153_v52, %s16617_s22 }
0x1589   : > { %9849 = vrot.lane.b32.xlu0 %v18155_v54, %s16617_s22 }
0x15ca   : > { %v9462_v18 = vpop.xlane.xlu1 %9461 }
0x15cb   : > { %v9482_v19 = vsub.f32 %v9450_v63, %v9462_v18 }
0x15cd   : > { %v9491_v30 = vmul.f32 1.442695, %v9482_v19 }
0x15cf   : > { %16260 = vpow2.f32 %v9491_v30 }
0x15dc   : > { %v18417_v28 = vpop.eup %16260 }
0x15dd   : > { %v9508_v26 = vsel %vm835_vm2, %v18417_v28, 0.0 }
0x15de   : > { %9509 = vadd.xlane.f32.xlu0 %v9508_v26 }
0x15e8   : > { %v9459_v21 = vpop.xlane.xlu0 %9458 }
0x15e9   : > { %v9481_v7 = vsub.f32 %v9449_v16, %v9459_v21 }
0x15eb   : > { %v9489_v1 = vmul.f32 1.442695, %v9481_v7 }
0x15ec   : > { %v9465_v59 = vpop.xlane.xlu0 %9464 }
0x15ed   : > { %16262 = vpow2.f32 %v9489_v1  ;;  %v9483_v38 = vsub.f32 %v9451_v20, %v9465_v59 }
0x15ef   : > { %v9493_v8 = vmul.f32 1.442695, %v9483_v38 }
0x15f0   : > { %v9468_v34 = vpop.xlane.xlu0 %9467  ;;  %v9471_v51 = vpop.xlane.xlu1 %9470 }
0x15f1   : > { %16264 = vpow2.f32 %v9493_v8  ;;  %v9484_v27 = vsub.f32 %v9452_v37, %v9468_v34  ;;  %v9485_v63 = vsub.f32 %v9453_v60, %v9471_v51 }
0x15f3   : > { %v9495_v14 = vmul.f32 1.442695, %v9484_v27  ;;  %v9497_v61 = vmul.f32 1.442695, %v9485_v63 }
0x15f4   : > { %v9474_v48 = vpop.xlane.xlu0 %9473  ;;  %v9477_v39 = vpop.xlane.xlu1 %9476 }
0x15f5   : > { %16266 = vpow2.f32 %v9495_v14  ;;  %v9486_v5 = vsub.f32 %v9454_v56, %v9474_v48  ;;  %v9487_v22 = vsub.f32 %v9455_v31, %v9477_v39 }
0x15f6   : > { %16268 = vpow2.f32 %v9497_v61 }
0x15f7   : > { %v9499_v47 = vmul.f32 1.442695, %v9486_v5  ;;  %v9501_v16 = vmul.f32 1.442695, %v9487_v22 }
0x15f8   : > { %v9480_v55 = vpop.xlane.xlu0 %9479  ;;  %v9546_v15 = vpop.permute.xlu1 %9545 }
0x15f9   : > { %16270 = vpow2.f32 %v9499_v47  ;;  %v9488_v20 = vsub.f32 %v9456_v49, %v9480_v55  ;;  %15631 = vmatpush3.msra.mxu0 %v9546_v15 }
0x15fa   : > { %v18421_v18 = vpop.eup %16262  ;;  %16272 = vpow2.f32 %v9501_v16  ;;  %15640 = vmatprep.subr.mxu0 %v19274_v12 }
0x15fb   : > { %v9503_v37 = vmul.f32 1.442695, %v9488_v20  ;;  %v9505_v60 = vsel %vm835_vm2, %v18421_v18, 0.0 }
0x15fc   : > { %9506 = vadd.xlane.f32.xlu1 %v9505_v60  ;;  %v9622_v56 = vpop.permute.xlu0 %9621  ;;  %v9698_v63 = vpop.permute.xlu1 %9697 }
0x15fd   : > { %16274 = vpow2.f32 %v9503_v37  ;;  %15636 = vmatpush3.msra.mxu1 %v9622_v56 }
0x15fe   : > { %v18426_v31 = vpop.eup %16264  ;;  %15645 = vmatprep.subr.mxu1 %v19274_v12 }
0x15ff   : > { %v9511_v49 = vsel %vm835_vm2, %v18426_v31, 0.0 }
0x1600   : > { %9512 = vadd.xlane.f32.xlu1 %v9511_v49  ;;  %v9850_v51 = vpop.permute.xlu0 %9849  ;;  %v9774_v48 = vpop.permute.xlu1 %9773 }
0x1602   : > { %v18431_v19 = vpop.eup %16266 }
0x1603   : > { %v18433_v30 = vpop.eup %16268  ;;  %v9514_v26 = vsel %vm835_vm2, %v18431_v19, 0.0 }
0x1604   : > { %9515 = vadd.xlane.f32.xlu0 %v9514_v26  ;;  %v9517_v21 = vsel %vm835_vm2, %v18433_v30, 0.0  ;;  %v9926_v39 = vpop.permute.xlu1 %9925 }
0x1605   : > { %9518 = vadd.xlane.f32.xlu1 %v9517_v21 }
0x1606   : > { %v18439_v7 = vpop.eup %16270 }
0x1607   : > { %v18441_v1 = vpop.eup %16272  ;;  %v9520_v59 = vsel %vm835_vm2, %v18439_v7, 0.0 }
0x1608   : > { %9521 = vadd.xlane.f32.xlu0 %v9520_v59  ;;  %v9523_v38 = vsel %vm835_vm2, %v18441_v1, 0.0 }
0x1609   : > { %9524 = vadd.xlane.f32.xlu1 %v9523_v38 }
0x160a   : > { %v18447_v8 = vpop.eup %16274 }
0x160b   : > { %v9526_v34 = vsel %vm835_vm2, %v18447_v8, 0.0 }
0x160c   : > { %9527 = vadd.xlane.f32.xlu0 %v9526_v34 }
0x161a   : > { %10077 = vrot.lane.b32.xlu1 %v18159_v10, %s16617_s22 }
0x161e   : > { %10491 = vrot.lane.b32.xlu1 %v18113_v44, %s16618_s7 }
0x1622   : > { %10489 = vrot.lane.b32.xlu1 %v18113_v44, %s19310_s1  ;;  %10001 = vrot.lane.b32.xlu0 %v18163_v33, %s16617_s22  ;;  %s19315_s22 = smov 40  }
0x1626   : > { %10647 = vrot.lane.b32.xlu1 %v18125_v40, %s16618_s7  ;;  %10413 = vrot.lane.b32.xlu0 %v18115_v32, %s16618_s7 }
0x162a   : > { %10645 = vrot.lane.b32.xlu1 %v18125_v40, %s19310_s1  ;;  %10411 = vrot.lane.b32.xlu0 %v18115_v32, %s19310_s1 }
0x162e   : > { %10803 = vrot.lane.b32.xlu1 %v18153_v52, %s16618_s7  ;;  %10569 = vrot.lane.b32.xlu0 %v18121_v35, %s16618_s7 }
0x1632   : > { %10801 = vrot.lane.b32.xlu1 %v18153_v52, %s19310_s1  ;;  %10567 = vrot.lane.b32.xlu0 %v18121_v35, %s19310_s1 }
0x1636   : > { %10959 = vrot.lane.b32.xlu1 %v18159_v10, %s16618_s7  ;;  %10725 = vrot.lane.b32.xlu0 %v18155_v54, %s16618_s7 }
0x163a   : > { %10957 = vrot.lane.b32.xlu1 %v18159_v10, %s19310_s1  ;;  %10723 = vrot.lane.b32.xlu0 %v18155_v54, %s19310_s1 }
0x163e   : > { %10881 = vrot.lane.b32.xlu0 %v18163_v33, %s16618_s7  ;;  %s19319_s7 = sld [smem:[#allocation28_spill]] }
0x1642   : > { %10879 = vrot.lane.b32.xlu0 %v18163_v33, %s19310_s1  ;;  %s19318_s1 = sshll.u32 %s16869_s26, 3 }
0x1644   : > { %s19198_s5 = scalar_lea.hbm %s19319_s7, %s14621_s18 }
0x1667   : > { %v9510_v27 = vpop.xlane.xlu0 %9509 }
0x1668   : > { %16276 = vrcp.f32 %v9510_v27 }
0x1675   : > { %v16277_v14 = vpop.eup %16276 }
0x1676   : > { %v9538_v61 = vmul.f32 %v16277_v14, %v18417_v28 }
0x1678   : > { %15638 = vmatmul.mubr.msk.f32.vlgmr.msra.gmra.mxu1 %vm835_vm2, %v9538_v61 }
0x1679   : > { %15646 = vmatpush3.msra.mxu1 %v9774_v48  ;;  %15647 = vmatprep.mubr.msk.f32.mxu1 %vm16612_vm1, %v19274_v12 }
0x167a   : > { %15655 = vmatprep.subr.mxu1 %v19274_v12 }
0x1685   : > { %v9507_v5 = vpop.xlane.xlu1 %9506 }
0x1686   : > { %16278 = vrcp.f32 %v9507_v5 }
0x1689   : > { %v9513_v22 = vpop.xlane.xlu1 %9512 }
0x168a   : > { %16280 = vrcp.f32 %v9513_v22 }
0x168d   : > { %v9516_v47 = vpop.xlane.xlu0 %9515 }
0x168e   : > { %16282 = vrcp.f32 %v9516_v47  ;;  %v9519_v16 = vpop.xlane.xlu1 %9518 }
0x168f   : > { %16284 = vrcp.f32 %v9519_v16 }
0x1691   : > { %v9522_v55 = vpop.xlane.xlu0 %9521 }
0x1692   : > { %16286 = vrcp.f32 %v9522_v55  ;;  %v9525_v28 = vpop.xlane.xlu1 %9524 }
0x1693   : > { %v16279_v15 = vpop.eup %16278  ;;  %16288 = vrcp.f32 %v9525_v28 }
0x1694   : > { %v9537_v20 = vmul.f32 %v16279_v15, %v18421_v18 }
0x1695   : > { %v9528_v37 = vpop.xlane.xlu0 %9527 }
0x1696   : > { %16290 = vrcp.f32 %v9528_v37  ;;  %v10078_v60 = vpop.permute.xlu1 %10077  ;;  %15633 = vmatmul.mubr.msk.f32.vlgmr.msra.gmra.mxu0 %vm835_vm2, %v9537_v20 }
0x1697   : > { %v16281_v56 = vpop.eup %16280  ;;  %15641 = vmatpush3.msra.mxu0 %v9698_v63  ;;  %15642 = vmatprep.mubr.msk.f32.mxu0 %vm16612_vm1, %v19274_v12 }
0x1698   : > { %v9539_v49 = vmul.f32 %v16281_v56, %v18426_v31  ;;  %15650 = vmatprep.subr.mxu0 %v19274_v12 }
0x1699   : > { %v10002_v34 = vpop.permute.xlu0 %10001 }
0x169a   : > { %15643 = vmatmul.mubr.msk.f32.vlgmr.msra.gmra.mxu0 %vm835_vm2, %v9539_v49  ;;  %v10492_v21 = vpop.permute.xlu1 %10491 }
0x169b   : > { %v16283_v26 = vpop.eup %16282  ;;  %15651 = vmatpush3.msra.mxu0 %v9850_v51  ;;  %15652 = vmatprep.mubr.msk.f32.mxu0 %vm16612_vm1, %v19274_v12 }
0x169c   : > { %v16285_v18 = vpop.eup %16284  ;;  %v9540_v59 = vmul.f32 %v16283_v26, %v18431_v19  ;;  %15660 = vmatprep.subr.mxu0 %v19274_v12 }
0x169d   : > { %v9541_v38 = vmul.f32 %v16285_v18, %v18433_v30  ;;  %v7485_v30 = vld [vmem:[#allocation5 + $0x20] sm:$0xff] }
0x169e   : > { %15648 = vmatmul.mubr.msk.f32.vlgmr.msra.gmra.mxu1 %vm835_vm2, %v9540_v59  ;;  %v10490_v63 = vpop.permute.xlu1 %10489 }
0x169f   : > { %v16287_v31 = vpop.eup %16286  ;;  %15653 = vmatmul.mubr.msk.f32.vlgmr.msra.gmra.mxu0 %vm835_vm2, %v9541_v38  ;;  %15656 = vmatpush3.msra.mxu1 %v9926_v39 }
0x16a0   : > { %v16289_v27 = vpop.eup %16288  ;;  %v9542_v51 = vmul.f32 %v16287_v31, %v18439_v7  ;;  %15661 = vmatpush3.msra.mxu0 %v10002_v34  ;;  %15657 = vmatprep.mubr.msk.f32.mxu1 %vm16612_vm1, %v19274_v12 }
0x16a1   : > { %v9543_v19 = vmul.f32 %v16289_v27, %v18441_v1  ;;  %15662 = vmatprep.mubr.msk.f32.mxu0 %vm16612_vm1, %v19274_v12  ;;  %15665 = vmatprep.subr.mxu1 %v19274_v12 }
0x16a2   : > { %15658 = vmatmul.mubr.msk.f32.vlgmr.msra.gmra.mxu1 %vm835_vm2, %v9542_v51  ;;  %v10648_v1 = vpop.permute.xlu1 %10647 }
0x16a3   : > { %v16291_v14 = vpop.eup %16290  ;;  %15663 = vmatmul.mubr.msk.f32.vlgmr.msra.gmra.mxu0 %vm835_vm2, %v9543_v19  ;;  %15666 = vmatpush3.msra.mxu1 %v10078_v60 }
0x16a4   : > { %v9544_v7 = vmul.f32 %v16291_v14, %v18447_v8  ;;  %15667 = vmatprep.mubr.msk.f32.mxu1 %vm16612_vm1, %v19274_v12  ;;  %15684 = vmatprep.subr.mxu1 %v7485_v30 }
0x16a6   : > { %15668 = vmatmul.mubr.msk.f32.vlgmr.msra.gmra.mxu1 %vm835_vm2, %v9544_v7  ;;  %v10646_v8 = vpop.permute.xlu1 %10645 }
0x16a7   : > { %15686 = vmatprep.mubr.msk.f32.mxu1 %vm835_vm2, %v18373_v0  ;;  %15685 = vmatpush3.msra.mxu1 %v7485_v30 }
0x16a8   : > { %15703 = vmatprep.subr.mxu1 %v19274_v12 }
0x16aa   : > { %15687 = vmatmul.mubr.msk.f32.vlgmr.msra.gmra.mxu1 %vm835_vm2, %v18375_v45  ;;  %v10804_v0 = vpop.permute.xlu1 %10803 }
0x16ab   : > { %15704 = vmatpush3.xpose.msk.msra.mxu1 %vm835_vm2, %v10492_v21  ;;  %15689 = vmatprep.mubr.msk.f32.mxu1 %vm835_vm2, %v18379_v9 }
0x16ac   : > { %15713 = vmatprep.subr.mxu1 %v19274_v12 }
0x16ae   : > { %15690 = vmatmul.mubr.msk.f32.gmra.mxu1 %vm835_vm2, %v18377_v53  ;;  %v10802_v45 = vpop.permute.xlu1 %10801  ;;  %v7486_v53 = vld [vmem:[#allocation5 + $0x28] sm:$0xff] }
0x16af   : > { %15692 = vmatprep.mubr.msk.f32.mxu1 %vm835_vm2, %v18387_v25  ;;  %15670 = vmatprep.subr.mxu0 %v7486_v53 }
0x16b0   : > { %15671 = vmatpush3.msra.mxu0 %v7486_v53 }
0x16b1   : > { %15698 = vmatprep.subr.mxu0 %v19274_v12 }
0x16b2   : > { %15693 = vmatmul.mubr.msk.f32.gmra.mxu1 %vm835_vm2, %v18381_v3  ;;  %v10960_v9 = vpop.permute.xlu1 %10959 }
0x16b3   : > { %15695 = vmatprep.mubr.msk.f32.mxu1 %vm835_vm2, %v18389_v17  ;;  %v10414_v17 = vpop.permute.xlu0 %10413 }
0x16b6   : > { %15696 = vmatmul.mubr.msk.f32.gmra.mxu1 %vm835_vm2, %v18383_v41  ;;  %v10958_v3 = vpop.permute.xlu1 %10957 }
0x16b7   : > { %15705 = vmatprep.mubr.msk.f32.mxu1 %vm16612_vm1, %v19274_v12  ;;  %v10412_v61 = vpop.permute.xlu0 %10411 }
0x16ba   : > { %15706 = vmatmul.mubr.msk.f32.vlgmr.msra.gmra.mxu1 %vm835_vm2, %v10490_v63 }
0x16bb   : > { %15714 = vmatpush3.xpose.msk.msra.mxu1 %vm835_vm2, %v10648_v1  ;;  %15715 = vmatprep.mubr.msk.f32.mxu1 %vm16612_vm1, %v19274_v12  ;;  %v10570_v39 = vpop.permute.xlu0 %10569 }
0x16bc   : > { %15723 = vmatprep.subr.mxu1 %v19274_v12 }
0x16be   : > { %15716 = vmatmul.mubr.msk.f32.vlgmr.msra.gmra.mxu1 %vm835_vm2, %v10646_v8 }
0x16bf   : > { %15724 = vmatpush3.xpose.msk.msra.mxu1 %vm835_vm2, %v10804_v0  ;;  %15725 = vmatprep.mubr.msk.f32.mxu1 %vm16612_vm1, %v19274_v12  ;;  %v10568_v16 = vpop.permute.xlu0 %10567 }
0x16c0   : > { %15733 = vmatprep.subr.mxu1 %v19274_v12 }
0x16c2   : > { %15726 = vmatmul.mubr.msk.f32.vlgmr.msra.gmra.mxu1 %vm835_vm2, %v10802_v45 }
0x16c3   : > { %15734 = vmatpush3.xpose.msk.msra.mxu1 %vm835_vm2, %v10960_v9  ;;  %15735 = vmatprep.mubr.msk.f32.mxu1 %vm16612_vm1, %v19274_v12  ;;  %v10726_v56 = vpop.permute.xlu0 %10725 }
0x16c4   : > { %15743 = vmatprep.subr.mxu1 %v19274_v12 }
0x16c6   : > { %15736 = vmatmul.mubr.msk.f32.vlgmr.msra.gmra.mxu1 %vm835_vm2, %v10958_v3 }
0x16c7   : > { %15745 = vmatprep.mubr.msk.f32.mxu1 %vm16612_vm1, %v19274_v12  ;;  %v10724_v59 = vpop.permute.xlu0 %10723 }
0x16cb   : > { %v10882_v27 = vpop.permute.xlu0 %10881 }
0x16cf   : > { %v10880_v30 = vpop.permute.xlu0 %10879 }
0x1738   : > { %v9693_v41 = vpop.f32.mrf.mxu1 }
0x173a   : > { %v15639_v25 = vpop.f32.mrf.mxu1 }
0x1756   : > { %v9617_v48 = vpop.f32.mrf.mxu0 }
0x1757   : > { %15672 = vmatprep.mubr.msk.f32.mxu0 %vm835_vm2, %v9617_v48 }
0x1758   : > { %v15634_v5 = vpop.f32.mrf.mxu0  ;;  %15673 = vmatmul.mubr.msk.f32.vlgmr.msra.gmra.mxu0 %vm835_vm2, %v9693_v41 }
0x1759   : > { %15699 = vmatpush3.xpose.msk.msra.mxu0 %vm835_vm2, %v10414_v17 }
0x175a   : > { %v9769_v22 = vpop.f32.mrf.mxu0  ;;  %15708 = vmatprep.subr.mxu0 %v19274_v12 }
0x175b   : > { %15675 = vmatprep.mubr.msk.f32.mxu0 %vm835_vm2, %v9769_v22 }
0x175c   : > { %v15644_v47 = vpop.f32.mrf.mxu0 }
0x175e   : > { %v9845_v55 = vpop.f32.mrf.mxu1 }
0x175f   : > { %v9921_v28 = vpop.f32.mrf.mxu0  ;;  %15676 = vmatmul.mubr.msk.f32.gmra.mxu0 %vm835_vm2, %v9845_v55 }
0x1760   : > { %v15649_v15 = vpop.f32.mrf.mxu1  ;;  %15678 = vmatprep.mubr.msk.f32.mxu0 %vm835_vm2, %v9921_v28 }
0x1761   : > { %v15654_v20 = vpop.f32.mrf.mxu0 }
0x1762   : > { %v9997_v37 = vpop.f32.mrf.mxu1 }
0x1763   : > { %v10073_v60 = vpop.f32.mrf.mxu0  ;;  %15679 = vmatmul.mubr.msk.f32.gmra.mxu0 %vm835_vm2, %v9997_v37 }
0x1764   : > { %v15659_v49 = vpop.f32.mrf.mxu1  ;;  %15681 = vmatprep.mubr.msk.f32.mxu0 %vm835_vm2, %v10073_v60 }
0x1765   : > { %v15664_v26 = vpop.f32.mrf.mxu0 }
0x1766   : > { %v10149_v21 = vpop.f32.mrf.mxu1 }
0x1767   : > { %15682 = vmatmul.mubr.msk.f32.gmra.mxu0 %vm835_vm2, %v10149_v21 }
0x1768   : > { %v15669_v18 = vpop.f32.mrf.mxu1  ;;  %15700 = vmatprep.mubr.msk.f32.mxu0 %vm16612_vm1, %v19274_v12 }
0x176a   : > { %v18571_v38 = vpop.f32.mrf.mxu1 }
0x176b   : > { %15701 = vmatmul.mubr.msk.f32.vlgmr.msra.gmra.mxu0 %vm835_vm2, %v10412_v61 }
0x176c   : > { %15709 = vmatpush3.xpose.msk.msra.mxu0 %vm835_vm2, %v10570_v39  ;;  %v18575_v31 = vpop.f32.mrf.mxu1  ;;  %15710 = vmatprep.mubr.msk.f32.mxu0 %vm16612_vm1, %v19274_v12 }
0x176d   : > { %15718 = vmatprep.subr.mxu0 %v19274_v12 }
0x176e   : > { %v18580_v34 = vpop.f32.mrf.mxu1 }
0x176f   : > { %15711 = vmatmul.mubr.msk.f32.vlgmr.msra.gmra.mxu0 %vm835_vm2, %v10568_v16 }
0x1770   : > { %15719 = vmatpush3.xpose.msk.msra.mxu0 %vm835_vm2, %v10726_v56  ;;  %v18584_v51 = vpop.f32.mrf.mxu1  ;;  %15720 = vmatprep.mubr.msk.f32.mxu0 %vm16612_vm1, %v19274_v12 }
0x1771   : > { %15728 = vmatprep.subr.mxu0 %v19274_v12 }
0x1772   : > { %v18589_v19 = vpop.f32.mrf.mxu1 }
0x1773   : > { %15721 = vmatmul.mubr.msk.f32.vlgmr.msra.gmra.mxu0 %vm835_vm2, %v10724_v59 }
0x1774   : > { %15729 = vmatpush3.xpose.msk.msra.mxu0 %vm835_vm2, %v10882_v27  ;;  %v18593_v63 = vpop.f32.mrf.mxu1  ;;  %15730 = vmatprep.mubr.msk.f32.mxu0 %vm16612_vm1, %v19274_v12 }
0x1775   : > { %15738 = vmatprep.subr.mxu0 %v19274_v12 }
0x1776   : > { %v18598_v14 = vpop.f32.mrf.mxu1 }
0x1777   : > { %15731 = vmatmul.mubr.msk.f32.vlgmr.msra.gmra.mxu0 %vm835_vm2, %v10880_v30 }
0x1778   : > { %v18601_v7 = vpop.f32.mrf.mxu1  ;;  %15740 = vmatprep.mubr.msk.f32.mxu0 %vm16612_vm1, %v19274_v12 }
0x177a   : > { %v10563_v1 = vpop.f32.mrf.mxu1 }
0x177b   : > { %v11036_v8 = vmul.f32 0.35355338, %v10563_v1 }
0x177c   : > { %v15707_v0 = vpop.f32.mrf.mxu1 }
0x177d   : > { %v11044_v45 = vadd.f32 %v11036_v8, %v17035_v57 }
0x177e   : > { %v10719_v53 = vpop.f32.mrf.mxu1 }
0x177f   : > { %v11054_v9 = vsel %vm835_vm2, %v11044_v45, -inf  ;;  %v11038_v26 = vmul.f32 0.35355338, %v10719_v53 }
0x1780   : > { %11055 = vmax.xlane.f32.xlu1 %v11054_v9  ;;  %v15717_v3 = vpop.f32.mrf.mxu1 }
0x1781   : > { %v11046_v8 = vadd.f32 %v11038_v26, %v17052_v11 }
0x1782   : > { %v10875_v41 = vpop.f32.mrf.mxu1 }
0x1783   : > { %v11040_v9 = vmul.f32 0.35355338, %v10875_v41 }
0x1784   : > { %v15727_v25 = vpop.f32.mrf.mxu1 }
0x1786   : > { %v11031_v17 = vpop.f32.mrf.mxu1 }
0x1788   : > { %v15737_v61 = vpop.f32.mrf.mxu1 }
0x1809   : > { %v11056_v28 = vpop.xlane.xlu1 %11055 }
0x180a   : > { %v11076_v37 = vsub.f32 %v11044_v45, %v11056_v28  ;;  %v11060_v28 = vsel %vm835_vm2, %v11046_v8, -inf }
0x180c   : > { %v11085_v18 = vmul.f32 1.442695, %v11076_v37  ;;  %v11042_v37 = vmul.f32 0.35355338, %v11031_v17 }
0x180e   : > { %16292 = vpow2.f32 %v11085_v18 }
0x1818   : > { %v18607_v48 = vpop.f32.mrf.mxu0 }
0x181a   : > { %v18609_v39 = vpop.f32.mrf.mxu0 }
0x181f   : > { %v18611_v5 = vpop.f32.mrf.mxu0 }
0x1821   : > { %v18613_v22 = vpop.f32.mrf.mxu0 }
0x1823   : > { %v18615_v47 = vpop.f32.mrf.mxu0 }
0x1825   : > { %v18617_v16 = vpop.f32.mrf.mxu0 }
0x1827   : > { %v18619_v55 = vpop.f32.mrf.mxu0 }
0x1829   : > { %v18621_v15 = vpop.f32.mrf.mxu0 }
0x182b   : > { %v10485_v20 = vpop.f32.mrf.mxu0 }
0x182c   : > { %v11035_v60 = vmul.f32 0.35355338, %v10485_v20  ;;  %v11048_v20 = vadd.f32 %v11040_v9, %v17056_v23 }
0x182d   : > { %v15702_v56 = vpop.f32.mrf.mxu0 }
0x182e   : > { %v11043_v49 = vadd.f32 %v11035_v60, %v17029_v50 }
0x182f   : > { %v10641_v21 = vpop.f32.mrf.mxu0 }
0x1830   : > { %v11037_v59 = vmul.f32 0.35355338, %v10641_v21  ;;  %v11051_v27 = vsel %vm835_vm2, %v11043_v49, -inf  ;;  %v11050_v21 = vadd.f32 %v11042_v37, %v17064_v36 }
0x1831   : > { %11052 = vmax.xlane.f32.xlu0 %v11051_v27  ;;  %v15712_v30 = vpop.f32.mrf.mxu0 }
0x1832   : > { %v11045_v1 = vadd.f32 %v11037_v59, %v17044_v2  ;;  %v11066_v59 = vsel %vm835_vm2, %v11048_v20, -inf  ;;  %v11072_v27 = vsel %vm835_vm2, %v11050_v21, -inf  ;;  %v18637_v30 = vpop.eup %16292 }
0x1833   : > { %v10797_v0 = vpop.f32.mrf.mxu0  ;;  %v11102_v17 = vsel %vm835_vm2, %v18637_v30, 0.0 }
0x1834   : > { %v11039_v45 = vmul.f32 0.35355338, %v10797_v0  ;;  %v11057_v3 = vsel %vm835_vm2, %v11045_v1, -inf }
0x1835   : > { %11058 = vmax.xlane.f32.xlu0 %v11057_v3  ;;  %v15722_v25 = vpop.f32.mrf.mxu0 }
0x1836   : > { %v11047_v53 = vadd.f32 %v11039_v45, %v17022_v43 }
0x1837   : > { %v10953_v61 = vpop.f32.mrf.mxu0 }
0x1838   : > { %v11041_v60 = vmul.f32 0.35355338, %v10953_v61  ;;  %v11063_v56 = vsel %vm835_vm2, %v11047_v53, -inf }
0x1839   : > { %v15732_v26 = vpop.f32.mrf.mxu0  ;;  %11064 = vmax.xlane.f32.xlu1 %v11063_v56  ;;  %11061 = vmax.xlane.f32.xlu0 %v11060_v28 }
0x183a   : > { %v11049_v41 = vadd.f32 %v11041_v60, %v17025_v46 }
0x183c   : > { %v11069_v18 = vsel %vm835_vm2, %v11049_v41, -inf }
0x183d   : > { %11070 = vmax.xlane.f32.xlu1 %v11069_v18  ;;  %11067 = vmax.xlane.f32.xlu0 %v11066_v59 }
0x1841   : > { %11073 = vmax.xlane.f32.xlu0 %v11072_v27 }
0x1845   : > { %11103 = vadd.xlane.f32.xlu0 %v11102_v17 }
0x184e   : > { %11139 = vrot.lane.b32.xlu1 %v18115_v32, %s19311_s6 }
0x1852   : > { %11291 = vrot.lane.b32.xlu1 %v18121_v35, %s19311_s6 }
0x1856   : > { %11367 = vrot.lane.b32.xlu1 %v18125_v40, %s19311_s6 }
0x185a   : > { %11519 = vrot.lane.b32.xlu1 %v18153_v52, %s19311_s6 }
0x18ba   : > { %v11053_v0 = vpop.xlane.xlu0 %11052 }
0x18bb   : > { %v11075_v9 = vsub.f32 %v11043_v49, %v11053_v0 }
0x18bd   : > { %v11083_v45 = vmul.f32 1.442695, %v11075_v9 }
0x18be   : > { %v11059_v3 = vpop.xlane.xlu0 %11058 }
0x18bf   : > { %16294 = vpow2.f32 %v11083_v45  ;;  %v11077_v25 = vsub.f32 %v11045_v1, %v11059_v3 }
0x18c1   : > { %v11087_v61 = vmul.f32 1.442695, %v11077_v25 }
0x18c2   : > { %v11062_v28 = vpop.xlane.xlu0 %11061  ;;  %v11065_v37 = vpop.xlane.xlu1 %11064 }
0x18c3   : > { %16296 = vpow2.f32 %v11087_v61  ;;  %v11078_v60 = vsub.f32 %v11046_v8, %v11062_v28  ;;  %v11079_v56 = vsub.f32 %v11047_v53, %v11065_v37  ;;  %v19312_v8 = vmov 0.0  }
0x18c5   : > { %v11089_v26 = vmul.f32 1.442695, %v11078_v60  ;;  %v11091_v18 = vmul.f32 1.442695, %v11079_v56 }
0x18c6   : > { %v11068_v59 = vpop.xlane.xlu0 %11067  ;;  %v11071_v27 = vpop.xlane.xlu1 %11070 }
0x18c7   : > { %16298 = vpow2.f32 %v11089_v26  ;;  %v11080_v17 = vsub.f32 %v11048_v20, %v11068_v59  ;;  %v11081_v12 = vsub.f32 %v11049_v41, %v11071_v27 }
0x18c8   : > { %16300 = vpow2.f32 %v11091_v18 }
0x18c9   : > { %v11093_v42 = vmul.f32 1.442695, %v11080_v17  ;;  %v11095_v49 = vmul.f32 1.442695, %v11081_v12 }
0x18ca   : > { %v11074_v0 = vpop.xlane.xlu0 %11073  ;;  %v11140_v9 = vpop.permute.xlu1 %11139 }
0x18cb   : > { %16302 = vpow2.f32 %v11093_v42  ;;  %v11082_v1 = vsub.f32 %v11050_v21, %v11074_v0  ;;  %15739 = vmatpush3.msra.mxu0 %v11140_v9 }
0x18cc   : > { %v18649_v45 = vpop.eup %16294  ;;  %16304 = vpow2.f32 %v11095_v49  ;;  %15748 = vmatprep.subr.mxu0 %v19312_v8 }
0x18cd   : > { %v11097_v53 = vmul.f32 1.442695, %v11082_v1  ;;  %v11099_v3 = vsel %vm835_vm2, %v18649_v45, 0.0 }
0x18ce   : > { %11100 = vadd.xlane.f32.xlu1 %v11099_v3  ;;  %v11292_v18 = vpop.permute.xlu1 %11291  ;;  %v11104_v49 = vpop.xlane.xlu0 %11103 }
0x18cf   : > { %16306 = vpow2.f32 %v11097_v53 }
0x18d0   : > { %v18654_v20 = vpop.eup %16296 }
0x18d1   : > { %v11105_v12 = vsel %vm835_vm2, %v18654_v20, 0.0 }
0x18d2   : > { %11106 = vadd.xlane.f32.xlu1 %v11105_v12  ;;  %v11368_v59 = vpop.permute.xlu1 %11367 }
0x18d4   : > { %v18658_v42 = vpop.eup %16298 }
0x18d5   : > { %v18660_v41 = vpop.eup %16300  ;;  %v11108_v21 = vsel %vm835_vm2, %v18658_v42, 0.0 }
0x18d6   : > { %11109 = vadd.xlane.f32.xlu0 %v11108_v21  ;;  %v11111_v25 = vsel %vm835_vm2, %v18660_v41, 0.0  ;;  %v11520_v27 = vpop.permute.xlu1 %11519 }
0x18d7   : > { %11112 = vadd.xlane.f32.xlu1 %v11111_v25 }
0x18d8   : > { %v18666_v61 = vpop.eup %16302 }
0x18d9   : > { %v18668_v28 = vpop.eup %16304  ;;  %v11114_v37 = vsel %vm835_vm2, %v18666_v61, 0.0 }
0x18da   : > { %11115 = vadd.xlane.f32.xlu0 %v11114_v37  ;;  %v11117_v60 = vsel %vm835_vm2, %v18668_v28, 0.0 }
0x18db   : > { %11118 = vadd.xlane.f32.xlu1 %v11117_v60 }
0x18dc   : > { %v18674_v56 = vpop.eup %16306 }
0x18dd   : > { %v11120_v26 = vsel %vm835_vm2, %v18674_v56, 0.0 }
0x18de   : > { %11121 = vadd.xlane.f32.xlu0 %v11120_v26 }
0x18ec   : > { %11671 = vrot.lane.b32.xlu1 %v18159_v10, %s19311_s6 }
0x18f0   : > { %11884 = vrot.lane.b32.xlu1 %v18115_v32, %s19313_s19 }
0x18f4   : > { %11962 = vrot.lane.b32.xlu1 %v18113_v44, %s19313_s19  ;;  %11215 = vrot.lane.b32.xlu0 %v18113_v44, %s19311_s6 }
0x18f8   : > { %12040 = vrot.lane.b32.xlu1 %v18121_v35, %s19313_s19  ;;  %11443 = vrot.lane.b32.xlu0 %v18155_v54, %s19311_s6 }
0x18fc   : > { %12118 = vrot.lane.b32.xlu1 %v18125_v40, %s19313_s19  ;;  %11595 = vrot.lane.b32.xlu0 %v18163_v33, %s19311_s6  ;;  %s651_s6 = scalar_lea.vmem [#allocation11], %s19318_s1 }
0x1900   : > { %12276 = vrot.lane.b32.xlu1 %v18153_v52, %s19314_s29  ;;  %11886 = vrot.lane.b32.xlu0 %v18115_v32, %s19314_s29 }
0x1904   : > { %12274 = vrot.lane.b32.xlu1 %v18153_v52, %s19313_s19  ;;  %11964 = vrot.lane.b32.xlu0 %v18113_v44, %s19314_s29 }
0x1908   : > { %12432 = vrot.lane.b32.xlu1 %v18159_v10, %s19314_s29  ;;  %12042 = vrot.lane.b32.xlu0 %v18121_v35, %s19314_s29 }
0x190c   : > { %12430 = vrot.lane.b32.xlu1 %v18159_v10, %s19313_s19  ;;  %12120 = vrot.lane.b32.xlu0 %v18125_v40, %s19314_s29 }
0x1910   : > { %12198 = vrot.lane.b32.xlu0 %v18155_v54, %s19314_s29 }
0x1914   : > { %12196 = vrot.lane.b32.xlu0 %v18155_v54, %s19313_s19 }
0x1918   : > { %12354 = vrot.lane.b32.xlu0 %v18163_v33, %s19314_s29 }
0x191c   : > { %12352 = vrot.lane.b32.xlu0 %v18163_v33, %s19313_s19  ;;  %s14131_s19 = sshll.u32 %s651_s6, 4  ;;  %s14132_s19 = int_to_ptr.vmem [resolvable:$true] %s14131_s19 }
0x191d   : > { %s16528_s21 = scalar_lea.vmem %s14132_s19, 128  ;;  %p16535_p5 = scmp.lt.s32.totalorder %s14132_s19, %s16533_s20 }
0x191e   : > { %p16529_p7 = scmp.ne.s32.totalorder %s14132_s19, %s16528_s21  ;;  %p16536_p9 = scmp.lt.s32.totalorder %s16534_s17, %s16528_s21 }
0x1920   : > { %p16530_p0 = pnand %p16529_p7, %p19320_p10  ;;  %p16537_p11 = por %p16536_p9, %p16535_p5 }
0x1922   : > { %p16531_p12 = pneg %p16530_p0 }
0x1924   : > { %p16538_p13 = pnand %p16537_p11, %p16531_p12 }
0x1957   : > { %v11101_v17 = vpop.xlane.xlu1 %11100 }
0x1958   : > { %16308 = vrcp.f32 %v11101_v17 }
0x1959   : > { %16310 = vrcp.f32 %v11104_v49 }
0x195b   : > { %v11107_v0 = vpop.xlane.xlu1 %11106 }
0x195c   : > { %16312 = vrcp.f32 %v11107_v0 }
0x195f   : > { %v11110_v9 = vpop.xlane.xlu0 %11109 }
0x1960   : > { %16314 = vrcp.f32 %v11110_v9  ;;  %v11113_v1 = vpop.xlane.xlu1 %11112 }
0x1961   : > { %16316 = vrcp.f32 %v11113_v1 }
0x1963   : > { %v11116_v53 = vpop.xlane.xlu0 %11115 }
0x1964   : > { %16318 = vrcp.f32 %v11116_v53  ;;  %v11119_v3 = vpop.xlane.xlu1 %11118 }
0x1965   : > { %v16309_v12 = vpop.eup %16308  ;;  %16320 = vrcp.f32 %v11119_v3 }
0x1966   : > { %v11131_v21 = vmul.f32 %v16309_v12, %v18649_v45  ;;  %v16311_v37 = vpop.eup %16310 }
0x1967   : > { %v11122_v25 = vpop.xlane.xlu0 %11121  ;;  %v11132_v49 = vmul.f32 %v16311_v37, %v18637_v30 }
0x1968   : > { %16322 = vrcp.f32 %v11122_v25  ;;  %v11672_v60 = vpop.permute.xlu1 %11671  ;;  %15741 = vmatmul.mubr.msk.f32.vlgmr.msra.gmra.mxu0 %vm835_vm2, %v11131_v21 }
0x1969   : > { %v16313_v26 = vpop.eup %16312  ;;  %15749 = vmatpush3.msra.mxu0 %v11292_v18  ;;  %15750 = vmatprep.mubr.msk.f32.mxu0 %vm16612_vm1, %v19312_v8 }
0x196a   : > { %v11133_v17 = vmul.f32 %v16313_v26, %v18654_v20  ;;  %15758 = vmatprep.subr.mxu0 %v19312_v8 }
0x196b   : > { %v11216_v0 = vpop.permute.xlu0 %11215 }
0x196c   : > { %v11885_v9 = vpop.permute.xlu1 %11884  ;;  %15744 = vmatpush3.msra.mxu1 %v11216_v0  ;;  %15751 = vmatmul.mubr.msk.f32.vlgmr.msra.gmra.mxu0 %vm835_vm2, %v11133_v17 }
0x196d   : > { %v16315_v45 = vpop.eup %16314  ;;  %15746 = vmatmul.mubr.msk.f32.vlgmr.msra.gmra.mxu1 %vm835_vm2, %v11132_v49  ;;  %15753 = vmatprep.subr.mxu1 %v19312_v8 }
0x196e   : > { %v16317_v18 = vpop.eup %16316  ;;  %v11134_v1 = vmul.f32 %v16315_v45, %v18658_v42  ;;  %15754 = vmatpush3.msra.mxu1 %v11368_v59  ;;  %15755 = vmatprep.mubr.msk.f32.mxu1 %vm16612_vm1, %v19312_v8 }
0x196f   : > { %v11135_v20 = vmul.f32 %v16317_v18, %v18660_v41  ;;  %v11444_v30 = vpop.permute.xlu0 %11443  ;;  %15760 = vmatprep.mubr.msk.f32.mxu0 %vm16612_vm1, %v19312_v8  ;;  %15763 = vmatprep.subr.mxu1 %v19312_v8 }
0x1970   : > { %v11963_v53 = vpop.permute.xlu1 %11962  ;;  %15759 = vmatpush3.msra.mxu0 %v11444_v30 }
0x1971   : > { %v16319_v3 = vpop.eup %16318  ;;  %15756 = vmatmul.mubr.msk.f32.vlgmr.msra.gmra.mxu1 %vm835_vm2, %v11134_v1  ;;  %15761 = vmatmul.mubr.msk.f32.vlgmr.msra.gmra.mxu0 %vm835_vm2, %v11135_v20 }
0x1972   : > { %v16321_v42 = vpop.eup %16320  ;;  %v11136_v59 = vmul.f32 %v16319_v3, %v18666_v61  ;;  %15764 = vmatpush3.msra.mxu1 %v11520_v27  ;;  %15768 = vmatprep.subr.mxu0 %v19312_v8 }
0x1973   : > { %v11137_v41 = vmul.f32 %v16321_v42, %v18668_v28  ;;  %v11596_v12 = vpop.permute.xlu0 %11595  ;;  %15765 = vmatprep.mubr.msk.f32.mxu1 %vm16612_vm1, %v19312_v8  ;;  %15770 = vmatprep.mubr.msk.f32.mxu0 %vm16612_vm1, %v19312_v8 }
0x1974   : > { %v12041_v21 = vpop.permute.xlu1 %12040  ;;  %15769 = vmatpush3.msra.mxu0 %v11596_v12  ;;  %15773 = vmatprep.subr.mxu1 %v19312_v8 }
0x1975   : > { %v16323_v25 = vpop.eup %16322  ;;  %15766 = vmatmul.mubr.msk.f32.vlgmr.msra.gmra.mxu1 %vm835_vm2, %v11136_v59  ;;  %15771 = vmatmul.mubr.msk.f32.vlgmr.msra.gmra.mxu0 %vm835_vm2, %v11137_v41 }
0x1976   : > { %v11138_v61 = vmul.f32 %v16323_v25, %v18674_v56  ;;  %15774 = vmatpush3.msra.mxu1 %v11672_v60  ;;  %15775 = vmatprep.mubr.msk.f32.mxu1 %vm16612_vm1, %v19312_v8 }
0x1977   : > { %v11887_v28 = vpop.permute.xlu0 %11886  ;;  %15792 = vmatprep.subr.mxu1 %v19312_v8 }
0x1978   : > { %v12119_v27 = vpop.permute.xlu1 %12118 }
0x1979   : > { %15776 = vmatmul.mubr.msk.f32.vlgmr.msra.gmra.mxu1 %vm835_vm2, %v11138_v61 }
0x197a   : > { %15793 = vmatpush3.xpose.msk.msra.mxu1 %vm835_vm2, %v11887_v28  ;;  %15794 = vmatprep.mubr.msk.f32.mxu1 %vm16612_vm1, %v19312_v8 }
0x197b   : > { %v11965_v37 = vpop.permute.xlu0 %11964  ;;  %15797 = vmatprep.subr.mxu1 %v19312_v8 }
0x197c   : > { %v12277_v56 = vpop.permute.xlu1 %12276 }
0x197d   : > { %15795 = vmatmul.mubr.msk.f32.vlgmr.msra.gmra.mxu1 %vm835_vm2, %v11885_v9  ;;  %v7487_v9 = vld [vmem:[#allocation5 + $0x30] sm:$0xff] }
0x197e   : > { %15798 = vmatpush3.xpose.msk.msra.mxu1 %vm835_vm2, %v11965_v37  ;;  %15799 = vmatprep.mubr.msk.f32.mxu1 %vm16612_vm1, %v19312_v8 }
0x197f   : > { %v12043_v60 = vpop.permute.xlu0 %12042  ;;  %15802 = vmatprep.subr.mxu1 %v19312_v8  ;;  %15778 = vmatprep.subr.mxu0 %v7487_v9 }
0x1980   : > { %v12275_v17 = vpop.permute.xlu1 %12274  ;;  %15779 = vmatpush3.msra.mxu0 %v7487_v9 }
0x1981   : > { %15800 = vmatmul.mubr.msk.f32.vlgmr.msra.gmra.mxu1 %vm835_vm2, %v11963_v53  ;;  %15812 = vmatprep.subr.mxu0 %v19312_v8 }
0x1982   : > { %15803 = vmatpush3.xpose.msk.msra.mxu1 %vm835_vm2, %v12043_v60  ;;  %15804 = vmatprep.mubr.msk.f32.mxu1 %vm16612_vm1, %v19312_v8 }
0x1983   : > { %v12121_v26 = vpop.permute.xlu0 %12120  ;;  %15807 = vmatprep.subr.mxu1 %v19312_v8 }
0x1984   : > { %v12433_v49 = vpop.permute.xlu1 %12432 }
0x1985   : > { %15805 = vmatmul.mubr.msk.f32.vlgmr.msra.gmra.mxu1 %vm835_vm2, %v12041_v21 }
0x1986   : > { %15808 = vmatpush3.xpose.msk.msra.mxu1 %vm835_vm2, %v12121_v26  ;;  %15809 = vmatprep.mubr.msk.f32.mxu1 %vm16612_vm1, %v19312_v8 }
0x1987   : > { %15817 = vmatprep.subr.mxu1 %v19312_v8  ;;  %v12199_v30 = vpop.permute.xlu0 %12198 }
0x1988   : > { %v12431_v0 = vpop.permute.xlu1 %12430 }
0x1989   : > { %15810 = vmatmul.mubr.msk.f32.vlgmr.msra.gmra.mxu1 %vm835_vm2, %v12119_v27 }
0x198a   : > { %15818 = vmatpush3.xpose.msk.msra.mxu1 %vm835_vm2, %v12277_v56  ;;  %15819 = vmatprep.mubr.msk.f32.mxu1 %vm16612_vm1, %v19312_v8 }
0x198b   : > { %15827 = vmatprep.subr.mxu1 %v19312_v8  ;;  %v12197_v21 = vpop.permute.xlu0 %12196 }
0x198d   : > { %15820 = vmatmul.mubr.msk.f32.vlgmr.msra.gmra.mxu1 %vm835_vm2, %v12275_v17 }
0x198e   : > { %15828 = vmatpush3.xpose.msk.msra.mxu1 %vm835_vm2, %v12433_v49  ;;  %15829 = vmatprep.mubr.msk.f32.mxu1 %vm16612_vm1, %v19312_v8 }
0x198f   : > { %15837 = vmatprep.subr.mxu1 %v19312_v8  ;;  %v12355_v56 = vpop.permute.xlu0 %12354 }
0x1991   : > { %15830 = vmatmul.mubr.msk.f32.vlgmr.msra.gmra.mxu1 %vm835_vm2, %v12431_v0 }
0x1992   : > { %15839 = vmatprep.mubr.msk.f32.mxu1 %vm16612_vm1, %v19312_v8 }
0x1993   : > { %v12353_v9 = vpop.permute.xlu0 %12352 }
0x1a28   : > { %v11211_v45 = vpop.f32.mrf.mxu0 }
0x1a29   : > { %15780 = vmatprep.mubr.msk.f32.mxu0 %vm835_vm2, %v11211_v45 }
0x1a2a   : > { %v15742_v18 = vpop.f32.mrf.mxu0 }
0x1a2c   : > { %v11363_v1 = vpop.f32.mrf.mxu0 }
0x1a2d   : > { %v11287_v20 = vpop.f32.mrf.mxu1 }
0x1a2e   : > { %v15752_v53 = vpop.f32.mrf.mxu0  ;;  %15781 = vmatmul.mubr.msk.f32.vlgmr.msra.gmra.mxu0 %vm835_vm2, %v11287_v20 }
0x1a2f   : > { %15813 = vmatpush3.xpose.msk.msra.mxu0 %vm835_vm2, %v12199_v30  ;;  %v15747_v3 = vpop.f32.mrf.mxu1  ;;  %15783 = vmatprep.mubr.msk.f32.mxu0 %vm835_vm2, %v11363_v1 }
0x1a30   : > { %15822 = vmatprep.subr.mxu0 %v19312_v8 }
0x1a31   : > { %v11439_v42 = vpop.f32.mrf.mxu1  ;;  %v11515_v59 = vpop.f32.mrf.mxu0 }
0x1a32   : > { %15784 = vmatmul.mubr.msk.f32.gmra.mxu0 %vm835_vm2, %v11439_v42 }
0x1a33   : > { %v15757_v41 = vpop.f32.mrf.mxu1  ;;  %v15762_v12 = vpop.f32.mrf.mxu0  ;;  %15786 = vmatprep.mubr.msk.f32.mxu0 %vm835_vm2, %v11515_v59 }
0x1a35   : > { %v11591_v25 = vpop.f32.mrf.mxu1  ;;  %v11667_v61 = vpop.f32.mrf.mxu0 }
0x1a36   : > { %15787 = vmatmul.mubr.msk.f32.gmra.mxu0 %vm835_vm2, %v11591_v25 }
0x1a37   : > { %v15767_v28 = vpop.f32.mrf.mxu1  ;;  %v15772_v27 = vpop.f32.mrf.mxu0  ;;  %15789 = vmatprep.mubr.msk.f32.mxu0 %vm835_vm2, %v11667_v61 }
0x1a39   : > { %v11743_v37 = vpop.f32.mrf.mxu1 }
0x1a3a   : > { %15790 = vmatmul.mubr.msk.f32.gmra.mxu0 %vm835_vm2, %v11743_v37 }
0x1a3b   : > { %v15777_v60 = vpop.f32.mrf.mxu1  ;;  %15814 = vmatprep.mubr.msk.f32.mxu0 %vm16612_vm1, %v19312_v8 }
0x1a3d   : > { %v11958_v26 = vpop.f32.mrf.mxu1 }
0x1a3e   : > { %v12508_v17 = vmul.f32 0.35355338, %v11958_v26  ;;  %15815 = vmatmul.mubr.msk.f32.vlgmr.msra.gmra.mxu0 %vm835_vm2, %v12197_v21 }
0x1a3f   : > { %15823 = vmatpush3.xpose.msk.msra.mxu0 %vm835_vm2, %v12355_v56  ;;  %v15796_v49 = vpop.f32.mrf.mxu1  ;;  %15824 = vmatprep.mubr.msk.f32.mxu0 %vm16612_vm1, %v19312_v8 }
0x1a40   : > { %v18802_v0 = vadd.f32 %v12508_v17, %v17029_v50  ;;  %15832 = vmatprep.subr.mxu0 %v19312_v8 }
0x1a41   : > { %v12036_v45 = vpop.f32.mrf.mxu1 }
0x1a42   : > { %v12509_v18 = vmul.f32 0.35355338, %v12036_v45  ;;  %15825 = vmatmul.mubr.msk.f32.vlgmr.msra.gmra.mxu0 %vm835_vm2, %v12353_v9  ;;  %v12524_v1 = vsel %vm835_vm2, %v18802_v0, -inf }
0x1a43   : > { %12525 = vmax.xlane.f32.xlu0 %v12524_v1  ;;  %v15801_v20 = vpop.f32.mrf.mxu1  ;;  %15834 = vmatprep.mubr.msk.f32.mxu0 %vm16612_vm1, %v19312_v8 }
0x1a44   : > { %v12517_v30 = vadd.f32 %v12509_v18, %v17035_v57 }
0x1a45   : > { %v12114_v53 = vpop.f32.mrf.mxu1 }
0x1a46   : > { %v12510_v50 = vmul.f32 0.35355338, %v12114_v53  ;;  %v12527_v3 = vsel %vm835_vm2, %v12517_v30, -inf }
0x1a47   : > { %12528 = vmax.xlane.f32.xlu1 %v12527_v3  ;;  %v15806_v42 = vpop.f32.mrf.mxu1 }
0x1a48   : > { %v18813_v59 = vadd.f32 %v12510_v50, %v17044_v2 }
0x1a49   : > { %v12192_v41 = vpop.f32.mrf.mxu1 }
0x1a4a   : > { %v12511_v12 = vmul.f32 0.35355338, %v12192_v41  ;;  %v12530_v21 = vsel %vm835_vm2, %v18813_v59, -inf }
0x1a4b   : > { %12531 = vmax.xlane.f32.xlu0 %v12530_v21  ;;  %v15811_v25 = vpop.f32.mrf.mxu1 }
0x1a4c   : > { %v12519_v61 = vadd.f32 %v12511_v12, %v17052_v11 }
0x1a4d   : > { %v12348_v28 = vpop.f32.mrf.mxu1 }
0x1a4e   : > { %v12513_v57 = vmul.f32 0.35355338, %v12348_v28  ;;  %v12533_v27 = vsel %vm835_vm2, %v12519_v61, -inf }
0x1a4f   : > { %12534 = vmax.xlane.f32.xlu0 %v12533_v27  ;;  %v15821_v37 = vpop.f32.mrf.mxu1 }
0x1a50   : > { %v12521_v56 = vadd.f32 %v12513_v57, %v17056_v23  ;;  %v10378_v57 = vadd.f32 %v18571_v38, %v18607_v48  ;;  %v10383_v48 = vadd.f32 %v18584_v51, %v18613_v22 }
0x1a51   : > { %v12504_v60 = vpop.f32.mrf.mxu1 }
0x1a52   : > { %v12515_v2 = vmul.f32 0.35355338, %v12504_v60  ;;  %v12539_v26 = vsel %vm835_vm2, %v12521_v56, -inf }
0x1a53   : > { %12540 = vmax.xlane.f32.xlu0 %v12539_v26  ;;  %v15831_v17 = vpop.f32.mrf.mxu1 }
0x1a54   : > { %v12523_v49 = vadd.f32 %v12515_v2, %v17064_v36  ;;  %v10388_v17 = vadd.f32 %v18580_v34, %v18611_v5  ;;  %v10398_v34 = vadd.f32 %v18589_v19, %v18615_v47  ;;  %v10403_v19 = vadd.f32 %v18601_v7, %v18621_v15 }
0x1a56   : > { %v12545_v9 = vsel %vm835_vm2, %v12523_v49, -inf }
0x1a57   : > { %12546 = vmax.xlane.f32.xlu0 %v12545_v9 }
0x1acc   : > { %v12526_v11 = vpop.xlane.xlu0 %12525 }
0x1ad0   : > { %v12529_v45 = vpop.xlane.xlu1 %12528 }
0x1ad1   : > { %v12549_v18 = vsub.f32 %v12517_v30, %v12529_v45 }
0x1ad3   : > { %v12558_v1 = vmul.f32 1.442695, %v12549_v18 }
0x1ad4   : > { %v12532_v20 = vpop.xlane.xlu0 %12531 }
0x1ad5   : > { %16324 = vpow2.f32 %v12558_v1  ;;  %v12550_v51 = vsub.f32 %v18813_v59, %v12532_v20 }
0x1ad7   : > { %v12560_v47 = vmul.f32 1.442695, %v12550_v51 }
0x1ad8   : > { %v12535_v53 = vpop.xlane.xlu0 %12534 }
0x1ad9   : > { %v12551_v50 = vsub.f32 %v12519_v61, %v12535_v53  ;;  %v10393_v53 = vadd.f32 %v18593_v63, %v18617_v16 }
0x1adb   : > { %v12562_v23 = vmul.f32 1.442695, %v12551_v50 }
0x1adc   : > { %v12541_v3 = vpop.xlane.xlu0 %12540 }
0x1add   : > { %16326 = vpow2.f32 %v12562_v23  ;;  %v12553_v42 = vsub.f32 %v12521_v56, %v12541_v3  ;;  %v10373_v56 = vadd.f32 %v18575_v31, %v18609_v39  ;;  %v12548_v31 = vsub.f32 %v18802_v0, %v12526_v11 }
0x1ade   : > { %v10408_v11 = vadd.f32 %v18598_v14, %v18619_v55 }
0x1adf   : > { %v12566_v41 = vmul.f32 1.442695, %v12553_v42  ;;  %v12556_v50 = vmul.f32 1.442695, %v12548_v31 }
0x1ae0   : > { %v12547_v12 = vpop.xlane.xlu0 %12546 }
0x1ae1   : > { %16328 = vpow2.f32 %v12566_v41  ;;  %v12555_v21 = vsub.f32 %v12523_v49, %v12547_v12 }
0x1ae2   : > { %v18823_v36 = vpop.eup %16324 }
0x1ae3   : > { %v12570_v25 = vmul.f32 1.442695, %v12555_v21  ;;  %v12575_v28 = vsel %vm835_vm2, %v18823_v36, 0.0 }
0x1ae4   : > { %12576 = vadd.xlane.f32.xlu0 %v12575_v28 }
0x1ae5   : > { %16330 = vpow2.f32 %v12570_v25 }
0x1ae6   : > { %16332 = vpow2.f32 %v12556_v50 }
0x1ae7   : > { %16334 = vpow2.f32 %v12560_v47 }
0x1aea   : > { %v18827_v30 = vpop.eup %16326 }
0x1aeb   : > { %v12581_v61 = vsel %vm835_vm2, %v18827_v30, 0.0 }
0x1aec   : > { %12582 = vadd.xlane.f32.xlu0 %v12581_v61 }
0x1aee   : > { %v18833_v27 = vpop.eup %16328  ;;  %v15782_v37 = vpop.f32.mrf.mxu0 }
0x1aef   : > { %v18837_v60 = vadd.f32 %v15782_v37, %v10378_v57  ;;  %v12587_v2 = vsel %vm835_vm2, %v18833_v27, 0.0 }
0x1af0   : > { %v11837_v26 = vpop.f32.mrf.mxu0  ;;  %12588 = vadd.xlane.f32.xlu0 %v12587_v2 }
0x1af1   : > { %v18843_v49 = vadd.f32 %v11837_v26, %v10373_v56 }
0x1af2   : > { %v18845_v9 = vpop.eup %16330  ;;  %v15785_v38 = vpop.f32.mrf.mxu0 }
0x1af3   : > { %v18850_v39 = vadd.f32 %v15785_v38, %v10388_v17  ;;  %v12593_v45 = vsel %vm835_vm2, %v18845_v9, 0.0  ;;  %v16333_v28 = vpop.eup %16332 }
0x1af4   : > { %v11847_v18 = vpop.f32.mrf.mxu0  ;;  %12594 = vadd.xlane.f32.xlu0 %v12593_v45  ;;  %v12572_v61 = vsel %vm835_vm2, %v16333_v28, 0.0  ;;  %v16335_v57 = vpop.eup %16334 }
0x1af5   : > { %v18856_v5 = vadd.f32 %v11847_v18, %v10383_v48 }
0x1af6   : > { %v15788_v1 = vpop.f32.mrf.mxu0 }
0x1af7   : > { %v18861_v22 = vadd.f32 %v15788_v1, %v10398_v34 }
0x1af8   : > { %v11857_v0 = vpop.f32.mrf.mxu0 }
0x1af9   : > { %v18865_v23 = vadd.f32 %v11857_v0, %v10393_v53 }
0x1afa   : > { %v15791_v3 = vpop.f32.mrf.mxu0 }
0x1afb   : > { %v18869_v42 = vadd.f32 %v15791_v3, %v10408_v11 }
0x1afc   : > { %v11867_v63 = vpop.f32.mrf.mxu0 }
0x1afd   : > { %v18871_v16 = vadd.f32 %v11867_v63, %v10403_v19 }
0x1afe   : > { %v12270_v59 = vpop.f32.mrf.mxu0 }
0x1aff   : > { %v12512_v20 = vmul.f32 0.35355338, %v12270_v59 }
0x1b00   : > { %v15816_v41 = vpop.f32.mrf.mxu0 }
0x1b01   : > { %v12520_v12 = vadd.f32 %v12512_v20, %v17022_v43  ;;  %v12578_v43 = vsel %vm835_vm2, %v16335_v57, 0.0 }
0x1b02   : > { %v12426_v14 = vpop.f32.mrf.mxu0 }
0x1b03   : > { %v12514_v55 = vmul.f32 0.35355338, %v12426_v14  ;;  %v12536_v21 = vsel %vm835_vm2, %v12520_v12, -inf }
0x1b04   : > { %v15826_v25 = vpop.f32.mrf.mxu0  ;;  %12537 = vmax.xlane.f32.xlu1 %v12536_v21 }
0x1b05   : > { %v12522_v7 = vadd.f32 %v12514_v55, %v17025_v46  ;;  %v7488_v25 = vld [vmem:[#allocation5 + $0x38] sm:$0xff] }
0x1b07   : > { %v12542_v15 = vsel %vm835_vm2, %v12522_v7, -inf }
0x1b08   : > { %12543 = vmax.xlane.f32.xlu1 %v12542_v15 }
0x1b0a   : > { %12688 = vrot.lane.b32.xlu0 %v18113_v44, %s19315_s22 }
0x1b0c   : > { %12573 = vadd.xlane.f32.xlu1 %v12572_v61 }
0x1b0e   : > { %12916 = vrot.lane.b32.xlu0 %v18155_v54, %s19315_s22 }
0x1b10   : > { %12579 = vadd.xlane.f32.xlu1 %v12578_v43 }
0x1b12   : > { %13068 = vrot.lane.b32.xlu0 %v18163_v33, %s19315_s22 }
0x1b21   : > { %12612 = vrot.lane.b32.xlu1 %v18115_v32, %s19315_s22 }
0x1b25   : > { %12764 = vrot.lane.b32.xlu1 %v18121_v35, %s19315_s22 }
0x1b29   : > { %12840 = vrot.lane.b32.xlu1 %v18125_v40, %s19315_s22 }
0x1b2d   : > { %12992 = vrot.lane.b32.xlu1 %v18153_v52, %s19315_s22 }
0x1b6d   : > { %v12577_v46 = vpop.xlane.xlu0 %12576 }
0x1b6e   : > { %16336 = vrcp.f32 %v12577_v46 }
0x1b75   : > { %v12583_v44 = vpop.xlane.xlu0 %12582 }
0x1b79   : > { %v12589_v54 = vpop.xlane.xlu0 %12588 }
0x1b7b   : > { %v16337_v56 = vpop.eup %16336 }
0x1b7c   : > { %v12605_v33 = vmul.f32 %v16337_v56, %v18823_v36 }
0x1b7d   : > { %v12595_v37 = vpop.xlane.xlu0 %12594 }
0x1b81   : > { %v12689_v2 = vpop.permute.xlu0 %12688 }
0x1b82   : > { %15838 = vmatpush3.msra.mxu1 %v12689_v2 }
0x1b83   : > { %15840 = vmatmul.mubr.msk.f32.vlgmr.msra.gmra.mxu1 %vm835_vm2, %v12605_v33  ;;  %15847 = vmatprep.subr.mxu1 %v19312_v8 }
0x1b84   : > { %15849 = vmatprep.mubr.msk.f32.mxu1 %vm16612_vm1, %v19312_v8 }
0x1b85   : > { %v12917_v59 = vpop.permute.xlu0 %12916 }
0x1b8d   : > { %v12538_v32 = vpop.xlane.xlu1 %12537 }
0x1b8e   : > { %v12552_v35 = vsub.f32 %v12520_v12, %v12538_v32 }
0x1b90   : > { %v12564_v40 = vmul.f32 1.442695, %v12552_v35 }
0x1b91   : > { %v12544_v52 = vpop.xlane.xlu1 %12543 }
0x1b92   : > { %16338 = vpow2.f32 %v12564_v40  ;;  %v12554_v26 = vsub.f32 %v12522_v7, %v12544_v52  ;;  %v13069_v7 = vpop.permute.xlu0 %13068 }
0x1b93   : > { %16340 = vrcp.f32 %v12583_v44 }
0x1b94   : > { %v12568_v17 = vmul.f32 1.442695, %v12554_v26 }
0x1b95   : > { %v12574_v38 = vpop.xlane.xlu1 %12573 }
0x1b96   : > { %16342 = vpow2.f32 %v12568_v17  ;;  %v14581_v17 = vld [vmem:[#allocation7 + $0x1] ss:$0 sm:$0xff] }
0x1b97   : > { %16344 = vrcp.f32 %v12574_v38 }
0x1b98   : > { %16346 = vrcp.f32 %v12589_v54 }
0x1b99   : > { %v12580_v36 = vpop.xlane.xlu1 %12579 }
0x1b9a   : > { %16348 = vrcp.f32 %v12580_v36 }
0x1b9b   : > { %16350 = vrcp.f32 %v12595_v37 }
0x1b9d   : > { %v12613_v48 = vpop.permute.xlu1 %12612 }
0x1b9e   : > { %15833 = vmatpush3.msra.mxu0 %v12613_v48 }
0x1b9f   : > { %v16339_v31 = vpop.eup %16338  ;;  %15842 = vmatprep.subr.mxu0 %v19312_v8 }
0x1ba0   : > { %v12584_v45 = vsel %vm835_vm2, %v16339_v31, 0.0  ;;  %v16341_v34 = vpop.eup %16340 }
0x1ba1   : > { %12585 = vadd.xlane.f32.xlu1 %v12584_v45  ;;  %v12765_v18 = vpop.permute.xlu1 %12764  ;;  %v12607_v51 = vmul.f32 %v16341_v34, %v18827_v30 }
0x1ba3   : > { %v16343_v1 = vpop.eup %16342 }
0x1ba4   : > { %v16345_v53 = vpop.eup %16344  ;;  %v12590_v50 = vsel %vm835_vm2, %v16343_v1, 0.0 }
0x1ba5   : > { %v12604_v0 = vmul.f32 %v16345_v53, %v16333_v28  ;;  %12591 = vadd.xlane.f32.xlu1 %v12590_v50  ;;  %v12841_v11 = vpop.permute.xlu1 %12840  ;;  %v16347_v3 = vpop.eup %16346 }
0x1ba6   : > { %15848 = vmatpush3.msra.mxu1 %v12841_v11  ;;  %v12609_v63 = vmul.f32 %v16347_v3, %v18833_v27 }
0x1ba7   : > { %v16349_v19 = vpop.eup %16348  ;;  %15835 = vmatmul.mubr.msk.f32.vlgmr.msra.gmra.mxu0 %vm835_vm2, %v12604_v0  ;;  %15850 = vmatmul.mubr.msk.f32.vlgmr.msra.gmra.mxu1 %vm835_vm2, %v12607_v51 }
0x1ba8   : > { %v12606_v47 = vmul.f32 %v16349_v19, %v16335_v57  ;;  %15843 = vmatpush3.msra.mxu0 %v12765_v18  ;;  %15844 = vmatprep.mubr.msk.f32.mxu0 %vm16612_vm1, %v19312_v8  ;;  %v16351_v41 = vpop.eup %16350 }
0x1ba9   : > { %15852 = vmatprep.subr.mxu0 %v19312_v8  ;;  %15857 = vmatprep.subr.mxu1 %v19312_v8  ;;  %v12993_v30 = vpop.permute.xlu1 %12992  ;;  %v12611_v12 = vmul.f32 %v16351_v41, %v18845_v9 }
0x1baa   : > { %15858 = vmatpush3.msra.mxu1 %v12993_v30  ;;  %15859 = vmatprep.mubr.msk.f32.mxu1 %vm16612_vm1, %v19312_v8 }
0x1bab   : > { %15845 = vmatmul.mubr.msk.f32.vlgmr.msra.gmra.mxu0 %vm835_vm2, %v12606_v47  ;;  %15860 = vmatmul.mubr.msk.f32.vlgmr.msra.gmra.mxu1 %vm835_vm2, %v12609_v63 }
0x1bac   : > { %15853 = vmatpush3.msra.mxu0 %v12917_v59  ;;  %15867 = vmatprep.subr.mxu1 %v19312_v8 }
0x1bad   : > { %15869 = vmatprep.mubr.msk.f32.mxu1 %vm16612_vm1, %v19312_v8  ;;  %15854 = vmatprep.mubr.msk.f32.mxu0 %vm16612_vm1, %v19312_v8 }
0x1bae   : > { %15862 = vmatprep.subr.mxu0 %v19312_v8 }
0x1bb6   : > { %13144 = vrot.lane.b32.xlu1 %v18159_v10, %s19315_s22 }
0x1c2a   : > { %v12586_v27 = vpop.xlane.xlu1 %12585 }
0x1c2b   : > { %16352 = vrcp.f32 %v12586_v27 }
0x1c2e   : > { %v12592_v20 = vpop.xlane.xlu1 %12591 }
0x1c2f   : > { %16354 = vrcp.f32 %v12592_v20 }
0x1c32   : > { %v13145_v14 = vpop.permute.xlu1 %13144 }
0x1c33   : > { %15868 = vmatpush3.msra.mxu1 %v13145_v14 }
0x1c34   : > { %15870 = vmatmul.mubr.msk.f32.vlgmr.msra.gmra.mxu1 %vm835_vm2, %v12611_v12 }
0x1c38   : > { %v16353_v55 = vpop.eup %16352 }
0x1c39   : > { %v12608_v21 = vmul.f32 %v16353_v55, %v16339_v31 }
0x1c3b   : > { %15855 = vmatmul.mubr.msk.f32.vlgmr.msra.gmra.mxu0 %vm835_vm2, %v12608_v21 }
0x1c3c   : > { %v16355_v15 = vpop.eup %16354  ;;  %15863 = vmatpush3.msra.mxu0 %v13069_v7  ;;  %15864 = vmatprep.mubr.msk.f32.mxu0 %vm16612_vm1, %v19312_v8 }
0x1c3d   : > { %v12610_v10 = vmul.f32 %v16355_v15, %v16343_v1  ;;  %15872 = vmatprep.subr.mxu0 %v7488_v25 }
0x1c3f   : > { %15865 = vmatmul.mubr.msk.f32.vlgmr.msra.gmra.mxu0 %vm835_vm2, %v12610_v10 }
0x1c40   : > { %15873 = vmatpush3.msra.mxu0 %v7488_v25 }
0x1c43   : > { %v12760_v9 = vpop.f32.mrf.mxu1 }
0x1c45   : > { %v15841_v28 = vpop.f32.mrf.mxu1 }
0x1c67   : > { %v12684_v61 = vpop.f32.mrf.mxu0  ;;  %v12912_v57 = vpop.f32.mrf.mxu1 }
0x1c68   : > { %15874 = vmatprep.mubr.msk.f32.mxu0 %vm835_vm2, %v12684_v61 }
0x1c69   : > { %v15836_v43 = vpop.f32.mrf.mxu0  ;;  %15875 = vmatmul.mubr.msk.f32.vlgmr.msra.gmra.mxu0 %vm835_vm2, %v12760_v9  ;;  %v15851_v46 = vpop.f32.mrf.mxu1 }
0x1c6b   : > { %v12836_v44 = vpop.f32.mrf.mxu0  ;;  %v13064_v54 = vpop.f32.mrf.mxu1 }
0x1c6c   : > { %15877 = vmatprep.mubr.msk.f32.mxu0 %vm835_vm2, %v12836_v44 }
0x1c6d   : > { %v15846_v37 = vpop.f32.mrf.mxu0  ;;  %15878 = vmatmul.mubr.msk.f32.gmra.mxu0 %vm835_vm2, %v12912_v57  ;;  %v15861_v56 = vpop.f32.mrf.mxu1 }
0x1cf4   : > { %v13216_v33 = vpop.f32.mrf.mxu1 }
0x1cf6   : > { %v15871_v2 = vpop.f32.mrf.mxu1 }
0x1cfb   : > { %v12988_v32 = vpop.f32.mrf.mxu0 }
0x1cfc   : > { %15880 = vmatprep.mubr.msk.f32.mxu0 %vm835_vm2, %v12988_v32 }
0x1cfd   : > { %v15856_v35 = vpop.f32.mrf.mxu0  ;;  %15881 = vmatmul.mubr.msk.f32.gmra.mxu0 %vm835_vm2, %v13064_v54 }
0x1cff   : > { %v13140_v40 = vpop.f32.mrf.mxu0 }
0x1d00   : > { %15883 = vmatprep.mubr.msk.f32.mxu0 %vm835_vm2, %v13140_v40 }
0x1d01   : > { %v15866_v52 = vpop.f32.mrf.mxu0  ;;  %15884 = vmatmul.mubr.msk.f32.gmra.mxu0 %vm835_vm2, %v13216_v33 }
0x1d02   : > { %v13521_v52 = vld [vmem:[#allocation10 + $0x38] sm:$0xff] }
0x1d03   : > { %15886 = vmatprep.subr.mxu1 %v13521_v52 }
0x1d04   : > { %15887 = vmatpush3.msra.mxu1 %v13521_v52 }
0x1d29   : > { %v15876_v26 = vpop.f32.mrf.mxu0 }
0x1d2a   : > { %v13350_v38 = vadd.f32 %v15876_v26, %v18837_v60  ;;  %v13520_v26 = vld [vmem:[#allocation10 + $0x30] sm:$0xff] }
0x1d2b   : > { %v13310_v36 = vpop.f32.mrf.mxu0  ;;  %15888 = vmatprep.subr.mxu1 %v13520_v26 }
0x1d2c   : > { %v13366_v48 = vadd.f32 %v14581_v17, %v13350_v38  ;;  %v13349_v31 = vadd.f32 %v13310_v36, %v18843_v49  ;;  %15889 = vmatpush3.msra.mxu1 %v13520_v26  ;;  %v13518_v38 = vld [vmem:[#allocation10 + $0x20] sm:$0xff] }
0x1d2d   : > { %v15879_v45 = vpop.f32.mrf.mxu0 }
0x1d2e   : > { %v13365_v18 = vadd.f32 %v14581_v17, %v13349_v31  ;;  %v13352_v34 = vadd.f32 %v15879_v45, %v18850_v39  ;;  %v13374_v1 = vadd.f32 %v13366_v48, %v18074_v13 }
0x1d2f   : > { %v13320_v53 = vpop.f32.mrf.mxu0 }
0x1d30   : > { %v13351_v50 = vadd.f32 %v13320_v53, %v18856_v5  ;;  %v13388_v51 = vsel %vm698_vm0, %v13374_v1, 0.0  ;;  %v13373_v0 = vadd.f32 %v13365_v18, %v18071_v24  ;;  %v13368_v11 = vadd.f32 %v14581_v17, %v13352_v34 }
0x1d31   : > { %13389 = vadd.xlane.f32.xlu1 %v13388_v51 }
0x1d32   : > { %v13367_v60 = vadd.f32 %v14581_v17, %v13351_v50  ;;  %v13385_v3 = vsel %vm698_vm0, %v13373_v0, 0.0  ;;  %v13376_v39 = vadd.f32 %v13368_v11, %v18082_v29 }
0x1d33   : > { %13386 = vadd.xlane.f32.xlu0 %v13385_v3 }
0x1d34   : > { %v13375_v49 = vadd.f32 %v13367_v60, %v18080_v6  ;;  %v13394_v13 = vsel %vm698_vm0, %v13376_v39, 0.0 }
0x1d36   : > { %v13391_v19 = vsel %vm698_vm0, %v13375_v49, 0.0 }
0x1d37   : > { %13392 = vadd.xlane.f32.xlu0 %v13391_v19 }
0x1d3b   : > { %13395 = vadd.xlane.f32.xlu0 %v13394_v13 }
0x1dba   : > { %v13390_v5 = vpop.xlane.xlu1 %13389 }
0x1dbb   : > { %v13410_v30 = vmul.f32 0.03125, %v13390_v5 }
0x1dbc   : > { %v13387_v47 = vpop.xlane.xlu0 %13386 }
0x1dbd   : > { %v15882_v63 = vpop.f32.mrf.mxu0  ;;  %v13409_v6 = vmul.f32 0.03125, %v13387_v47  ;;  %v18951_v21 = vsub.f32 %v13374_v1, %v13410_v30 }
0x1dbe   : > { %v13354_v24 = vadd.f32 %v15882_v63, %v18861_v22 }
0x1dbf   : > { %v13330_v59 = vpop.f32.mrf.mxu0  ;;  %v18956_v28 = vsub.f32 %v13373_v0, %v13409_v6 }
0x1dc0   : > { %v13370_v27 = vadd.f32 %v14581_v17, %v13354_v24  ;;  %v13393_v20 = vpop.xlane.xlu0 %13392  ;;  %v13353_v41 = vadd.f32 %v13330_v59, %v18865_v23 }
0x1dc1   : > { %v15885_v12 = vpop.f32.mrf.mxu0  ;;  %v13411_v61 = vmul.f32 0.03125, %v13393_v20  ;;  %v13425_v56 = vmul.f32 %v18956_v28, %v18956_v28 }
0x1dc2   : > { %v13369_v14 = vadd.f32 %v14581_v17, %v13353_v41  ;;  %v13356_v29 = vadd.f32 %v15885_v12, %v18869_v42  ;;  %v13378_v55 = vadd.f32 %v13370_v27, %v18094_v4 }
0x1dc3   : > { %v13340_v25 = vpop.f32.mrf.mxu0  ;;  %v18966_v54 = vsub.f32 %v13375_v49, %v13411_v61  ;;  %v13433_v2 = vsel %vm698_vm0, %v13425_v56, 0.0  ;;  %v14600_v56 = vld [vmem:[%s19246_s11 + $0x68] sm:$0xff] }
0x1dc4   : > { %v13372_v7 = vadd.f32 %v14581_v17, %v13356_v29  ;;  %v13396_v15 = vpop.xlane.xlu0 %13395  ;;  %v13355_v22 = vadd.f32 %v13340_v25, %v18871_v16  ;;  %v13400_v10 = vsel %vm698_vm0, %v13378_v55, 0.0  ;;  %v13377_v9 = vadd.f32 %v13369_v14, %v18091_v62  ;;  %v19316_v16 = vld [vmem:[#allocation20_spill] sm:$0xff] }
0x1dc5   : > { %v13412_v23 = vmul.f32 0.03125, %v13396_v15  ;;  %13401 = vadd.xlane.f32.xlu0 %v13400_v10  ;;  %v13426_v62 = vmul.f32 %v18951_v21, %v18951_v21  ;;  %v13427_v32 = vmul.f32 %v18966_v54, %v18966_v54 }
0x1dc6   : > { %v13371_v57 = vadd.f32 %v14581_v17, %v13355_v22  ;;  %v13397_v42 = vsel %vm698_vm0, %v13377_v9, 0.0  ;;  %v13380_v4 = vadd.f32 %v13372_v7, %v18102_v58  ;;  %v13519_v17 = vld [vmem:[#allocation10 + $0x28] sm:$0xff]  ;;  %v19000_v7 = vld [vmem:[#allocation8 + $0x1] ss:$0 sm:$0xff] }
0x1dc7   : > { %13398 = vadd.xlane.f32.xlu1 %v13397_v42  ;;  %v18960_v43 = vsub.f32 %v13376_v39, %v13412_v23  ;;  %v13436_v58 = vsel %vm698_vm0, %v13426_v62, 0.0  ;;  %v13439_v40 = vsel %vm698_vm0, %v13427_v32, 0.0  ;;  %15890 = vmatprep.subr.mxu1 %v13519_v17  ;;  %v14596_v32 = vld [vmem:[%s19246_s11 + $0x48] sm:$0xff] }
0x1dc8   : > { %v13406_v46 = vsel %vm698_vm0, %v13380_v4, 0.0  ;;  %v13379_v44 = vadd.f32 %v13371_v57, %v19316_v16  ;;  %15891 = vmatpush3.msra.mxu1 %v13519_v17  ;;  %v19009_v57 = vld [vmem:[%s19243_s8 + $0x1] ss:$0 sm:$0xff] }
0x1dc9   : > { %13407 = vadd.xlane.f32.xlu0 %v13406_v46  ;;  %v13428_v33 = vmul.f32 %v18960_v43, %v18960_v43  ;;  %15892 = vmatprep.subr.mxu1 %v13518_v38 }
0x1dca   : > { %v13403_v37 = vsel %vm698_vm0, %v13379_v44, 0.0  ;;  %15893 = vmatpush3.msra.mxu1 %v13518_v38 }
0x1dcb   : > { %13404 = vadd.xlane.f32.xlu1 %v13403_v37  ;;  %v13442_v35 = vsel %vm698_vm0, %v13428_v33, 0.0  ;;  %15934 = vmatprep.subr.mxu1 %v19312_v8  ;;  %v14601_v37 = vld [vmem:[%s19246_s11 + $0x70] sm:$0xff]  ;;  %v14598_v33 = vld [vmem:[%s19246_s11 + $0x58] sm:$0xff] }
0x1dcd   : > { %13437 = vadd.xlane.f32.xlu0 %v13436_v58  ;;  %v14599_v58 = vld [vmem:[%s19246_s11 + $0x60] sm:$0xff] }
0x1dcf   : > { %13434 = vadd.xlane.f32.xlu1 %v13433_v2  ;;  %v14597_v2 = vld [vmem:[%s19246_s11 + $0x50] sm:$0xff] }
0x1dd1   : > { %13443 = vadd.xlane.f32.xlu0 %v13442_v35  ;;  %v14595_v35 = vld [vmem:[%s19246_s11 + $0x40] sm:$0xff] }
0x1dd3   : > { %13440 = vadd.xlane.f32.xlu1 %v13439_v40 }
0x1e4e   : > { %v13402_v36 = vpop.xlane.xlu0 %13401 }
0x1e4f   : > { %v13414_v48 = vmul.f32 0.03125, %v13402_v36 }
0x1e50   : > { %v13399_v31 = vpop.xlane.xlu1 %13398 }
0x1e51   : > { %v18980_v45 = vsub.f32 %v13378_v55, %v13414_v48  ;;  %v13413_v18 = vmul.f32 0.03125, %v13399_v31 }
0x1e52   : > { %v13408_v34 = vpop.xlane.xlu0 %13407 }
0x1e53   : > { %v18982_v1 = vsub.f32 %v13377_v9, %v13413_v18  ;;  %v13416_v53 = vmul.f32 0.03125, %v13408_v34  ;;  %v13430_v50 = vmul.f32 %v18980_v45, %v18980_v45 }
0x1e54   : > { %v13405_v51 = vpop.xlane.xlu1 %13404 }
0x1e55   : > { %v18986_v0 = vsub.f32 %v13380_v4, %v13416_v53  ;;  %v13415_v11 = vmul.f32 0.03125, %v13405_v51  ;;  %v13448_v60 = vsel %vm698_vm0, %v13430_v50, 0.0  ;;  %v13429_v3 = vmul.f32 %v18982_v1, %v18982_v1 }
0x1e56   : > { %13449 = vadd.xlane.f32.xlu0 %v13448_v60  ;;  %v13438_v49 = vpop.xlane.xlu0 %13437 }
0x1e57   : > { %v18991_v19 = vsub.f32 %v13379_v44, %v13415_v11  ;;  %v13458_v39 = vmul.f32 0.03125, %v13438_v49  ;;  %v13445_v13 = vsel %vm698_vm0, %v13429_v3, 0.0  ;;  %v13432_v5 = vmul.f32 %v18986_v0, %v18986_v0 }
0x1e58   : > { %13446 = vadd.xlane.f32.xlu1 %v13445_v13  ;;  %v13435_v47 = vpop.xlane.xlu1 %13434 }
0x1e59   : > { %v13466_v63 = vadd.f32 1e-05, %v13458_v39  ;;  %v13457_v24 = vmul.f32 0.03125, %v13435_v47  ;;  %v13454_v30 = vsel %vm698_vm0, %v13432_v5, 0.0  ;;  %v13431_v59 = vmul.f32 %v18991_v19, %v18991_v19 }
0x1e5a   : > { %13455 = vadd.xlane.f32.xlu0 %v13454_v30  ;;  %v13444_v27 = vpop.xlane.xlu0 %13443 }
0x1e5b   : > { %16356 = vrsqrt.f32 %v13466_v63  ;;  %v13465_v20 = vadd.f32 1e-05, %v13457_v24  ;;  %v13460_v41 = vmul.f32 0.03125, %v13444_v27  ;;  %v13451_v6 = vsel %vm698_vm0, %v13431_v59, 0.0 }
0x1e5c   : > { %13452 = vadd.xlane.f32.xlu1 %v13451_v6  ;;  %v13441_v12 = vpop.xlane.xlu1 %13440 }
0x1e5d   : > { %16358 = vrsqrt.f32 %v13465_v20  ;;  %v13468_v14 = vadd.f32 1e-05, %v13460_v41  ;;  %v13459_v29 = vmul.f32 0.03125, %v13441_v12 }
0x1e5f   : > { %16360 = vrsqrt.f32 %v13468_v14  ;;  %v13467_v55 = vadd.f32 1e-05, %v13459_v29 }
0x1e61   : > { %16362 = vrsqrt.f32 %v13467_v55 }
0x1e68   : > { %v16357_v25 = vpop.eup %16356 }
0x1e69   : > { %v13482_v15 = vmul.f32 %v16357_v25, %v18951_v21 }
0x1e6a   : > { %v16359_v22 = vpop.eup %16358 }
0x1e6b   : > { %v13481_v10 = vmul.f32 %v16359_v22, %v18956_v28  ;;  %v13496_v23 = vmul.f32 %v19000_v7, %v13482_v15 }
0x1e6c   : > { %v16361_v9 = vpop.eup %16360 }
0x1e6d   : > { %v13484_v61 = vmul.f32 %v16361_v9, %v18960_v43  ;;  %v13495_v42 = vmul.f32 %v19000_v7, %v13481_v10  ;;  %v19017_v28 = vadd.f32 %v19009_v57, %v13496_v23 }
0x1e6e   : > { %v16363_v4 = vpop.eup %16362 }
0x1e6f   : > { %v19013_v46 = vadd.f32 %v19009_v57, %v13495_v42  ;;  %v13483_v21 = vmul.f32 %v16363_v4, %v18966_v54  ;;  %v13498_v16 = vmul.f32 %v19000_v7, %v13484_v61  ;;  %v14602_v54 = vld [vmem:[%s19246_s11 + $0x78] sm:$0xff] }
0x1e70   : > { %15906 = vmatprep.subr.mxu0 %v14602_v54 }
0x1e71   : > { %15894 = vmatprep.mubr.msk.f32.mxu1 %vm698_vm0, %v19013_v46  ;;  %v13497_v43 = vmul.f32 %v19000_v7, %v13483_v21  ;;  %v19029_v62 = vadd.f32 %v19009_v57, %v13498_v16  ;;  %15907 = vmatpush3.msra.mxu0 %v14602_v54 }
0x1e72   : > { %15895 = vmatmul.mubr.msk.f32.vlgmr.msra.gmra.mxu1 %vm698_vm0, %v19017_v28  ;;  %15908 = vmatprep.subr.mxu0 %v14601_v37 }
0x1e73   : > { %v19026_v44 = vadd.f32 %v19009_v57, %v13497_v43  ;;  %15909 = vmatpush3.msra.mxu0 %v14601_v37 }
0x1e74   : > { %15910 = vmatprep.subr.mxu0 %v14600_v56 }
0x1e75   : > { %15897 = vmatprep.mubr.msk.f32.mxu1 %vm698_vm0, %v19026_v44  ;;  %15911 = vmatpush3.msra.mxu0 %v14600_v56 }
0x1e76   : > { %15898 = vmatmul.mubr.msk.f32.gmra.mxu1 %vm698_vm0, %v19029_v62  ;;  %15912 = vmatprep.subr.mxu0 %v14599_v58 }
0x1e77   : > { %15913 = vmatpush3.msra.mxu0 %v14599_v58 }
0x1e78   : > { %15914 = vmatprep.subr.mxu0 %v14598_v33 }
0x1e79   : > { %15915 = vmatpush3.msra.mxu0 %v14598_v33 }
0x1e7a   : > { %15916 = vmatprep.subr.mxu0 %v14597_v2 }
0x1e7b   : > { %15917 = vmatpush3.msra.mxu0 %v14597_v2 }
0x1e7c   : > { %15918 = vmatprep.subr.mxu0 %v14596_v32 }
0x1e7d   : > { %15919 = vmatpush3.msra.mxu0 %v14596_v32 }
0x1e7e   : > { %15920 = vmatprep.subr.mxu0 %v14595_v35 }
0x1e7f   : > { %15921 = vmatpush3.msra.mxu0 %v14595_v35 }
0x1edf   : > { %v13450_v40 = vpop.xlane.xlu0 %13449 }
0x1ee0   : > { %v13462_v52 = vmul.f32 0.03125, %v13450_v40  ;;  %v14604_v40 = vld [vmem:[%s19247_s12 + $0x1] ss:$0 sm:$0xff] }
0x1ee1   : > { %v13447_v26 = vpop.xlane.xlu1 %13446 }
0x1ee2   : > { %v13470_v17 = vadd.f32 1e-05, %v13462_v52  ;;  %v13461_v38 = vmul.f32 0.03125, %v13447_v26 }
0x1ee3   : > { %v13456_v36 = vpop.xlane.xlu0 %13455 }
0x1ee4   : > { %16364 = vrsqrt.f32 %v13470_v17  ;;  %v13469_v48 = vadd.f32 1e-05, %v13461_v38  ;;  %v13464_v31 = vmul.f32 0.03125, %v13456_v36 }
0x1ee5   : > { %v13453_v18 = vpop.xlane.xlu1 %13452 }
0x1ee6   : > { %16366 = vrsqrt.f32 %v13469_v48  ;;  %v13472_v34 = vadd.f32 1e-05, %v13464_v31  ;;  %v13463_v53 = vmul.f32 0.03125, %v13453_v18 }
0x1ee8   : > { %16368 = vrsqrt.f32 %v13472_v34  ;;  %v13471_v50 = vadd.f32 1e-05, %v13463_v53 }
0x1eea   : > { %16370 = vrsqrt.f32 %v13471_v50 }
0x1ef1   : > { %v16365_v51 = vpop.eup %16364 }
0x1ef2   : > { %v13486_v11 = vmul.f32 %v16365_v51, %v18980_v45 }
0x1ef3   : > { %v16367_v60 = vpop.eup %16366 }
0x1ef4   : > { %v13485_v3 = vmul.f32 %v16367_v60, %v18982_v1  ;;  %v13500_v39 = vmul.f32 %v19000_v7, %v13486_v11 }
0x1ef5   : > { %v16369_v49 = vpop.eup %16368 }
0x1ef6   : > { %v13488_v13 = vmul.f32 %v16369_v49, %v18986_v0  ;;  %v13499_v5 = vmul.f32 %v19000_v7, %v13485_v3  ;;  %v13514_v30 = vadd.f32 %v19009_v57, %v13500_v39 }
0x1ef7   : > { %v16371_v47 = vpop.eup %16370 }
0x1ef8   : > { %v19065_v63 = vadd.f32 %v19009_v57, %v13499_v5  ;;  %v13487_v24 = vmul.f32 %v16371_v47, %v18991_v19  ;;  %v13502_v45 = vmul.f32 %v19000_v7, %v13488_v13  ;;  %v14586_v19 = vld [vmem:[%s19245_s10 + $0x1] ss:$0 sm:$0xff] }
0x1efa   : > { %15900 = vmatprep.mubr.msk.f32.mxu1 %vm698_vm0, %v19065_v63  ;;  %v13501_v1 = vmul.f32 %v19000_v7, %v13487_v24  ;;  %v13516_v59 = vadd.f32 %v19009_v57, %v13502_v45 }
0x1efb   : > { %15901 = vmatmul.mubr.msk.f32.gmra.mxu1 %vm698_vm0, %v13514_v30 }
0x1efc   : > { %v13515_v0 = vadd.f32 %v19009_v57, %v13501_v1 }
0x1efe   : > { %15903 = vmatprep.mubr.msk.f32.mxu1 %vm698_vm0, %v13515_v0 }
0x1eff   : > { %15904 = vmatmul.mubr.msk.f32.gmra.mxu1 %vm698_vm0, %v13516_v59 }
0x1f00   : > { %15950 = vmatprep.mubr.msk.f32.mxu1 %vm16612_vm1, %v19312_v8 }
0x1f32   : > { %v15896_v27 = vpop.f32.mrf.mxu1 }
0x1f33   : > { %v13626_v20 = vadd.f32 %v15896_v27, %v14586_v19 }
0x1f34   : > { %v13620_v41 = vpop.f32.mrf.mxu1 }
0x1f35   : > { %v13621_v6 = vadd.f32 %v14586_v19, %v13620_v41  ;;  %v13660_v29 = vmax.f32 %v13626_v20, 0.0 }
0x1f36   : > { %v15899_v12 = vpop.f32.mrf.mxu1 }
0x1f37   : > { %v13659_v14 = vmax.f32 %v13621_v6, 0.0  ;;  %v13636_v55 = vadd.f32 %v15899_v12, %v14586_v19 }
0x1f38   : > { %v13630_v25 = vpop.f32.mrf.mxu1 }
0x1f39   : > { %v13631_v7 = vadd.f32 %v14586_v19, %v13630_v25  ;;  %15922 = vmatprep.mubr.msk.f32.mxu0 %vm7070_vm3, %v13659_v14  ;;  %v13662_v22 = vmax.f32 %v13636_v55, 0.0 }
0x1f3a   : > { %15923 = vmatmul.mubr.msk.f32.vlgmr.msra.gmra.mxu0 %vm7070_vm3, %v13660_v29 }
0x1f3b   : > { %v13661_v15 = vmax.f32 %v13631_v7, 0.0 }
0x1f3d   : > { %15925 = vmatprep.mubr.msk.f32.mxu0 %vm7070_vm3, %v13661_v15 }
0x1f3e   : > { %15926 = vmatmul.mubr.msk.f32.gmra.mxu0 %vm7070_vm3, %v13662_v22 }
0x1fbb   : > { %v15902_v10 = vpop.f32.mrf.mxu1 }
0x1fbc   : > { %v13646_v9 = vadd.f32 %v15902_v10, %v14586_v19 }
0x1fbd   : > { %v13640_v23 = vpop.f32.mrf.mxu1 }
0x1fbe   : > { %v13641_v61 = vadd.f32 %v14586_v19, %v13640_v23  ;;  %v13664_v4 = vmax.f32 %v13646_v9, 0.0 }
0x1fbf   : > { %v15905_v57 = vpop.f32.mrf.mxu1 }
0x1fc0   : > { %v13663_v42 = vmax.f32 %v13641_v61, 0.0  ;;  %v13656_v21 = vadd.f32 %v15905_v57, %v14586_v19 }
0x1fc1   : > { %v13650_v16 = vpop.f32.mrf.mxu1 }
0x1fc2   : > { %v13651_v43 = vadd.f32 %v14586_v19, %v13650_v16  ;;  %15928 = vmatprep.mubr.msk.f32.mxu0 %vm7070_vm3, %v13663_v42  ;;  %v13666_v37 = vmax.f32 %v13656_v21, 0.0 }
0x1fc3   : > { %15929 = vmatmul.mubr.msk.f32.gmra.mxu0 %vm7070_vm3, %v13664_v4 }
0x1fc4   : > { %v13665_v54 = vmax.f32 %v13651_v43, 0.0 }
0x1fc6   : > { %15931 = vmatprep.mubr.msk.f32.mxu0 %vm7070_vm3, %v13665_v54 }
0x1fc7   : > { %15932 = vmatmul.mubr.msk.f32.gmra.mxu0 %vm7070_vm3, %v13666_v37 }
0x1ffa   : > { %v15924_v56 = vpop.f32.mrf.mxu0 }
0x1ffb   : > { %v13780_v3 = vadd.f32 %v15924_v56, %v14604_v40 }
0x1ffc   : > { %v13774_v58 = vpop.f32.mrf.mxu0 }
0x1ffd   : > { %v13775_v13 = vadd.f32 %v14604_v40, %v13774_v58  ;;  %v13814_v24 = vadd.f32 %v13780_v3, %v19017_v28 }
0x1ffe   : > { %v15927_v33 = vpop.f32.mrf.mxu0 }
0x1fff   : > { %v13790_v18 = vadd.f32 %v15927_v33, %v14604_v40 }
0x2000   : > { %v13784_v2 = vpop.f32.mrf.mxu0 }
0x2001   : > { %v13785_v51 = vadd.f32 %v14604_v40, %v13784_v2  ;;  %v13816_v49 = vadd.f32 %v13790_v18, %v19029_v62  ;;  %v13828_v62 = vsel %vm698_vm0, %v13814_v24, 0.0 }
0x2003   : > { %v13815_v5 = vadd.f32 %v13785_v51, %v19026_v44 }
0x2005   : > { %v13831_v45 = vsel %vm698_vm0, %v13815_v5, 0.0 }
0x2083   : > { %v15930_v32 = vpop.f32.mrf.mxu0 }
0x2084   : > { %v13800_v26 = vadd.f32 %v15930_v32, %v14604_v40 }
0x2085   : > { %v13794_v35 = vpop.f32.mrf.mxu0 }
0x2086   : > { %v13795_v36 = vadd.f32 %v14604_v40, %v13794_v35  ;;  %v13818_v34 = vadd.f32 %v13800_v26, %v13514_v30  ;;  %v13834_v30 = vsel %vm698_vm0, %v13816_v49, 0.0 }
0x2087   : > { %v15933_v52 = vpop.f32.mrf.mxu0 }
0x2088   : > { %v13810_v17 = vadd.f32 %v15933_v52, %v14604_v40  ;;  %v13817_v11 = vadd.f32 %v13795_v36, %v19065_v63  ;;  %v13840_v39 = vsel %vm698_vm0, %v13818_v34, 0.0  ;;  %v13813_v63 = vadd.f32 %v13775_v13, %v19013_v46 }
0x2089   : > { %v13804_v38 = vpop.f32.mrf.mxu0 }
0x208a   : > { %v13820_v48 = vadd.f32 %v13810_v17, %v13516_v59  ;;  %v13805_v31 = vadd.f32 %v14604_v40, %v13804_v38  ;;  %v13837_v47 = vsel %vm698_vm0, %v13817_v11, 0.0  ;;  %v13825_v1 = vsel %vm698_vm0, %v13813_v63, 0.0 }
0x208c   : > { %v13819_v53 = vadd.f32 %v13805_v31, %v13515_v0  ;;  %v13846_v50 = vsel %vm698_vm0, %v13820_v48, 0.0 }
0x208d   : > { %13847 = vadd.xlane.f32.xlu1 %v13846_v50 }
0x208e   : > { %v13843_v60 = vsel %vm698_vm0, %v13819_v53, 0.0 }
0x208f   : > { %13844 = vadd.xlane.f32.xlu0 %v13843_v60 }
0x2091   : > { %13841 = vadd.xlane.f32.xlu1 %v13840_v39 }
0x2093   : > { %13838 = vadd.xlane.f32.xlu0 %v13837_v47 }
0x2095   : > { %13835 = vadd.xlane.f32.xlu1 %v13834_v30 }
0x2097   : > { %13832 = vadd.xlane.f32.xlu0 %v13831_v45 }
0x2099   : > { %13829 = vadd.xlane.f32.xlu1 %v13828_v62 }
0x209b   : > { %13826 = vadd.xlane.f32.xlu0 %v13825_v1 }
0x2116   : > { %v13848_v44 = vpop.xlane.xlu1 %13847 }
0x2117   : > { %v13856_v0 = vmul.f32 0.03125, %v13848_v44 }
0x2118   : > { %v13845_v59 = vpop.xlane.xlu0 %13844 }
0x2119   : > { %v19107_v19 = vsub.f32 %v13820_v48, %v13856_v0  ;;  %v13855_v28 = vmul.f32 0.03125, %v13845_v59  ;;  %v14615_v59 = vld [vmem:[%s19248_s13 + $0x1] ss:$0 sm:$0xff] }
0x211a   : > { %v13842_v27 = vpop.xlane.xlu1 %13841 }
0x211b   : > { %v19109_v20 = vsub.f32 %v13819_v53, %v13855_v28  ;;  %v13854_v41 = vmul.f32 0.03125, %v13842_v27  ;;  %v13872_v46 = vmul.f32 %v19107_v19, %v19107_v19 }
0x211c   : > { %v13839_v6 = vpop.xlane.xlu0 %13838 }
0x211d   : > { %v19113_v12 = vsub.f32 %v13818_v34, %v13854_v41  ;;  %v13853_v14 = vmul.f32 0.03125, %v13839_v6  ;;  %v13894_v29 = vsel %vm698_vm0, %v13872_v46, 0.0  ;;  %v13871_v55 = vmul.f32 %v19109_v20, %v19109_v20  ;;  %v14616_v41 = vld [vmem:[%s19249_s14 + $0x1] ss:$0 sm:$0xff] }
0x211e   : > { %13895 = vadd.xlane.f32.xlu1 %v13894_v29  ;;  %v13836_v25 = vpop.xlane.xlu1 %13835 }
0x211f   : > { %v19118_v7 = vsub.f32 %v13817_v11, %v13853_v14  ;;  %v13852_v15 = vmul.f32 0.03125, %v13836_v25  ;;  %v13891_v22 = vsel %vm698_vm0, %v13871_v55, 0.0  ;;  %v13870_v10 = vmul.f32 %v19113_v12, %v19113_v12 }
0x2120   : > { %13892 = vadd.xlane.f32.xlu0 %v13891_v22  ;;  %v13833_v9 = vpop.xlane.xlu0 %13832 }
0x2121   : > { %v19123_v23 = vsub.f32 %v13816_v49, %v13852_v15  ;;  %v13851_v61 = vmul.f32 0.03125, %v13833_v9  ;;  %v13888_v57 = vsel %vm698_vm0, %v13870_v10, 0.0  ;;  %v13869_v42 = vmul.f32 %v19118_v7, %v19118_v7 }
0x2122   : > { %13889 = vadd.xlane.f32.xlu1 %v13888_v57  ;;  %v13830_v4 = vpop.xlane.xlu1 %13829 }
0x2123   : > { %v19128_v21 = vsub.f32 %v13815_v5, %v13851_v61  ;;  %v13850_v16 = vmul.f32 0.03125, %v13830_v4  ;;  %v13885_v43 = vsel %vm698_vm0, %v13869_v42, 0.0  ;;  %v13868_v54 = vmul.f32 %v19123_v23, %v19123_v23 }
0x2124   : > { %13886 = vadd.xlane.f32.xlu0 %v13885_v43  ;;  %v13827_v37 = vpop.xlane.xlu0 %13826 }
0x2125   : > { %v19133_v56 = vsub.f32 %v13814_v24, %v13850_v16  ;;  %v13849_v58 = vmul.f32 0.03125, %v13827_v37  ;;  %v13882_v33 = vsel %vm698_vm0, %v13868_v54, 0.0  ;;  %v13867_v2 = vmul.f32 %v19128_v21, %v19128_v21 }
0x2126   : > { %13883 = vadd.xlane.f32.xlu1 %v13882_v33 }
0x2127   : > { %v19138_v32 = vsub.f32 %v13813_v63, %v13849_v58  ;;  %v13879_v35 = vsel %vm698_vm0, %v13867_v2, 0.0  ;;  %v13866_v40 = vmul.f32 %v19133_v56, %v19133_v56 }
0x2128   : > { %13880 = vadd.xlane.f32.xlu0 %v13879_v35 }
0x2129   : > { %v13876_v52 = vsel %vm698_vm0, %v13866_v40, 0.0  ;;  %v13865_v26 = vmul.f32 %v19138_v32, %v19138_v32 }
0x212a   : > { %13877 = vadd.xlane.f32.xlu1 %v13876_v52  ;;  %v13957_v52 = vld [vmem:[%s16875_s27] sm:$0xff]  ;;  %s14118_s27 = scalar_lea.sflag [#allocation4], %s16869_s26 }
0x212b   : > { %v13873_v17 = vsel %vm698_vm0, %v13865_v26, 0.0  ;;  %v14033_v26 = vld [vmem:[%s19250_s15 + $0x8] sm:$0xff] }
0x212c   : > { %13874 = vadd.xlane.f32.xlu0 %v13873_v17  ;;  %v14032_v17 = vld [vmem:[%s19250_s15] sm:$0xff] }
0x21a7   : > { %v13896_v38 = vpop.xlane.xlu1 %13895 }
0x21a8   : > { %v13904_v36 = vmul.f32 0.03125, %v13896_v38 }
0x21a9   : > { %v13893_v48 = vpop.xlane.xlu0 %13892 }
0x21aa   : > { %v13912_v31 = vadd.f32 1e-05, %v13904_v36  ;;  %v13903_v18 = vmul.f32 0.03125, %v13893_v48 }
0x21ab   : > { %v13890_v34 = vpop.xlane.xlu1 %13889 }
0x21ac   : > { %16372 = vrsqrt.f32 %v13912_v31  ;;  %v13911_v53 = vadd.f32 1e-05, %v13903_v18  ;;  %v13902_v50 = vmul.f32 0.03125, %v13890_v34  ;;  %v14618_v31 = vld [vmem:[%s19317_s28] ss:$0 sm:$0xff] }
0x21ad   : > { %v13887_v51 = vpop.xlane.xlu0 %13886 }
0x21ae   : > { %16374 = vrsqrt.f32 %v13911_v53  ;;  %v13910_v11 = vadd.f32 1e-05, %v13902_v50  ;;  %v13901_v60 = vmul.f32 0.03125, %v13887_v51 }
0x21af   : > { %v13884_v3 = vpop.xlane.xlu1 %13883 }
0x21b0   : > { %16376 = vrsqrt.f32 %v13910_v11  ;;  %v13909_v49 = vadd.f32 1e-05, %v13901_v60  ;;  %v13900_v39 = vmul.f32 0.03125, %v13884_v3 }
0x21b1   : > { %v13881_v13 = vpop.xlane.xlu0 %13880 }
0x21b2   : > { %16378 = vrsqrt.f32 %v13909_v49  ;;  %v13908_v5 = vadd.f32 1e-05, %v13900_v39  ;;  %v13899_v47 = vmul.f32 0.03125, %v13881_v13 }
0x21b3   : > { %v13878_v24 = vpop.xlane.xlu1 %13877 }
0x21b4   : > { %16380 = vrsqrt.f32 %v13908_v5  ;;  %v13907_v30 = vadd.f32 1e-05, %v13899_v47  ;;  %v13898_v63 = vmul.f32 0.03125, %v13878_v24 }
0x21b5   : > { %v13875_v45 = vpop.xlane.xlu0 %13874 }
0x21b6   : > { %16382 = vrsqrt.f32 %v13907_v30  ;;  %v13906_v62 = vadd.f32 1e-05, %v13898_v63  ;;  %v13897_v1 = vmul.f32 0.03125, %v13875_v45 }
0x21b8   : > { %16384 = vrsqrt.f32 %v13906_v62  ;;  %v13905_v44 = vadd.f32 1e-05, %v13897_v1 }
0x21b9   : > { %v16373_v0 = vpop.eup %16372 }
0x21ba   : > { %16386 = vrsqrt.f32 %v13905_v44  ;;  %v13928_v28 = vmul.f32 %v16373_v0, %v19107_v19 }
0x21bb   : > { %v16375_v27 = vpop.eup %16374 }
0x21bc   : > { %v13942_v46 = vmul.f32 %v14615_v59, %v13928_v28  ;;  %v13927_v6 = vmul.f32 %v16375_v27, %v19109_v20 }
0x21bd   : > { %v16377_v14 = vpop.eup %16376 }
0x21be   : > { %v13956_v29 = vadd.f32 %v14616_v41, %v13942_v46  ;;  %v13941_v55 = vmul.f32 %v14615_v59, %v13927_v6  ;;  %v13926_v25 = vmul.f32 %v16377_v14, %v19113_v12 }
0x21bf   : > { %v16379_v15 = vpop.eup %16378 }
0x21c0   : > { %15935 = vmatpush3.msra.mxu1 %v13956_v29  ;;  %v13955_v22 = vadd.f32 %v14616_v41, %v13941_v55  ;;  %v13940_v10 = vmul.f32 %v14615_v59, %v13926_v25  ;;  %v13925_v9 = vmul.f32 %v16379_v15, %v19118_v7 }
0x21c1   : > { %v16381_v19 = vpop.eup %16380  ;;  %15936 = vmatprep.subr.mxu1 %v19312_v8 }
0x21c2   : > { %15937 = vmatpush3.msra.mxu1 %v13955_v22  ;;  %v13954_v61 = vadd.f32 %v14616_v41, %v13940_v10  ;;  %v13939_v57 = vmul.f32 %v14615_v59, %v13925_v9  ;;  %v13924_v42 = vmul.f32 %v16381_v19, %v19123_v23 }
0x21c3   : > { %v16383_v20 = vpop.eup %16382  ;;  %15938 = vmatprep.subr.mxu1 %v19312_v8 }
0x21c4   : > { %15939 = vmatpush3.msra.mxu1 %v13954_v61  ;;  %v13953_v4 = vadd.f32 %v14616_v41, %v13939_v57  ;;  %v13938_v12 = vmul.f32 %v14615_v59, %v13924_v42  ;;  %v13923_v16 = vmul.f32 %v16383_v20, %v19128_v21 }
0x21c5   : > { %v16385_v43 = vpop.eup %16384  ;;  %15940 = vmatprep.subr.mxu1 %v19312_v8 }
0x21c6   : > { %15941 = vmatpush3.msra.mxu1 %v13953_v4  ;;  %v13952_v7 = vadd.f32 %v14616_v41, %v13938_v12  ;;  %v13937_v54 = vmul.f32 %v14615_v59, %v13923_v16  ;;  %v13922_v37 = vmul.f32 %v16385_v43, %v19133_v56  ;;  %v14035_v56 = vld [vmem:[%s19250_s15 + $0x18] sm:$0xff] }
0x21c7   : > { %v16387_v58 = vpop.eup %16386  ;;  %15942 = vmatprep.subr.mxu1 %v19312_v8 }
0x21c8   : > { %15943 = vmatpush3.msra.mxu1 %v13952_v7  ;;  %v13951_v23 = vadd.f32 %v14616_v41, %v13937_v54  ;;  %v13936_v33 = vmul.f32 %v14615_v59, %v13922_v37  ;;  %v13921_v2 = vmul.f32 %v16387_v58, %v19138_v32  ;;  %v14034_v32 = vld [vmem:[%s19250_s15 + $0x10] sm:$0xff] }
0x21c9   : > { %15944 = vmatprep.subr.mxu1 %v19312_v8 }
0x21ca   : > { %15945 = vmatpush3.msra.mxu1 %v13951_v23  ;;  %v13950_v21 = vadd.f32 %v14616_v41, %v13936_v33  ;;  %v13935_v35 = vmul.f32 %v14615_v59, %v13921_v2 }
0x21cb   : > { %15946 = vmatprep.subr.mxu1 %v19312_v8 }
0x21cc   : > { %15947 = vmatpush3.msra.mxu1 %v13950_v21  ;;  %v13949_v40 = vadd.f32 %v14616_v41, %v13935_v35 }
0x21cd   : > { %15948 = vmatprep.subr.mxu1 %v19312_v8 }
0x21ce   : > { %15949 = vmatpush3.msra.mxu1 %v13949_v40 }
0x21cf   : > { %15951 = vmatmul.mubr.msk.f32.vlgmr.msra.gmra.mxu1 %vm7070_vm3, %v13957_v52  ;;  %15953 = vmatprep.subr.mxu1 %v19312_v8 }
0x21d0   : > { %15954 = vmatpush3.msra.mxu1 %v14035_v56  ;;  %15961 = vmatprep.mubr.msk.f32.mxu1 %vm16612_vm1, %v19312_v8 }
0x21d1   : > { %15955 = vmatprep.subr.mxu1 %v19312_v8 }
0x21d2   : > { %15956 = vmatpush3.msra.mxu1 %v14034_v32 }
0x21d3   : > { %15957 = vmatprep.subr.mxu1 %v19312_v8 }
0x21d4   : > { %15958 = vmatpush3.msra.mxu1 %v14033_v26 }
0x21d5   : > { %15959 = vmatprep.subr.mxu1 %v19312_v8 }
0x21d6   : > { %15960 = vmatpush3.msra.mxu1 %v14032_v17 }
0x228f   : > { %v14027_v38 = vpop.f32.mrf.mxu1 }
0x2290   : > { %v14031_v36 = vmax.f32 %v14027_v38, 0.0 }
0x2291   : > { %v15952_v48 = vpop.f32.mrf.mxu1 }
0x2292   : > { %15962 = vmatmul.mubr.msk.f32.vlgmr.msra.gmra.mxu1 %vm698_vm0, %v14031_v36 }
0x2352   : > { %v14112_v18 = vpop.f32.mrf.mxu1 }
0x2353   : > { %v14113_v34 = vadd.f32 %v14618_v31, %v14112_v18 }
0x2354   : > { %v15963_v8 = vpop.f32.mrf.mxu1 }
0x2355   : > { %14116 = vst [vmem:[%s651_s6] sm:$0xff] %v14113_v34 }
0x2356   : > { %16541 = shalt.err (!%p16538_p13)
}
0x2357   : > { %s16542_s9 = scalar_lea.hbm %s19198_s5, 128  ;;  %s16546_s28 = scalar_lea.hbm %s19319_s7, 256 }
0x2358   : > { %p16543_p1 = scmp.ne.s32.totalorder %s19198_s5, %s16542_s9  ;;  %p16547_p6 = scmp.lt.s32.totalorder %s19198_s5, %s19319_s7 }
0x2359   : > { %p16548_p2 = scmp.lt.s32.totalorder %s16546_s28, %s16542_s9 }
0x235a   : > { %p16544_p3 = pnand %p16543_p1, %p19320_p10 }
0x235b   : > { %p16549_p8 = por %p16548_p2, %p16547_p6 }
0x235c   : > { %p16545_p4 = pneg %p16544_p3 }
0x235e   : > { %p16550_p7 = pnand %p16549_p8, %p16545_p4 }
0x2360   : > { %16553 = shalt.err (!%p16550_p7)
}
0x2361   : > { %15982 = dma.vmem_to_hbm [thread:$0]  (%p19320_p10), %s14132_s19, 128, %s19198_s5, %s14118_s27  }
0x2362 PF: > { %s19321_s6 = sld [smem:[#allocation17_spill]]  ;;  %s14143_s29 = sand.u32 1, %s16588_s24  }
0x2363   : > { %p19322_p0 = scmp.ne.s32.totalorder %s19299_s16, 0  ;;  %s14144_s22 = scalar_lea.sflag [#allocation4], %s14143_s29 }
0x2368   : > { %p19323_p12 = scmp.ge.s32.totalorder %s19321_s6, 2 }
0x236a   : > { %p16002_p5 = pnand %p19323_p12, %p19322_p0 }
0x236c   : > { %p16003_p9 = pneg %p16002_p5 }
0x236e   : > { %16583 = dma.done.wait (%p16003_p9), %s14144_s22, 128  }
0x236f   : > { %16585 = vsyncadd (%p16003_p9), %s14144_s22, 4294967168  ;;  %s19324_s27 = sld [smem:[#allocation18_spill]]  ;;  %s19327_s24 = smov %s16592_s25 }
0x2370   : > { %s19325_s21 = sld [smem:[#allocation16_spill]] }
0x2371   : > { %s19326_s26 = sld [smem:[#allocation19_spill]] }
0x2375   : > { %p32_p11 = scmp.ge.s32.totalorder %s19324_s27, 4  }
0x2376   : > { %s19328_s25 = smov %s19325_s21 }
0x2377   :  { %34 = sbr.rel (!%p32_p11) target bundleno = 16 (0x10), region = 167 }
0x237c   :  { %14149 = vsyncpa [#allocation3], 1 }
0x237d   :  { %14151 = vsyncpa [#allocation3 + $0x1], 1 }
0x237e   :  { %14152 = vsyncpa [#allocation6], 1 }
0x237f   :  { %14153 = vsyncpa [#allocation9], 1 }
0x2380   :  { %14154 = vsyncpa [#allocation4], 1 }
0x2381   :  { %14156 = vsyncpa [#allocation4 + $0x1], 1 }

</bundles_post_ra>
